<compile_context>
chip_gen: v6e
topology: v6e:2x2x1
jax: 0.10.0
libtpu: 0.0.40
codegen_flags: <defaults>
</compile_context>

<pallas_src>
import functools

import numpy as np
import jax
import jax.numpy as jnp
from jax.experimental import pallas as pl
from jax.experimental.pallas import tpu as pltpu

_NUM_IDX = 17     # packed index rows (7 entity + 5 uConcept + 5 bConcept)
_NUM_ENT = 7
_NUM_UC = 5
_NUM_BC = 5
_NUM_TERMS = 22   # 13 squared + 9 abs reduction terms
_OUT_ROWS = 16    # 14 used rows (loss12 split into rows 12+13), 2 padding


def _round_up(x, m):
    return ((x + m - 1) // m) * m


def _reason_e_kernel(dp, idx_ref, ent_ref, uc_ref, bc_ref, sel_ref,
                     margin_ref, out_ref):
    """One batch tile in feature-major layout (batch in lanes, D in sublanes).

    idx_ref    : (17, T) int32    packed index rows for this tile
    ent_ref    : (Dp, Ep) f32     entity table, transposed (lanes = rows)
    uc_ref     : (Dp, Up) f32     unary-concept table, transposed
    bc_ref     : (2*Dp, Bp) f32   binary-concept table, [H ; T] stacked sublanes
    sel_ref    : (16, 22*Dp) f32  constant reduce+pack selector
    margin_ref : (1,) f32         lossMargin (SMEM scalar)
    out_ref    : (16, T) f32      packed loss rows (see wrapper for mapping)
    """
    T = idx_ref.shape[1]
    idx = idx_ref[...]              # (17, T) int32 — single load, reused
    ent_t = ent_ref[...]            # (Dp, Ep)
    uc_t = uc_ref[...]              # (Dp, Up)
    bc_t = bc_ref[...]              # (2Dp, Bp)
    sel = sel_ref[...]              # (16, 22*Dp)
    margin = margin_ref[0]

    one = jnp.float32(1.0)
    zero = jnp.float32(0.0)

    # HIGHEST keeps the f32 table values (essentially) exact through the MXU;
    # the MXU is far from saturated here so the multipass cost is hidden.
    mxu = functools.partial(jnp.dot, preferred_element_type=jnp.float32,
                            precision=jax.lax.Precision.HIGHEST)

    def batched_gather(table_t, first_row, count):
        """table_t[:, idx[r]] for r in [first_row, first_row+count) via ONE
        one-hot matmul (rows, count*T).  NOTE: out-of-range indices silently
        gather zeros (unlike torch.nn.Embedding, which would raise)."""
        rows = table_t.shape[1]
        row_iota = jax.lax.broadcasted_iota(jnp.int32, (rows, T), 0)  # hoisted
        onehots = jnp.concatenate(
            [(idx[r:r + 1, :] == row_iota).astype(jnp.float32)
             for r in range(first_row, first_row + count)], axis=1)
        return mxu(table_t, onehots)          # (table sublanes, count*T)

    ent_g = batched_gather(ent_t, 0, _NUM_ENT)                  # (Dp, 7T)
    uc_g = batched_gather(uc_t, _NUM_ENT, _NUM_UC)              # (Dp, 5T)
    bc_g = batched_gather(bc_t, _NUM_ENT + _NUM_UC, _NUM_BC)    # (2Dp, 5T)

    eb = lambda k: ent_g[:, k * T:(k + 1) * T]
    ub = lambda k: uc_g[:, k * T:(k + 1) * T]
    hb = lambda k: bc_g[:dp, k * T:(k + 1) * T]
    tb = lambda k: bc_g[dp:, k * T:(k + 1) * T]

    aUEE, nAUEE, aBHEE, aBTEE, nABHEE, nABTEE, uniqEE = (eb(k) for k in range(7))
    aUCE, nAUCE, tUCCE, tUPCE, uniqUCE = (ub(k) for k in range(5))
    aBCHE, nABCHE, tBCCHE, tBPCHE, uniqBCHE = (hb(k) for k in range(5))
    aBCTE, nABCTE, tBCCTE, tBPCTE, uniqBCTE = (tb(k) for k in range(5))

    sq = lambda x: x * x
    # 22 per-feature reduction terms, stacked along sublanes; a single MXU
    # matmul against the constant selector then performs every sum-over-D and
    # emits the packed (16, T) pre-activation block directly (reduce + pack).
    terms = jnp.concatenate([
        sq((one - aUCE) * aUEE),          # 0  -> loss0
        sq((one - aBCHE) * aBHEE),        # 1  -> loss1
        sq((one - aBCTE) * aBTEE),        # 2  -> loss1
        sq((one - nAUCE) * nAUEE),        # 3  -> loss2 (margin hinge)
        sq((one - nABCHE) * nABHEE),      # 4  -> loss3 (margin hinge)
        sq((one - nABCTE) * nABTEE),      # 5  -> loss3
        sq(tUCCE * (one - tUPCE)),        # 6  -> loss4
        sq(tBCCHE * (one - tBPCHE)),      # 7  -> loss5
        sq(tBCCTE * (one - tBPCTE)),      # 8  -> loss5
        sq(uniqEE),                       # 9  -> loss8 ((x-1)^2)
        sq(uniqUCE * (one - uniqUCE)),    # 10 -> loss9
        sq(uniqBCHE * (one - uniqBCHE)),  # 11 -> loss10
        sq(uniqBCTE * (one - uniqBCTE)),  # 12 -> loss10
        jnp.abs(tUCCE),                   # 13 -> loss6 (+)
        jnp.abs(tUPCE),                   # 14 -> loss6 (-)
        jnp.abs(tBCCHE),                  # 15 -> loss7 (+)
        jnp.abs(tBCCTE),                  # 16 -> loss7 (+)
        jnp.abs(tBPCHE),                  # 17 -> loss7 (-)
        jnp.abs(tBPCTE),                  # 18 -> loss7 (-)
        jnp.abs(uniqUCE),                 # 19 -> loss11
        jnp.abs(uniqBCHE),                # 20 -> loss12 (H half)
        jnp.abs(uniqBCTE),                # 21 -> loss12 (T half)
    ], axis=0)                            # (22*Dp, T)

    pre = mxu(sel, terms)                 # (16, T)

    # Nonlinear post-ops, applied with a tiny masked epilogue on (16, T).
    row = jax.lax.broadcasted_iota(jnp.int32, (_OUT_ROWS, T), 0)
    out = pre
    out = jnp.where((row == 2) | (row == 3),
                    jnp.maximum(margin - pre, zero), out)        # margin hinges
    out = jnp.where((row == 6) | (row == 7),
                    jnp.maximum(pre + one, zero), out)           # count hinges
    out = jnp.where(row == 8, (pre - one) * (pre - one), out)    # uniqENormL
    out = jnp.where((row >= 11) & (row <= 13),
                    jnp.maximum(one - pre, zero), out)           # basis-count hinges
    out_ref[...] = out


class ReasonEModelPallas:
    """JAX/Pallas port of ReasonEModel. Embedding tables use deterministic
    xavier-uniform init + row L2 normalization, mirroring the PyTorch __init__."""

    def __init__(self, entityCount, uConceptCount, bConceptCount, embedDim,
                 key=jax.random.PRNGKey(0)):
        self.embedDim = embedDim
        self.entityCount = entityCount
        self.uConceptCount = uConceptCount
        self.bConceptCount = bConceptCount
        self.baseMat = jnp.eye(embedDim, dtype=jnp.float32)

        k1, k2, k3, k4 = jax.random.split(key, 4)
        self.entityEmbed = self._init_table(k1, entityCount, embedDim)
        self.uConceptEmbed = self._init_table(k2, uConceptCount, embedDim)
        self.bConceptHEmbed = self._init_table(k3, bConceptCount, embedDim)
        self.bConceptTEmbed = self._init_table(k4, bConceptCount, embedDim)

        # Kernel-side layout: transposed (feature-major / lane-dense) tables,
        # feature dim padded to a multiple of 8 sublanes, row count padded to
        # a multiple of 8 lanes.  The binary-concept H/T tables are stacked
        # along the feature (sublane) axis so one one-hot matmul gathers both.
        self._dp = _round_up(embedDim, 8)
        self._entTabT = self._to_kernel_layout(self.entityEmbed)
        self._ucTabT = self._to_kernel_layout(self.uConceptEmbed)
        self._bcTabT = jnp.concatenate(
            [self._to_kernel_layout(self.bConceptHEmbed),
             self._to_kernel_layout(self.bConceptTEmbed)], axis=0)
        self._selMat = jnp.asarray(self._build_selector(self._dp))

    @staticmethod
    def _init_table(key, rows, cols):
        bound = jnp.sqrt(6.0 / (rows + cols)).astype(jnp.float32)
        w = jax.random.uniform(key, (rows, cols), jnp.float32, -bound, bound)
        norm = jnp.sqrt(jnp.sum(w * w, axis=1, keepdims=True))
        return w / jnp.maximum(norm, 1e-12)   # F.normalize(p=2, dim=1)

    def _to_kernel_layout(self, tab):
        """(rows, D) -> transposed, padded (Dp, rows8).  Zero-padding the
        feature dim is loss-preserving (padded features contribute 0 to every
        squared / abs reduction term)."""
        rows, d = tab.shape
        return jnp.pad(tab.T, ((0, self._dp - d),
                               (0, _round_up(rows, 8) - rows)))

    @staticmethod
    def _build_selector(dp):
        """(16, 22*dp) +/-1 selector: row j sums the Dp-wide term blocks that
        feed packed-output row j (term order matches the kernel comments)."""
        sel = np.zeros((_OUT_ROWS, _NUM_TERMS * dp), np.float32)

        def put(row, term, val=1.0):
            sel[row, term * dp:(term + 1) * dp] = val

        put(0, 0)                                    # uE2CMemberL
        put(1, 1); put(1, 2)                         # bE2CMemberL
        put(2, 3)                                    # uE2CDiscMemberL (pre)
        put(3, 4); put(3, 5)                         # bE2CDiscMemberL (pre)
        put(4, 6)                                    # uC2CHierBasisAlignL
        put(5, 7); put(5, 8)                         # bC2CHierBasisAlignL
        put(6, 13); put(6, 14, -1.0)                 # uC2CHierBasisCountL (pre)
        put(7, 15); put(7, 16); put(7, 17, -1.0); put(7, 18, -1.0)  # bC2C count
        put(8, 9)                                    # uniqENormL (pre)
        put(9, 10)                                   # uniqUCBasisAlignL
        put(10, 11); put(10, 12)                     # uniqBCBasisAlignL
        put(11, 19)                                  # uniqUCBasisCountL (pre)
        put(12, 20)                                  # uniqBCBasisCountL (H, pre)
        put(13, 21)                                  # uniqBCBasisCountL (T, pre)
        return sel

    @staticmethod
    def _pick_tile(np_rows):
        """Largest of {512, 256, 128} dividing np_rows, with >= 2 grid steps
        whenever np_rows >= 256 so the 'parallel' axis shards across both v7x
        TensorCores.  (On v5e/v6e, 128 MiB VMEM, a 1024 tile would also be
        fine once N is large; kept <= 512 to stay inside v7x's 64 MiB.)"""
        min_steps = 2 if np_rows >= 256 else 1
        for cand in (512, 256):
            if np_rows % cand == 0 and np_rows // cand >= min_steps:
                return cand
        return 128

    def forward(self, aUE, aUC, nAUE, nAUC, aBHE, aBTE, aBC, nABHE, nABTE,
                nABC, tUCC, tUPC, tBCC, tBPC, uniqE, uniqUC, uniqBC,
                rdHUC, rdTUC, rdBC, nRdHUC, nRdTUC, lossMargin, device=None):
        del rdHUC, rdTUC, rdBC, nRdHUC, nRdTUC, device  # unused (as in PyTorch)

        # Packed index rows, grouped per table (order must match the kernel).
        idx_list = [aUE, nAUE, aBHE, aBTE, nABHE, nABTE, uniqE,     # entity
                    aUC, nAUC, tUCC, tUPC, uniqUC,                  # uConcept
                    aBC, nABC, tBCC, tBPC, uniqBC]                  # bConcept
        N = int(idx_list[0].shape[0])
        assert all(v.shape == (N,) for v in idx_list), \
            "fused kernel assumes one common batch length for all index sets"
        idx = jnp.stack([v.astype(jnp.int32) for v in idx_list], axis=0)  # (17,N)

        Np = _round_up(max(N, 1), 128)
        tile = self._pick_tile(Np)
        if Np != N:
            idx = jnp.pad(idx, ((0, 0), (0, Np - N)))   # padded cols gather row 0

        margin = jnp.asarray(lossMargin, jnp.float32).reshape(1)  # runtime scalar

        kernel = functools.partial(_reason_e_kernel, self._dp)

        out = pl.pallas_call(
            kernel,
            out_shape=jax.ShapeDtypeStruct((_OUT_ROWS, Np), jnp.float32),
            grid_spec=pltpu.PrefetchScalarGridSpec(
                num_scalar_prefetch=0,
                grid=(Np // tile,),
                in_specs=[
                    # packed index rows, tiled over the batch (lane axis)
                    pl.BlockSpec((_NUM_IDX, tile), lambda i: (0, i)),
                    # transposed tables + selector: full-array, VMEM-resident
                    pl.BlockSpec(self._entTabT.shape, lambda i: (0, 0)),
                    pl.BlockSpec(self._ucTabT.shape, lambda i: (0, 0)),
                    pl.BlockSpec(self._bcTabT.shape, lambda i: (0, 0)),
                    pl.BlockSpec(self._selMat.shape, lambda i: (0, 0)),
                    # lossMargin scalar lives in SMEM
                    pl.BlockSpec(memory_space=pltpu.MemorySpace.SMEM),
                ],
                out_specs=pl.BlockSpec((_OUT_ROWS, tile), lambda i: (0, i)),
            ),
            compiler_params=pltpu.CompilerParams(
                dimension_semantics=("parallel",),      # rows independent
                vmem_limit_bytes=64 * 1024 * 1024,      # <= physical on all gens
            ),
        )(idx, self._entTabT, self._ucTabT, self._bcTabT, self._selMat, margin)

        out = out[:, :N]                       # drop batch (lane) padding
        losses = [out[j] for j in range(12)]   # rows 0..11 == losses 0..11
        losses.append(out[12] + out[13])       # uniqBCBasisCountL = H + T hinges
        return tuple(losses)


def _reference_forward(model, aUE, aUC, nAUE, nAUC, aBHE, aBTE, aBC, nABHE,
                       nABTE, nABC, tUCC, tUPC, tBCC, tBPC, uniqE, uniqUC,
                       uniqBC, lossMargin):
    """Pure-JAX mirror of the PyTorch forward, for correctness checking."""
    take = lambda tbl, i: jnp.take(tbl, i, axis=0)
    one, zero = jnp.float32(1.0), jnp.float32(0.0)
    margin = jnp.float32(lossMargin)
    sq = lambda x: jnp.sum(x * x, axis=1)
    ab = lambda x: jnp.sum(jnp.abs(x), axis=1)

    aUEE, aUCE = take(model.entityEmbed, aUE), take(model.uConceptEmbed, aUC)
    nAUEE, nAUCE = take(model.entityEmbed, nAUE), take(model.uConceptEmbed, nAUC)
    aBHEE, aBTEE = take(model.entityEmbed, aBHE), take(model.entityEmbed, aBTE)
    aBCHE, aBCTE = take(model.bConceptHEmbed, aBC), take(model.bConceptTEmbed, aBC)
    nABHEE, nABTEE = take(model.entityEmbed, nABHE), take(model.entityEmbed, nABTE)
    nABCHE, nABCTE = take(model.bConceptHEmbed, nABC), take(model.bConceptTEmbed, nABC)
    tUCCE, tUPCE = take(model.uConceptEmbed, tUCC), take(model.uConceptEmbed, tUPC)
    tBCCHE, tBCCTE = take(model.bConceptHEmbed, tBCC), take(model.bConceptTEmbed, tBCC)
    tBPCHE, tBPCTE = take(model.bConceptHEmbed, tBPC), take(model.bConceptTEmbed, tBPC)
    uniqEE = take(model.entityEmbed, uniqE)
    uniqUCE = take(model.uConceptEmbed, uniqUC)
    uniqBCHE, uniqBCTE = take(model.bConceptHEmbed, uniqBC), take(model.bConceptTEmbed, uniqBC)

    uE2CMemberL = sq((one - aUCE) * aUEE)
    bE2CMemberL = sq((one - aBCHE) * aBHEE) + sq((one - aBCTE) * aBTEE)
    uE2CDiscMemberL = jnp.maximum(margin - sq((one - nAUCE) * nAUEE), zero)
    bE2CDiscMemberL = jnp.maximum(
        margin - (sq((one - nABCHE) * nABHEE) + sq((one - nABCTE) * nABTEE)), zero)
    uC2CHierBasisAlignL = sq(tUCCE * (one - tUPCE))
    bC2CHierBasisAlignL = sq(tBCCHE * (one - tBPCHE)) + sq(tBCCTE * (one - tBPCTE))
    uC2CHierBasisCountL = jnp.maximum(ab(tUCCE) + one - ab(tUPCE), zero)
    bC2CHierBasisCountL = jnp.maximum(
        ab(tBCCHE) + ab(tBCCTE) + one - ab(tBPCHE) - ab(tBPCTE), zero)
    tmpE = sq(uniqEE) - one
    uniqENormL = tmpE * tmpE
    uniqUCBasisAlignL = sq(uniqUCE * (one - uniqUCE))
    uniqBCBasisAlignL = sq(uniqBCHE * (one - uniqBCHE)) + sq(uniqBCTE * (one - uniqBCTE))
    uniqUCBasisCountL = jnp.maximum(one - ab(uniqUCE), zero)
    uniqBCBasisCountL = (jnp.maximum(one - ab(uniqBCHE), zero)
                         + jnp.maximum(one - ab(uniqBCTE), zero))
    return (uE2CMemberL, bE2CMemberL, uE2CDiscMemberL, bE2CDiscMemberL,
            uC2CHierBasisAlignL, bC2CHierBasisAlignL,
            uC2CHierBasisCountL, bC2CHierBasisCountL,
            uniqENormL, uniqUCBasisAlignL, uniqBCBasisAlignL,
            uniqUCBasisCountL, uniqBCBasisCountL)


if __name__ == "__main__":
    entityCount, uConceptCount, bConceptCount, embedDim = 20, 6, 5, 32
    N = 8  # common batch length for every index set
    lossMargin = 1.0

    model = ReasonEModelPallas(entityCount, uConceptCount, bConceptCount,
                               embedDim, key=jax.random.PRNGKey(0))

    key = jax.random.PRNGKey(0)
    ks = jax.random.split(key, 16)
    ridx = lambda k, hi: jax.random.randint(k, (N,), 0, hi, dtype=jnp.int32)

    aUE   = ridx(ks[0], entityCount);   aUC   = ridx(ks[1], uConceptCount)
    nAUE  = ridx(ks[2], entityCount);   nAUC  = ridx(ks[3], uConceptCount)
    aBHE  = ridx(ks[4], entityCount);   aBTE  = ridx(ks[5], entityCount)
    aBC   = ridx(ks[6], bConceptCount)
    nABHE = ridx(ks[7], entityCount);   nABTE = ridx(ks[8], entityCount)
    nABC  = ridx(ks[9], bConceptCount)
    tUCC  = ridx(ks[10], uConceptCount); tUPC = ridx(ks[11], uConceptCount)
    tBCC  = ridx(ks[12], bConceptCount); tBPC = ridx(ks[13], bConceptCount)
    uniqE  = jnp.arange(N, dtype=jnp.int32) % entityCount
    uniqUC = jnp.arange(N, dtype=jnp.int32) % uConceptCount
    uniqBC = jnp.arange(N, dtype=jnp.int32) % bConceptCount
    # rd* / nRd* args are unused by the forward pass (as in the PyTorch code)
    rdHUC = rdTUC = rdBC = nRdHUC = nRdTUC = jnp.zeros((N,), jnp.int32)

    outs = model.forward(aUE, aUC, nAUE, nAUC, aBHE, aBTE, aBC, nABHE, nABTE,
                         nABC, tUCC, tUPC, tBCC, tBPC, uniqE, uniqUC, uniqBC,
                         rdHUC, rdTUC, rdBC, nRdHUC, nRdTUC, lossMargin,
                         device=None)
    outs = jax.block_until_ready(outs)
    assert len(outs) == 13 and all(o.shape == (N,) for o in outs)

    refs = _reference_forward(model, aUE, aUC, nAUE, nAUC, aBHE, aBTE, aBC,
                              nABHE, nABTE, nABC, tUCC, tUPC, tBCC, tBPC,
                              uniqE, uniqUC, uniqBC, lossMargin)
    refs = jax.block_until_ready(refs)
    for o, r in zip(outs, refs):
        assert jnp.allclose(o, r, atol=2e-2, rtol=2e-2), (o, r)

    print("KERNEL_OK")
</pallas_src>

<mosaic_0001>
module attributes {stable_mosaic.version = 11 : i64} {
  func.func @_reason_e_kernel(%arg0: i32, %arg1: memref<17x128xi32, #tpu.memory_space<vmem>>, %arg2: memref<32x24xf32, #tpu.memory_space<vmem>>, %arg3: memref<32x8xf32, #tpu.memory_space<vmem>>, %arg4: memref<64x8xf32, #tpu.memory_space<vmem>>, %arg5: memref<16x704xf32, #tpu.memory_space<vmem>>, %arg6: memref<1xf32, #tpu.memory_space<smem>>, %arg7: memref<16x128xf32, #tpu.memory_space<vmem>>) attributes {dimension_semantics = [#tpu.dimension_semantics<parallel>], iteration_bounds = array<i64: 1>, scalar_prefetch = 0 : i64, scratch_operands = 0 : i64, tpu.core_type = #tpu.core_type<tc>, window_params = [{transform_indices = @transform_0, window_bounds = array<i64: 17, 128>}, {pipeline_mode = #tpu.pipeline_mode<synchronous>, transform_indices = @transform_1, window_bounds = array<i64: 32, 24>}, {pipeline_mode = #tpu.pipeline_mode<synchronous>, transform_indices = @transform_2, window_bounds = array<i64: 32, 8>}, {pipeline_mode = #tpu.pipeline_mode<synchronous>, transform_indices = @transform_3, window_bounds = array<i64: 64, 8>}, {pipeline_mode = #tpu.pipeline_mode<synchronous>, transform_indices = @transform_4, window_bounds = array<i64: 16, 704>}, {transform_indices = @transform_5, window_bounds = array<i64: 1>}, {transform_indices = @transform_6, window_bounds = array<i64: 16, 128>}]} {
    %c0 = arith.constant 0 : index
    %c0_0 = arith.constant 0 : index
    %0 = vector.load %arg1[%c0, %c0_0] : memref<17x128xi32, #tpu.memory_space<vmem>>, vector<17x128xi32>
    %c0_1 = arith.constant 0 : index
    %c0_2 = arith.constant 0 : index
    %1 = vector.load %arg2[%c0_1, %c0_2] : memref<32x24xf32, #tpu.memory_space<vmem>>, vector<32x24xf32>
    %c0_3 = arith.constant 0 : index
    %c0_4 = arith.constant 0 : index
    %2 = vector.load %arg3[%c0_3, %c0_4] : memref<32x8xf32, #tpu.memory_space<vmem>>, vector<32x8xf32>
    %c0_5 = arith.constant 0 : index
    %c0_6 = arith.constant 0 : index
    %3 = vector.load %arg4[%c0_5, %c0_6] : memref<64x8xf32, #tpu.memory_space<vmem>>, vector<64x8xf32>
    %c0_7 = arith.constant 0 : index
    %c0_8 = arith.constant 0 : index
    %4 = vector.load %arg5[%c0_7, %c0_8] : memref<16x704xf32, #tpu.memory_space<vmem>>, vector<16x704xf32>
    %c0_9 = arith.constant 0 : index
    %5 = memref.load %arg6[%c0_9] : memref<1xf32, #tpu.memory_space<smem>>
    %6 = tpu.iota {dimensions = array<i32: 0>} : vector<24x128xi32>
    %7 = vector.extract_strided_slice %0 {offsets = [0, 0], sizes = [1, 128], strides = [1, 1]} : vector<17x128xi32> to vector<1x128xi32>
    %8 = vector.broadcast %7 : vector<1x128xi32> to vector<24x128xi32>
    %9 = arith.cmpi eq, %8, %6 : vector<24x128xi32>
    %10 = arith.extui %9 : vector<24x128xi1> to vector<24x128xi32>
    %11 = arith.sitofp %10 : vector<24x128xi32> to vector<24x128xf32>
    %12 = vector.extract_strided_slice %0 {offsets = [1, 0], sizes = [1, 128], strides = [1, 1]} : vector<17x128xi32> to vector<1x128xi32>
    %13 = vector.broadcast %12 : vector<1x128xi32> to vector<24x128xi32>
    %14 = arith.cmpi eq, %13, %6 : vector<24x128xi32>
    %15 = arith.extui %14 : vector<24x128xi1> to vector<24x128xi32>
    %16 = arith.sitofp %15 : vector<24x128xi32> to vector<24x128xf32>
    %17 = vector.extract_strided_slice %0 {offsets = [2, 0], sizes = [1, 128], strides = [1, 1]} : vector<17x128xi32> to vector<1x128xi32>
    %18 = vector.broadcast %17 : vector<1x128xi32> to vector<24x128xi32>
    %19 = arith.cmpi eq, %18, %6 : vector<24x128xi32>
    %20 = arith.extui %19 : vector<24x128xi1> to vector<24x128xi32>
    %21 = arith.sitofp %20 : vector<24x128xi32> to vector<24x128xf32>
    %22 = vector.extract_strided_slice %0 {offsets = [3, 0], sizes = [1, 128], strides = [1, 1]} : vector<17x128xi32> to vector<1x128xi32>
    %23 = vector.broadcast %22 : vector<1x128xi32> to vector<24x128xi32>
    %24 = arith.cmpi eq, %23, %6 : vector<24x128xi32>
    %25 = arith.extui %24 : vector<24x128xi1> to vector<24x128xi32>
    %26 = arith.sitofp %25 : vector<24x128xi32> to vector<24x128xf32>
    %27 = vector.extract_strided_slice %0 {offsets = [4, 0], sizes = [1, 128], strides = [1, 1]} : vector<17x128xi32> to vector<1x128xi32>
    %28 = vector.broadcast %27 : vector<1x128xi32> to vector<24x128xi32>
    %29 = arith.cmpi eq, %28, %6 : vector<24x128xi32>
    %30 = arith.extui %29 : vector<24x128xi1> to vector<24x128xi32>
    %31 = arith.sitofp %30 : vector<24x128xi32> to vector<24x128xf32>
    %32 = vector.extract_strided_slice %0 {offsets = [5, 0], sizes = [1, 128], strides = [1, 1]} : vector<17x128xi32> to vector<1x128xi32>
    %33 = vector.broadcast %32 : vector<1x128xi32> to vector<24x128xi32>
    %34 = arith.cmpi eq, %33, %6 : vector<24x128xi32>
    %35 = arith.extui %34 : vector<24x128xi1> to vector<24x128xi32>
    %36 = arith.sitofp %35 : vector<24x128xi32> to vector<24x128xf32>
    %37 = vector.extract_strided_slice %0 {offsets = [6, 0], sizes = [1, 128], strides = [1, 1]} : vector<17x128xi32> to vector<1x128xi32>
    %38 = vector.broadcast %37 : vector<1x128xi32> to vector<24x128xi32>
    %39 = arith.cmpi eq, %38, %6 : vector<24x128xi32>
    %40 = arith.extui %39 : vector<24x128xi1> to vector<24x128xi32>
    %41 = arith.sitofp %40 : vector<24x128xi32> to vector<24x128xf32>
    %42 = tpu.concatenate %11, %16, %21, %26, %31, %36, %41 in 1 : vector<24x128xf32>, vector<24x128xf32>, vector<24x128xf32>, vector<24x128xf32>, vector<24x128xf32>, vector<24x128xf32>, vector<24x128xf32> -> vector<24x896xf32>
    %cst = arith.constant dense<0.000000e+00> : vector<32x896xf32>
    %43 = tpu.matmul %1, %42, %cst {dimension_numbers = #tpu.dot_dimension_numbers<[1], [0], [0], [1], [0, 0, 1, 1], [], []>, precision = #tpu.contract_precision<fp32>} : vector<32x24xf32>, vector<24x896xf32>, vector<32x896xf32> -> vector<32x896xf32>
    %44 = tpu.iota {dimensions = array<i32: 0>} : vector<8x128xi32>
    %45 = vector.extract_strided_slice %0 {offsets = [7, 0], sizes = [1, 128], strides = [1, 1]} : vector<17x128xi32> to vector<1x128xi32>
    %46 = vector.broadcast %45 : vector<1x128xi32> to vector<8x128xi32>
    %47 = arith.cmpi eq, %46, %44 : vector<8x128xi32>
    %48 = arith.extui %47 : vector<8x128xi1> to vector<8x128xi32>
    %49 = arith.sitofp %48 : vector<8x128xi32> to vector<8x128xf32>
    %50 = vector.extract_strided_slice %0 {offsets = [8, 0], sizes = [1, 128], strides = [1, 1]} : vector<17x128xi32> to vector<1x128xi32>
    %51 = vector.broadcast %50 : vector<1x128xi32> to vector<8x128xi32>
    %52 = arith.cmpi eq, %51, %44 : vector<8x128xi32>
    %53 = arith.extui %52 : vector<8x128xi1> to vector<8x128xi32>
    %54 = arith.sitofp %53 : vector<8x128xi32> to vector<8x128xf32>
    %55 = vector.extract_strided_slice %0 {offsets = [9, 0], sizes = [1, 128], strides = [1, 1]} : vector<17x128xi32> to vector<1x128xi32>
    %56 = vector.broadcast %55 : vector<1x128xi32> to vector<8x128xi32>
    %57 = arith.cmpi eq, %56, %44 : vector<8x128xi32>
    %58 = arith.extui %57 : vector<8x128xi1> to vector<8x128xi32>
    %59 = arith.sitofp %58 : vector<8x128xi32> to vector<8x128xf32>
    %60 = vector.extract_strided_slice %0 {offsets = [10, 0], sizes = [1, 128], strides = [1, 1]} : vector<17x128xi32> to vector<1x128xi32>
    %61 = vector.broadcast %60 : vector<1x128xi32> to vector<8x128xi32>
    %62 = arith.cmpi eq, %61, %44 : vector<8x128xi32>
    %63 = arith.extui %62 : vector<8x128xi1> to vector<8x128xi32>
    %64 = arith.sitofp %63 : vector<8x128xi32> to vector<8x128xf32>
    %65 = vector.extract_strided_slice %0 {offsets = [11, 0], sizes = [1, 128], strides = [1, 1]} : vector<17x128xi32> to vector<1x128xi32>
    %66 = vector.broadcast %65 : vector<1x128xi32> to vector<8x128xi32>
    %67 = arith.cmpi eq, %66, %44 : vector<8x128xi32>
    %68 = arith.extui %67 : vector<8x128xi1> to vector<8x128xi32>
    %69 = arith.sitofp %68 : vector<8x128xi32> to vector<8x128xf32>
    %70 = tpu.concatenate %49, %54, %59, %64, %69 in 1 : vector<8x128xf32>, vector<8x128xf32>, vector<8x128xf32>, vector<8x128xf32>, vector<8x128xf32> -> vector<8x640xf32>
    %cst_10 = arith.constant dense<0.000000e+00> : vector<32x640xf32>
    %71 = tpu.matmul %2, %70, %cst_10 {dimension_numbers = #tpu.dot_dimension_numbers<[1], [0], [0], [1], [0, 0, 1, 1], [], []>, precision = #tpu.contract_precision<fp32>} : vector<32x8xf32>, vector<8x640xf32>, vector<32x640xf32> -> vector<32x640xf32>
    %72 = tpu.iota {dimensions = array<i32: 0>} : vector<8x128xi32>
    %73 = vector.extract_strided_slice %0 {offsets = [12, 0], sizes = [1, 128], strides = [1, 1]} : vector<17x128xi32> to vector<1x128xi32>
    %74 = vector.broadcast %73 : vector<1x128xi32> to vector<8x128xi32>
    %75 = arith.cmpi eq, %74, %72 : vector<8x128xi32>
    %76 = arith.extui %75 : vector<8x128xi1> to vector<8x128xi32>
    %77 = arith.sitofp %76 : vector<8x128xi32> to vector<8x128xf32>
    %78 = vector.extract_strided_slice %0 {offsets = [13, 0], sizes = [1, 128], strides = [1, 1]} : vector<17x128xi32> to vector<1x128xi32>
    %79 = vector.broadcast %78 : vector<1x128xi32> to vector<8x128xi32>
    %80 = arith.cmpi eq, %79, %72 : vector<8x128xi32>
    %81 = arith.extui %80 : vector<8x128xi1> to vector<8x128xi32>
    %82 = arith.sitofp %81 : vector<8x128xi32> to vector<8x128xf32>
    %83 = vector.extract_strided_slice %0 {offsets = [14, 0], sizes = [1, 128], strides = [1, 1]} : vector<17x128xi32> to vector<1x128xi32>
    %84 = vector.broadcast %83 : vector<1x128xi32> to vector<8x128xi32>
    %85 = arith.cmpi eq, %84, %72 : vector<8x128xi32>
    %86 = arith.extui %85 : vector<8x128xi1> to vector<8x128xi32>
    %87 = arith.sitofp %86 : vector<8x128xi32> to vector<8x128xf32>
    %88 = vector.extract_strided_slice %0 {offsets = [15, 0], sizes = [1, 128], strides = [1, 1]} : vector<17x128xi32> to vector<1x128xi32>
    %89 = vector.broadcast %88 : vector<1x128xi32> to vector<8x128xi32>
    %90 = arith.cmpi eq, %89, %72 : vector<8x128xi32>
    %91 = arith.extui %90 : vector<8x128xi1> to vector<8x128xi32>
    %92 = arith.sitofp %91 : vector<8x128xi32> to vector<8x128xf32>
    %93 = vector.extract_strided_slice %0 {offsets = [16, 0], sizes = [1, 128], strides = [1, 1]} : vector<17x128xi32> to vector<1x128xi32>
    %94 = vector.broadcast %93 : vector<1x128xi32> to vector<8x128xi32>
    %95 = arith.cmpi eq, %94, %72 : vector<8x128xi32>
    %96 = arith.extui %95 : vector<8x128xi1> to vector<8x128xi32>
    %97 = arith.sitofp %96 : vector<8x128xi32> to vector<8x128xf32>
    %98 = tpu.concatenate %77, %82, %87, %92, %97 in 1 : vector<8x128xf32>, vector<8x128xf32>, vector<8x128xf32>, vector<8x128xf32>, vector<8x128xf32> -> vector<8x640xf32>
    %cst_11 = arith.constant dense<0.000000e+00> : vector<64x640xf32>
    %99 = tpu.matmul %3, %98, %cst_11 {dimension_numbers = #tpu.dot_dimension_numbers<[1], [0], [0], [1], [0, 0, 1, 1], [], []>, precision = #tpu.contract_precision<fp32>} : vector<64x8xf32>, vector<8x640xf32>, vector<64x640xf32> -> vector<64x640xf32>
    %100 = vector.extract_strided_slice %43 {offsets = [0, 0], sizes = [32, 128], strides = [1, 1]} : vector<32x896xf32> to vector<32x128xf32>
    %101 = vector.extract_strided_slice %43 {offsets = [0, 128], sizes = [32, 128], strides = [1, 1]} : vector<32x896xf32> to vector<32x128xf32>
    %102 = vector.extract_strided_slice %43 {offsets = [0, 256], sizes = [32, 128], strides = [1, 1]} : vector<32x896xf32> to vector<32x128xf32>
    %103 = vector.extract_strided_slice %43 {offsets = [0, 384], sizes = [32, 128], strides = [1, 1]} : vector<32x896xf32> to vector<32x128xf32>
    %104 = vector.extract_strided_slice %43 {offsets = [0, 512], sizes = [32, 128], strides = [1, 1]} : vector<32x896xf32> to vector<32x128xf32>
    %105 = vector.extract_strided_slice %43 {offsets = [0, 640], sizes = [32, 128], strides = [1, 1]} : vector<32x896xf32> to vector<32x128xf32>
    %106 = vector.extract_strided_slice %43 {offsets = [0, 768], sizes = [32, 128], strides = [1, 1]} : vector<32x896xf32> to vector<32x128xf32>
    %107 = vector.extract_strided_slice %71 {offsets = [0, 0], sizes = [32, 128], strides = [1, 1]} : vector<32x640xf32> to vector<32x128xf32>
    %108 = vector.extract_strided_slice %71 {offsets = [0, 128], sizes = [32, 128], strides = [1, 1]} : vector<32x640xf32> to vector<32x128xf32>
    %109 = vector.extract_strided_slice %71 {offsets = [0, 256], sizes = [32, 128], strides = [1, 1]} : vector<32x640xf32> to vector<32x128xf32>
    %110 = vector.extract_strided_slice %71 {offsets = [0, 384], sizes = [32, 128], strides = [1, 1]} : vector<32x640xf32> to vector<32x128xf32>
    %111 = vector.extract_strided_slice %71 {offsets = [0, 512], sizes = [32, 128], strides = [1, 1]} : vector<32x640xf32> to vector<32x128xf32>
    %112 = vector.extract_strided_slice %99 {offsets = [0, 0], sizes = [32, 128], strides = [1, 1]} : vector<64x640xf32> to vector<32x128xf32>
    %113 = vector.extract_strided_slice %99 {offsets = [0, 128], sizes = [32, 128], strides = [1, 1]} : vector<64x640xf32> to vector<32x128xf32>
    %114 = vector.extract_strided_slice %99 {offsets = [0, 256], sizes = [32, 128], strides = [1, 1]} : vector<64x640xf32> to vector<32x128xf32>
    %115 = vector.extract_strided_slice %99 {offsets = [0, 384], sizes = [32, 128], strides = [1, 1]} : vector<64x640xf32> to vector<32x128xf32>
    %116 = vector.extract_strided_slice %99 {offsets = [0, 512], sizes = [32, 128], strides = [1, 1]} : vector<64x640xf32> to vector<32x128xf32>
    %117 = vector.extract_strided_slice %99 {offsets = [32, 0], sizes = [32, 128], strides = [1, 1]} : vector<64x640xf32> to vector<32x128xf32>
    %118 = vector.extract_strided_slice %99 {offsets = [32, 128], sizes = [32, 128], strides = [1, 1]} : vector<64x640xf32> to vector<32x128xf32>
    %119 = vector.extract_strided_slice %99 {offsets = [32, 256], sizes = [32, 128], strides = [1, 1]} : vector<64x640xf32> to vector<32x128xf32>
    %120 = vector.extract_strided_slice %99 {offsets = [32, 384], sizes = [32, 128], strides = [1, 1]} : vector<64x640xf32> to vector<32x128xf32>
    %121 = vector.extract_strided_slice %99 {offsets = [32, 512], sizes = [32, 128], strides = [1, 1]} : vector<64x640xf32> to vector<32x128xf32>
    %cst_12 = arith.constant 1.000000e+00 : f32
    %122 = vector.broadcast %cst_12 : f32 to vector<32x128xf32>
    %123 = arith.subf %122, %107 : vector<32x128xf32>
    %124 = arith.mulf %123, %100 : vector<32x128xf32>
    %125 = arith.mulf %124, %124 : vector<32x128xf32>
    %cst_13 = arith.constant 1.000000e+00 : f32
    %126 = vector.broadcast %cst_13 : f32 to vector<32x128xf32>
    %127 = arith.subf %126, %112 : vector<32x128xf32>
    %128 = arith.mulf %127, %102 : vector<32x128xf32>
    %129 = arith.mulf %128, %128 : vector<32x128xf32>
    %cst_14 = arith.constant 1.000000e+00 : f32
    %130 = vector.broadcast %cst_14 : f32 to vector<32x128xf32>
    %131 = arith.subf %130, %117 : vector<32x128xf32>
    %132 = arith.mulf %131, %103 : vector<32x128xf32>
    %133 = arith.mulf %132, %132 : vector<32x128xf32>
    %cst_15 = arith.constant 1.000000e+00 : f32
    %134 = vector.broadcast %cst_15 : f32 to vector<32x128xf32>
    %135 = arith.subf %134, %108 : vector<32x128xf32>
    %136 = arith.mulf %135, %101 : vector<32x128xf32>
    %137 = arith.mulf %136, %136 : vector<32x128xf32>
    %cst_16 = arith.constant 1.000000e+00 : f32
    %138 = vector.broadcast %cst_16 : f32 to vector<32x128xf32>
    %139 = arith.subf %138, %113 : vector<32x128xf32>
    %140 = arith.mulf %139, %104 : vector<32x128xf32>
    %141 = arith.mulf %140, %140 : vector<32x128xf32>
    %cst_17 = arith.constant 1.000000e+00 : f32
    %142 = vector.broadcast %cst_17 : f32 to vector<32x128xf32>
    %143 = arith.subf %142, %118 : vector<32x128xf32>
    %144 = arith.mulf %143, %105 : vector<32x128xf32>
    %145 = arith.mulf %144, %144 : vector<32x128xf32>
    %cst_18 = arith.constant 1.000000e+00 : f32
    %146 = vector.broadcast %cst_18 : f32 to vector<32x128xf32>
    %147 = arith.subf %146, %110 : vector<32x128xf32>
    %148 = arith.mulf %109, %147 : vector<32x128xf32>
    %149 = arith.mulf %148, %148 : vector<32x128xf32>
    %cst_19 = arith.constant 1.000000e+00 : f32
    %150 = vector.broadcast %cst_19 : f32 to vector<32x128xf32>
    %151 = arith.subf %150, %115 : vector<32x128xf32>
    %152 = arith.mulf %114, %151 : vector<32x128xf32>
    %153 = arith.mulf %152, %152 : vector<32x128xf32>
    %cst_20 = arith.constant 1.000000e+00 : f32
    %154 = vector.broadcast %cst_20 : f32 to vector<32x128xf32>
    %155 = arith.subf %154, %120 : vector<32x128xf32>
    %156 = arith.mulf %119, %155 : vector<32x128xf32>
    %157 = arith.mulf %156, %156 : vector<32x128xf32>
    %158 = arith.mulf %106, %106 : vector<32x128xf32>
    %cst_21 = arith.constant 1.000000e+00 : f32
    %159 = vector.broadcast %cst_21 : f32 to vector<32x128xf32>
    %160 = arith.subf %159, %111 : vector<32x128xf32>
    %161 = arith.mulf %111, %160 : vector<32x128xf32>
    %162 = arith.mulf %161, %161 : vector<32x128xf32>
    %cst_22 = arith.constant 1.000000e+00 : f32
    %163 = vector.broadcast %cst_22 : f32 to vector<32x128xf32>
    %164 = arith.subf %163, %116 : vector<32x128xf32>
    %165 = arith.mulf %116, %164 : vector<32x128xf32>
    %166 = arith.mulf %165, %165 : vector<32x128xf32>
    %cst_23 = arith.constant 1.000000e+00 : f32
    %167 = vector.broadcast %cst_23 : f32 to vector<32x128xf32>
    %168 = arith.subf %167, %121 : vector<32x128xf32>
    %169 = arith.mulf %121, %168 : vector<32x128xf32>
    %170 = arith.mulf %169, %169 : vector<32x128xf32>
    %171 = math.absf %109 : vector<32x128xf32>
    %172 = math.absf %110 : vector<32x128xf32>
    %173 = math.absf %114 : vector<32x128xf32>
    %174 = math.absf %119 : vector<32x128xf32>
    %175 = math.absf %115 : vector<32x128xf32>
    %176 = math.absf %120 : vector<32x128xf32>
    %177 = math.absf %111 : vector<32x128xf32>
    %178 = math.absf %116 : vector<32x128xf32>
    %179 = math.absf %121 : vector<32x128xf32>
    %180 = tpu.concatenate %125, %129, %133, %137, %141, %145, %149, %153, %157, %158, %162, %166, %170, %171, %172, %173 in 0 : vector<32x128xf32>, vector<32x128xf32>, vector<32x128xf32>, vector<32x128xf32>, vector<32x128xf32>, vector<32x128xf32>, vector<32x128xf32>, vector<32x128xf32>, vector<32x128xf32>, vector<32x128xf32>, vector<32x128xf32>, vector<32x128xf32>, vector<32x128xf32>, vector<32x128xf32>, vector<32x128xf32>, vector<32x128xf32> -> vector<512x128xf32>
    %181 = tpu.concatenate %174, %175, %176, %177, %178, %179 in 0 : vector<32x128xf32>, vector<32x128xf32>, vector<32x128xf32>, vector<32x128xf32>, vector<32x128xf32>, vector<32x128xf32> -> vector<192x128xf32>
    %182 = tpu.concatenate %180, %181 in 0 : vector<512x128xf32>, vector<192x128xf32> -> vector<704x128xf32>
    %cst_24 = arith.constant dense<0.000000e+00> : vector<16x128xf32>
    %183 = tpu.matmul %4, %182, %cst_24 {dimension_numbers = #tpu.dot_dimension_numbers<[1], [0], [0], [1], [0, 0, 1, 1], [], []>, precision = #tpu.contract_precision<fp32>} : vector<16x704xf32>, vector<704x128xf32>, vector<16x128xf32> -> vector<16x128xf32>
    %184 = tpu.iota {dimensions = array<i32: 0>} : vector<16x128xi32>
    %c2_i32 = arith.constant 2 : i32
    %185 = vector.broadcast %c2_i32 : i32 to vector<16x128xi32>
    %186 = arith.cmpi eq, %184, %185 : vector<16x128xi32>
    %c3_i32 = arith.constant 3 : i32
    %187 = vector.broadcast %c3_i32 : i32 to vector<16x128xi32>
    %188 = arith.cmpi eq, %184, %187 : vector<16x128xi32>
    %189 = arith.ori %186, %188 : vector<16x128xi1>
    %190 = vector.broadcast %5 : f32 to vector<16x128xf32>
    %191 = arith.subf %190, %183 : vector<16x128xf32>
    %cst_25 = arith.constant 0.000000e+00 : f32
    %192 = vector.broadcast %cst_25 : f32 to vector<16x128xf32>
    %193 = arith.maximumf %191, %192 : vector<16x128xf32>
    %194 = arith.select %189, %193, %183 : vector<16x128xi1>, vector<16x128xf32>
    %c6_i32 = arith.constant 6 : i32
    %195 = vector.broadcast %c6_i32 : i32 to vector<16x128xi32>
    %196 = arith.cmpi eq, %184, %195 : vector<16x128xi32>
    %c7_i32 = arith.constant 7 : i32
    %197 = vector.broadcast %c7_i32 : i32 to vector<16x128xi32>
    %198 = arith.cmpi eq, %184, %197 : vector<16x128xi32>
    %199 = arith.ori %196, %198 : vector<16x128xi1>
    %cst_26 = arith.constant 1.000000e+00 : f32
    %200 = vector.broadcast %cst_26 : f32 to vector<16x128xf32>
    %201 = arith.addf %183, %200 : vector<16x128xf32>
    %cst_27 = arith.constant 0.000000e+00 : f32
    %202 = vector.broadcast %cst_27 : f32 to vector<16x128xf32>
    %203 = arith.maximumf %201, %202 : vector<16x128xf32>
    %204 = arith.select %199, %203, %194 : vector<16x128xi1>, vector<16x128xf32>
    %c8_i32 = arith.constant 8 : i32
    %205 = vector.broadcast %c8_i32 : i32 to vector<16x128xi32>
    %206 = arith.cmpi eq, %184, %205 : vector<16x128xi32>
    %cst_28 = arith.constant 1.000000e+00 : f32
    %207 = vector.broadcast %cst_28 : f32 to vector<16x128xf32>
    %208 = arith.subf %183, %207 : vector<16x128xf32>
    %cst_29 = arith.constant 1.000000e+00 : f32
    %209 = vector.broadcast %cst_29 : f32 to vector<16x128xf32>
    %210 = arith.subf %183, %209 : vector<16x128xf32>
    %211 = arith.mulf %208, %210 : vector<16x128xf32>
    %212 = arith.select %206, %211, %204 : vector<16x128xi1>, vector<16x128xf32>
    %c11_i32 = arith.constant 11 : i32
    %213 = vector.broadcast %c11_i32 : i32 to vector<16x128xi32>
    %214 = arith.cmpi sge, %184, %213 : vector<16x128xi32>
    %c13_i32 = arith.constant 13 : i32
    %215 = vector.broadcast %c13_i32 : i32 to vector<16x128xi32>
    %216 = arith.cmpi sle, %184, %215 : vector<16x128xi32>
    %217 = arith.andi %214, %216 : vector<16x128xi1>
    %cst_30 = arith.constant 1.000000e+00 : f32
    %218 = vector.broadcast %cst_30 : f32 to vector<16x128xf32>
    %219 = arith.subf %218, %183 : vector<16x128xf32>
    %cst_31 = arith.constant 0.000000e+00 : f32
    %220 = vector.broadcast %cst_31 : f32 to vector<16x128xf32>
    %221 = arith.maximumf %219, %220 : vector<16x128xf32>
    %222 = arith.select %217, %221, %212 : vector<16x128xi1>, vector<16x128xf32>
    %c0_32 = arith.constant 0 : index
    %c0_33 = arith.constant 0 : index
    %223 = vector.load %arg7[%c0_32, %c0_33] : memref<16x128xf32, #tpu.memory_space<vmem>>, vector<16x128xf32>
    tpu.vector_store %arg7[%c0_32, %c0_33], %222 {strides = array<i32>} : memref<16x128xf32, #tpu.memory_space<vmem>>, vector<16x128xf32>,
    return
  }
  func.func @transform_0(%arg0: i32) -> (i32, i32) {
    %c0_i32 = arith.constant 0 : i32
    %c0_i32_0 = arith.constant 0 : i32
    return %c0_i32, %arg0 : i32, i32
  }
  func.func @transform_1(%arg0: i32) -> (i32, i32) {
    %c0_i32 = arith.constant 0 : i32
    %c0_i32_0 = arith.constant 0 : i32
    %c0_i32_1 = arith.constant 0 : i32
    return %c0_i32, %c0_i32_0 : i32, i32
  }
  func.func @transform_2(%arg0: i32) -> (i32, i32) {
    %c0_i32 = arith.constant 0 : i32
    %c0_i32_0 = arith.constant 0 : i32
    %c0_i32_1 = arith.constant 0 : i32
    return %c0_i32, %c0_i32_0 : i32, i32
  }
  func.func @transform_3(%arg0: i32) -> (i32, i32) {
    %c0_i32 = arith.constant 0 : i32
    %c0_i32_0 = arith.constant 0 : i32
    %c0_i32_1 = arith.constant 0 : i32
    return %c0_i32, %c0_i32_0 : i32, i32
  }
  func.func @transform_4(%arg0: i32) -> (i32, i32) {
    %c0_i32 = arith.constant 0 : i32
    %c0_i32_0 = arith.constant 0 : i32
    %c0_i32_1 = arith.constant 0 : i32
    return %c0_i32, %c0_i32_0 : i32, i32
  }
  func.func @transform_5(%arg0: i32) -> i32 {
    %c0_i32 = arith.constant 0 : i32
    %c0_i32_0 = arith.constant 0 : i32
    return %c0_i32 : i32
  }
  func.func @transform_6(%arg0: i32) -> (i32, i32) {
    %c0_i32 = arith.constant 0 : i32
    %c0_i32_0 = arith.constant 0 : i32
    return %c0_i32, %arg0 : i32, i32
  }
}

</mosaic_0001>

<bundles_post_ra>
// kernel: tpu_custom_call.1
= control target key start
LH: loop header
LB: loop body
LE: loop exit
PB: predicated region body
PF: predicated region fallthrough
CT: control target
= control target key end

     0   :  { %v57_v0 = vlaneseq  ;;  %vm152_vm0 = vcmask 195584   ;;  %v15186_v3 = vmov 0.0   ;;  %s15158_s0 = inlined_call_operand.vmem [shape: s32[17,128], index: 0, kind: input, shape index: {}]   ;;  %s15159_s1 = inlined_call_operand.vmem [shape: f32[32,24], index: 1, kind: input, shape index: {}]   ;;  %s15160_s2 = inlined_call_operand.vmem [shape: f32[32,8], index: 2, kind: input, shape index: {}]   ;;  %s15161_s3 = inlined_call_operand.vmem [shape: f32[64,8], index: 3, kind: input, shape index: {}]   ;;  %s15162_s4 = inlined_call_operand.vmem [shape: f32[16,704], index: 4, kind: input, shape index: {}]   ;;  %s15163_s5 = inlined_call_operand.<no memory space> [shape: f32[1], index: 5, kind: input, shape index: {}]   ;;  %s15164_s6 = inlined_call_operand.hbm [shape: f32[16,128], index: 6, kind: output, shape index: {}]  }
   0x1   :  { %v28_v1 = vld [vmem:[%s15159_s1] sm:$0xff]  ;;  %v29_v2 = vld [vmem:[%s15159_s1 + $0x8] sm:$0xff]  ;;  %235 = vmatprep.mubr.f32.mxu0 %v15186_v3  ;;  %v30_v6 = vld [vmem:[%s15159_s1 + $0x10] sm:$0xff]  ;;  %374 = vmatprep.mubr.f32.mxu1 %v15186_v3 }
   0x2   :  { %v154_v4 = vsel %vm152_vm0, %v28_v1, 0  ;;  %v157_v5 = vsel %vm152_vm0, %v29_v2, 0  ;;  %v31_v7 = vld [vmem:[%s15159_s1 + $0x18] sm:$0xff]  ;;  %v10928_v8 = vshrl.u32 %v57_v0, 7  ;;  %v160_v11 = vsel %vm152_vm0, %v30_v6, 0 }
   0x3   :  { %v10930_v9 = vand.u32 4294901760, %v154_v4  ;;  %v10932_v10 = vand.u32 4294901760, %v157_v5 }
   0x4   :  { %15428 = vst [vmem:[#allocation6_spill] sm:$0xff] %v10928_v8 }
   0x5   :  { %12 = vsyncpa [#allocation4], 0  ;;  %v10938_v12 = vld [vmem:[%s15158_s0] sm:$0xff]  ;;  %v10940_v13 = vand.u32 4294901760, %v160_v11  ;;  %v163_v14 = vsel %vm152_vm0, %v31_v7, 0  ;;  %v10944_v15 = vadd.s32 16, %v10928_v8  ;;  %v10952_v19 = vsub.f32 %v154_v4, %v10930_v9 }
   0x6   :  { %v76_v16 = vsub.s32 1, %v10928_v8  ;;  %v63_v17 = vsub.s32 0, %v10928_v8  ;;  %v10949_v18 = vadd.s32 8, %v10928_v8  ;;  %v10955_v20 = vsub.f32 %v157_v5, %v10932_v10 }
   0x7   :  { %v10958_v21 = vsub.f32 %v160_v11, %v10940_v13  ;;  %v10960_v22 = vand.u32 4294901760, %v163_v14  ;;  %v10973_v25 = vand.u32 4294901760, %v10952_v19  ;;  %v15168_v29 = vmov 1.0  }
   0x8   :  { %15429 = vst [vmem:[#allocation7_spill] sm:$0xff] %v10949_v18  ;;  %v10965_v23 = vrot.slane %v10938_v12, %v76_v16  ;;  %v10970_v24 = vrot.slane %v10938_v12, %v63_v17  ;;  %v10976_v26 = vand.u32 4294901760, %v10955_v20  ;;  %v128_v5 = vsub.s32 5, %v10928_v8 }
   0x9   :  { %v10979_v27 = vand.u32 4294901760, %v10958_v21  ;;  %v10982_v28 = vsub.f32 %v163_v14, %v10960_v22  ;;  %v239_v38 = vsub.f32 %v10952_v19, %v10973_v25  ;;  %v102_v7 = vsub.s32 3, %v10928_v8 }
   0xa   :  { %vm80_vm1 = vcmp.eq.s32.totalorder %v10965_v23, %v10944_v15  ;;  %vm67_vm2 = vcmp.eq.s32.totalorder %v10970_v24, %v10944_v15  ;;  %vm79_vm3 = vcmp.eq.s32.totalorder %v10965_v23, %v10949_v18  ;;  %vm66_vm4 = vcmp.eq.s32.totalorder %v10970_v24, %v10949_v18 }
   0xb   :  { %9952 = vmatprep.subr.msk.mxu0 %vm80_vm1, %v15168_v29  ;;  %v9935_v30 = vsel %vm79_vm3, 1.0, %v15186_v3  ;;  %v9932_v31 = vsel %vm66_vm4, 1.0, %v15186_v3  ;;  %vm78_vm5 = vcmp.eq.s32.totalorder %v10965_v23, %v10928_v8  ;;  %vm65_vm6 = vcmp.eq.s32.totalorder %v10970_v24, %v10928_v8 }
   0xc   :  { %9953 = vmatpush1.msk.msra.mxu0 %vm67_vm2, %v15168_v29  ;;  %v11012_v32 = vsub.f32 %v9935_v30, %v9935_v30  ;;  %v11014_v33 = vsub.f32 %v9932_v31, %v9932_v31  ;;  %v9934_v34 = vsel %vm78_vm5, 1.0, %v15186_v3  ;;  %v9931_v35 = vsel %vm65_vm6, 1.0, %v15186_v3 }
   0xd   :  { %9954 = vmatprep.subr.msk.mxu0 %vm79_vm3, %v15168_v29  ;;  %v11028_v36 = vsub.f32 %v9934_v34, %v9934_v34  ;;  %v11030_v37 = vsub.f32 %v9931_v35, %v9931_v35  ;;  %v9936_v39 = vsel %vm80_vm1, 1.0, %v15186_v3  ;;  %v250_v41 = vsub.f32 %v10955_v20, %v10976_v26 }
   0xe   :  { %9955 = vmatpush1.msk.msra.mxu0 %vm66_vm4, %v15168_v29  ;;  %v307_v40 = vsub.f32 %v9936_v39, %v9936_v39  ;;  %v9933_v42 = vsel %vm67_vm2, 1.0, %v15186_v3  ;;  %v320_v43 = vand.u32 4294901760, %v11012_v32  ;;  %v11053_v44 = vand.u32 4294901760, %v239_v38 }
   0xf   :  { %9956 = vmatprep.subr.msk.mxu0 %vm78_vm5, %v15168_v29  ;;  %v11055_v45 = vsub.f32 %v9933_v42, %v9933_v42  ;;  %v326_v46 = vand.u32 4294901760, %v11014_v33  ;;  %v332_v47 = vand.u32 4294901760, %v11028_v36  ;;  %v11063_v49 = vand.u32 4294901760, %v250_v41 }
  0x10   :  { %9957 = vmatpush1.msk.msra.mxu0 %vm65_vm6, %v15168_v29  ;;  %v308_v48 = vand.u32 4294901760, %v307_v40  ;;  %v321_v50 = vsub.f32 %v11012_v32, %v320_v43  ;;  %v261_v53 = vsub.f32 %v10958_v21, %v10979_v27  ;;  %v338_v54 = vand.u32 4294901760, %v11030_v37 }
  0x11   :  { %241 = vmatmul.mubr.f32.vlgmr.msra.gmra.mxu0 %v11053_v44  ;;  %v314_v51 = vand.u32 4294901760, %v11055_v45  ;;  %v327_v52 = vsub.f32 %v11014_v33, %v326_v46  ;;  %431 = vmatprep.subr.mxu0 %v307_v40  ;;  %v333_v56 = vsub.f32 %v11028_v36, %v332_v47  ;;  %v11082_v57 = vand.u32 4294901760, %v10982_v28 }
  0x12   :  { %246 = vmatprep.mubr.f32.mxu0 %v15186_v3  ;;  %v309_v55 = vsub.f32 %v307_v40, %v308_v48  ;;  %434 = vmatpush1.msra.mxu0 %v11055_v45  ;;  %v339_v59 = vsub.f32 %v11030_v37, %v338_v54  ;;  %v322_v61 = vand.u32 4294901760, %v321_v50  ;;  %v11091_v0 = vand.u32 4294901760, %v261_v53 }
  0x13   :  { %v315_v58 = vsub.f32 %v11055_v45, %v314_v51  ;;  %437 = vmatprep.subr.mxu0 %v11012_v32  ;;  %v328_v63 = vand.u32 4294901760, %v327_v52  ;;  %v272_v1 = vsub.f32 %v10982_v28, %v11082_v57  ;;  %v334_v2 = vand.u32 4294901760, %v333_v56 }
  0x14   :  { %v310_v60 = vand.u32 4294901760, %v309_v55  ;;  %440 = vmatpush1.msra.mxu0 %v11014_v33  ;;  %v340_v4 = vand.u32 4294901760, %v339_v59  ;;  %v11107_v11 = vrot.slane %v10938_v12, %v128_v5  ;;  %v115_v14 = vsub.s32 4, %v10928_v8 }
  0x15   :  { %252 = vmatmul.mubr.f32.gmra.mxu0 %v11063_v49  ;;  %v316_v62 = vand.u32 4294901760, %v315_v58  ;;  %443 = vmatprep.subr.mxu0 %v11028_v36  ;;  %v11100_v6 = vand.u32 4294901760, %v272_v1  ;;  %v11123_v30 = vrot.slane %v10938_v12, %v102_v7  ;;  %v89_v31 = vsub.s32 2, %v10928_v8 }
  0x16   :  { %311 = vmatprep.subr.mxu1 %v310_v60  ;;  %257 = vmatprep.mubr.f32.mxu0 %v15186_v3  ;;  %vm132_vm7 = vcmp.eq.s32.totalorder %v11107_v11, %v10944_v15  ;;  %v11138_v34 = vrot.slane %v10938_v12, %v115_v14  ;;  %v15165_v35 = vsub.s32 6, %v10928_v8  ;;  %vm131_vm0 = vcmp.eq.s32.totalorder %v11107_v11, %v10949_v18 }
  0x17   :  { %317 = vmatpush1.msra.mxu1 %v316_v62  ;;  %446 = vmatpush1.msra.mxu0 %v11030_v37  ;;  %vm106_vm8 = vcmp.eq.s32.totalorder %v11123_v30, %v10944_v15  ;;  %v11159_v38 = vrot.slane %v10938_v12, %v89_v31  ;;  %vm105_vm12 = vcmp.eq.s32.totalorder %v11123_v30, %v10949_v18 }
  0x18   :  { %323 = vmatprep.subr.mxu1 %v322_v61  ;;  %648 = vmatprep.subr.mxu0 %v308_v48  ;;  %vm119_vm9 = vcmp.eq.s32.totalorder %v11138_v34, %v10944_v15  ;;  %v9942_v39 = vsel %vm106_vm8, 1.0, %v15186_v3  ;;  %v11173_v40 = vrot.slane %v10938_v12, %v15165_v35  ;;  %v9941_v37 = vsel %vm105_vm12, 1.0, %v15186_v3 }
  0x19   :  { %329 = vmatpush1.msra.mxu1 %v328_v63  ;;  %263 = vmatmul.mubr.f32.gmra.mxu0 %v11091_v0  ;;  %v11186_v32 = vsub.f32 %v9942_v39, %v9942_v39  ;;  %vm93_vm10 = vcmp.eq.s32.totalorder %v11159_v38, %v10944_v15  ;;  %vm92_vm13 = vcmp.eq.s32.totalorder %v11159_v38, %v10949_v18 }
  0x1a   :  { %335 = vmatprep.subr.mxu1 %v334_v2  ;;  %268 = vmatprep.mubr.f32.mxu0 %v15186_v3  ;;  %vm11192_vm11 = vcmp.eq.s32.totalorder %v11173_v40, %v10944_v15  ;;  %v9939_v33 = vsel %vm93_vm10, 1.0, %v15186_v3  ;;  %vm104_vm14 = vcmp.eq.s32.totalorder %v11123_v30, %v10928_v8  ;;  %v11240_v45 = vsub.f32 %v9941_v37, %v9941_v37 }
  0x1b   :  { %341 = vmatpush1.msra.mxu1 %v340_v4  ;;  %v972_v36 = vand.u32 4294901760, %v11186_v32  ;;  %v11227_v42 = vsub.f32 %v9939_v33, %v9939_v33  ;;  %vm91_vm15 = vcmp.eq.s32.totalorder %v11159_v38, %v10928_v8 }
  0x1c   :  { %376 = vmatmul.mubr.f32.vlgmr.msra.gmra.mxu1 %v10930_v9  ;;  %9958 = vmatprep.subr.msk.mxu1 %vm80_vm1, %v15168_v29  ;;  %v9937_v53 = vsel %vm91_vm15, 1.0, %v15186_v3 }
  0x1d   :  { %9959 = vmatpush1.msk.msra.mxu1 %vm67_vm2, %v15168_v29  ;;  %274 = vmatmul.mubr.f32.gmra.mxu0 %v11100_v6  ;;  %v978_v48 = vand.u32 4294901760, %v11227_v42  ;;  %v11293_v55 = vsub.f32 %v9937_v53, %v9937_v53 }
  0x1e   :  { %381 = vmatprep.mubr.f32.mxu1 %v15186_v3  ;;  %479 = vmatprep.mubr.f32.mxu0 %v15186_v3 }
  0x1f   :  { %9960 = vmatprep.subr.msk.mxu1 %vm79_vm3, %v15168_v29  ;;  %v979_v23 = vsub.f32 %v11227_v42, %v978_v48  ;;  %v1002_v61 = vand.u32 4294901760, %v11293_v55 }
  0x20   :  { %383 = vmatmul.mubr.f32.gmra.mxu1 %v10932_v10 }
  0x21   :  { %388 = vmatprep.mubr.f32.mxu1 %v15186_v3  ;;  %482 = vmatmul.mubr.f32.vlgmr.msra.gmra.mxu0 %v10952_v19  ;;  %v980_v24 = vand.u32 4294901760, %v979_v23  ;;  %v1003_v2 = vsub.f32 %v11293_v55, %v1002_v61 }
  0x22   :  { %9961 = vmatpush1.msk.msra.mxu1 %vm66_vm4, %v15168_v29  ;;  %487 = vmatprep.mubr.f32.mxu0 %v15186_v3 }
  0x23   :  { %9962 = vmatprep.subr.msk.mxu1 %vm78_vm5, %v15168_v29  ;;  %652 = vmatpush1.msra.mxu0 %v314_v51  ;;  %v1004_v39 = vand.u32 4294901760, %v1003_v2 }
  0x24   :  { %390 = vmatmul.mubr.f32.gmra.mxu1 %v10940_v13  ;;  %656 = vmatprep.subr.mxu0 %v320_v43  ;;  %v973_v43 = vsub.f32 %v11186_v32, %v972_v36 }
  0x25   :  { %395 = vmatprep.mubr.f32.mxu1 %v15186_v3  ;;  %490 = vmatmul.mubr.f32.gmra.mxu0 %v10955_v20 }
  0x26   :  { %9963 = vmatpush1.msk.msra.mxu1 %vm65_vm6, %v15168_v29  ;;  %495 = vmatprep.mubr.f32.mxu0 %v15186_v3  ;;  %v974_v51 = vand.u32 4294901760, %v973_v43 }
  0x27   :  { %9964 = vmatprep.subr.msk.mxu1 %vm80_vm1, %v15168_v29  ;;  %660 = vmatpush1.msra.mxu0 %v326_v46  ;;  %v9938_v46 = vsel %vm92_vm13, 1.0, %v15186_v3  ;;  %vm118_vm1 = vcmp.eq.s32.totalorder %v11138_v34, %v10949_v18 }
  0x28   :  { %397 = vmatmul.mubr.f32.gmra.mxu1 %v10960_v22  ;;  %664 = vmatprep.subr.mxu0 %v332_v47  ;;  %v9940_v47 = vsel %vm104_vm14, 1.0, %v15186_v3  ;;  %v11261_v50 = vsub.f32 %v9938_v46, %v9938_v46 }
  0x29   :  { %498 = vmatmul.mubr.f32.gmra.mxu0 %v10958_v21  ;;  %582 = vmatprep.mubr.f32.mxu1 %v15186_v3  ;;  %v11271_v52 = vsub.f32 %v9940_v47, %v9940_v47  ;;  %v9944_v47 = vsel %vm118_vm1, 1.0, %v15186_v3 }
  0x2a   :  { %503 = vmatprep.mubr.f32.mxu0 %v15186_v3  ;;  %668 = vmatpush1.msra.mxu0 %v338_v54  ;;  %v984_v54 = vand.u32 4294901760, %v11240_v45  ;;  %v990_v56 = vand.u32 4294901760, %v11261_v50 }
  0x2b   :  { %9970 = vmatprep.subr.msk.mxu0 %vm106_vm8, %v15168_v29  ;;  %v996_v59 = vand.u32 4294901760, %v11271_v52 }
  0x2c   :  { %586 = vmatmul.mubr.f32.vlgmr.msra.gmra.mxu1 %v10973_v25  ;;  %v985_v58 = vsub.f32 %v11240_v45, %v984_v54  ;;  %v991_v60 = vsub.f32 %v11261_v50, %v990_v56 }
  0x2d   :  { %9965 = vmatpush1.msk.msra.mxu1 %vm67_vm2, %v15168_v29  ;;  %506 = vmatmul.mubr.f32.gmra.mxu0 %v10982_v28  ;;  %v997_v63 = vsub.f32 %v11271_v52, %v996_v59  ;;  %vm130_vm2 = vcmp.eq.s32.totalorder %v11107_v11, %v10928_v8 }
  0x2e   :  { %591 = vmatprep.mubr.f32.mxu1 %v15186_v3  ;;  %701 = vmatprep.mubr.f32.mxu0 %v15186_v3  ;;  %v986_v62 = vand.u32 4294901760, %v985_v58  ;;  %v992_v1 = vand.u32 4294901760, %v991_v60 }
  0x2f   :  { %9966 = vmatprep.subr.msk.mxu1 %vm79_vm3, %v15168_v29  ;;  %v998_v4 = vand.u32 4294901760, %v997_v63  ;;  %vm117_vm3 = vcmp.eq.s32.totalorder %v11138_v34, %v10928_v8 }
  0x30   :  { %595 = vmatmul.mubr.f32.gmra.mxu1 %v10976_v26 }
  0x31   :  { %600 = vmatprep.mubr.f32.mxu1 %v15186_v3  ;;  %703 = vmatmul.mubr.f32.vlgmr.msra.gmra.mxu0 %v10930_v9 }
  0x32   :  { %9967 = vmatpush1.msk.msra.mxu1 %vm66_vm4, %v15168_v29  ;;  %708 = vmatprep.mubr.f32.mxu0 %v15186_v3  ;;  %vm11614_vm4 = vcmp.eq.s32.totalorder %v11173_v40, %v10949_v18 }
  0x33   :  { %9968 = vmatprep.subr.msk.mxu1 %vm78_vm5, %v15168_v29  ;;  %9971 = vmatpush1.msk.msra.mxu0 %vm93_vm10, %v15168_v29  ;;  %vm11638_vm5 = vcmp.eq.s32.totalorder %v11173_v40, %v10928_v8 }
  0x34   :  { %604 = vmatmul.mubr.f32.gmra.mxu1 %v10979_v27  ;;  %9972 = vmatprep.subr.msk.mxu0 %vm105_vm12, %v15168_v29  ;;  %v9949_v40 = vsel %vm11638_vm5, 1.0, %v15186_v3 }
  0x35   :  { %609 = vmatprep.mubr.f32.mxu1 %v15186_v3  ;;  %710 = vmatmul.mubr.f32.gmra.mxu0 %v10932_v10 }
  0x36   :  { %9969 = vmatpush1.msk.msra.mxu1 %vm65_vm6, %v15168_v29  ;;  %715 = vmatprep.mubr.f32.mxu0 %v15186_v3  ;;  %vm2793_vm6 = vcmask 64512  }
  0x37   :  { %975 = vmatprep.subr.mxu1 %v974_v51  ;;  %9973 = vmatpush1.msk.msra.mxu0 %vm92_vm13, %v15168_v29  ;;  %v11467_v51 = vsub.f32 %v9944_v47, %v9944_v47  ;;  %v2307_v47 = vsub.f32 %v9949_v40, %v9949_v40 }
  0x38   :  { %613 = vmatmul.mubr.f32.gmra.mxu1 %v11082_v57  ;;  %9974 = vmatprep.subr.msk.mxu0 %vm104_vm14, %v15168_v29 }
  0x39   :  { %717 = vmatmul.mubr.f32.gmra.mxu0 %v10940_v13  ;;  %800 = vmatprep.mubr.f32.mxu1 %v15186_v3 }
  0x3a   :  { %722 = vmatprep.mubr.f32.mxu0 %v15186_v3  ;;  %9975 = vmatpush1.msk.msra.mxu0 %vm91_vm15, %v15168_v29 }
  0x3b   :  { %1095 = vmatprep.subr.mxu0 %v11186_v32  ;;  %v9948_v32 = vsel %vm132_vm7, 1.0, %v15186_v3 }
  0x3c   :  { %802 = vmatmul.mubr.f32.vlgmr.msra.gmra.mxu1 %v10930_v9  ;;  %v11400_v33 = vsub.f32 %v9948_v32, %v9948_v32 }
  0x3d   :  { %981 = vmatpush1.msra.mxu1 %v980_v24  ;;  %724 = vmatmul.mubr.f32.gmra.mxu0 %v10960_v22 }
  0x3e   :  { %807 = vmatprep.mubr.f32.mxu1 %v15186_v3  ;;  %899 = vmatprep.mubr.f32.mxu0 %v15186_v3  ;;  %v1636_v37 = vand.u32 4294901760, %v11400_v33 }
  0x3f   :  { %987 = vmatprep.subr.mxu1 %v986_v62 }
  0x40   :  { %809 = vmatmul.mubr.f32.gmra.mxu1 %v10932_v10 }
  0x41   :  { %814 = vmatprep.mubr.f32.mxu1 %v15186_v3  ;;  %905 = vmatmul.mubr.f32.vlgmr.msra.gmra.mxu0 %v11053_v44 }
  0x42   :  { %993 = vmatpush1.msra.mxu1 %v992_v1  ;;  %910 = vmatprep.mubr.f32.mxu0 %v15186_v3 }
  0x43   :  { %999 = vmatprep.subr.mxu1 %v998_v4  ;;  %1098 = vmatpush1.msra.mxu0 %v11227_v42  ;;  %v9947_v42 = vsel %vm131_vm0, 1.0, %v15186_v3 }
  0x44   :  { %816 = vmatmul.mubr.f32.gmra.mxu1 %v10940_v13  ;;  %1101 = vmatprep.subr.mxu0 %v11240_v45  ;;  %v1637_v45 = vsub.f32 %v11400_v33, %v1636_v37  ;;  %v11446_v46 = vsub.f32 %v9947_v42, %v9947_v42 }
  0x45   :  { %821 = vmatprep.mubr.f32.mxu1 %v15186_v3  ;;  %916 = vmatmul.mubr.f32.gmra.mxu0 %v11063_v49 }
  0x46   :  { %1005 = vmatpush1.msra.mxu1 %v1004_v39  ;;  %921 = vmatprep.mubr.f32.mxu0 %v15186_v3  ;;  %v1648_v23 = vand.u32 4294901760, %v11446_v46  ;;  %v9951_v39 = vsel %vm11192_vm11, 1.0, %v15186_v3 }
  0x47   :  { %9976 = vmatprep.subr.msk.mxu1 %vm106_vm8, %v15168_v29  ;;  %1104 = vmatpush1.msra.mxu0 %v11261_v50  ;;  %v11605_v32 = vsub.f32 %v9951_v39, %v9951_v39 }
  0x48   :  { %823 = vmatmul.mubr.f32.gmra.mxu1 %v10960_v22  ;;  %1107 = vmatprep.subr.mxu0 %v11271_v52  ;;  %v1638_v52 = vand.u32 4294901760, %v1637_v45  ;;  %v1649_v58 = vsub.f32 %v11446_v46, %v1648_v23 }
  0x49   :  { %927 = vmatmul.mubr.f32.gmra.mxu0 %v11091_v0  ;;  %1038 = vmatprep.mubr.f32.mxu1 %v15186_v3 }
  0x4a   :  { %932 = vmatprep.mubr.f32.mxu0 %v15186_v3  ;;  %1110 = vmatpush1.msra.mxu0 %v11293_v55 }
  0x4b   :  { %1312 = vmatprep.subr.mxu0 %v972_v36  ;;  %v9945_v36 = vsel %vm119_vm9, 1.0, %v15186_v3 }
  0x4c   :  { %1040 = vmatmul.mubr.f32.vlgmr.msra.gmra.mxu1 %v10930_v9  ;;  %v11433_v43 = vsub.f32 %v9945_v36, %v9945_v36  ;;  %v11625_v36 = vand.u32 4294901760, %v11605_v32 }
  0x4d   :  { %9977 = vmatpush1.msk.msra.mxu1 %vm93_vm10, %v15168_v29  ;;  %938 = vmatmul.mubr.f32.gmra.mxu0 %v11100_v6 }
  0x4e   :  { %1045 = vmatprep.mubr.f32.mxu1 %v15186_v3  ;;  %1143 = vmatprep.mubr.f32.mxu0 %v15186_v3  ;;  %v1642_v50 = vand.u32 4294901760, %v11433_v43  ;;  %v2295_v15 = vsub.f32 %v11605_v32, %v11625_v36 }
  0x4f   :  { %9978 = vmatprep.subr.msk.mxu1 %vm105_vm12, %v15168_v29 }
  0x50   :  { %1047 = vmatmul.mubr.f32.gmra.mxu1 %v10932_v10  ;;  %v1643_v30 = vsub.f32 %v11433_v43, %v1642_v50  ;;  %v2296_v45 = vand.u32 4294901760, %v2295_v15 }
  0x51   :  { %1052 = vmatprep.mubr.f32.mxu1 %v15186_v3  ;;  %1146 = vmatmul.mubr.f32.vlgmr.msra.gmra.mxu0 %v10952_v19 }
  0x52   :  { %9979 = vmatpush1.msk.msra.mxu1 %vm92_vm13, %v15168_v29  ;;  %1151 = vmatprep.mubr.f32.mxu0 %v15186_v3  ;;  %v1644_v38 = vand.u32 4294901760, %v1643_v30 }
  0x53   :  { %9980 = vmatprep.subr.msk.mxu1 %vm104_vm14, %v15168_v29  ;;  %1316 = vmatpush1.msra.mxu0 %v978_v48  ;;  %v9946_v48 = vsel %vm130_vm2, 1.0, %v15186_v3 }
  0x54   :  { %1054 = vmatmul.mubr.f32.gmra.mxu1 %v10940_v13  ;;  %1320 = vmatprep.subr.mxu0 %v984_v54  ;;  %v11477_v53 = vsub.f32 %v9946_v48, %v9946_v48  ;;  %v9943_v54 = vsel %vm117_vm3, 1.0, %v15186_v3  ;;  %v11685_v48 = vand.u32 4294901760, %v2307_v47 }
  0x55   :  { %1059 = vmatprep.mubr.f32.mxu1 %v15186_v3  ;;  %1154 = vmatmul.mubr.f32.gmra.mxu0 %v10955_v20  ;;  %v11499_v55 = vsub.f32 %v9943_v54, %v9943_v54  ;;  %v32_v54 = vld [vmem:[%s15160_s2] sm:$0xff] }
  0x56   :  { %9981 = vmatpush1.msk.msra.mxu1 %vm91_vm15, %v15168_v29  ;;  %1159 = vmatprep.mubr.f32.mxu0 %v15186_v3 }
  0x57   :  { %9982 = vmatprep.subr.msk.mxu1 %vm106_vm8, %v15168_v29  ;;  %1324 = vmatpush1.msra.mxu0 %v990_v56  ;;  %v1654_v56 = vand.u32 4294901760, %v11467_v51  ;;  %v1666_v60 = vand.u32 4294901760, %v11499_v55 }
  0x58   :  { %1061 = vmatmul.mubr.f32.gmra.mxu1 %v10960_v22  ;;  %1328 = vmatprep.subr.mxu0 %v996_v59  ;;  %v1660_v59 = vand.u32 4294901760, %v11477_v53 }
  0x59   :  { %1162 = vmatmul.mubr.f32.gmra.mxu0 %v10958_v21  ;;  %1246 = vmatprep.mubr.f32.mxu1 %v15186_v3  ;;  %v1655_v24 = vsub.f32 %v11467_v51, %v1654_v56  ;;  %v1667_v1 = vsub.f32 %v11499_v55, %v1666_v60 }
  0x5a   :  { %1167 = vmatprep.mubr.f32.mxu0 %v15186_v3  ;;  %1332 = vmatpush1.msra.mxu0 %v1002_v61  ;;  %v1650_v61 = vand.u32 4294901760, %v1649_v58  ;;  %v1661_v62 = vsub.f32 %v11477_v53, %v1660_v59 }
  0x5b   :  { %9988 = vmatprep.subr.msk.mxu0 %vm132_vm7, %v15168_v29  ;;  %v1656_v63 = vand.u32 4294901760, %v1655_v24  ;;  %v1668_v4 = vand.u32 4294901760, %v1667_v1 }
  0x5c   :  { %1250 = vmatmul.mubr.f32.vlgmr.msra.gmra.mxu1 %v10973_v25  ;;  %v1662_v2 = vand.u32 4294901760, %v1661_v62 }
  0x5d   :  { %9983 = vmatpush1.msk.msra.mxu1 %vm93_vm10, %v15168_v29  ;;  %1170 = vmatmul.mubr.f32.gmra.mxu0 %v10982_v28 }
  0x5e   :  { %1255 = vmatprep.mubr.f32.mxu1 %v15186_v3  ;;  %1365 = vmatprep.mubr.f32.mxu0 %v15186_v3 }
  0x5f   :  { %9984 = vmatprep.subr.msk.mxu1 %vm105_vm12, %v15168_v29 }
  0x60   :  { %1259 = vmatmul.mubr.f32.gmra.mxu1 %v10976_v26 }
  0x61   :  { %1264 = vmatprep.mubr.f32.mxu1 %v15186_v3  ;;  %1367 = vmatmul.mubr.f32.vlgmr.msra.gmra.mxu0 %v10930_v9 }
  0x62   :  { %9985 = vmatpush1.msk.msra.mxu1 %vm92_vm13, %v15168_v29  ;;  %1372 = vmatprep.mubr.f32.mxu0 %v15186_v3 }
  0x63   :  { %9986 = vmatprep.subr.msk.mxu1 %vm104_vm14, %v15168_v29  ;;  %9989 = vmatpush1.msk.msra.mxu0 %vm119_vm9, %v15168_v29 }
  0x64   :  { %1268 = vmatmul.mubr.f32.gmra.mxu1 %v10979_v27  ;;  %9990 = vmatprep.subr.msk.mxu0 %vm131_vm0, %v15168_v29 }
  0x65   :  { %1273 = vmatprep.mubr.f32.mxu1 %v15186_v3  ;;  %1374 = vmatmul.mubr.f32.gmra.mxu0 %v10932_v10 }
  0x66   :  { %9987 = vmatpush1.msk.msra.mxu1 %vm91_vm15, %v15168_v29  ;;  %1379 = vmatprep.mubr.f32.mxu0 %v15186_v3 }
  0x67   :  { %1639 = vmatprep.subr.mxu1 %v1638_v52  ;;  %9991 = vmatpush1.msk.msra.mxu0 %vm118_vm1, %v15168_v29 }
  0x68   :  { %1277 = vmatmul.mubr.f32.gmra.mxu1 %v11082_v57  ;;  %9992 = vmatprep.subr.msk.mxu0 %vm130_vm2, %v15168_v29 }
  0x69   :  { %1381 = vmatmul.mubr.f32.gmra.mxu0 %v10940_v13  ;;  %1464 = vmatprep.mubr.f32.mxu1 %v15186_v3 }
  0x6a   :  { %1386 = vmatprep.mubr.f32.mxu0 %v15186_v3  ;;  %9993 = vmatpush1.msk.msra.mxu0 %vm117_vm3, %v15168_v29 }
  0x6b   :  { %1759 = vmatprep.subr.mxu0 %v11400_v33 }
  0x6c   :  { %1466 = vmatmul.mubr.f32.vlgmr.msra.gmra.mxu1 %v10930_v9 }
  0x6d   :  { %1645 = vmatpush1.msra.mxu1 %v1644_v38  ;;  %1388 = vmatmul.mubr.f32.gmra.mxu0 %v10960_v22 }
  0x6e   :  { %1471 = vmatprep.mubr.f32.mxu1 %v15186_v3  ;;  %1563 = vmatprep.mubr.f32.mxu0 %v15186_v3 }
  0x6f   :  { %1651 = vmatprep.subr.mxu1 %v1650_v61 }
  0x70   :  { %1473 = vmatmul.mubr.f32.gmra.mxu1 %v10932_v10 }
  0x71   :  { %1478 = vmatprep.mubr.f32.mxu1 %v15186_v3  ;;  %1569 = vmatmul.mubr.f32.vlgmr.msra.gmra.mxu0 %v11053_v44 }
  0x72   :  { %1657 = vmatpush1.msra.mxu1 %v1656_v63  ;;  %1574 = vmatprep.mubr.f32.mxu0 %v15186_v3 }
  0x73   :  { %1663 = vmatprep.subr.mxu1 %v1662_v2  ;;  %1762 = vmatpush1.msra.mxu0 %v11433_v43 }
  0x74   :  { %1480 = vmatmul.mubr.f32.gmra.mxu1 %v10940_v13  ;;  %1765 = vmatprep.subr.mxu0 %v11446_v46 }
  0x75   :  { %1485 = vmatprep.mubr.f32.mxu1 %v15186_v3  ;;  %1580 = vmatmul.mubr.f32.gmra.mxu0 %v11063_v49 }
  0x76   :  { %1669 = vmatpush1.msra.mxu1 %v1668_v4  ;;  %1585 = vmatprep.mubr.f32.mxu0 %v15186_v3 }
  0x77   :  { %9994 = vmatprep.subr.msk.mxu1 %vm132_vm7, %v15168_v29  ;;  %1768 = vmatpush1.msra.mxu0 %v11467_v51  ;;  %v11706_v51 = vld [vmem:[%s15158_s0 + $0x8] sm:$0xff] }
  0x78   :  { %1487 = vmatmul.mubr.f32.gmra.mxu1 %v10960_v22  ;;  %1771 = vmatprep.subr.mxu0 %v11477_v53  ;;  %v15167_v53 = vsub.s32 7, %v10928_v8  ;;  %v11881_v42 = vrot.slane %v11706_v51, %v89_v31  ;;  %v11930_v40 = vrot.slane %v11706_v51, %v76_v16 }
  0x79   :  { %1591 = vmatmul.mubr.f32.gmra.mxu0 %v11091_v0  ;;  %1702 = vmatprep.mubr.f32.mxu1 %v15186_v3 }
  0x7a   :  { %1596 = vmatprep.mubr.f32.mxu0 %v15186_v3  ;;  %1774 = vmatpush1.msra.mxu0 %v11499_v55  ;;  %vm2776_vm10 = vcmp.eq.s32.totalorder %v11930_v40, %v10928_v8 }
  0x7b   :  { %1976 = vmatprep.subr.mxu0 %v1636_v37  ;;  %v9950_v37 = vsel %vm11614_vm4, 1.0, %v15186_v3 }
  0x7c   :  { %1704 = vmatmul.mubr.f32.vlgmr.msra.gmra.mxu1 %v10930_v9  ;;  %v2300_v43 = vsub.f32 %v9950_v37, %v9950_v37 }
  0x7d   :  { %9995 = vmatpush1.msk.msra.mxu1 %vm119_vm9, %v15168_v29  ;;  %1602 = vmatmul.mubr.f32.gmra.mxu0 %v11100_v6 }
  0x7e   :  { %1709 = vmatprep.mubr.f32.mxu1 %v15186_v3  ;;  %1807 = vmatprep.mubr.f32.mxu0 %v15186_v3  ;;  %v11668_v46 = vand.u32 4294901760, %v2300_v43 }
  0x7f   :  { %9996 = vmatprep.subr.msk.mxu1 %vm131_vm0, %v15168_v29 }
  0x80   :  { %1711 = vmatmul.mubr.f32.gmra.mxu1 %v10932_v10  ;;  %v2302_v11 = vsub.f32 %v2300_v43, %v11668_v46 }
  0x81   :  { %1716 = vmatprep.mubr.f32.mxu1 %v15186_v3  ;;  %1810 = vmatmul.mubr.f32.vlgmr.msra.gmra.mxu0 %v10952_v19 }
  0x82   :  { %9997 = vmatpush1.msk.msra.mxu1 %vm118_vm1, %v15168_v29  ;;  %1815 = vmatprep.mubr.f32.mxu0 %v15186_v3  ;;  %v2303_v34 = vand.u32 4294901760, %v2302_v11 }
  0x83   :  { %9998 = vmatprep.subr.msk.mxu1 %vm130_vm2, %v15168_v29  ;;  %1980 = vmatpush1.msra.mxu0 %v1642_v50  ;;  %v2309_v50 = vsub.f32 %v2307_v47, %v11685_v48 }
  0x84   :  { %1718 = vmatmul.mubr.f32.gmra.mxu1 %v10940_v13  ;;  %1984 = vmatprep.subr.mxu0 %v1648_v23  ;;  %v2795_v23 = vsel %vm2793_vm6, %v32_v54, 0 }
  0x85   :  { %1723 = vmatprep.mubr.f32.mxu1 %v15186_v3  ;;  %1818 = vmatmul.mubr.f32.gmra.mxu0 %v10955_v20  ;;  %v2310_v52 = vand.u32 4294901760, %v2309_v50 }
  0x86   :  { %9999 = vmatpush1.msk.msra.mxu1 %vm117_vm3, %v15168_v29  ;;  %1823 = vmatprep.mubr.f32.mxu0 %v15186_v3 }
  0x87   :  { %10000 = vmatprep.subr.msk.mxu1 %vm132_vm7, %v15168_v29  ;;  %1988 = vmatpush1.msra.mxu0 %v1654_v56 }
  0x88   :  { %1725 = vmatmul.mubr.f32.gmra.mxu1 %v10960_v22  ;;  %1992 = vmatprep.subr.mxu0 %v1660_v59  ;;  %v35_v59 = vld [vmem:[%s15160_s2 + $0x18] sm:$0xff] }
  0x89   :  { %1826 = vmatmul.mubr.f32.gmra.mxu0 %v10958_v21  ;;  %1910 = vmatprep.mubr.f32.mxu1 %v15186_v3  ;;  %v2804_v61 = vsel %vm2793_vm6, %v35_v59, 0 }
  0x8a   :  { %1831 = vmatprep.mubr.f32.mxu0 %v15186_v3  ;;  %1996 = vmatpush1.msra.mxu0 %v1666_v60  ;;  %v11820_v4 = vand.u32 4294901760, %v2804_v61 }
  0x8b   :  { %10640 = vmatprep.subr.msk.mxu0 %vm11192_vm11, %v15168_v29 }
  0x8c   :  { %1914 = vmatmul.mubr.f32.vlgmr.msra.gmra.mxu1 %v10973_v25 }
  0x8d   :  { %10001 = vmatpush1.msk.msra.mxu1 %vm119_vm9, %v15168_v29  ;;  %1834 = vmatmul.mubr.f32.gmra.mxu0 %v10982_v28  ;;  %vm2783_vm9 = vcmp.eq.s32.totalorder %v11881_v42, %v10928_v8 }
  0x8e   :  { %1919 = vmatprep.mubr.f32.mxu1 %v15186_v3  ;;  %2029 = vmatprep.mubr.f32.mxu0 %v15186_v3  ;;  %v10018_v31 = vsel %vm2783_vm9, 1.0, %v15186_v3 }
  0x8f   :  { %10002 = vmatprep.subr.msk.mxu1 %vm131_vm0, %v15168_v29 }
  0x90   :  { %1923 = vmatmul.mubr.f32.gmra.mxu1 %v10976_v26 }
  0x91   :  { %1928 = vmatprep.mubr.f32.mxu1 %v15186_v3  ;;  %2031 = vmatmul.mubr.f32.vlgmr.msra.gmra.mxu0 %v10930_v9 }
  0x92   :  { %10003 = vmatpush1.msk.msra.mxu1 %vm118_vm1, %v15168_v29  ;;  %2036 = vmatprep.mubr.f32.mxu0 %v15186_v3  ;;  %vm7211_vm1 = vcmask 523264  }
  0x93   :  { %10004 = vmatprep.subr.msk.mxu1 %vm130_vm2, %v15168_v29  ;;  %10641 = vmatpush3.msk.msra.mxu0 %vm11192_vm11, %v15168_v29 }
  0x94   :  { %1932 = vmatmul.mubr.f32.gmra.mxu1 %v10979_v27  ;;  %10642 = vmatprep.subr.msk.mxu0 %vm11614_vm4, %v15168_v29 }
  0x95   :  { %1937 = vmatprep.mubr.f32.mxu1 %v15186_v3  ;;  %2038 = vmatmul.mubr.f32.gmra.mxu0 %v10932_v10 }
  0x96   :  { %10005 = vmatpush1.msk.msra.mxu1 %vm117_vm3, %v15168_v29  ;;  %2043 = vmatprep.mubr.f32.mxu0 %v15186_v3 }
  0x97   :  { %10652 = vmatprep.subr.mxu1 %v2296_v45  ;;  %10643 = vmatpush3.msk.msra.mxu0 %vm11614_vm4, %v15168_v29 }
  0x98   :  { %1941 = vmatmul.mubr.f32.gmra.mxu1 %v11082_v57  ;;  %10644 = vmatprep.subr.msk.mxu0 %vm11638_vm5, %v15168_v29 }
  0x99   :  { %2045 = vmatmul.mubr.f32.gmra.mxu0 %v10940_v13  ;;  %2128 = vmatprep.mubr.f32.mxu1 %v15186_v3 }
  0x9a   :  { %2050 = vmatprep.mubr.f32.mxu0 %v15186_v3  ;;  %10645 = vmatpush3.msk.msra.mxu0 %vm11638_vm5, %v15168_v29 }
  0x9b   :  { %10664 = vmatprep.subr.mxu0 %v11605_v32 }
  0x9c   :  { %2130 = vmatmul.mubr.f32.vlgmr.msra.gmra.mxu1 %v10930_v9 }
  0x9d   :  { %10653 = vmatpush3.msra.mxu1 %v2296_v45  ;;  %2052 = vmatmul.mubr.f32.gmra.mxu0 %v10960_v22 }
  0x9e   :  { %2135 = vmatprep.mubr.f32.mxu1 %v15186_v3  ;;  %10646 = vmatprep.mubr.f32.mxu0 %v11053_v44  ;;  %v11719_v44 = vrot.slane %v11706_v51, %v63_v17  ;;  %v33_v17 = vld [vmem:[%s15160_s2 + $0x8] sm:$0xff] }
  0x9f   :  { %10654 = vmatprep.subr.mxu1 %v2303_v34 }
  0xa0   :  { %2137 = vmatmul.mubr.f32.gmra.mxu1 %v10932_v10  ;;  %vm2769_vm7 = vcmp.eq.s32.totalorder %v11719_v44, %v10928_v8 }
  0xa1   :  { %2142 = vmatprep.mubr.f32.mxu1 %v15186_v3  ;;  %10647 = vmatmul.mubr.f32.vlgmr.msra.gmra.mxu0 %v11063_v49  ;;  %v11725_v49 = vrot.slane %v10938_v12, %v15167_v53  ;;  %v11739_v12 = vand.u32 4294901760, %v2795_v23 }
  0xa2   :  { %10655 = vmatpush3.msra.mxu1 %v2303_v34  ;;  %10649 = vmatprep.mubr.f32.mxu0 %v11091_v0  ;;  %v2798_v0 = vsel %vm2793_vm6, %v33_v17, 0 }
  0xa3   :  { %10665 = vmatpush3.msra.mxu0 %v11605_v32  ;;  %10656 = vmatprep.subr.mxu1 %v2310_v52  ;;  %vm2762_vm8 = vcmp.eq.s32.totalorder %v11725_v49, %v10928_v8  ;;  %v11763_v30 = vsub.f32 %v2795_v23, %v11739_v12  ;;  %v11765_v55 = vand.u32 4294901760, %v2798_v0 }
  0xa4   :  { %2144 = vmatmul.mubr.f32.gmra.mxu1 %v10940_v13  ;;  %10666 = vmatprep.subr.mxu0 %v2300_v43 }
  0xa5   :  { %2149 = vmatprep.mubr.f32.mxu1 %v15186_v3  ;;  %10650 = vmatmul.mubr.f32.gmra.mxu0 %v11100_v6  ;;  %v10016_v6 = vsel %vm2769_vm7, 1.0, %v15186_v3  ;;  %v11790_v38 = vand.u32 4294901760, %v11763_v30  ;;  %v11793_v24 = vsub.f32 %v2798_v0, %v11765_v55 }
  0xa6   :  { %10657 = vmatpush3.msra.mxu1 %v2310_v52  ;;  %10667 = vmatpush3.msra.mxu0 %v2300_v43  ;;  %v11769_v56 = vsub.f32 %v10016_v6, %v10016_v6 }
  0xa7   :  { %10668 = vmatprep.subr.mxu0 %v2307_v47  ;;  %10670 = vmatprep.mubr.f32.mxu0 %v10952_v19  ;;  %v34_v19 = vld [vmem:[%s15160_s2 + $0x10] sm:$0xff]  ;;  %v2876_v63 = vsub.f32 %v11763_v30, %v11790_v38  ;;  %v11815_v1 = vand.u32 4294901760, %v11793_v24 }
  0xa8   :  { %2151 = vmatmul.mubr.f32.gmra.mxu1 %v10960_v22  ;;  %10669 = vmatpush3.msra.mxu0 %v2307_v47  ;;  %v2801_v58 = vsel %vm2793_vm6, %v34_v19, 0 }
  0xa9   :  { %10658 = vmatprep.mubr.f32.mxu1 %v10930_v9  ;;  %10671 = vmatmul.mubr.f32.vlgmr.msra.gmra.mxu0 %v10955_v20  ;;  %v10015_v20 = vsel %vm2762_vm8, 1.0, %v15186_v3  ;;  %v11795_v60 = vand.u32 4294901760, %v2801_v58  ;;  %v2887_v41 = vsub.f32 %v11793_v24, %v11815_v1 }
  0xaa   :  { %10676 = vmatprep.subr.msk.mxu1 %vm11192_vm11, %v15168_v29  ;;  %10688 = vmatprep.subr.mxu0 %v11625_v36 }
  0xab   :  { %10673 = vmatprep.mubr.f32.mxu0 %v10958_v21  ;;  %10689 = vmatpush3.msra.mxu0 %v11625_v36  ;;  %v11776_v21 = vsub.f32 %v10015_v20, %v10015_v20  ;;  %v11818_v2 = vsub.f32 %v2801_v58, %v11795_v60 }
  0xac   :  { %10659 = vmatmul.mubr.f32.vlgmr.msra.gmra.mxu1 %v10932_v10  ;;  %10690 = vmatprep.subr.mxu0 %v11668_v46 }
  0xad   :  { %10677 = vmatpush3.msk.msra.mxu1 %vm11192_vm11, %v15168_v29  ;;  %10661 = vmatprep.mubr.f32.mxu1 %v10940_v13  ;;  %v2955_v62 = vand.u32 4294901760, %v11776_v21  ;;  %v11847_v32 = vand.u32 4294901760, %v11818_v2 }
  0xae   :  { %10674 = vmatmul.mubr.f32.gmra.mxu0 %v10982_v28  ;;  %10678 = vmatprep.subr.msk.mxu1 %vm11614_vm4, %v15168_v29  ;;  %v2949_v28 = vand.u32 4294901760, %v11769_v56 }
  0xaf   :  { %10679 = vmatpush3.msk.msra.mxu1 %vm11614_vm4, %v15168_v29  ;;  %10691 = vmatpush3.msra.mxu0 %v11668_v46  ;;  %v2956_v39 = vsub.f32 %v11776_v21, %v2955_v62  ;;  %v2898_v37 = vsub.f32 %v11818_v2, %v11847_v32  ;;  %v10017_v46 = vsel %vm2776_vm10, 1.0, %v15186_v3 }
  0xb0   :  { %10662 = vmatmul.mubr.f32.gmra.mxu1 %v10960_v22  ;;  %10692 = vmatprep.subr.mxu0 %v11685_v48  ;;  %v11962_v34 = vsub.f32 %v10017_v46, %v10017_v46 }
  0xb1   :  { %10680 = vmatprep.subr.msk.mxu1 %vm11638_vm5, %v15168_v29  ;;  %10693 = vmatpush3.msra.mxu0 %v11685_v48  ;;  %v2957_v36 = vand.u32 4294901760, %v2956_v39 }
  0xb2   :  { %10694 = vmatprep.mubr.f32.mxu0 %v10930_v9  ;;  %10681 = vmatpush3.msk.msra.mxu1 %vm11638_vm5, %v15168_v29  ;;  %v3567_v54 = vand.u32 4294901760, %v11962_v34 }
  0xb3   :  { %10682 = vmatprep.mubr.f32.mxu1 %v10973_v25  ;;  %10695 = vmatmul.mubr.f32.vlgmr.msra.gmra.mxu0 %v10932_v10  ;;  %v2950_v25 = vsub.f32 %v11769_v56, %v2949_v28 }
  0xb4   :  { %10683 = vmatmul.mubr.f32.vlgmr.msra.gmra.mxu1 %v10976_v26  ;;  %10700 = vmatprep.subr.msk.mxu1 %vm11192_vm11, %v15168_v29  ;;  %v11842_v26 = vand.u32 4294901760, %v2876_v63  ;;  %v3568_v0 = vsub.f32 %v11962_v34, %v3567_v54 }
  0xb5   :  { %10701 = vmatpush3.msk.msra.mxu1 %vm11192_vm11, %v15168_v29  ;;  %10697 = vmatprep.mubr.f32.mxu0 %v10940_v13  ;;  %v2951_v33 = vand.u32 4294901760, %v2950_v25 }
  0xb6   :  { %10685 = vmatprep.mubr.f32.mxu1 %v10979_v27  ;;  %10702 = vmatprep.subr.msk.mxu1 %vm11614_vm4, %v15168_v29  ;;  %v11850_v27 = vsub.f32 %v2804_v61, %v11820_v4  ;;  %v3569_v59 = vand.u32 4294901760, %v3568_v0 }
  0xb7   :  { %10698 = vmatmul.mubr.f32.gmra.mxu0 %v10960_v22  ;;  %10703 = vmatpush3.msk.msra.mxu1 %vm11614_vm4, %v15168_v29 }
  0xb8   :  { %10686 = vmatmul.mubr.f32.gmra.mxu1 %v11082_v57  ;;  %10020 = vmatprep.subr.msk.mxu0 %vm2769_vm7, %v15168_v29  ;;  %v11870_v57 = vand.u32 4294901760, %v2887_v41  ;;  %v11875_v15 = vand.u32 4294901760, %v11850_v27 }
  0xb9   :  { %10704 = vmatprep.subr.msk.mxu1 %vm11638_vm5, %v15168_v29  ;;  %10021 = vmatpush1.msk.msra.mxu0 %vm2762_vm8, %v15168_v29 }
  0xba   :  { %2872 = vmatprep.mubr.f32.mxu0 %v15186_v3  ;;  %10705 = vmatpush3.msk.msra.mxu1 %vm11638_vm5, %v15168_v29 }
  0xbb   :  { %10706 = vmatprep.mubr.f32.mxu1 %v10930_v9  ;;  %2878 = vmatmul.mubr.f32.vlgmr.msra.gmra.mxu0 %v11842_v26  ;;  %v11887_v9 = vand.u32 4294901760, %v2898_v37 }
  0xbc   :  { %10707 = vmatmul.mubr.f32.vlgmr.msra.gmra.mxu1 %v10932_v10  ;;  %2952 = vmatprep.subr.mxu1 %v2951_v33  ;;  %v2909_v10 = vsub.f32 %v11850_v27, %v11875_v15 }
  0xbd   :  { %2958 = vmatpush1.msra.mxu1 %v2957_v36  ;;  %2883 = vmatprep.mubr.f32.mxu0 %v15186_v3 }
  0xbe   :  { %10709 = vmatprep.mubr.f32.mxu1 %v10940_v13  ;;  %3052 = vmatprep.subr.mxu0 %v11769_v56  ;;  %v11902_v13 = vand.u32 4294901760, %v2909_v10 }
  0xbf   :  { %2889 = vmatmul.mubr.f32.gmra.mxu0 %v11870_v57  ;;  %10022 = vmatprep.subr.msk.mxu1 %vm2769_vm7, %v15168_v29 }
  0xc0   :  { %10710 = vmatmul.mubr.f32.gmra.mxu1 %v10960_v22  ;;  %2894 = vmatprep.mubr.f32.mxu0 %v15186_v3  ;;  %v11919_v22 = vsub.f32 %v10018_v31, %v10018_v31 }
  0xc1   :  { %2991 = vmatprep.mubr.f32.mxu1 %v15186_v3  ;;  %3055 = vmatpush1.msra.mxu0 %v11776_v21 }
  0xc2   :  { %3257 = vmatprep.subr.mxu0 %v2949_v28  ;;  %v3561_v43 = vand.u32 4294901760, %v11919_v22 }
  0xc3   :  { %2900 = vmatmul.mubr.f32.gmra.mxu0 %v11887_v9 }
  0xc4   :  { %2993 = vmatmul.mubr.f32.vlgmr.msra.gmra.mxu1 %v11739_v12  ;;  %2905 = vmatprep.mubr.f32.mxu0 %v15186_v3  ;;  %v3562_v45 = vsub.f32 %v11919_v22, %v3561_v43 }
  0xc5   :  { %10023 = vmatpush1.msk.msra.mxu1 %vm2762_vm8, %v15168_v29  ;;  %2998 = vmatprep.mubr.f32.mxu1 %v15186_v3 }
  0xc6   :  { %10024 = vmatprep.subr.msk.mxu1 %vm2769_vm7, %v15168_v29  ;;  %v3563_v47 = vand.u32 4294901760, %v3562_v45 }
  0xc7   :  { %2911 = vmatmul.mubr.f32.gmra.mxu0 %v11902_v13 }
  0xc8   :  { %3000 = vmatmul.mubr.f32.gmra.mxu1 %v11765_v55  ;;  %3088 = vmatprep.mubr.f32.mxu0 %v15186_v3 }
  0xc9   :  { %3005 = vmatprep.mubr.f32.mxu1 %v15186_v3 }
  0xcb   :  { %3091 = vmatmul.mubr.f32.vlgmr.msra.gmra.mxu0 %v11763_v30 }
  0xcc   :  { %3007 = vmatmul.mubr.f32.gmra.mxu1 %v11795_v60  ;;  %3096 = vmatprep.mubr.f32.mxu0 %v15186_v3 }
  0xcd   :  { %3012 = vmatprep.mubr.f32.mxu1 %v15186_v3  ;;  %3261 = vmatpush1.msra.mxu0 %v2955_v62 }
  0xce   :  { %10026 = vmatprep.subr.msk.mxu0 %vm2783_vm9, %v15168_v29 }
  0xcf   :  { %3099 = vmatmul.mubr.f32.gmra.mxu0 %v11793_v24 }
  0xd0   :  { %3014 = vmatmul.mubr.f32.gmra.mxu1 %v11820_v4  ;;  %3104 = vmatprep.mubr.f32.mxu0 %v15186_v3 }
  0xd1   :  { %v242_v16 = vpop.f32.mrf.mxu0  ;;  %3187 = vmatprep.mubr.f32.mxu1 %v15186_v3 }
  0xd3   :  { %3107 = vmatmul.mubr.f32.gmra.mxu0 %v11818_v2  ;;  %v244_v11 = vpop.f32.mrf.mxu0 }
  0xd4   :  { %3191 = vmatmul.mubr.f32.vlgmr.msra.gmra.mxu1 %v11790_v38  ;;  %3112 = vmatprep.mubr.f32.mxu0 %v15186_v3 }
  0xd5   :  { %10025 = vmatpush1.msk.msra.mxu1 %vm2762_vm8, %v15168_v29  ;;  %v253_v48 = vpop.f32.mrf.mxu0  ;;  %3196 = vmatprep.mubr.f32.mxu1 %v15186_v3 }
  0xd6   :  { %3564 = vmatprep.subr.mxu1 %v3563_v47 }
  0xd7   :  { %3115 = vmatmul.mubr.f32.gmra.mxu0 %v11850_v27  ;;  %v255_v50 = vpop.f32.mrf.mxu0 }
  0xd8   :  { %3200 = vmatmul.mubr.f32.gmra.mxu1 %v11815_v1  ;;  %3294 = vmatprep.mubr.f32.mxu0 %v15186_v3 }
  0xd9   :  { %v264_v52 = vpop.f32.mrf.mxu0  ;;  %3205 = vmatprep.mubr.f32.mxu1 %v15186_v3 }
  0xdb   :  { %3296 = vmatmul.mubr.f32.vlgmr.msra.gmra.mxu0 %v11739_v12  ;;  %v266_v44 = vpop.f32.mrf.mxu0 }
  0xdc   :  { %v377_v49 = vpop.f32.mrf.mxu1  ;;  %3209 = vmatmul.mubr.f32.gmra.mxu1 %v11847_v32  ;;  %3301 = vmatprep.mubr.f32.mxu0 %v15186_v3 }
  0xdd   :  { %v378_v23 = vadd.f32 %v377_v49, %v242_v16  ;;  %v275_v17 = vpop.f32.mrf.mxu0  ;;  %3214 = vmatprep.mubr.f32.mxu1 %v15186_v3  ;;  %10027 = vmatpush1.msk.msra.mxu0 %vm2776_vm10, %v15168_v29 }
  0xde   :  { %v379_v6 = vpop.f32.mrf.mxu1  ;;  %3664 = vmatprep.subr.mxu0 %v11919_v22 }
  0xdf   :  { %v380_v19 = vadd.f32 %v379_v6, %v244_v11  ;;  %3303 = vmatmul.mubr.f32.gmra.mxu0 %v11765_v55  ;;  %v277_v20 = vpop.f32.mrf.mxu0 }
  0xe0   :  { %v384_v56 = vpop.f32.mrf.mxu1  ;;  %3218 = vmatmul.mubr.f32.gmra.mxu1 %v11875_v15  ;;  %3308 = vmatprep.mubr.f32.mxu0 %v15186_v3 }
  0xe1   :  { %v385_v58 = vadd.f32 %v384_v56, %v253_v48  ;;  %v483_v21 = vpop.f32.mrf.mxu0  ;;  %3389 = vmatprep.mubr.f32.mxu1 %v15186_v3 }
  0xe2   :  { %v386_v28 = vpop.f32.mrf.mxu1  ;;  %v484_v61 = vadd.f32 %v483_v21, %v378_v23 }
  0xe3   :  { %v387_v62 = vadd.f32 %v386_v28, %v255_v50  ;;  %3310 = vmatmul.mubr.f32.gmra.mxu0 %v11795_v60  ;;  %v485_v63 = vpop.f32.mrf.mxu0 }
  0xe4   :  { %v391_v25 = vpop.f32.mrf.mxu1  ;;  %3391 = vmatmul.mubr.f32.vlgmr.msra.gmra.mxu1 %v11739_v12  ;;  %v486_v39 = vadd.f32 %v485_v63, %v380_v19  ;;  %3315 = vmatprep.mubr.f32.mxu0 %v15186_v3 }
  0xe5   :  { %v392_v41 = vadd.f32 %v391_v25, %v264_v52  ;;  %3570 = vmatpush1.msra.mxu1 %v3569_v59  ;;  %v491_v33 = vpop.f32.mrf.mxu0  ;;  %3396 = vmatprep.mubr.f32.mxu1 %v15186_v3 }
  0xe6   :  { %v393_v36 = vpop.f32.mrf.mxu1  ;;  %v492_v37 = vadd.f32 %v491_v33, %v385_v58  ;;  %10028 = vmatprep.subr.msk.mxu1 %vm2783_vm9, %v15168_v29 }
  0xe7   :  { %v394_v10 = vadd.f32 %v393_v36, %v266_v44  ;;  %3317 = vmatmul.mubr.f32.gmra.mxu0 %v11820_v4  ;;  %v493_v31 = vpop.f32.mrf.mxu0  ;;  %v2789_v44 = vrot.slane %v11706_v51, %v102_v7 }
  0xe8   :  { %v398_v45 = vpop.f32.mrf.mxu1  ;;  %3398 = vmatmul.mubr.f32.gmra.mxu1 %v11765_v55  ;;  %v494_v16 = vadd.f32 %v493_v31, %v387_v62  ;;  %3484 = vmatprep.mubr.f32.mxu0 %v15186_v3 }
  0xe9   :  { %v399_v46 = vadd.f32 %v398_v45, %v275_v17  ;;  %v499_v47 = vpop.f32.mrf.mxu0  ;;  %3403 = vmatprep.mubr.f32.mxu1 %v15186_v3  ;;  %vm12011_vm11 = vcmp.eq.s32.totalorder %v2789_v44, %v10928_v8 }
  0xea   :  { %v400_v11 = vpop.f32.mrf.mxu1  ;;  %v500_v48 = vadd.f32 %v499_v47, %v392_v41  ;;  %v10019_v63 = vsel %vm12011_vm11, 1.0, %v15186_v3 }
  0xeb   :  { %v401_v50 = vadd.f32 %v400_v11, %v277_v20  ;;  %3490 = vmatmul.mubr.f32.vlgmr.msra.gmra.mxu0 %v11842_v26  ;;  %v501_v52 = vpop.f32.mrf.mxu0 }
  0xec   :  { %v587_v49 = vpop.f32.mrf.mxu1  ;;  %3405 = vmatmul.mubr.f32.gmra.mxu1 %v11795_v60  ;;  %v502_v23 = vadd.f32 %v501_v52, %v394_v10  ;;  %3495 = vmatprep.mubr.f32.mxu0 %v15186_v3  ;;  %v12031_v10 = vsub.f32 %v10019_v63, %v10019_v63 }
  0xed   :  { %v588_v17 = vadd.f32 %v587_v49, %v484_v61  ;;  %v507_v0 = vpop.f32.mrf.mxu0  ;;  %3410 = vmatprep.mubr.f32.mxu1 %v15186_v3  ;;  %3667 = vmatpush1.msra.mxu0 %v11962_v34 }
  0xee   :  { %v589_v6 = vpop.f32.mrf.mxu1  ;;  %v508_v19 = vadd.f32 %v507_v0, %v399_v46  ;;  %3869 = vmatprep.subr.mxu0 %v3561_v43  ;;  %v12038_v42 = vand.u32 4294901760, %v12031_v10 }
  0xef   :  { %v590_v20 = vadd.f32 %v589_v6, %v486_v39  ;;  %3501 = vmatmul.mubr.f32.gmra.mxu0 %v11870_v57  ;;  %v509_v7 = vpop.f32.mrf.mxu0 }
  0xf0   :  { %v596_v56 = vpop.f32.mrf.mxu1  ;;  %3412 = vmatmul.mubr.f32.gmra.mxu1 %v11820_v4  ;;  %v510_v58 = vadd.f32 %v509_v7, %v401_v50  ;;  %3506 = vmatprep.mubr.f32.mxu0 %v15186_v3 }
  0xf1   :  { %v597_v59 = vadd.f32 %v596_v56, %v492_v37  ;;  %v704_v28 = vpop.f32.mrf.mxu0  ;;  %3603 = vmatprep.mubr.f32.mxu1 %v15186_v3 }
  0xf2   :  { %v598_v22 = vpop.f32.mrf.mxu1  ;;  %v705_v43 = vadd.f32 %v704_v28, %v588_v17 }
  0xf3   :  { %v599_v61 = vadd.f32 %v598_v22, %v494_v16  ;;  %3512 = vmatmul.mubr.f32.gmra.mxu0 %v11887_v9  ;;  %v706_v62 = vpop.f32.mrf.mxu0 }
  0xf4   :  { %v605_v25 = vpop.f32.mrf.mxu1  ;;  %3605 = vmatmul.mubr.f32.vlgmr.msra.gmra.mxu1 %v11739_v12  ;;  %v707_v39 = vadd.f32 %v706_v62, %v590_v20  ;;  %3517 = vmatprep.mubr.f32.mxu0 %v15186_v3  ;;  %v4170_v20 = vsub.f32 %v12031_v10, %v12038_v42 }
  0xf5   :  { %v606_v41 = vadd.f32 %v605_v25, %v500_v48  ;;  %10029 = vmatpush1.msk.msra.mxu1 %vm2776_vm10, %v15168_v29  ;;  %v711_v33 = vpop.f32.mrf.mxu0  ;;  %3610 = vmatprep.mubr.f32.mxu1 %v15186_v3 }
  0xf6   :  { %v607_v36 = vpop.f32.mrf.mxu1  ;;  %v712_v37 = vadd.f32 %v711_v33, %v597_v59  ;;  %10030 = vmatprep.subr.msk.mxu1 %vm2783_vm9, %v15168_v29  ;;  %v4171_v22 = vand.u32 4294901760, %v4170_v20 }
  0xf7   :  { %v608_v31 = vadd.f32 %v607_v36, %v502_v23  ;;  %3523 = vmatmul.mubr.f32.gmra.mxu0 %v11902_v13  ;;  %v713_v45 = vpop.f32.mrf.mxu0 }
  0xf8   :  { %v614_v16 = vpop.f32.mrf.mxu1  ;;  %3612 = vmatmul.mubr.f32.gmra.mxu1 %v11765_v55  ;;  %v714_v46 = vadd.f32 %v713_v45, %v599_v61  ;;  %3700 = vmatprep.mubr.f32.mxu0 %v15186_v3 }
  0xf9   :  { %v615_v47 = vadd.f32 %v614_v16, %v508_v19  ;;  %v718_v11 = vpop.f32.mrf.mxu0  ;;  %3617 = vmatprep.mubr.f32.mxu1 %v15186_v3 }
  0xfa   :  { %v616_v48 = vpop.f32.mrf.mxu1  ;;  %v719_v50 = vadd.f32 %v718_v11, %v606_v41 }
  0xfb   :  { %v617_v52 = vadd.f32 %v616_v48, %v510_v58  ;;  %3703 = vmatmul.mubr.f32.vlgmr.msra.gmra.mxu0 %v11763_v30  ;;  %v720_v44 = vpop.f32.mrf.mxu0 }
  0xfc   :  { %v803_v49 = vpop.f32.mrf.mxu1  ;;  %3619 = vmatmul.mubr.f32.gmra.mxu1 %v11795_v60  ;;  %v721_v23 = vadd.f32 %v720_v44, %v608_v31  ;;  %3708 = vmatprep.mubr.f32.mxu0 %v15186_v3 }
  0xfd   :  { %v12043_v17 = vadd.f32 %v803_v49, %v705_v43  ;;  %v725_v0 = vpop.f32.mrf.mxu0  ;;  %3624 = vmatprep.mubr.f32.mxu1 %v15186_v3  ;;  %3873 = vmatpush1.msra.mxu0 %v3567_v54 }
  0xfe   :  { %v805_v6 = vpop.f32.mrf.mxu1  ;;  %v726_v19 = vadd.f32 %v725_v0, %v615_v47  ;;  %10712 = vmatprep.subr.msk.mxu0 %vm12011_vm11, %v15168_v29 }
  0xff   :  { %v12053_v7 = vadd.f32 %v805_v6, %v707_v39  ;;  %3711 = vmatmul.mubr.f32.gmra.mxu0 %v11793_v24  ;;  %v727_v56 = vpop.f32.mrf.mxu0 }
 0x100   :  { %v810_v58 = vpop.f32.mrf.mxu1  ;;  %3626 = vmatmul.mubr.f32.gmra.mxu1 %v11820_v4  ;;  %v728_v59 = vadd.f32 %v727_v56, %v617_v52  ;;  %3716 = vmatprep.mubr.f32.mxu0 %v15186_v3 }
 0x101   :  { %v12058_v34 = vadd.f32 %v810_v58, %v712_v37  ;;  %v906_v54 = vpop.f32.mrf.mxu0  ;;  %3799 = vmatprep.mubr.f32.mxu1 %v15186_v3 }
 0x102   :  { %v812_v28 = vpop.f32.mrf.mxu1 }
 0x103   :  { %v12061_v43 = vadd.f32 %v812_v28, %v714_v46  ;;  %3719 = vmatmul.mubr.f32.gmra.mxu0 %v11818_v2  ;;  %v908_v61 = vpop.f32.mrf.mxu0 }
 0x104   :  { %v817_v62 = vpop.f32.mrf.mxu1  ;;  %3803 = vmatmul.mubr.f32.vlgmr.msra.gmra.mxu1 %v11790_v38  ;;  %3724 = vmatprep.mubr.f32.mxu0 %v15186_v3 }
 0x105   :  { %v12066_v63 = vadd.f32 %v817_v62, %v719_v50  ;;  %10031 = vmatpush1.msk.msra.mxu1 %vm2776_vm10, %v15168_v29  ;;  %v917_v25 = vpop.f32.mrf.mxu0  ;;  %3808 = vmatprep.mubr.f32.mxu1 %v15186_v3 }
 0x106   :  { %v819_v39 = vpop.f32.mrf.mxu1  ;;  %10720 = vmatprep.subr.mxu1 %v4171_v22 }
 0x107   :  { %v12073_v41 = vadd.f32 %v819_v39, %v721_v23  ;;  %3727 = vmatmul.mubr.f32.gmra.mxu0 %v11850_v27  ;;  %v919_v33 = vpop.f32.mrf.mxu0 }
 0x108   :  { %v824_v36 = vpop.f32.mrf.mxu1  ;;  %3812 = vmatmul.mubr.f32.gmra.mxu1 %v11815_v1  ;;  %3906 = vmatprep.mubr.f32.mxu0 %v15186_v3 }
 0x109   :  { %15438 = vst [vmem:[#allocation8_spill] sm:$0xff] %v12073_v41  ;;  %v12078_v37 = vadd.f32 %v824_v36, %v726_v19  ;;  %v928_v31 = vpop.f32.mrf.mxu0  ;;  %3817 = vmatprep.mubr.f32.mxu1 %v15186_v3 }
 0x10a   :  { %v826_v40 = vpop.f32.mrf.mxu1 }
 0x10b   :  { %15439 = vst [vmem:[#allocation9_spill] sm:$0xff] %v12078_v37  ;;  %v12081_v45 = vadd.f32 %v826_v40, %v728_v59  ;;  %3908 = vmatmul.mubr.f32.vlgmr.msra.gmra.mxu0 %v11739_v12  ;;  %v930_v16 = vpop.f32.mrf.mxu0  ;;  %v12101_v59 = vrot.slane %v11706_v51, %v128_v5 }
 0x10c   :  { %v1041_v46 = vpop.f32.mrf.mxu1  ;;  %3821 = vmatmul.mubr.f32.gmra.mxu1 %v11847_v32  ;;  %3913 = vmatprep.mubr.f32.mxu0 %v15186_v3 }
 0x10d   :  { %15440 = vst [vmem:[#allocation10_spill] sm:$0xff] %v12081_v45  ;;  %v1042_v47 = vadd.f32 %v1041_v46, %v906_v54  ;;  %v939_v11 = vpop.f32.mrf.mxu0  ;;  %3826 = vmatprep.mubr.f32.mxu1 %v15186_v3  ;;  %10713 = vmatpush3.msk.msra.mxu0 %vm12011_vm11, %v15168_v29  ;;  %vm4616_vm12 = vcmp.eq.s32.totalorder %v12101_v59, %v10928_v8 }
 0x10e   :  { %v1043_v48 = vpop.f32.mrf.mxu1  ;;  %10728 = vmatprep.subr.mxu0 %v12031_v10 }
 0x10f   :  { %v1044_v50 = vadd.f32 %v1043_v48, %v908_v61  ;;  %3915 = vmatmul.mubr.f32.gmra.mxu0 %v11765_v55  ;;  %v941_v52 = vpop.f32.mrf.mxu0  ;;  %v12124_v48 = vrot.slane %v11706_v51, %v115_v14 }
 0x110   :  { %v1048_v44 = vpop.f32.mrf.mxu1  ;;  %3830 = vmatmul.mubr.f32.gmra.mxu1 %v11875_v15  ;;  %3920 = vmatprep.mubr.f32.mxu0 %v15186_v3 }
 0x111   :  { %v1049_v49 = vadd.f32 %v1048_v44, %v917_v25  ;;  %v1147_v23 = vpop.f32.mrf.mxu0  ;;  %4001 = vmatprep.mubr.f32.mxu1 %v15186_v3  ;;  %vm4609_vm13 = vcmp.eq.s32.totalorder %v12124_v48, %v10928_v8 }
 0x112   :  { %v1050_v0 = vpop.f32.mrf.mxu1  ;;  %v1148_v6 = vadd.f32 %v1147_v23, %v1042_v47 }
 0x113   :  { %v1051_v19 = vadd.f32 %v1050_v0, %v919_v33  ;;  %3922 = vmatmul.mubr.f32.gmra.mxu0 %v11795_v60  ;;  %v1149_v20 = vpop.f32.mrf.mxu0 }
 0x114   :  { %v1055_v56 = vpop.f32.mrf.mxu1  ;;  %4003 = vmatmul.mubr.f32.vlgmr.msra.gmra.mxu1 %v11739_v12  ;;  %v1150_v58 = vadd.f32 %v1149_v20, %v1044_v50  ;;  %3927 = vmatprep.mubr.f32.mxu0 %v15186_v3 }
 0x115   :  { %v1056_v54 = vadd.f32 %v1055_v56, %v928_v31  ;;  %10721 = vmatpush3.msra.mxu1 %v4171_v22  ;;  %v1155_v28 = vpop.f32.mrf.mxu0  ;;  %4008 = vmatprep.mubr.f32.mxu1 %v15186_v3  ;;  %v36_v22 = vld [vmem:[%s15161_s3] sm:$0xff] }
 0x116   :  { %v1057_v61 = vpop.f32.mrf.mxu1  ;;  %v1156_v62 = vadd.f32 %v1155_v28, %v1049_v49  ;;  %10736 = vmatprep.subr.msk.mxu1 %vm12011_vm11, %v15168_v29  ;;  %v37_v49 = vld [vmem:[%s15161_s3 + $0x8] sm:$0xff] }
 0x117   :  { %v1058_v25 = vadd.f32 %v1057_v61, %v930_v16  ;;  %3929 = vmatmul.mubr.f32.gmra.mxu0 %v11820_v4  ;;  %v1157_v39 = vpop.f32.mrf.mxu0  ;;  %v4644_v20 = vsel %vm2793_vm6, %v37_v49, 0  ;;  %v10035_v61 = vsel %vm4609_vm13, 1.0, %v15186_v3 }
 0x118   :  { %v1062_v33 = vpop.f32.mrf.mxu1  ;;  %4010 = vmatmul.mubr.f32.gmra.mxu1 %v11765_v55  ;;  %v1158_v5 = vadd.f32 %v1157_v39, %v1051_v19  ;;  %10714 = vmatprep.mubr.f32.mxu0 %v11842_v26  ;;  %v10036_v26 = vsel %vm4616_vm12, 1.0, %v15186_v3 }
 0x119   :  { %v1063_v36 = vadd.f32 %v1062_v33, %v939_v11  ;;  %v1163_v31 = vpop.f32.mrf.mxu0  ;;  %4015 = vmatprep.mubr.f32.mxu1 %v15186_v3  ;;  %v4641_v11 = vsel %vm2793_vm6, %v36_v22, 0  ;;  %v12135_v23 = vsub.f32 %v10036_v26, %v10036_v26  ;;  %v12158_v33 = vand.u32 4294901760, %v4644_v20 }
 0x11a   :  { %v1064_v40 = vpop.f32.mrf.mxu1  ;;  %v1164_v16 = vadd.f32 %v1163_v31, %v1056_v54  ;;  %v12137_v0 = vand.u32 4294901760, %v4641_v11 }
 0x11b   :  { %v1065_v46 = vadd.f32 %v1064_v40, %v941_v52  ;;  %10715 = vmatmul.mubr.f32.vlgmr.msra.gmra.mxu0 %v11870_v57  ;;  %v1165_v47 = vpop.f32.mrf.mxu0  ;;  %v39_v40 = vld [vmem:[%s15161_s3 + $0x18] sm:$0xff] }
 0x11c   :  { %v1251_v50 = vpop.f32.mrf.mxu1  ;;  %4017 = vmatmul.mubr.f32.gmra.mxu1 %v11795_v60  ;;  %v1166_v44 = vadd.f32 %v1165_v47, %v1058_v25  ;;  %10717 = vmatprep.mubr.f32.mxu0 %v11887_v9  ;;  %v12154_v25 = vsub.f32 %v4641_v11, %v12137_v0 }
 0x11d   :  { %v1252_v57 = vadd.f32 %v1251_v50, %v1148_v6  ;;  %v1171_v52 = vpop.f32.mrf.mxu0  ;;  %4022 = vmatprep.mubr.f32.mxu1 %v15186_v3  ;;  %10729 = vmatpush3.msra.mxu0 %v12031_v10 }
 0x11e   :  { %v1253_v14 = vpop.f32.mrf.mxu1  ;;  %v1172_v51 = vadd.f32 %v1171_v52, %v1063_v36  ;;  %10744 = vmatprep.subr.mxu0 %v12038_v42  ;;  %15441 = vst [vmem:[#allocation11_spill] sm:$0xff] %v12154_v25  ;;  %v4650_v52 = vsel %vm2793_vm6, %v39_v40, 0 }
 0x11f   :  { %v1254_v19 = vadd.f32 %v1253_v14, %v1150_v58  ;;  %10718 = vmatmul.mubr.f32.gmra.mxu0 %v11902_v13  ;;  %v1173_v9 = vpop.f32.mrf.mxu0  ;;  %v38_v13 = vld [vmem:[%s15161_s3 + $0x10] sm:$0xff] }
 0x120   :  { %v1260_v10 = vpop.f32.mrf.mxu1  ;;  %4024 = vmatmul.mubr.f32.gmra.mxu1 %v11820_v4  ;;  %v1174_v6 = vadd.f32 %v1173_v9, %v1065_v46  ;;  %10730 = vmatprep.mubr.f32.mxu0 %v11763_v30  ;;  %v4851_v30 = vand.u32 4294901760, %v12135_v23  ;;  %v4647_v31 = vsel %vm2793_vm6, %v38_v13, 0  ;;  %v12202_v13 = vand.u32 4294901760, %v4650_v52 }
 0x121   :  { %v1261_v56 = vadd.f32 %v1260_v10, %v1156_v62  ;;  %v1368_v54 = vpop.f32.mrf.mxu0  ;;  %10722 = vmatprep.mubr.f32.mxu1 %v11739_v12 }
 0x122   :  { %v1262_v58 = vpop.f32.mrf.mxu1  ;;  %v1369_v28 = vadd.f32 %v1368_v54, %v1252_v57  ;;  %v12190_v57 = vand.u32 4294901760, %v4647_v31  ;;  %v12231_v21 = vsub.f32 %v4650_v52, %v12202_v13 }
 0x123   :  { %v1263_v62 = vadd.f32 %v1262_v58, %v1158_v5  ;;  %10731 = vmatmul.mubr.f32.vlgmr.msra.gmra.mxu0 %v11793_v24  ;;  %v1370_v39 = vpop.f32.mrf.mxu0  ;;  %v12170_v5 = vsub.f32 %v10035_v61, %v10035_v61 }
 0x124   :  { %v1269_v22 = vpop.f32.mrf.mxu1  ;;  %10723 = vmatmul.mubr.f32.vlgmr.msra.gmra.mxu1 %v11765_v55  ;;  %v1371_v36 = vadd.f32 %v1370_v39, %v1254_v19  ;;  %10733 = vmatprep.mubr.f32.mxu0 %v11818_v2  ;;  %v12177_v2 = vand.u32 4294901760, %v12154_v25 }
 0x125   :  { %v1270_v46 = vadd.f32 %v1269_v22, %v1164_v16  ;;  %10737 = vmatpush3.msk.msra.mxu1 %vm12011_vm11, %v15168_v29  ;;  %v1375_v24 = vpop.f32.mrf.mxu0  ;;  %10725 = vmatprep.mubr.f32.mxu1 %v11795_v60  ;;  %v4852_v16 = vsub.f32 %v12135_v23, %v4851_v30  ;;  %v15166_v9 = vand.u32 4294901760, %v12170_v5 }
 0x126   :  { %v1271_v47 = vpop.f32.mrf.mxu1  ;;  %v1376_v26 = vadd.f32 %v1375_v24, %v1261_v56  ;;  %10745 = vmatpush3.msra.mxu0 %v12038_v42  ;;  %10752 = vmatprep.subr.msk.mxu1 %vm12011_vm11, %v15168_v29  ;;  %v12188_v42 = vsub.f32 %v4644_v20, %v12158_v33  ;;  %v4734_v56 = vsub.f32 %v12154_v25, %v12177_v2 }
 0x127   :  { %v1272_v11 = vadd.f32 %v1271_v47, %v1166_v44  ;;  %10734 = vmatmul.mubr.f32.gmra.mxu0 %v11850_v27  ;;  %v1377_v50 = vpop.f32.mrf.mxu0  ;;  %10041 = vmatprep.subr.msk.mxu0 %vm4616_vm12, %v15168_v29  ;;  %v40_v27 = vld [vmem:[%s15161_s3 + $0x20] sm:$0xff]  ;;  %v4853_v54 = vand.u32 4294901760, %v4852_v16 }
 0x128   :  { %v1278_v49 = vpop.f32.mrf.mxu1  ;;  %10726 = vmatmul.mubr.f32.gmra.mxu1 %v11820_v4  ;;  %v1378_v14 = vadd.f32 %v1377_v50, %v1263_v62  ;;  %10746 = vmatprep.mubr.f32.mxu0 %v11739_v12  ;;  %v12206_v62 = vand.u32 4294901760, %v12188_v42  ;;  %v12238_v16 = vand.u32 4294901760, %v4734_v56 }
 0x129   :  { %v1279_v44 = vadd.f32 %v1278_v49, %v1172_v51  ;;  %v1382_v19 = vpop.f32.mrf.mxu0  ;;  %10738 = vmatprep.mubr.f32.mxu1 %v11790_v38  ;;  %v12209_v51 = vsub.f32 %v4647_v31, %v12190_v57  ;;  %v4653_v38 = vsel %vm2793_vm6, %v40_v27, 0  ;;  %v4858_v31 = vsub.f32 %v12170_v5, %v15166_v9 }
 0x12a   :  { %v1280_v10 = vpop.f32.mrf.mxu1  ;;  %v1383_v20 = vadd.f32 %v1382_v19, %v1270_v46 }
 0x12b   :  { %v1281_v58 = vadd.f32 %v1280_v10, %v1174_v6  ;;  %10747 = vmatmul.mubr.f32.vlgmr.msra.gmra.mxu0 %v11765_v55  ;;  %v1384_v61 = vpop.f32.mrf.mxu0  ;;  %v12244_v50 = vand.u32 4294901760, %v12209_v51  ;;  %v4859_v19 = vand.u32 4294901760, %v4858_v31  ;;  %v42_v10 = vld [vmem:[%s15161_s3 + $0x30] sm:$0xff] }
 0x12c   :  { %v1467_v39 = vpop.f32.mrf.mxu1  ;;  %10739 = vmatmul.mubr.f32.vlgmr.msra.gmra.mxu1 %v11815_v1  ;;  %v1385_v22 = vadd.f32 %v1384_v61, %v1272_v11  ;;  %10749 = vmatprep.mubr.f32.mxu0 %v11795_v60  ;;  %v41_v1 = vld [vmem:[%s15161_s3 + $0x28] sm:$0xff]  ;;  %v4745_v11 = vsub.f32 %v12188_v42, %v12206_v62 }
 0x12d   :  { %v12214_v40 = vadd.f32 %v1467_v39, %v1369_v28  ;;  %10753 = vmatpush3.msk.msra.mxu1 %vm12011_vm11, %v15168_v29  ;;  %v1389_v6 = vpop.f32.mrf.mxu0  ;;  %10741 = vmatprep.mubr.f32.mxu1 %v11847_v32  ;;  %v12233_v32 = vand.u32 4294901760, %v4653_v38 }
 0x12e   :  { %v1469_v46 = vpop.f32.mrf.mxu1  ;;  %v1390_v24 = vadd.f32 %v1389_v6, %v1279_v44  ;;  %10042 = vmatpush1.msk.msra.mxu0 %vm4609_vm13, %v15168_v29  ;;  %4854 = vmatprep.subr.mxu1 %v4853_v54  ;;  %v12256_v54 = vand.u32 4294901760, %v12231_v21  ;;  %v12264_v61 = vand.u32 4294901760, %v4745_v11 }
 0x12f   :  { %15442 = vst [vmem:[#allocation12_spill] sm:$0xff] %v12214_v40  ;;  %v12235_v28 = vadd.f32 %v1469_v46, %v1371_v36  ;;  %10750 = vmatmul.mubr.f32.gmra.mxu0 %v11820_v4  ;;  %v1391_v47 = vpop.f32.mrf.mxu0  ;;  %4982 = vmatprep.subr.mxu0 %v12135_v23  ;;  %v4656_v36 = vsel %vm2793_vm6, %v41_v1, 0  ;;  %v43_v1 = vld [vmem:[%s15161_s3 + $0x38] sm:$0xff] }
 0x130   :  { %v1474_v49 = vpop.f32.mrf.mxu1  ;;  %10742 = vmatmul.mubr.f32.gmra.mxu1 %v11875_v15  ;;  %v1392_v52 = vadd.f32 %v1391_v47, %v1281_v58  ;;  %4730 = vmatprep.mubr.f32.mxu0 %v15186_v3  ;;  %v12259_v15 = vsub.f32 %v4653_v38, %v12233_v32  ;;  %v12268_v39 = vand.u32 4294901760, %v4656_v36  ;;  %v4659_v38 = vsel %vm2793_vm6, %v42_v10, 0 }
 0x131   :  { %15443 = vst [vmem:[#allocation13_spill] sm:$0xff] %v12235_v28  ;;  %v12249_v27 = vadd.f32 %v1474_v49, %v1376_v26  ;;  %v1570_v44 = vpop.f32.mrf.mxu0  ;;  %10754 = vmatprep.mubr.f32.mxu1 %v11739_v12  ;;  %v4756_v12 = vsub.f32 %v12209_v51, %v12244_v50 }
 0x132   :  { %v1476_v56 = vpop.f32.mrf.mxu1  ;;  %v12295_v49 = vsub.f32 %v4656_v36, %v12268_v39 }
 0x133   :  { %15444 = vst [vmem:[#allocation14_spill] sm:$0xff] %v12249_v27  ;;  %v12261_v58 = vadd.f32 %v1476_v56, %v1378_v14  ;;  %4736 = vmatmul.mubr.f32.vlgmr.msra.gmra.mxu0 %v12238_v16  ;;  %v1572_v26 = vpop.f32.mrf.mxu0  ;;  %v12292_v11 = vand.u32 4294901760, %v4756_v12 }
 0x134   :  { %v1481_v6 = vpop.f32.mrf.mxu1  ;;  %10755 = vmatmul.mubr.f32.vlgmr.msra.gmra.mxu1 %v11765_v55  ;;  %4741 = vmatprep.mubr.f32.mxu0 %v15186_v3  ;;  %v4767_v55 = vsub.f32 %v12231_v21, %v12256_v54 }
 0x135   :  { %15445 = vst [vmem:[#allocation15_spill] sm:$0xff] %v12261_v58  ;;  %v12273_v31 = vadd.f32 %v1481_v6, %v1383_v20  ;;  %4860 = vmatpush1.msra.mxu1 %v4859_v19  ;;  %v1581_v14 = vpop.f32.mrf.mxu0  ;;  %10757 = vmatprep.mubr.f32.mxu1 %v11795_v60  ;;  %v12287_v20 = vand.u32 4294901760, %v12259_v15  ;;  %v12297_v19 = vand.u32 4294901760, %v4659_v38 }
 0x136   :  { %v1483_v46 = vpop.f32.mrf.mxu1  ;;  %4985 = vmatpush1.msra.mxu0 %v12170_v5  ;;  %10043 = vmatprep.subr.msk.mxu1 %vm4616_vm12, %v15168_v29  ;;  %v12307_v36 = vand.u32 4294901760, %v4767_v55 }
 0x137   :  { %15446 = vst [vmem:[#allocation16_spill] sm:$0xff] %v12273_v31  ;;  %v12289_v47 = vadd.f32 %v1483_v46, %v1385_v22  ;;  %4747 = vmatmul.mubr.f32.gmra.mxu0 %v12264_v61  ;;  %v1583_v60 = vpop.f32.mrf.mxu0  ;;  %5255 = vmatprep.subr.mxu0 %v4851_v30  ;;  %v4662_v22 = vsel %vm2793_vm6, %v43_v1, 0  ;;  %v4778_v46 = vsub.f32 %v12259_v15, %v12287_v20  ;;  %v12315_v30 = vand.u32 4294901760, %v12295_v49 }
 0x138   :  { %v1488_v10 = vpop.f32.mrf.mxu1  ;;  %10758 = vmatmul.mubr.f32.gmra.mxu1 %v11820_v4  ;;  %4752 = vmatprep.mubr.f32.mxu0 %v15186_v3  ;;  %v12320_v1 = vand.u32 4294901760, %v4662_v22 }
 0x139   :  { %15447 = vst [vmem:[#allocation17_spill] sm:$0xff] %v12289_v47  ;;  %v12304_v56 = vadd.f32 %v1488_v10, %v1390_v24  ;;  %v1592_v6 = vpop.f32.mrf.mxu0  ;;  %4893 = vmatprep.mubr.f32.mxu1 %v15186_v3  ;;  %v12318_v24 = vsub.f32 %v4659_v38, %v12297_v19  ;;  %v12329_v35 = vand.u32 4294901760, %v4778_v46 }
 0x13a   :  { %v1490_v12 = vpop.f32.mrf.mxu1  ;;  %v12342_v53 = vsub.f32 %v4662_v22, %v12320_v1 }
 0x13b   :  { %15448 = vst [vmem:[#allocation18_spill] sm:$0xff] %v12304_v56  ;;  %v12311_v23 = vadd.f32 %v1490_v12, %v1392_v52  ;;  %4758 = vmatmul.mubr.f32.gmra.mxu0 %v12292_v11  ;;  %v1594_v4 = vpop.f32.mrf.mxu0  ;;  %v12339_v9 = vand.u32 4294901760, %v12318_v24 }
 0x13c   :  { %v1705_v10 = vpop.f32.mrf.mxu1  ;;  %4895 = vmatmul.mubr.f32.vlgmr.msra.gmra.mxu1 %v12137_v0  ;;  %4763 = vmatprep.mubr.f32.mxu0 %v15186_v3  ;;  %v12353_v58 = vand.u32 4294901760, %v12342_v53 }
 0x13d   :  { %15449 = vst [vmem:[#allocation19_spill] sm:$0xff] %v12311_v23  ;;  %v1706_v55 = vadd.f32 %v1705_v10, %v1570_v44  ;;  %10044 = vmatpush1.msk.msra.mxu1 %vm4609_vm13, %v15168_v29  ;;  %v1603_v52 = vpop.f32.mrf.mxu0  ;;  %4900 = vmatprep.mubr.f32.mxu1 %v15186_v3  ;;  %v4789_v10 = vsub.f32 %v12295_v49, %v12315_v30 }
 0x13e   :  { %v1707_v12 = vpop.f32.mrf.mxu1  ;;  %10045 = vmatprep.subr.msk.mxu1 %vm4616_vm12, %v15168_v29  ;;  %v4800_v22 = vsub.f32 %v12318_v24, %v12339_v9  ;;  %v4811_v27 = vsub.f32 %v12342_v53, %v12353_v58 }
 0x13f   :  { %v1708_v38 = vadd.f32 %v1707_v12, %v1572_v26  ;;  %4769 = vmatmul.mubr.f32.gmra.mxu0 %v12307_v36  ;;  %v1605_v44 = vpop.f32.mrf.mxu0  ;;  %v12348_v47 = vand.u32 4294901760, %v4789_v10 }
 0x140   :  { %v1712_v46 = vpop.f32.mrf.mxu1  ;;  %4902 = vmatmul.mubr.f32.gmra.mxu1 %v12158_v33  ;;  %4774 = vmatprep.mubr.f32.mxu0 %v15186_v3 }
 0x141   :  { %v1713_v59 = vadd.f32 %v1712_v46, %v1581_v14  ;;  %v1811_v29 = vpop.f32.mrf.mxu0  ;;  %4907 = vmatprep.mubr.f32.mxu1 %v15186_v3 }
 0x142   :  { %v1714_v26 = vpop.f32.mrf.mxu1  ;;  %v1812_v12 = vadd.f32 %v1811_v29, %v1706_v55  ;;  %v12360_v29 = vld [vmem:[%s15158_s0 + $0x8] sm:$0xff] }
 0x143   :  { %v1715_v18 = vadd.f32 %v1714_v26, %v1583_v60  ;;  %4780 = vmatmul.mubr.f32.gmra.mxu0 %v12329_v35  ;;  %v1813_v23 = vpop.f32.mrf.mxu0  ;;  %v15450_v60 = vsub.s32 7, %v10928_v8 }
 0x144   :  { %v1719_v28 = vpop.f32.mrf.mxu1  ;;  %4909 = vmatmul.mubr.f32.gmra.mxu1 %v12190_v57  ;;  %v1814_v14 = vadd.f32 %v1813_v23, %v1708_v38  ;;  %4785 = vmatprep.mubr.f32.mxu0 %v15186_v3  ;;  %v12369_v38 = vand.u32 4294901760, %v4800_v22 }
 0x145   :  { %v12365_v55 = vrot.slane %v12360_v29, %v15450_v60  ;;  %v1720_v10 = vadd.f32 %v1719_v28, %v1592_v6  ;;  %v1819_v46 = vpop.f32.mrf.mxu0  ;;  %4914 = vmatprep.mubr.f32.mxu1 %v15186_v3 }
 0x146   :  { %v1721_v26 = vpop.f32.mrf.mxu1  ;;  %v1820_v56 = vadd.f32 %v1819_v46, %v1713_v59 }
 0x147   :  { %v1722_v31 = vadd.f32 %v1721_v26, %v1594_v4  ;;  %4791 = vmatmul.mubr.f32.gmra.mxu0 %v12348_v47  ;;  %v1821_v23 = vpop.f32.mrf.mxu0  ;;  %vm4630_vm14 = vcmp.eq.s32.totalorder %v12365_v55, %v10928_v8  ;;  %v12379_v26 = vand.u32 4294901760, %v4811_v27 }
 0x148   :  { %v1726_v40 = vpop.f32.mrf.mxu1  ;;  %4916 = vmatmul.mubr.f32.gmra.mxu1 %v12202_v13  ;;  %v1822_v60 = vadd.f32 %v1821_v23, %v1715_v18  ;;  %4796 = vmatprep.mubr.f32.mxu0 %v15186_v3  ;;  %v10038_v18 = vsel %vm4630_vm14, 1.0, %v15186_v3 }
 0x149   :  { %v1727_v28 = vadd.f32 %v1726_v40, %v1603_v52  ;;  %v1827_v6 = vpop.f32.mrf.mxu0  ;;  %4921 = vmatprep.mubr.f32.mxu1 %v15186_v3 }
 0x14a   :  { %v1728_v4 = vpop.f32.mrf.mxu1  ;;  %v1828_v59 = vadd.f32 %v1827_v6, %v1720_v10  ;;  %v12388_v6 = vsub.f32 %v10038_v18, %v10038_v18 }
 0x14b   :  { %v1729_v22 = vadd.f32 %v1728_v4, %v1605_v44  ;;  %4802 = vmatmul.mubr.f32.gmra.mxu0 %v12369_v38  ;;  %v1829_v46 = vpop.f32.mrf.mxu0 }
 0x14c   :  { %v1915_v23 = vpop.f32.mrf.mxu1  ;;  %4923 = vmatmul.mubr.f32.gmra.mxu1 %v12233_v32  ;;  %v1830_v40 = vadd.f32 %v1829_v46, %v1722_v31  ;;  %4807 = vmatprep.mubr.f32.mxu0 %v15186_v3 }
 0x14d   :  { %v1916_v52 = vadd.f32 %v1915_v23, %v1812_v12  ;;  %v1835_v45 = vpop.f32.mrf.mxu0  ;;  %4928 = vmatprep.mubr.f32.mxu1 %v15186_v3 }
 0x14e   :  { %v1917_v44 = vpop.f32.mrf.mxu1  ;;  %v1836_v10 = vadd.f32 %v1835_v45, %v1727_v28  ;;  %v15174_v45 = vand.u32 4294901760, %v12388_v6 }
 0x14f   :  { %v1918_v27 = vadd.f32 %v1917_v44, %v1814_v14  ;;  %4813 = vmatmul.mubr.f32.gmra.mxu0 %v12379_v26  ;;  %v1837_v4 = vpop.f32.mrf.mxu0 }
 0x150   :  { %v1924_v37 = vpop.f32.mrf.mxu1  ;;  %4930 = vmatmul.mubr.f32.gmra.mxu1 %v12268_v39  ;;  %v1838_v41 = vadd.f32 %v1837_v4, %v1729_v22  ;;  %5018 = vmatprep.mubr.f32.mxu0 %v15186_v3 }
 0x151   :  { %v1925_v31 = vadd.f32 %v1924_v37, %v1820_v56  ;;  %v2032_v46 = vpop.f32.mrf.mxu0  ;;  %4935 = vmatprep.mubr.f32.mxu1 %v15186_v3  ;;  %v15451_v37 = vand.u32 4294901760, %v12170_v5 }
 0x152   :  { %v1926_v12 = vpop.f32.mrf.mxu1  ;;  %v2033_v23 = vadd.f32 %v2032_v46, %v1916_v52  ;;  %v15452_v46 = vmov 1.0  }
 0x153   :  { %v1927_v28 = vadd.f32 %v1926_v12, %v1822_v60  ;;  %5021 = vmatmul.mubr.f32.vlgmr.msra.gmra.mxu0 %v12154_v25  ;;  %v2034_v14 = vpop.f32.mrf.mxu0  ;;  %v5660_v60 = vsub.f32 %v12388_v6, %v15174_v45 }
 0x154   :  { %v1933_v18 = vpop.f32.mrf.mxu1  ;;  %4937 = vmatmul.mubr.f32.gmra.mxu1 %v12297_v19  ;;  %v2035_v44 = vadd.f32 %v2034_v14, %v1918_v27  ;;  %5026 = vmatprep.mubr.f32.mxu0 %v15186_v3 }
 0x155   :  { %v1934_v22 = vadd.f32 %v1933_v18, %v1828_v59  ;;  %v2039_v4 = vpop.f32.mrf.mxu0  ;;  %4942 = vmatprep.mubr.f32.mxu1 %v15186_v3  ;;  %5259 = vmatpush1.msra.mxu0 %v15451_v37  ;;  %v5661_v37 = vand.u32 4294901760, %v5660_v60 }
 0x156   :  { %v1935_v56 = vpop.f32.mrf.mxu1  ;;  %v2040_v52 = vadd.f32 %v2039_v4, %v1925_v31  ;;  %10047 = vmatprep.subr.msk.mxu0 %vm4630_vm14, %v15452_v46 }
 0x157   :  { %v1936_v27 = vadd.f32 %v1935_v56, %v1830_v40  ;;  %5029 = vmatmul.mubr.f32.gmra.mxu0 %v12188_v42  ;;  %v2041_v59 = vpop.f32.mrf.mxu0 }
 0x158   :  { %v1942_v12 = vpop.f32.mrf.mxu1  ;;  %4944 = vmatmul.mubr.f32.gmra.mxu1 %v12320_v1  ;;  %v2042_v5 = vadd.f32 %v2041_v59, %v1927_v28  ;;  %5034 = vmatprep.mubr.f32.mxu0 %v15186_v3 }
 0x159   :  { %v1943_v31 = vadd.f32 %v1942_v12, %v1836_v10  ;;  %v2046_v14 = vpop.f32.mrf.mxu0  ;;  %5149 = vmatprep.mubr.f32.mxu1 %v15186_v3 }
 0x15a   :  { %v1944_v18 = vpop.f32.mrf.mxu1  ;;  %v2047_v4 = vadd.f32 %v2046_v14, %v1934_v22 }
 0x15b   :  { %v1945_v25 = vadd.f32 %v1944_v18, %v1838_v41  ;;  %5037 = vmatmul.mubr.f32.gmra.mxu0 %v12209_v51  ;;  %v2048_v40 = vpop.f32.mrf.mxu0 }
 0x15c   :  { %v2131_v56 = vpop.f32.mrf.mxu1  ;;  %5153 = vmatmul.mubr.f32.vlgmr.msra.gmra.mxu1 %v12177_v2  ;;  %v2049_v45 = vadd.f32 %v2048_v40, %v1936_v27  ;;  %5042 = vmatprep.mubr.f32.mxu0 %v15186_v3 }
 0x15d   :  { %v12415_v28 = vadd.f32 %v2131_v56, %v2033_v23  ;;  %10046 = vmatpush1.msk.msra.mxu1 %vm4609_vm13, %v15452_v46  ;;  %v2053_v10 = vpop.f32.mrf.mxu0  ;;  %5158 = vmatprep.mubr.f32.mxu1 %v15186_v3 }
 0x15e   :  { %v2133_v41 = vpop.f32.mrf.mxu1  ;;  %v2054_v22 = vadd.f32 %v2053_v10, %v1943_v31  ;;  %5662 = vmatprep.subr.mxu1 %v5661_v37  ;;  %v15457_v31 = vsub.s32 6, %v10928_v8 }
 0x15f   :  { %15453 = vst [vmem:[#allocation20_spill] sm:$0xff] %v12415_v28  ;;  %v12422_v60 = vadd.f32 %v2133_v41, %v2035_v44  ;;  %5045 = vmatmul.mubr.f32.gmra.mxu0 %v12231_v21  ;;  %v2055_v27 = vpop.f32.mrf.mxu0 }
 0x160   :  { %v2138_v59 = vpop.f32.mrf.mxu1  ;;  %5162 = vmatmul.mubr.f32.gmra.mxu1 %v12206_v62  ;;  %v2056_v23 = vadd.f32 %v2055_v27, %v1945_v25  ;;  %5050 = vmatprep.mubr.f32.mxu0 %v15186_v3  ;;  %v12436_v37 = vrot.slane %v12360_v29, %v15457_v31 }
 0x161   :  { %15454 = vst [vmem:[#allocation21_spill] sm:$0xff] %v12422_v60  ;;  %v12427_v12 = vadd.f32 %v2138_v59, %v2040_v52  ;;  %v10648_v48 = vpop.f32.mrf.mxu0  ;;  %5167 = vmatprep.mubr.f32.mxu1 %v15186_v3 }
 0x162   :  { %v2140_v14 = vpop.f32.mrf.mxu1  ;;  %vm4623_vm15 = vcmp.eq.s32.totalorder %v12436_v37, %v10928_v8 }
 0x163   :  { %15455 = vst [vmem:[#allocation22_spill] sm:$0xff] %v12427_v12  ;;  %v12430_v18 = vadd.f32 %v2140_v14, %v2042_v5  ;;  %5053 = vmatmul.mubr.f32.gmra.mxu0 %v12259_v15  ;;  %v2231_v44 = vpop.f32.mrf.mxu0 }
 0x164   :  { %v2145_v40 = vpop.f32.mrf.mxu1  ;;  %5171 = vmatmul.mubr.f32.gmra.mxu1 %v12244_v50  ;;  %5058 = vmatprep.mubr.f32.mxu0 %v15186_v3 }
 0x165   :  { %15456 = vst [vmem:[#allocation23_spill] sm:$0xff] %v12430_v18  ;;  %v12440_v25 = vadd.f32 %v2145_v40, %v2047_v4  ;;  %v10651_v52 = vpop.f32.mrf.mxu0  ;;  %5176 = vmatprep.mubr.f32.mxu1 %v15186_v3 }
 0x166   :  { %v2147_v5 = vpop.f32.mrf.mxu1 }
 0x167   :  { %15458 = vst [vmem:[#allocation24_spill] sm:$0xff] %v12440_v25  ;;  %v12443_v56 = vadd.f32 %v2147_v5, %v2049_v45  ;;  %5061 = vmatmul.mubr.f32.gmra.mxu0 %v12295_v49  ;;  %v2251_v10 = vpop.f32.mrf.mxu0  ;;  %v10037_v45 = vsel %vm4623_vm15, 1.0, %v15186_v3 }
 0x168   :  { %v2152_v29 = vpop.f32.mrf.mxu1  ;;  %5180 = vmatmul.mubr.f32.gmra.mxu1 %v12256_v54  ;;  %5066 = vmatprep.mubr.f32.mxu0 %v15186_v3  ;;  %v12463_v40 = vsub.f32 %v10037_v45, %v10037_v45 }
 0x169   :  { %15459 = vst [vmem:[#allocation25_spill] sm:$0xff] %v12443_v56  ;;  %v12450_v41 = vadd.f32 %v2152_v29, %v2054_v22  ;;  %v10672_v4 = vpop.f32.mrf.mxu0  ;;  %5185 = vmatprep.mubr.f32.mxu1 %v15186_v3 }
 0x16a   :  { %v2154_v27 = vpop.f32.mrf.mxu1 }
 0x16b   :  { %15460 = vst [vmem:[#allocation26_spill] sm:$0xff] %v12450_v41  ;;  %v12457_v59 = vadd.f32 %v2154_v27, %v2056_v23  ;;  %5069 = vmatmul.mubr.f32.gmra.mxu0 %v12318_v24  ;;  %v2443_v14 = vpop.f32.mrf.mxu0 }
 0x16c   :  { %v10660_v31 = vpop.f32.mrf.mxu1  ;;  %5189 = vmatmul.mubr.f32.gmra.mxu1 %v12287_v20  ;;  %5074 = vmatprep.mubr.f32.mxu0 %v15186_v3 }
 0x16d   :  { %15461 = vst [vmem:[#allocation27_spill] sm:$0xff] %v12457_v59  ;;  %v2354_v22 = vadd.f32 %v10660_v31, %v10648_v48  ;;  %5194 = vmatprep.mubr.f32.mxu1 %v15186_v3  ;;  %v15175_v31 = vand.u32 4294901760, %v12463_v40 }
 0x16e   :  { %v2347_v5 = vpop.f32.mrf.mxu1  ;;  %v10675_v29 = vpop.f32.mrf.mxu0 }
 0x16f   :  { %v2348_v60 = vadd.f32 %v2347_v5, %v2231_v44  ;;  %5077 = vmatmul.mubr.f32.gmra.mxu0 %v12342_v53  ;;  %v2451_v23 = vadd.f32 %v10672_v4, %v2354_v22 }
 0x170   :  { %v10663_v27 = vpop.f32.mrf.mxu1  ;;  %5198 = vmatmul.mubr.f32.gmra.mxu1 %v12315_v30  ;;  %v2457_v18 = vpop.f32.mrf.mxu0  ;;  %5292 = vmatprep.mubr.f32.mxu0 %v15186_v3 }
 0x171   :  { %v2366_v59 = vadd.f32 %v10663_v27, %v10651_v52  ;;  %5203 = vmatprep.mubr.f32.mxu1 %v15186_v3  ;;  %v2444_v48 = vadd.f32 %v2443_v14, %v2348_v60  ;;  %v5666_v60 = vsub.f32 %v12463_v40, %v15175_v31 }
 0x172   :  { %v2359_v45 = vpop.f32.mrf.mxu1 }
 0x173   :  { %v2360_v56 = vadd.f32 %v2359_v45, %v2251_v10  ;;  %v10696_v41 = vpop.f32.mrf.mxu0  ;;  %5294 = vmatmul.mubr.f32.vlgmr.msra.gmra.mxu0 %v12137_v0  ;;  %v2465_v44 = vadd.f32 %v10675_v29, %v2366_v59  ;;  %v5667_v27 = vand.u32 4294901760, %v5666_v60 }
 0x174   :  { %v10684_v5 = vpop.f32.mrf.mxu1  ;;  %5207 = vmatmul.mubr.f32.gmra.mxu1 %v12339_v9  ;;  %5299 = vmatprep.mubr.f32.mxu0 %v15186_v3 }
 0x175   :  { %v2549_v4 = vadd.f32 %v10684_v5, %v2451_v23  ;;  %v2644_v22 = vpop.f32.mrf.mxu0  ;;  %5212 = vmatprep.mubr.f32.mxu1 %v15186_v3  ;;  %v2458_v52 = vadd.f32 %v2457_v18, %v2360_v56  ;;  %10048 = vmatpush1.msk.msra.mxu0 %vm4623_vm15, %v15452_v46 }
 0x176   :  { %v2540_v10 = vpop.f32.mrf.mxu1  ;;  %5790 = vmatprep.subr.mxu0 %v12388_v6 }
 0x177   :  { %v2541_v59 = vadd.f32 %v2540_v10, %v2444_v48  ;;  %v10699_v14 = vpop.f32.mrf.mxu0  ;;  %5301 = vmatmul.mubr.f32.gmra.mxu0 %v12158_v33  ;;  %v2651_v29 = vadd.f32 %v10696_v41, %v2549_v4 }
 0x178   :  { %v10687_v23 = vpop.f32.mrf.mxu1  ;;  %5216 = vmatmul.mubr.f32.gmra.mxu1 %v12353_v58  ;;  %5306 = vmatprep.mubr.f32.mxu0 %v15186_v3 }
 0x179   :  { %v2565_v18 = vadd.f32 %v10687_v23, %v2465_v44  ;;  %v2656_v56 = vpop.f32.mrf.mxu0  ;;  %5415 = vmatprep.mubr.f32.mxu1 %v15186_v3  ;;  %v2645_v45 = vadd.f32 %v2644_v22, %v2541_v59 }
 0x17a   :  { %v2556_v5 = vpop.f32.mrf.mxu1 }
 0x17b   :  { %v2557_v31 = vadd.f32 %v2556_v5, %v2458_v52  ;;  %v2879_v25 = vpop.f32.mrf.mxu0  ;;  %5308 = vmatmul.mubr.f32.gmra.mxu0 %v12190_v57  ;;  %v2663_v48 = vadd.f32 %v10699_v14, %v2565_v18 }
 0x17c   :  { %v10708_v10 = vpop.f32.mrf.mxu1  ;;  %5417 = vmatmul.mubr.f32.vlgmr.msra.gmra.mxu1 %v12137_v0  ;;  %5313 = vmatprep.mubr.f32.mxu0 %v15186_v3 }
 0x17d   :  { %v12489_v41 = vadd.f32 %v10708_v10, %v2651_v29  ;;  %v2881_v4 = vpop.f32.mrf.mxu0  ;;  %5668 = vmatpush1.msra.mxu1 %v5667_v27  ;;  %5422 = vmatprep.mubr.f32.mxu1 %v15186_v3  ;;  %v2657_v44 = vadd.f32 %v2656_v56, %v2557_v31 }
 0x17e   :  { %v2736_v60 = vpop.f32.mrf.mxu1  ;;  %10049 = vmatprep.subr.msk.mxu1 %vm4630_vm14, %v15452_v46 }
 0x17f   :  { %15462 = vst [vmem:[#allocation28_spill] sm:$0xff] %v12489_v41  ;;  %v12496_v22 = vadd.f32 %v2736_v60, %v2645_v45  ;;  %v2890_v52 = vpop.f32.mrf.mxu0  ;;  %5315 = vmatmul.mubr.f32.gmra.mxu0 %v12202_v13 }
 0x180   :  { %v10711_v59 = vpop.f32.mrf.mxu1  ;;  %5424 = vmatmul.mubr.f32.gmra.mxu1 %v12158_v33  ;;  %5320 = vmatprep.mubr.f32.mxu0 %v15186_v3 }
 0x181   :  { %15463 = vst [vmem:[#allocation29_spill] sm:$0xff] %v12496_v22  ;;  %v12501_v14 = vadd.f32 %v10711_v59, %v2663_v48  ;;  %v2892_v29 = vpop.f32.mrf.mxu0  ;;  %5429 = vmatprep.mubr.f32.mxu1 %v15186_v3 }
 0x182   :  { %v2748_v31 = vpop.f32.mrf.mxu1 }
 0x183   :  { %15464 = vst [vmem:[#allocation30_spill] sm:$0xff] %v12501_v14  ;;  %v12504_v23 = vadd.f32 %v2748_v31, %v2657_v44  ;;  %v2901_v18 = vpop.f32.mrf.mxu0  ;;  %5322 = vmatmul.mubr.f32.gmra.mxu0 %v12233_v32 }
 0x184   :  { %v2994_v56 = vpop.f32.mrf.mxu1  ;;  %5431 = vmatmul.mubr.f32.gmra.mxu1 %v12190_v57  ;;  %5327 = vmatprep.mubr.f32.mxu0 %v15186_v3 }
 0x185   :  { %15465 = vst [vmem:[#allocation31_spill] sm:$0xff] %v12504_v23  ;;  %v2903_v27 = vpop.f32.mrf.mxu0  ;;  %5436 = vmatprep.mubr.f32.mxu1 %v15186_v3  ;;  %v2995_v45 = vadd.f32 %v2994_v56, %v2879_v25 }
 0x186   :  { %v2996_v5 = vpop.f32.mrf.mxu1 }
 0x187   :  { %v2912_v48 = vpop.f32.mrf.mxu0  ;;  %5329 = vmatmul.mubr.f32.gmra.mxu0 %v12268_v39  ;;  %v2997_v10 = vadd.f32 %v2996_v5, %v2881_v4 }
 0x188   :  { %v3001_v60 = vpop.f32.mrf.mxu1  ;;  %5438 = vmatmul.mubr.f32.gmra.mxu1 %v12202_v13  ;;  %5334 = vmatprep.mubr.f32.mxu0 %v15186_v3 }
 0x189   :  { %v3002_v44 = vadd.f32 %v3001_v60, %v2890_v52  ;;  %v2914_v59 = vpop.f32.mrf.mxu0  ;;  %5443 = vmatprep.mubr.f32.mxu1 %v15186_v3 }
 0x18a   :  { %v3003_v31 = vpop.f32.mrf.mxu1 }
 0x18b   :  { %v3004_v22 = vadd.f32 %v3003_v31, %v2892_v29  ;;  %v3092_v23 = vpop.f32.mrf.mxu0  ;;  %5336 = vmatmul.mubr.f32.gmra.mxu0 %v12297_v19 }
 0x18c   :  { %v3093_v25 = vadd.f32 %v3092_v23, %v2995_v45  ;;  %v3008_v56 = vpop.f32.mrf.mxu1  ;;  %5445 = vmatmul.mubr.f32.gmra.mxu1 %v12233_v32  ;;  %5341 = vmatprep.mubr.f32.mxu0 %v15186_v3 }
 0x18d   :  { %v3009_v4 = vadd.f32 %v3008_v56, %v2901_v18  ;;  %v3094_v5 = vpop.f32.mrf.mxu0  ;;  %5450 = vmatprep.mubr.f32.mxu1 %v15186_v3 }
 0x18e   :  { %v3095_v14 = vadd.f32 %v3094_v5, %v2997_v10  ;;  %v3010_v52 = vpop.f32.mrf.mxu1 }
 0x18f   :  { %v3011_v60 = vadd.f32 %v3010_v52, %v2903_v27  ;;  %v3100_v41 = vpop.f32.mrf.mxu0  ;;  %5343 = vmatmul.mubr.f32.gmra.mxu0 %v12320_v1 }
 0x190   :  { %v3101_v29 = vadd.f32 %v3100_v41, %v3002_v44  ;;  %v3015_v31 = vpop.f32.mrf.mxu1  ;;  %5452 = vmatmul.mubr.f32.gmra.mxu1 %v12268_v39  ;;  %5538 = vmatprep.mubr.f32.mxu0 %v15186_v3 }
 0x191   :  { %v3016_v23 = vadd.f32 %v3015_v31, %v2912_v48  ;;  %v3102_v45 = vpop.f32.mrf.mxu0  ;;  %5457 = vmatprep.mubr.f32.mxu1 %v15186_v3 }
 0x192   :  { %v3103_v18 = vadd.f32 %v3102_v45, %v3004_v22  ;;  %v3017_v56 = vpop.f32.mrf.mxu1  ;;  %v15466_v22 = vand.u32 4294901760, %v12388_v6 }
 0x193   :  { %v3018_v12 = vadd.f32 %v3017_v56, %v2914_v59  ;;  %v3108_v28 = vpop.f32.mrf.mxu0  ;;  %5544 = vmatmul.mubr.f32.vlgmr.msra.gmra.mxu0 %v12238_v16 }
 0x194   :  { %v3109_v27 = vadd.f32 %v3108_v28, %v3009_v4  ;;  %v3192_v10 = vpop.f32.mrf.mxu1  ;;  %5459 = vmatmul.mubr.f32.gmra.mxu1 %v12297_v19  ;;  %5549 = vmatprep.mubr.f32.mxu0 %v15186_v3 }
 0x195   :  { %v3193_v41 = vadd.f32 %v3192_v10, %v3093_v25  ;;  %v3110_v44 = vpop.f32.mrf.mxu0  ;;  %5464 = vmatprep.mubr.f32.mxu1 %v15186_v3  ;;  %5793 = vmatpush1.msra.mxu0 %v12463_v40 }
 0x196   :  { %v3111_v48 = vadd.f32 %v3110_v44, %v3011_v60  ;;  %v3194_v5 = vpop.f32.mrf.mxu1  ;;  %6063 = vmatprep.subr.mxu0 %v15466_v22 }
 0x197   :  { %v3195_v59 = vadd.f32 %v3194_v5, %v3095_v14  ;;  %v3116_v52 = vpop.f32.mrf.mxu0  ;;  %5555 = vmatmul.mubr.f32.gmra.mxu0 %v12264_v61 }
 0x198   :  { %v3117_v28 = vadd.f32 %v3116_v52, %v3016_v23  ;;  %v3201_v4 = vpop.f32.mrf.mxu1  ;;  %5466 = vmatmul.mubr.f32.gmra.mxu1 %v12320_v1  ;;  %5560 = vmatprep.mubr.f32.mxu0 %v15186_v3 }
 0x199   :  { %v3202_v25 = vadd.f32 %v3201_v4, %v3101_v29  ;;  %v3118_v31 = vpop.f32.mrf.mxu0  ;;  %5701 = vmatprep.mubr.f32.mxu1 %v15186_v3 }
 0x19a   :  { %v3119_v45 = vadd.f32 %v3118_v31, %v3018_v12  ;;  %v3203_v60 = vpop.f32.mrf.mxu1 }
 0x19b   :  { %v3204_v56 = vadd.f32 %v3203_v60, %v3103_v18  ;;  %v3297_v10 = vpop.f32.mrf.mxu0  ;;  %5566 = vmatmul.mubr.f32.gmra.mxu0 %v12292_v11 }
 0x19c   :  { %v3298_v6 = vadd.f32 %v3297_v10, %v3193_v41  ;;  %v3210_v14 = vpop.f32.mrf.mxu1  ;;  %5703 = vmatmul.mubr.f32.vlgmr.msra.gmra.mxu1 %v12137_v0  ;;  %5571 = vmatprep.mubr.f32.mxu0 %v15186_v3 }
 0x19d   :  { %v3211_v23 = vadd.f32 %v3210_v14, %v3109_v27  ;;  %v3299_v44 = vpop.f32.mrf.mxu0  ;;  %10050 = vmatpush1.msk.msra.mxu1 %vm4623_vm15, %v15452_v46  ;;  %5708 = vmatprep.mubr.f32.mxu1 %v15186_v3 }
 0x19e   :  { %v3300_v12 = vadd.f32 %v3299_v44, %v3195_v59  ;;  %v3212_v29 = vpop.f32.mrf.mxu1  ;;  %10051 = vmatprep.subr.msk.mxu1 %vm4630_vm14, %v15452_v46 }
 0x19f   :  { %v3213_v18 = vadd.f32 %v3212_v29, %v3111_v48  ;;  %v3304_v41 = vpop.f32.mrf.mxu0  ;;  %5577 = vmatmul.mubr.f32.gmra.mxu0 %v12307_v36 }
 0x1a0   :  { %v3305_v27 = vadd.f32 %v3304_v41, %v3202_v25  ;;  %v3219_v5 = vpop.f32.mrf.mxu1  ;;  %5710 = vmatmul.mubr.f32.gmra.mxu1 %v12158_v33  ;;  %5582 = vmatprep.mubr.f32.mxu0 %v15186_v3 }
 0x1a1   :  { %v3220_v22 = vadd.f32 %v3219_v5, %v3117_v28  ;;  %v3306_v52 = vpop.f32.mrf.mxu0  ;;  %5715 = vmatprep.mubr.f32.mxu1 %v15186_v3  ;;  %v10039_v28 = vld [vmem:[%s15158_s0 + $0x10] ss:$0 sm:$0xff] }
 0x1a2   :  { %v3307_v59 = vadd.f32 %v3306_v52, %v3204_v56  ;;  %v3221_v4 = vpop.f32.mrf.mxu1  ;;  %vm12560_vm0 = vcmp.eq.s32.totalorder %v10039_v28, %v10928_v8 }
 0x1a3   :  { %v3222_v31 = vadd.f32 %v3221_v4, %v3119_v45  ;;  %v3311_v60 = vpop.f32.mrf.mxu0  ;;  %5588 = vmatmul.mubr.f32.gmra.mxu0 %v12329_v35 }
 0x1a4   :  { %v3312_v55 = vadd.f32 %v3311_v60, %v3211_v23  ;;  %v3392_v48 = vpop.f32.mrf.mxu1  ;;  %5717 = vmatmul.mubr.f32.gmra.mxu1 %v12190_v57  ;;  %5593 = vmatprep.mubr.f32.mxu0 %v15186_v3 }
 0x1a5   :  { %v3393_v25 = vadd.f32 %v3392_v48, %v3298_v6  ;;  %v3313_v10 = vpop.f32.mrf.mxu0  ;;  %5722 = vmatprep.mubr.f32.mxu1 %v15186_v3 }
 0x1a6   :  { %v3314_v56 = vadd.f32 %v3313_v10, %v3213_v18  ;;  %v3394_v14 = vpop.f32.mrf.mxu1 }
 0x1a7   :  { %v7027_v45 = vsub.f32 1.0, %v3393_v25  ;;  %v3395_v44 = vadd.f32 %v3394_v14, %v3300_v12  ;;  %v3318_v29 = vpop.f32.mrf.mxu0  ;;  %5599 = vmatmul.mubr.f32.gmra.mxu0 %v12348_v47 }
 0x1a8   :  { %v3319_v23 = vadd.f32 %v3318_v29, %v3220_v22  ;;  %v3399_v41 = vpop.f32.mrf.mxu1  ;;  %5724 = vmatmul.mubr.f32.gmra.mxu1 %v12202_v13  ;;  %5604 = vmatprep.mubr.f32.mxu0 %v15186_v3 }
 0x1a9   :  { %v12565_v5 = vmul.f32 %v7027_v45, %v12043_v17  ;;  %v7063_v18 = vsub.f32 1.0, %v3395_v44  ;;  %v3400_v52 = vadd.f32 %v3399_v41, %v3305_v27  ;;  %v3320_v12 = vpop.f32.mrf.mxu0  ;;  %5729 = vmatprep.mubr.f32.mxu1 %v15186_v3  ;;  %v10040_v17 = vsel %vm12560_vm0, 1.0, %v15186_v3 }
 0x1aa   :  { %v3321_v4 = vadd.f32 %v3320_v12, %v3222_v31  ;;  %v3401_v22 = vpop.f32.mrf.mxu1  ;;  %v12581_v45 = vsub.f32 %v10040_v17, %v10040_v17 }
 0x1ab   :  { %15469 = vst [vmem:[#allocation32_spill] sm:$0xff] %v12565_v5  ;;  %v12569_v60 = vmul.f32 %v7063_v18, %v12053_v7  ;;  %v7028_v48 = vsub.f32 1.0, %v3400_v52  ;;  %v3402_v25 = vadd.f32 %v3401_v22, %v3307_v59  ;;  %v3491_v10 = vpop.f32.mrf.mxu0  ;;  %5610 = vmatmul.mubr.f32.gmra.mxu0 %v12369_v38 }
 0x1ac   :  { %v3406_v28 = vpop.f32.mrf.mxu1  ;;  %5731 = vmatmul.mubr.f32.gmra.mxu1 %v12233_v32  ;;  %5615 = vmatprep.mubr.f32.mxu0 %v15186_v3 }
 0x1ad   :  { %v12578_v27 = vmul.f32 %v7028_v48, %v12058_v34  ;;  %v7064_v31 = vsub.f32 1.0, %v3402_v25  ;;  %v3493_v7 = vpop.f32.mrf.mxu0  ;;  %5736 = vmatprep.mubr.f32.mxu1 %v15186_v3  ;;  %v3407_v59 = vadd.f32 %v3406_v28, %v3312_v55  ;;  %v12594_v48 = vand.u32 4294901760, %v12581_v45  ;;  %v15471_v28 = vld [vmem:[#allocation11_spill] sm:$0xff] }
 0x1ae   :  { %v3408_v14 = vpop.f32.mrf.mxu1 }
 0x1af   :  { %v12584_v44 = vmul.f32 %v7064_v31, %v12061_v43  ;;  %v3502_v29 = vpop.f32.mrf.mxu0  ;;  %5621 = vmatmul.mubr.f32.gmra.mxu0 %v12379_v26  ;;  %v7029_v41 = vsub.f32 1.0, %v3407_v59  ;;  %v3409_v18 = vadd.f32 %v3408_v14, %v3314_v56  ;;  %v15472_v31 = vld [vmem:[#allocation8_spill] sm:$0xff] }
 0x1b0   :  { %v3413_v52 = vpop.f32.mrf.mxu1  ;;  %5738 = vmatmul.mubr.f32.gmra.mxu1 %v12268_v39  ;;  %5826 = vmatprep.mubr.f32.mxu0 %v15186_v3 }
 0x1b1   :  { %v3414_v34 = vadd.f32 %v3413_v52, %v3319_v23  ;;  %v3504_v12 = vpop.f32.mrf.mxu0  ;;  %5743 = vmatprep.mubr.f32.mxu1 %v15186_v3  ;;  %v12591_v55 = vmul.f32 %v7029_v41, %v12066_v63  ;;  %v7065_v22 = vsub.f32 1.0, %v3409_v18  ;;  %v15473_v63 = vld [vmem:[#allocation9_spill] sm:$0xff] }
 0x1b2   :  { %v3415_v43 = vpop.f32.mrf.mxu1 }
 0x1b3   :  { %15470 = vst [vmem:[#allocation33_spill] sm:$0xff] %v12591_v55  ;;  %v7030_v25 = vsub.f32 1.0, %v3414_v34  ;;  %v3416_v17 = vadd.f32 %v3415_v43, %v3321_v4  ;;  %v3513_v56 = vpop.f32.mrf.mxu0  ;;  %5829 = vmatmul.mubr.f32.vlgmr.msra.gmra.mxu0 %v15471_v28  ;;  %v12598_v59 = vmul.f32 %v7065_v22, %v15472_v31  ;;  %v15475_v4 = vand.u32 4294901760, %v12463_v40  ;;  %v15476_v43 = vld [vmem:[#allocation10_spill] sm:$0xff] }
 0x1b4   :  { %v3606_v23 = vpop.f32.mrf.mxu1  ;;  %5745 = vmatmul.mubr.f32.gmra.mxu1 %v12297_v19  ;;  %5834 = vmatprep.mubr.f32.mxu0 %v15186_v3  ;;  %v6460_v22 = vsub.f32 %v12581_v45, %v12594_v48 }
 0x1b5   :  { %v12603_v14 = vmul.f32 %v7030_v25, %v15473_v63  ;;  %v7066_v41 = vsub.f32 1.0, %v3416_v17  ;;  %v3607_v18 = vadd.f32 %v3606_v23, %v3491_v10  ;;  %v3515_v52 = vpop.f32.mrf.mxu0  ;;  %5750 = vmatprep.mubr.f32.mxu1 %v15186_v3  ;;  %6067 = vmatpush1.msra.mxu0 %v15475_v4 }
 0x1b6   :  { %v3608_v34 = vpop.f32.mrf.mxu1  ;;  %10760 = vmatprep.subr.msk.mxu0 %vm12560_vm0, %v15452_v46  ;;  %v12620_v4 = vand.u32 4294901760, %v6460_v22 }
 0x1b7   :  { %15474 = vst [vmem:[#allocation11_spill] sm:$0xff] %v12603_v14  ;;  %v12614_v31 = vmul.f32 %v7066_v41, %v15476_v43  ;;  %v3609_v25 = vadd.f32 %v3608_v34, %v3493_v7  ;;  %v3524_v17 = vpop.f32.mrf.mxu0  ;;  %5837 = vmatmul.mubr.f32.gmra.mxu0 %v12188_v42 }
 0x1b8   :  { %v3613_v10 = vpop.f32.mrf.mxu1  ;;  %5752 = vmatmul.mubr.f32.gmra.mxu1 %v12320_v1  ;;  %5842 = vmatprep.mubr.f32.mxu0 %v15186_v3 }
 0x1b9   :  { %v3614_v40 = vadd.f32 %v3613_v10, %v3502_v29  ;;  %v3526_v23 = vpop.f32.mrf.mxu0  ;;  %5957 = vmatprep.mubr.f32.mxu1 %v15186_v3 }
 0x1ba   :  { %v3615_v63 = vpop.f32.mrf.mxu1 }
 0x1bb   :  { %v3616_v55 = vadd.f32 %v3615_v63, %v3504_v12  ;;  %v3704_v5 = vpop.f32.mrf.mxu0  ;;  %5845 = vmatmul.mubr.f32.gmra.mxu0 %v12209_v51 }
 0x1bc   :  { %v3705_v7 = vadd.f32 %v3704_v5, %v3607_v18  ;;  %v3620_v41 = vpop.f32.mrf.mxu1  ;;  %5961 = vmatmul.mubr.f32.vlgmr.msra.gmra.mxu1 %v12177_v2  ;;  %5850 = vmatprep.mubr.f32.mxu0 %v15186_v3 }
 0x1bd   :  { %v3621_v34 = vadd.f32 %v3620_v41, %v3513_v56  ;;  %v3706_v43 = vpop.f32.mrf.mxu0  ;;  %10052 = vmatpush1.msk.msra.mxu1 %vm4623_vm15, %v15452_v46  ;;  %5966 = vmatprep.mubr.f32.mxu1 %v15186_v3 }
 0x1be   :  { %v3707_v29 = vadd.f32 %v3706_v43, %v3609_v25  ;;  %v3622_v12 = vpop.f32.mrf.mxu1  ;;  %10774 = vmatprep.subr.mxu1 %v12620_v4 }
 0x1bf   :  { %v3623_v22 = vadd.f32 %v3622_v12, %v3515_v52  ;;  %v3712_v5 = vpop.f32.mrf.mxu0  ;;  %5853 = vmatmul.mubr.f32.gmra.mxu0 %v12231_v21 }
 0x1c0   :  { %v3713_v18 = vadd.f32 %v3712_v5, %v3614_v40  ;;  %v3627_v10 = vpop.f32.mrf.mxu1  ;;  %5970 = vmatmul.mubr.f32.gmra.mxu1 %v12206_v62  ;;  %5858 = vmatprep.mubr.f32.mxu0 %v15186_v3 }
 0x1c1   :  { %v3628_v56 = vadd.f32 %v3627_v10, %v3524_v17  ;;  %v3714_v63 = vpop.f32.mrf.mxu0  ;;  %5975 = vmatprep.mubr.f32.mxu1 %v15186_v3 }
 0x1c2   :  { %v3715_v37 = vadd.f32 %v3714_v63, %v3616_v55  ;;  %v3629_v41 = vpop.f32.mrf.mxu1 }
 0x1c3   :  { %v3630_v25 = vadd.f32 %v3629_v41, %v3526_v23  ;;  %v3720_v43 = vpop.f32.mrf.mxu0  ;;  %5861 = vmatmul.mubr.f32.gmra.mxu0 %v12259_v15 }
 0x1c4   :  { %v3721_v52 = vadd.f32 %v3720_v43, %v3621_v34  ;;  %v3804_v12 = vpop.f32.mrf.mxu1  ;;  %5979 = vmatmul.mubr.f32.gmra.mxu1 %v12244_v50  ;;  %5866 = vmatprep.mubr.f32.mxu0 %v15186_v3 }
 0x1c5   :  { %v3805_v40 = vadd.f32 %v3804_v12, %v3705_v7  ;;  %v3722_v5 = vpop.f32.mrf.mxu0  ;;  %5984 = vmatprep.mubr.f32.mxu1 %v15186_v3 }
 0x1c6   :  { %v3723_v17 = vadd.f32 %v3722_v5, %v3623_v22  ;;  %v3806_v10 = vpop.f32.mrf.mxu1 }
 0x1c7   :  { %v3807_v8 = vadd.f32 %v3806_v10, %v3707_v29  ;;  %v3728_v14 = vpop.f32.mrf.mxu0  ;;  %5869 = vmatmul.mubr.f32.gmra.mxu0 %v12295_v49 }
 0x1c8   :  { %v3729_v55 = vadd.f32 %v3728_v14, %v3628_v56  ;;  %v3813_v23 = vpop.f32.mrf.mxu1  ;;  %5988 = vmatmul.mubr.f32.gmra.mxu1 %v12256_v54  ;;  %5874 = vmatprep.mubr.f32.mxu0 %v15186_v3 }
 0x1c9   :  { %v3814_v34 = vadd.f32 %v3813_v23, %v3713_v18  ;;  %v3730_v63 = vpop.f32.mrf.mxu0  ;;  %5993 = vmatprep.mubr.f32.mxu1 %v15186_v3 }
 0x1ca   :  { %v3731_v7 = vadd.f32 %v3730_v63, %v3630_v25  ;;  %v3815_v41 = vpop.f32.mrf.mxu1 }
 0x1cb   :  { %v3816_v43 = vadd.f32 %v3815_v41, %v3715_v37  ;;  %v3909_v12 = vpop.f32.mrf.mxu0  ;;  %5877 = vmatmul.mubr.f32.gmra.mxu0 %v12318_v24 }
 0x1cc   :  { %v3910_v29 = vadd.f32 %v3909_v12, %v3805_v40  ;;  %v3822_v22 = vpop.f32.mrf.mxu1  ;;  %5997 = vmatmul.mubr.f32.gmra.mxu1 %v12287_v20  ;;  %5882 = vmatprep.mubr.f32.mxu0 %v15186_v3 }
 0x1cd   :  { %v3823_v14 = vadd.f32 %v3822_v22, %v3721_v52  ;;  %v3911_v56 = vpop.f32.mrf.mxu0  ;;  %6002 = vmatprep.mubr.f32.mxu1 %v15186_v3 }
 0x1ce   :  { %v3912_v18 = vadd.f32 %v3911_v56, %v3807_v8  ;;  %v3824_v5 = vpop.f32.mrf.mxu1 }
 0x1cf   :  { %v3825_v10 = vadd.f32 %v3824_v5, %v3723_v17  ;;  %v3916_v23 = vpop.f32.mrf.mxu0  ;;  %5885 = vmatmul.mubr.f32.gmra.mxu0 %v12342_v53 }
 0x1d0   :  { %v3917_v37 = vadd.f32 %v3916_v23, %v3814_v34  ;;  %v3831_v25 = vpop.f32.mrf.mxu1  ;;  %6006 = vmatmul.mubr.f32.gmra.mxu1 %v12315_v30  ;;  %6100 = vmatprep.mubr.f32.mxu0 %v15186_v3 }
 0x1d1   :  { %v3832_v40 = vadd.f32 %v3831_v25, %v3729_v55  ;;  %v3918_v63 = vpop.f32.mrf.mxu0  ;;  %6011 = vmatprep.mubr.f32.mxu1 %v15186_v3 }
 0x1d2   :  { %v3919_v52 = vadd.f32 %v3918_v63, %v3816_v43  ;;  %v3833_v41 = vpop.f32.mrf.mxu1 }
 0x1d3   :  { %v3834_v12 = vadd.f32 %v3833_v41, %v3731_v7  ;;  %v3923_v22 = vpop.f32.mrf.mxu0  ;;  %6102 = vmatmul.mubr.f32.vlgmr.msra.gmra.mxu0 %v12137_v0 }
 0x1d4   :  { %v3924_v8 = vadd.f32 %v3923_v22, %v3823_v14  ;;  %v4004_v17 = vpop.f32.mrf.mxu1  ;;  %6015 = vmatmul.mubr.f32.gmra.mxu1 %v12339_v9  ;;  %6107 = vmatprep.mubr.f32.mxu0 %v15186_v3 }
 0x1d5   :  { %v12654_v34 = vadd.f32 %v4004_v17, %v3910_v29  ;;  %v3925_v56 = vpop.f32.mrf.mxu0  ;;  %6020 = vmatprep.mubr.f32.mxu1 %v15186_v3  ;;  %10761 = vmatpush3.msk.msra.mxu0 %vm12560_vm0, %v15452_v46 }
 0x1d6   :  { %v3926_v55 = vadd.f32 %v3925_v56, %v3825_v10  ;;  %v4006_v7 = vpop.f32.mrf.mxu1  ;;  %10788 = vmatprep.subr.mxu0 %v12581_v45 }
 0x1d7   :  { %15477 = vst [vmem:[#allocation8_spill] sm:$0xff] %v12654_v34  ;;  %v12661_v43 = vadd.f32 %v4006_v7, %v3912_v18  ;;  %v3930_v14 = vpop.f32.mrf.mxu0  ;;  %6109 = vmatmul.mubr.f32.gmra.mxu0 %v12158_v33 }
 0x1d8   :  { %v3931_v5 = vadd.f32 %v3930_v14, %v3832_v40  ;;  %v4011_v23 = vpop.f32.mrf.mxu1  ;;  %6024 = vmatmul.mubr.f32.gmra.mxu1 %v12353_v58  ;;  %6114 = vmatprep.mubr.f32.mxu0 %v15186_v3 }
 0x1d9   :  { %15478 = vst [vmem:[#allocation9_spill] sm:$0xff] %v12661_v43  ;;  %v7099_v29 = vsub.f32 1.0, %v12661_v43  ;;  %v12667_v25 = vadd.f32 %v4011_v23, %v3917_v37  ;;  %v3932_v63 = vpop.f32.mrf.mxu0  ;;  %6223 = vmatprep.mubr.f32.mxu1 %v15186_v3 }
 0x1da   :  { %v3933_v10 = vadd.f32 %v3932_v63, %v3834_v12  ;;  %v4013_v41 = vpop.f32.mrf.mxu1 }
 0x1db   :  { %15479 = vst [vmem:[#allocation10_spill] sm:$0xff] %v12667_v25  ;;  %v12671_v18 = vmul.f32 %v7099_v29, %v12654_v34  ;;  %v10716_v22 = vpop.f32.mrf.mxu0  ;;  %6116 = vmatmul.mubr.f32.gmra.mxu0 %v12190_v57  ;;  %v12674_v40 = vadd.f32 %v4013_v41, %v3919_v52 }
 0x1dc   :  { %v4018_v17 = vpop.f32.mrf.mxu1  ;;  %6225 = vmatmul.mubr.f32.vlgmr.msra.gmra.mxu1 %v12137_v0  ;;  %6121 = vmatprep.mubr.f32.mxu0 %v15186_v3 }
 0x1dd   :  { %15480 = vst [vmem:[#allocation34_spill] sm:$0xff] %v12674_v40  ;;  %v12678_v37 = vadd.f32 %v4018_v17, %v3924_v8  ;;  %v4102_v56 = vpop.f32.mrf.mxu0  ;;  %6230 = vmatprep.mubr.f32.mxu1 %v15186_v3  ;;  %10775 = vmatpush3.msra.mxu1 %v12620_v4  ;;  %v7100_v12 = vsub.f32 1.0, %v12674_v40 }
 0x1de   :  { %v4020_v7 = vpop.f32.mrf.mxu1  ;;  %10802 = vmatprep.subr.msk.mxu1 %vm12560_vm0, %v15452_v46 }
 0x1df   :  { %15481 = vst [vmem:[#allocation35_spill] sm:$0xff] %v12678_v37  ;;  %v12686_v52 = vadd.f32 %v4020_v7, %v3926_v55  ;;  %v10719_v14 = vpop.f32.mrf.mxu0  ;;  %6123 = vmatmul.mubr.f32.gmra.mxu0 %v12202_v13  ;;  %v12690_v8 = vmul.f32 %v7100_v12, %v12667_v25 }
 0x1e0   :  { %v4025_v23 = vpop.f32.mrf.mxu1  ;;  %6232 = vmatmul.mubr.f32.gmra.mxu1 %v12158_v33  ;;  %6128 = vmatprep.mubr.f32.mxu0 %v15186_v3 }
 0x1e1   :  { %15482 = vst [vmem:[#allocation36_spill] sm:$0xff] %v12686_v52  ;;  %v7101_v4 = vsub.f32 1.0, %v12686_v52  ;;  %v12695_v29 = vadd.f32 %v4025_v23, %v3931_v5  ;;  %v4122_v63 = vpop.f32.mrf.mxu0  ;;  %6237 = vmatprep.mubr.f32.mxu1 %v15186_v3 }
 0x1e2   :  { %v4027_v55 = vpop.f32.mrf.mxu1 }
 0x1e3   :  { %15483 = vst [vmem:[#allocation37_spill] sm:$0xff] %v12695_v29  ;;  %v12699_v41 = vmul.f32 %v7101_v4, %v12678_v37  ;;  %v10732_v17 = vpop.f32.mrf.mxu0  ;;  %6130 = vmatmul.mubr.f32.gmra.mxu0 %v12233_v32  ;;  %v12702_v12 = vadd.f32 %v4027_v55, %v3933_v10 }
 0x1e4   :  { %v10724_v7 = vpop.f32.mrf.mxu1  ;;  %6239 = vmatmul.mubr.f32.gmra.mxu1 %v12190_v57  ;;  %6135 = vmatprep.mubr.f32.mxu0 %v15186_v3 }
 0x1e5   :  { %15484 = vst [vmem:[#allocation38_spill] sm:$0xff] %v12702_v12  ;;  %v4215_v25 = vadd.f32 %v10724_v7, %v10716_v22  ;;  %v4300_v5 = vpop.f32.mrf.mxu0  ;;  %6244 = vmatprep.mubr.f32.mxu1 %v15186_v3  ;;  %v7102_v23 = vsub.f32 1.0, %v12702_v12 }
 0x1e6   :  { %v4208_v43 = vpop.f32.mrf.mxu1 }
 0x1e7   :  { %v4209_v52 = vadd.f32 %v4208_v43, %v4102_v56  ;;  %v10735_v4 = vpop.f32.mrf.mxu0  ;;  %6137 = vmatmul.mubr.f32.gmra.mxu0 %v12268_v39  ;;  %v4308_v37 = vadd.f32 %v10732_v17, %v4215_v25  ;;  %v12710_v10 = vmul.f32 %v7102_v23, %v12695_v29 }
 0x1e8   :  { %v10727_v55 = vpop.f32.mrf.mxu1  ;;  %6246 = vmatmul.mubr.f32.gmra.mxu1 %v12202_v13  ;;  %6142 = vmatprep.mubr.f32.mxu0 %v15186_v3 }
 0x1e9   :  { %15485 = vst [vmem:[#allocation39_spill] sm:$0xff] %v12710_v10  ;;  %v4227_v22 = vadd.f32 %v10727_v55, %v10719_v14  ;;  %v4314_v7 = vpop.f32.mrf.mxu0  ;;  %6251 = vmatprep.mubr.f32.mxu1 %v15186_v3  ;;  %v4301_v40 = vadd.f32 %v4300_v5, %v4209_v52 }
 0x1ea   :  { %v4220_v12 = vpop.f32.mrf.mxu1 }
 0x1eb   :  { %v4221_v34 = vadd.f32 %v4220_v12, %v4122_v63  ;;  %v10748_v43 = vpop.f32.mrf.mxu0  ;;  %6144 = vmatmul.mubr.f32.gmra.mxu0 %v12297_v19  ;;  %v4322_v56 = vadd.f32 %v10735_v4, %v4227_v22 }
 0x1ec   :  { %v10740_v25 = vpop.f32.mrf.mxu1  ;;  %6253 = vmatmul.mubr.f32.gmra.mxu1 %v12233_v32  ;;  %6149 = vmatprep.mubr.f32.mxu0 %v15186_v3 }
 0x1ed   :  { %v4404_v17 = vadd.f32 %v10740_v25, %v4308_v37  ;;  %v4493_v23 = vpop.f32.mrf.mxu0  ;;  %6258 = vmatprep.mubr.f32.mxu1 %v15186_v3  ;;  %v4315_v14 = vadd.f32 %v4314_v7, %v4221_v34 }
 0x1ee   :  { %v4395_v55 = vpop.f32.mrf.mxu1 }
 0x1ef   :  { %v4396_v29 = vadd.f32 %v4395_v55, %v4301_v40  ;;  %v10751_v10 = vpop.f32.mrf.mxu0  ;;  %6151 = vmatmul.mubr.f32.gmra.mxu0 %v12320_v1  ;;  %v4500_v52 = vadd.f32 %v10748_v43, %v4404_v17 }
 0x1f0   :  { %v10743_v63 = vpop.f32.mrf.mxu1  ;;  %6260 = vmatmul.mubr.f32.gmra.mxu1 %v12268_v39  ;;  %10762 = vmatprep.mubr.f32.mxu0 %v12238_v16 }
 0x1f1   :  { %v4420_v12 = vadd.f32 %v10743_v63, %v4322_v56  ;;  %v4505_v5 = vpop.f32.mrf.mxu0  ;;  %6265 = vmatprep.mubr.f32.mxu1 %v15186_v3  ;;  %v4494_v37 = vadd.f32 %v4493_v23, %v4396_v29 }
 0x1f2   :  { %v4411_v4 = vpop.f32.mrf.mxu1 }
 0x1f3   :  { %v4412_v22 = vadd.f32 %v4411_v4, %v4315_v14  ;;  %v4737_v25 = vpop.f32.mrf.mxu0  ;;  %v4512_v34 = vadd.f32 %v10751_v10, %v4420_v12  ;;  %10763 = vmatmul.mubr.f32.vlgmr.msra.gmra.mxu0 %v12264_v61 }
 0x1f4   :  { %v10756_v40 = vpop.f32.mrf.mxu1  ;;  %6267 = vmatmul.mubr.f32.gmra.mxu1 %v12297_v19  ;;  %10765 = vmatprep.mubr.f32.mxu0 %v12292_v11 }
 0x1f5   :  { %v12726_v7 = vadd.f32 %v10756_v40, %v4500_v52  ;;  %v4739_v43 = vpop.f32.mrf.mxu0  ;;  %6272 = vmatprep.mubr.f32.mxu1 %v15186_v3  ;;  %v4506_v16 = vadd.f32 %v4505_v5, %v4412_v22  ;;  %10789 = vmatpush3.msra.mxu0 %v12581_v45 }
 0x1f6   :  { %v4583_v29 = vpop.f32.mrf.mxu1  ;;  %10816 = vmatprep.subr.mxu0 %v12594_v48 }
 0x1f7   :  { %15486 = vst [vmem:[#allocation40_spill] sm:$0xff] %v12726_v7  ;;  %v12731_v56 = vadd.f32 %v4583_v29, %v4494_v37  ;;  %v4748_v10 = vpop.f32.mrf.mxu0  ;;  %10766 = vmatmul.mubr.f32.gmra.mxu0 %v12307_v36 }
 0x1f8   :  { %v10759_v61 = vpop.f32.mrf.mxu1  ;;  %6274 = vmatmul.mubr.f32.gmra.mxu1 %v12320_v1  ;;  %10768 = vmatprep.mubr.f32.mxu0 %v12329_v35 }
 0x1f9   :  { %15487 = vst [vmem:[#allocation41_spill] sm:$0xff] %v12731_v56  ;;  %v4750_v11 = vpop.f32.mrf.mxu0  ;;  %10776 = vmatprep.mubr.f32.mxu1 %v12137_v0  ;;  %v12737_v17 = vadd.f32 %v10759_v61, %v4512_v34 }
 0x1fa   :  { %v4595_v23 = vpop.f32.mrf.mxu1 }
 0x1fb   :  { %15488 = vst [vmem:[#allocation42_spill] sm:$0xff] %v12737_v17  ;;  %v12739_v45 = vadd.f32 %v4595_v23, %v4506_v16  ;;  %v4759_v14 = vpop.f32.mrf.mxu0  ;;  %10769 = vmatmul.mubr.f32.gmra.mxu0 %v12348_v47 }
 0x1fc   :  { %v4896_v55 = vpop.f32.mrf.mxu1  ;;  %10777 = vmatmul.mubr.f32.vlgmr.msra.gmra.mxu1 %v12158_v33  ;;  %10771 = vmatprep.mubr.f32.mxu0 %v12369_v38 }
 0x1fd   :  { %15489 = vst [vmem:[#allocation43_spill] sm:$0xff] %v12739_v45  ;;  %v4761_v36 = vpop.f32.mrf.mxu0  ;;  %10779 = vmatprep.mubr.f32.mxu1 %v12190_v57  ;;  %10803 = vmatpush3.msk.msra.mxu1 %vm12560_vm0, %v15452_v46  ;;  %v4897_v35 = vadd.f32 %v4896_v55, %v4737_v25  ;;  %v15494_v45 = vld [vmem:[#allocation12_spill] sm:$0xff] }
 0x1fe   :  { %v4898_v52 = vpop.f32.mrf.mxu1  ;;  %10830 = vmatprep.subr.msk.mxu1 %vm12560_vm0, %v15452_v46 }
 0x1ff   :  { %v12751_v63 = vadd.f32 %v4898_v52, %v4739_v43  ;;  %v4770_v47 = vpop.f32.mrf.mxu0  ;;  %10772 = vmatmul.mubr.f32.gmra.mxu0 %v12379_v26 }
 0x200   :  { %v4903_v12 = vpop.f32.mrf.mxu1  ;;  %10780 = vmatmul.mubr.f32.gmra.mxu1 %v12202_v13  ;;  %10790 = vmatprep.mubr.f32.mxu0 %v15471_v28 }
 0x201   :  { %v4904_v38 = vadd.f32 %v4903_v12, %v4748_v10  ;;  %v4772_v5 = vpop.f32.mrf.mxu0  ;;  %10782 = vmatprep.mubr.f32.mxu1 %v12233_v32 }
 0x202   :  { %v4905_v37 = vpop.f32.mrf.mxu1 }
 0x203   :  { %v12757_v4 = vadd.f32 %v4905_v37, %v4750_v11  ;;  %v4781_v22 = vpop.f32.mrf.mxu0  ;;  %10791 = vmatmul.mubr.f32.vlgmr.msra.gmra.mxu0 %v12188_v42 }
 0x204   :  { %v4910_v25 = vpop.f32.mrf.mxu1  ;;  %10783 = vmatmul.mubr.f32.gmra.mxu1 %v12268_v39  ;;  %10793 = vmatprep.mubr.f32.mxu0 %v12209_v51 }
 0x205   :  { %v4911_v26 = vadd.f32 %v4910_v25, %v4759_v14  ;;  %v12762_v34 = vpop.f32.mrf.mxu0  ;;  %10785 = vmatprep.mubr.f32.mxu1 %v12297_v19  ;;  %10817 = vmatpush3.msra.mxu0 %v12594_v48 }
 0x206   :  { %v4912_v28 = vpop.f32.mrf.mxu1 }
 0x207   :  { %v12766_v40 = vadd.f32 %v4912_v28, %v4761_v36  ;;  %v4792_v43 = vpop.f32.mrf.mxu0  ;;  %10794 = vmatmul.mubr.f32.gmra.mxu0 %v12231_v21 }
 0x208   :  { %v4917_v16 = vpop.f32.mrf.mxu1  ;;  %10786 = vmatmul.mubr.f32.gmra.mxu1 %v12320_v1  ;;  %10796 = vmatprep.mubr.f32.mxu0 %v12259_v15 }
 0x209   :  { %v4918_v42 = vadd.f32 %v4917_v16, %v4770_v47  ;;  %v12771_v51 = vpop.f32.mrf.mxu0  ;;  %10804 = vmatprep.mubr.f32.mxu1 %v12177_v2 }
 0x20a   :  { %v4919_v29 = vpop.f32.mrf.mxu1 }
 0x20b   :  { %v12774_v10 = vadd.f32 %v4919_v29, %v4772_v5  ;;  %v4803_v48 = vpop.f32.mrf.mxu0  ;;  %10797 = vmatmul.mubr.f32.gmra.mxu0 %v12295_v49 }
 0x20c   :  { %v4924_v61 = vpop.f32.mrf.mxu1  ;;  %10805 = vmatmul.mubr.f32.vlgmr.msra.gmra.mxu1 %v12206_v62  ;;  %10799 = vmatprep.mubr.f32.mxu0 %v12318_v24 }
 0x20d   :  { %v4925_v21 = vadd.f32 %v4924_v61, %v4781_v22  ;;  %v12779_v11 = vpop.f32.mrf.mxu0  ;;  %10807 = vmatprep.mubr.f32.mxu1 %v12244_v50  ;;  %10831 = vmatpush3.msk.msra.mxu1 %vm12560_vm0, %v15452_v46 }
 0x20e   :  { %v12785_v2 = vpop.f32.mrf.mxu1 }
 0x20f   :  { %v4814_v15 = vpop.f32.mrf.mxu0  ;;  %10800 = vmatmul.mubr.f32.gmra.mxu0 %v12342_v53 }
 0x210   :  { %v4931_v49 = vpop.f32.mrf.mxu1  ;;  %10808 = vmatmul.mubr.f32.gmra.mxu1 %v12256_v54  ;;  %10818 = vmatprep.mubr.f32.mxu0 %v12137_v0 }
 0x211   :  { %v4932_v62 = vadd.f32 %v4931_v49, %v4792_v43  ;;  %v12790_v24 = vpop.f32.mrf.mxu0  ;;  %10810 = vmatprep.mubr.f32.mxu1 %v12287_v20 }
 0x212   :  { %v12793_v50 = vpop.f32.mrf.mxu1 }
 0x213   :  { %v5022_v23 = vpop.f32.mrf.mxu0  ;;  %10819 = vmatmul.mubr.f32.vlgmr.msra.gmra.mxu0 %v12158_v33 }
 0x214   :  { %v5023_v46 = vadd.f32 %v5022_v23, %v4897_v35  ;;  %v4938_v6 = vpop.f32.mrf.mxu1  ;;  %10811 = vmatmul.mubr.f32.gmra.mxu1 %v12315_v30  ;;  %10821 = vmatprep.mubr.f32.mxu0 %v12190_v57 }
 0x215   :  { %v4939_v53 = vadd.f32 %v4938_v6, %v4803_v48  ;;  %v12798_v54 = vpop.f32.mrf.mxu0  ;;  %10813 = vmatprep.mubr.f32.mxu1 %v12339_v9 }
 0x216   :  { %v12801_v14 = vpop.f32.mrf.mxu1 }
 0x217   :  { %v5030_v55 = vpop.f32.mrf.mxu0  ;;  %10822 = vmatmul.mubr.f32.gmra.mxu0 %v12202_v13 }
 0x218   :  { %v5031_v20 = vadd.f32 %v5030_v55, %v4904_v38  ;;  %v4945_v36 = vpop.f32.mrf.mxu1  ;;  %10814 = vmatmul.mubr.f32.gmra.mxu1 %v12353_v58  ;;  %10824 = vmatprep.mubr.f32.mxu0 %v12233_v32 }
 0x219   :  { %v4946_v35 = vadd.f32 %v4945_v36, %v4814_v15  ;;  %v12806_v30 = vpop.f32.mrf.mxu0  ;;  %10832 = vmatprep.mubr.f32.mxu1 %v12137_v0 }
 0x21a   :  { %v12809_v52 = vpop.f32.mrf.mxu1 }
 0x21b   :  { %v5038_v47 = vpop.f32.mrf.mxu0  ;;  %10825 = vmatmul.mubr.f32.gmra.mxu0 %v12268_v39 }
 0x21c   :  { %v5039_v9 = vadd.f32 %v5038_v47, %v4911_v26  ;;  %v5154_v12 = vpop.f32.mrf.mxu1  ;;  %10833 = vmatmul.mubr.f32.vlgmr.msra.gmra.mxu1 %v12158_v33  ;;  %10827 = vmatprep.mubr.f32.mxu0 %v12297_v19 }
 0x21d   :  { %v5155_v38 = vadd.f32 %v5154_v12, %v5023_v46  ;;  %v12814_v58 = vpop.f32.mrf.mxu0  ;;  %10835 = vmatprep.mubr.f32.mxu1 %v12190_v57 }
 0x21e   :  { %v5156_v5 = vpop.f32.mrf.mxu1 }
 0x21f   :  { %v5046_v37 = vpop.f32.mrf.mxu0  ;;  %10828 = vmatmul.mubr.f32.gmra.mxu0 %v12320_v1 }
 0x220   :  { %v5047_v0 = vadd.f32 %v5046_v37, %v4918_v42  ;;  %v5163_v22 = vpop.f32.mrf.mxu1  ;;  %10836 = vmatmul.mubr.f32.gmra.mxu1 %v12202_v13 }
 0x221   :  { %v5164_v25 = vadd.f32 %v5163_v22, %v5031_v20  ;;  %v12819_v26 = vpop.f32.mrf.mxu0  ;;  %10838 = vmatprep.mubr.f32.mxu1 %v12233_v32 }
 0x222   :  { %v5165_v33 = vpop.f32.mrf.mxu1 }
 0x223   :  { %v5054_v28 = vpop.f32.mrf.mxu0 }
 0x224   :  { %v5055_v43 = vadd.f32 %v5054_v28, %v4925_v21  ;;  %v5172_v16 = vpop.f32.mrf.mxu1  ;;  %10839 = vmatmul.mubr.f32.gmra.mxu1 %v12268_v39 }
 0x225   :  { %v5173_v57 = vadd.f32 %v5172_v16, %v5039_v9  ;;  %v12823_v29 = vpop.f32.mrf.mxu0  ;;  %10841 = vmatprep.mubr.f32.mxu1 %v12297_v19 }
 0x226   :  { %15490 = vst [vmem:[#allocation44_spill] sm:$0xff] %v12823_v29  ;;  %v5174_v42 = vpop.f32.mrf.mxu1 }
 0x227   :  { %v5062_v48 = vpop.f32.mrf.mxu0 }
 0x228   :  { %v5063_v61 = vadd.f32 %v5062_v48, %v4932_v62  ;;  %v5181_v13 = vpop.f32.mrf.mxu1  ;;  %10842 = vmatmul.mubr.f32.gmra.mxu1 %v12320_v1 }
 0x229   :  { %v5182_v15 = vadd.f32 %v5181_v13, %v5047_v0  ;;  %v12827_v49 = vpop.f32.mrf.mxu0 }
 0x22a   :  { %15491 = vst [vmem:[#allocation45_spill] sm:$0xff] %v12827_v49  ;;  %v5183_v32 = vpop.f32.mrf.mxu1  ;;  %v15538_v49 = vld [vmem:[#allocation32_spill] sm:$0xff] }
 0x22b   :  { %v5070_v23 = vpop.f32.mrf.mxu0 }
 0x22c   :  { %v5071_v21 = vadd.f32 %v5070_v23, %v4939_v53  ;;  %v5190_v46 = vpop.f32.mrf.mxu1 }
 0x22d   :  { %v5191_v6 = vadd.f32 %v5190_v46, %v5055_v43  ;;  %v12829_v39 = vpop.f32.mrf.mxu0 }
 0x22e   :  { %v12831_v55 = vpop.f32.mrf.mxu1 }
 0x22f   :  { %15492 = vst [vmem:[#allocation46_spill] sm:$0xff] %v12831_v55  ;;  %v5078_v20 = vpop.f32.mrf.mxu0 }
 0x230   :  { %v5079_v19 = vadd.f32 %v5078_v20, %v4946_v35  ;;  %v5199_v36 = vpop.f32.mrf.mxu1  ;;  %v5025_v35 = vadd.f32 %v12798_v54, %v12751_v63 }
 0x231   :  { %v5200_v47 = vadd.f32 %v5199_v36, %v5063_v61  ;;  %v12833_v62 = vpop.f32.mrf.mxu0 }
 0x232   :  { %v12835_v9 = vpop.f32.mrf.mxu1  ;;  %v5157_v23 = vadd.f32 %v5156_v5, %v5025_v35 }
 0x233   :  { %15493 = vst [vmem:[#allocation47_spill] sm:$0xff] %v12835_v9  ;;  %v5295_v1 = vpop.f32.mrf.mxu0 }
 0x234   :  { %v5296_v12 = vadd.f32 %v5295_v1, %v5155_v38  ;;  %v5208_v37 = vpop.f32.mrf.mxu1 }
 0x235   :  { %v12837_v0 = vadd.f32 %v5208_v37, %v5071_v21  ;;  %v5297_v53 = vpop.f32.mrf.mxu0  ;;  %v5033_v21 = vadd.f32 %v12806_v30, %v12757_v4  ;;  %v5041_v4 = vadd.f32 %v12814_v58, %v12766_v40 }
 0x236   :  { %v12839_v22 = vpop.f32.mrf.mxu1  ;;  %v5298_v36 = vadd.f32 %v5297_v53, %v5157_v23 }
 0x237   :  { %v5302_v28 = vpop.f32.mrf.mxu0 }
 0x238   :  { %v5303_v43 = vadd.f32 %v5302_v28, %v5164_v25  ;;  %v5217_v16 = vpop.f32.mrf.mxu1  ;;  %v5166_v28 = vadd.f32 %v5165_v33, %v5033_v21 }
 0x239   :  { %v12843_v48 = vadd.f32 %v5217_v16, %v5079_v19  ;;  %v5304_v61 = vpop.f32.mrf.mxu0 }
 0x23a   :  { %v12845_v13 = vpop.f32.mrf.mxu1  ;;  %v5305_v16 = vadd.f32 %v5304_v61, %v5166_v28 }
 0x23b   :  { %v5309_v46 = vpop.f32.mrf.mxu0 }
 0x23c   :  { %v5310_v38 = vadd.f32 %v5309_v46, %v5173_v57  ;;  %v5418_v20 = vpop.f32.mrf.mxu1 }
 0x23d   :  { %v5419_v1 = vadd.f32 %v5418_v20, %v5296_v12  ;;  %v5311_v37 = vpop.f32.mrf.mxu0  ;;  %v15496_v12 = vld [vmem:[#allocation20_spill] sm:$0xff]  ;;  %v5175_v20 = vadd.f32 %v5174_v42, %v5041_v4 }
 0x23e   :  { %v5420_v25 = vpop.f32.mrf.mxu1 }
 0x23f   :  { %v7039_v3 = vsub.f32 1.0, %v5419_v1  ;;  %v5421_v56 = vadd.f32 %v5420_v25, %v5298_v36  ;;  %v5316_v63 = vpop.f32.mrf.mxu0  ;;  %v5312_v40 = vadd.f32 %v5311_v37, %v5175_v20  ;;  %v15501_v25 = vld [vmem:[#allocation22_spill] sm:$0xff] }
 0x240   :  { %v5317_v54 = vadd.f32 %v5316_v63, %v5182_v15  ;;  %v5425_v19 = vpop.f32.mrf.mxu1 }
 0x241   :  { %v12850_v17 = vmul.f32 %v7039_v3, %v15494_v45  ;;  %v7075_v5 = vsub.f32 1.0, %v5421_v56  ;;  %v5426_v57 = vadd.f32 %v5425_v19, %v5303_v43  ;;  %v5318_v35 = vpop.f32.mrf.mxu0  ;;  %v5049_v3 = vadd.f32 %v12819_v26, %v12774_v10  ;;  %v15498_v45 = vld [vmem:[#allocation14_spill] sm:$0xff] }
 0x242   :  { %v5427_v30 = vpop.f32.mrf.mxu1 }
 0x243   :  { %15495 = vst [vmem:[#allocation12_spill] sm:$0xff] %v12850_v17  ;;  %v12855_v53 = vmul.f32 %v7075_v5, %v15496_v12  ;;  %v7040_v33 = vsub.f32 1.0, %v5426_v57  ;;  %v5428_v23 = vadd.f32 %v5427_v30, %v5305_v16  ;;  %v5323_v46 = vpop.f32.mrf.mxu0  ;;  %v5184_v1 = vadd.f32 %v5183_v32, %v5049_v3  ;;  %v15504_v57 = vld [vmem:[#allocation16_spill] sm:$0xff] }
 0x244   :  { %v5324_v15 = vadd.f32 %v5323_v46, %v5191_v6  ;;  %v5432_v21 = vpop.f32.mrf.mxu1 }
 0x245   :  { %15497 = vst [vmem:[#allocation20_spill] sm:$0xff] %v12855_v53  ;;  %v12860_v56 = vmul.f32 %v7040_v33, %v15498_v45  ;;  %v7076_v43 = vsub.f32 1.0, %v5428_v23  ;;  %v12862_v61 = vpop.f32.mrf.mxu0  ;;  %v5433_v58 = vadd.f32 %v5432_v21, %v5310_v38  ;;  %v5319_v5 = vadd.f32 %v5318_v35, %v5184_v1  ;;  %v15506_v33 = vld [vmem:[#allocation24_spill] sm:$0xff] }
 0x246   :  { %15500 = vst [vmem:[#allocation48_spill] sm:$0xff] %v12862_v61  ;;  %v5434_v36 = vpop.f32.mrf.mxu1 }
 0x247   :  { %15499 = vst [vmem:[#allocation14_spill] sm:$0xff] %v12860_v56  ;;  %v12865_v28 = vmul.f32 %v7076_v43, %v15501_v25  ;;  %v5330_v63 = vpop.f32.mrf.mxu0  ;;  %v7041_v42 = vsub.f32 1.0, %v5433_v58  ;;  %v5435_v6 = vadd.f32 %v5434_v36, %v5312_v40  ;;  %v4941_v43 = vadd.f32 %v12801_v14, %v12779_v11  ;;  %v15511_v40 = vld [vmem:[#allocation26_spill] sm:$0xff] }
 0x248   :  { %v5331_v19 = vadd.f32 %v5330_v63, %v5200_v47  ;;  %v5439_v16 = vpop.f32.mrf.mxu1  ;;  %v15508_v47 = vld [vmem:[#allocation18_spill] sm:$0xff]  ;;  %v4948_v11 = vadd.f32 %v12809_v52, %v12790_v24 }
 0x249   :  { %15502 = vst [vmem:[#allocation22_spill] sm:$0xff] %v12865_v28  ;;  %v5440_v10 = vadd.f32 %v5439_v16, %v5317_v54  ;;  %v12867_v26 = vpop.f32.mrf.mxu0  ;;  %v12870_v4 = vmul.f32 %v7041_v42, %v15504_v57  ;;  %v7077_v30 = vsub.f32 1.0, %v5435_v6  ;;  %v5073_v63 = vadd.f32 %v12829_v39, %v4941_v43  ;;  %v15513_v42 = vld [vmem:[#allocation13_spill] sm:$0xff] }
 0x24a   :  { %15503 = vst [vmem:[#allocation49_spill] sm:$0xff] %v12867_v26  ;;  %v5441_v37 = vpop.f32.mrf.mxu1 }
 0x24b   :  { %15505 = vst [vmem:[#allocation16_spill] sm:$0xff] %v12870_v4  ;;  %v7042_v38 = vsub.f32 1.0, %v5440_v10  ;;  %v5442_v12 = vadd.f32 %v5441_v37, %v5319_v5  ;;  %v5337_v32 = vpop.f32.mrf.mxu0  ;;  %v12873_v23 = vmul.f32 %v7077_v30, %v15506_v33  ;;  %v5211_v14 = vadd.f32 %v12839_v22, %v5073_v63  ;;  %v15518_v22 = vld [vmem:[#allocation17_spill] sm:$0xff] }
 0x24c   :  { %v5338_v46 = vadd.f32 %v5337_v32, %v12837_v0  ;;  %v5446_v20 = vpop.f32.mrf.mxu1 }
 0x24d   :  { %15507 = vst [vmem:[#allocation24_spill] sm:$0xff] %v12873_v23  ;;  %v12877_v21 = vmul.f32 %v7042_v38, %v15508_v47  ;;  %v7078_v54 = vsub.f32 1.0, %v5442_v12  ;;  %v5447_v35 = vadd.f32 %v5446_v20, %v5324_v15  ;;  %v5339_v3 = vpop.f32.mrf.mxu0  ;;  %v15516_v12 = vld [vmem:[#allocation15_spill] sm:$0xff] }
 0x24e   :  { %v12879_v45 = vpop.f32.mrf.mxu1  ;;  %v5340_v37 = vadd.f32 %v5339_v3, %v5211_v14 }
 0x24f   :  { %15509 = vst [vmem:[#allocation18_spill] sm:$0xff] %v12877_v21  ;;  %15510 = vst [vmem:[#allocation50_spill] sm:$0xff] %v12879_v45  ;;  %v12884_v58 = vmul.f32 %v7078_v54, %v15511_v40  ;;  %v7051_v36 = vsub.f32 1.0, %v5447_v35  ;;  %v5344_v1 = vpop.f32.mrf.mxu0 }
 0x250   :  { %v5345_v25 = vadd.f32 %v5344_v1, %v12843_v48  ;;  %v5453_v0 = vpop.f32.mrf.mxu1  ;;  %v5081_v48 = vadd.f32 %v12833_v62, %v4948_v11 }
 0x251   :  { %15512 = vst [vmem:[#allocation26_spill] sm:$0xff] %v12884_v58  ;;  %v12889_v6 = vmul.f32 %v7051_v36, %v15513_v42  ;;  %v5346_v15 = vpop.f32.mrf.mxu0  ;;  %v5454_v16 = vadd.f32 %v5453_v0, %v5331_v19 }
 0x252   :  { %v12891_v5 = vpop.f32.mrf.mxu1  ;;  %v5220_v19 = vadd.f32 %v12845_v13, %v5081_v48  ;;  %v15522_v13 = vld [vmem:[#allocation19_spill] sm:$0xff] }
 0x253   :  { %15514 = vst [vmem:[#allocation13_spill] sm:$0xff] %v12889_v6  ;;  %15515 = vst [vmem:[#allocation51_spill] sm:$0xff] %v12891_v5  ;;  %v5545_v10 = vpop.f32.mrf.mxu0  ;;  %v7052_v57 = vsub.f32 1.0, %v5454_v16 }
 0x254   :  { %v5460_v30 = vpop.f32.mrf.mxu1  ;;  %v5347_v52 = vadd.f32 %v5346_v15, %v5220_v19  ;;  %v45_v19 = vld [vmem:[%s15162_s4 + $0x8] sm:$0xff] }
 0x255   :  { %v5461_v38 = vadd.f32 %v5460_v30, %v5338_v46  ;;  %v5547_v39 = vpop.f32.mrf.mxu0  ;;  %v12898_v32 = vmul.f32 %v7052_v57, %v15516_v12  ;;  %v15520_v46 = vld [vmem:[#allocation25_spill] sm:$0xff]  ;;  %v15524_v30 = vld [vmem:[#allocation27_spill] sm:$0xff] }
 0x256   :  { %v5462_v33 = vpop.f32.mrf.mxu1 }
 0x257   :  { %15517 = vst [vmem:[#allocation15_spill] sm:$0xff] %v12898_v32  ;;  %v7053_v20 = vsub.f32 1.0, %v5461_v38  ;;  %v5463_v47 = vadd.f32 %v5462_v33, %v5340_v37  ;;  %v5556_v54 = vpop.f32.mrf.mxu0 }
 0x258   :  { %v5467_v24 = vpop.f32.mrf.mxu1 }
 0x259   :  { %v12902_v35 = vmul.f32 %v7053_v20, %v15518_v22  ;;  %v7089_v43 = vsub.f32 1.0, %v5463_v47  ;;  %v5468_v40 = vadd.f32 %v5467_v24, %v5345_v25  ;;  %v5558_v62 = vpop.f32.mrf.mxu0 }
 0x25a   :  { %v5469_v3 = vpop.f32.mrf.mxu1 }
 0x25b   :  { %15519 = vst [vmem:[#allocation17_spill] sm:$0xff] %v12902_v35  ;;  %v12905_v36 = vmul.f32 %v7089_v43, %v15520_v46  ;;  %v7054_v1 = vsub.f32 1.0, %v5468_v40  ;;  %v5470_v0 = vadd.f32 %v5469_v3, %v5347_v52  ;;  %v5567_v63 = vpop.f32.mrf.mxu0  ;;  %v12930_v52 = vand.u32 4294901760, %v45_v19 }
 0x25c   :  { %v5704_v42 = vpop.f32.mrf.mxu1  ;;  %v7071_v35 = vmul.f32 %v12569_v60, %v12569_v60  ;;  %v7073_v60 = vmul.f32 %v12598_v59, %v12598_v59 }
 0x25d   :  { %15521 = vst [vmem:[#allocation25_spill] sm:$0xff] %v12905_v36  ;;  %v12908_v16 = vmul.f32 %v7054_v1, %v15522_v13  ;;  %v7090_v11 = vsub.f32 1.0, %v5470_v0  ;;  %v12910_v14 = vpop.f32.mrf.mxu0  ;;  %v12912_v15 = vadd.f32 %v5704_v42, %v5545_v10  ;;  %15526 = vst [vmem:[#allocation52_spill] sm:$0xff] %v12930_v52  ;;  %7570 = vmatprep.mubr.f32.mxu1 %v12930_v52 }
 0x25e   :  { %v5706_v57 = vpop.f32.mrf.mxu1  ;;  %v13004_v59 = vand.u32 4294901760, %v7073_v60 }
 0x25f   :  { %15523 = vst [vmem:[#allocation19_spill] sm:$0xff] %v12908_v16  ;;  %v12915_v25 = vmul.f32 %v7090_v11, %v15524_v30  ;;  %v12917_v48 = vpop.f32.mrf.mxu0  ;;  %v12919_v37 = vadd.f32 %v5706_v57, %v5547_v39  ;;  %v7072_v16 = vmul.f32 %v12584_v44, %v12584_v44 }
 0x260   :  { %v5711_v38 = vpop.f32.mrf.mxu1  ;;  %15532 = vst [vmem:[#allocation58_spill] sm:$0xff] %v13004_v59 }
 0x261   :  { %15525 = vst [vmem:[#allocation27_spill] sm:$0xff] %v12915_v25  ;;  %v12921_v12 = vadd.f32 %v5711_v38, %v5556_v54  ;;  %v12923_v33 = vpop.f32.mrf.mxu0  ;;  %v12937_v54 = vsub.f32 %v45_v19, %v12930_v52 }
 0x262   :  { %v5713_v20 = vpop.f32.mrf.mxu1 }
 0x263   :  { %v12928_v10 = vadd.f32 %v5713_v20, %v5558_v62  ;;  %v5589_v47 = vpop.f32.mrf.mxu0  ;;  %15527 = vst [vmem:[#allocation53_spill] sm:$0xff] %v12937_v54  ;;  %v15194_v62 = vand.u32 4294901760, %v12937_v54 }
 0x264   :  { %v5718_v24 = vpop.f32.mrf.mxu1 }
 0x265   :  { %v12932_v22 = vadd.f32 %v5718_v24, %v5567_v63  ;;  %v5591_v39 = vpop.f32.mrf.mxu0  ;;  %v7317_v0 = vsub.f32 %v12937_v54, %v15194_v62 }
 0x266   :  { %v12934_v43 = vpop.f32.mrf.mxu1 }
 0x267   :  { %v5600_v40 = vpop.f32.mrf.mxu0  ;;  %v7318_v13 = vand.u32 4294901760, %v7317_v0 }
 0x268   :  { %v12940_v3 = vpop.f32.mrf.mxu1 }
 0x269   :  { %v5602_v46 = vpop.f32.mrf.mxu0  ;;  %7319 = vmatprep.mubr.f32.mxu0 %v7318_v13 }
 0x26a   :  { %v12943_v1 = vpop.f32.mrf.mxu1 }
 0x26b   :  { %v5611_v63 = vpop.f32.mrf.mxu0 }
 0x26c   :  { %v5732_v42 = vpop.f32.mrf.mxu1 }
 0x26d   :  { %v5733_v11 = vadd.f32 %v5732_v42, %v5589_v47  ;;  %v5613_v57 = vpop.f32.mrf.mxu0 }
 0x26e   :  { %v5734_v30 = vpop.f32.mrf.mxu1 }
 0x26f   :  { %v5735_v38 = vadd.f32 %v5734_v30, %v5591_v39  ;;  %v5622_v19 = vpop.f32.mrf.mxu0 }
 0x270   :  { %v5739_v20 = vpop.f32.mrf.mxu1 }
 0x271   :  { %v5740_v24 = vadd.f32 %v5739_v20, %v5600_v40  ;;  %v5624_v52 = vpop.f32.mrf.mxu0 }
 0x272   :  { %v5741_v7 = vpop.f32.mrf.mxu1 }
 0x273   :  { %v5742_v28 = vadd.f32 %v5741_v7, %v5602_v46  ;;  %v12948_v53 = vpop.f32.mrf.mxu0 }
 0x274   :  { %v5746_v23 = vpop.f32.mrf.mxu1 }
 0x275   :  { %v5747_v58 = vadd.f32 %v5746_v23, %v5611_v63  ;;  %v12950_v36 = vpop.f32.mrf.mxu0 }
 0x276   :  { %v5748_v62 = vpop.f32.mrf.mxu1 }
 0x277   :  { %v5749_v54 = vadd.f32 %v5748_v62, %v5613_v57  ;;  %v12952_v0 = vpop.f32.mrf.mxu0 }
 0x278   :  { %v5753_v47 = vpop.f32.mrf.mxu1 }
 0x279   :  { %v5754_v42 = vadd.f32 %v5753_v47, %v5622_v19  ;;  %v12954_v13 = vpop.f32.mrf.mxu0 }
 0x27a   :  { %v5755_v39 = vpop.f32.mrf.mxu1 }
 0x27b   :  { %v5756_v30 = vadd.f32 %v5755_v39, %v5624_v52  ;;  %v12956_v40 = vpop.f32.mrf.mxu0 }
 0x27c   :  { %v12958_v20 = vpop.f32.mrf.mxu1 }
 0x27d   :  { %v12960_v7 = vpop.f32.mrf.mxu0 }
 0x27e   :  { %v12962_v46 = vpop.f32.mrf.mxu1 }
 0x27f   :  { %v12964_v23 = vpop.f32.mrf.mxu0 }
 0x280   :  { %v12966_v63 = vpop.f32.mrf.mxu1 }
 0x281   :  { %v12968_v62 = vpop.f32.mrf.mxu0 }
 0x282   :  { %v12970_v57 = vpop.f32.mrf.mxu1 }
 0x283   :  { %v5862_v19 = vpop.f32.mrf.mxu0 }
 0x284   :  { %v5863_v47 = vadd.f32 %v5862_v19, %v5733_v11  ;;  %v12972_v4 = vpop.f32.mrf.mxu1 }
 0x285   :  { %v5864_v52 = vpop.f32.mrf.mxu0 }
 0x286   :  { %v5865_v39 = vadd.f32 %v5864_v52, %v5735_v38  ;;  %v12974_v25 = vpop.f32.mrf.mxu1  ;;  %v12984_v38 = vand.u32 4294901760, %v7071_v35 }
 0x287   :  { %v5870_v6 = vpop.f32.mrf.mxu0 }
 0x288   :  { %v5871_v21 = vadd.f32 %v5870_v6, %v5740_v24  ;;  %v12976_v32 = vpop.f32.mrf.mxu1  ;;  %15528 = vst [vmem:[#allocation54_spill] sm:$0xff] %v12984_v38  ;;  %v12988_v24 = vand.u32 4294901760, %v7072_v16 }
 0x289   :  { %v5872_v45 = vpop.f32.mrf.mxu0 }
 0x28a   :  { %v5873_v5 = vadd.f32 %v5872_v45, %v5742_v28  ;;  %v12982_v56 = vpop.f32.mrf.mxu1  ;;  %15529 = vst [vmem:[#allocation55_spill] sm:$0xff] %v12988_v24  ;;  %v7074_v28 = vmul.f32 %v12614_v31, %v12614_v31  ;;  %v13002_v55 = vsub.f32 %v7072_v16, %v12988_v24  ;;  %v7036_v31 = vmul.f32 %v12578_v27, %v12578_v27 }
 0x28b   :  { %v5878_v11 = vpop.f32.mrf.mxu0  ;;  %v5833_v27 = vadd.f32 %v12950_v36, %v12919_v37 }
 0x28c   :  { %v5879_v19 = vadd.f32 %v5878_v11, %v5747_v58  ;;  %v5998_v26 = vpop.f32.mrf.mxu1  ;;  %v12997_v11 = vsub.f32 %v7071_v35, %v12984_v38  ;;  %15531 = vst [vmem:[#allocation57_spill] sm:$0xff] %v13002_v55  ;;  %v15545_v36 = vand.u32 4294901760, %v13002_v55 }
 0x28d   :  { %v12986_v52 = vadd.f32 %v5998_v26, %v5863_v47  ;;  %v5880_v6 = vpop.f32.mrf.mxu0 }
 0x28e   :  { %v5881_v61 = vadd.f32 %v5880_v6, %v5749_v54  ;;  %v6000_v17 = vpop.f32.mrf.mxu1  ;;  %15530 = vst [vmem:[#allocation56_spill] sm:$0xff] %v12997_v11  ;;  %v13057_v37 = vsub.f32 %v13002_v55, %v15545_v36 }
 0x28f   :  { %v12992_v9 = vadd.f32 %v6000_v17, %v5865_v39  ;;  %v5886_v44 = vpop.f32.mrf.mxu0 }
 0x290   :  { %v5887_v45 = vadd.f32 %v5886_v44, %v5754_v42  ;;  %v6007_v58 = vpop.f32.mrf.mxu1  ;;  %v13010_v42 = vand.u32 4294901760, %v7074_v28 }
 0x291   :  { %v12999_v26 = vadd.f32 %v6007_v58, %v5871_v21  ;;  %v5888_v47 = vpop.f32.mrf.mxu0  ;;  %v7107_v21 = vmul.f32 %v12671_v18, %v12671_v18  ;;  %v13027_v18 = vmul.f32 %v15538_v49, %v15538_v49  ;;  %v15543_v49 = vand.u32 4294901760, %v12997_v11 }
 0x292   :  { %v5889_v54 = vadd.f32 %v5888_v47, %v5756_v30  ;;  %v6009_v17 = vpop.f32.mrf.mxu1  ;;  %15533 = vst [vmem:[#allocation59_spill] sm:$0xff] %v13010_v42  ;;  %v13018_v30 = vsub.f32 %v7073_v60, %v13004_v59  ;;  %v13036_v60 = vsub.f32 %v7074_v28, %v13010_v42  ;;  %v7108_v28 = vmul.f32 %v12690_v8, %v12690_v8 }
 0x293   :  { %v13006_v39 = vadd.f32 %v6009_v17, %v5873_v5  ;;  %v6103_v6 = vpop.f32.mrf.mxu0  ;;  %v15536_v5 = vld [vmem:[#allocation11_spill] sm:$0xff]  ;;  %15539 = vst [vmem:[#allocation32_spill] sm:$0xff] %v13027_v18  ;;  %v13042_v59 = vand.u32 4294901760, %v7107_v21  ;;  %v13067_v8 = vand.u32 4294901760, %v13027_v18 }
 0x294   :  { %v6016_v35 = vpop.f32.mrf.mxu1  ;;  %15535 = vst [vmem:[#allocation61_spill] sm:$0xff] %v13018_v30  ;;  %v7038_v47 = vmul.f32 %v15536_v5, %v15536_v5 }
 0x295   :  { %v13014_v44 = vadd.f32 %v6016_v35, %v5879_v19  ;;  %v6105_v16 = vpop.f32.mrf.mxu0  ;;  %v13029_v19 = vand.u32 4294901760, %v7036_v31  ;;  %v15540_v35 = vld [vmem:[#allocation33_spill] sm:$0xff]  ;;  %15542 = vst [vmem:[#allocation62_spill] sm:$0xff] %v13042_v59  ;;  %15546 = vst [vmem:[#allocation64_spill] sm:$0xff] %v13067_v8 }
 0x296   :  { %v6018_v17 = vpop.f32.mrf.mxu1  ;;  %v13033_v58 = vmul.f32 %v15540_v35, %v15540_v35  ;;  %v13049_v29 = vand.u32 4294901760, %v7038_v47 }
 0x297   :  { %15534 = vst [vmem:[#allocation60_spill] sm:$0xff] %v13014_v44  ;;  %v13023_v38 = vadd.f32 %v6018_v17, %v5881_v61  ;;  %v6110_v24 = vpop.f32.mrf.mxu0  ;;  %v13070_v42 = vsub.f32 %v7036_v31, %v13029_v19  ;;  %v5841_v31 = vadd.f32 %v12954_v13, %v12928_v10  ;;  %v5839_v10 = vadd.f32 %v12952_v0, %v12921_v12 }
 0x298   :  { %v6025_v5 = vpop.f32.mrf.mxu1  ;;  %15544 = vst [vmem:[#allocation63_spill] sm:$0xff] %v13049_v29  ;;  %v13073_v36 = vand.u32 4294901760, %v13033_v58 }
 0x299   :  { %15537 = vst [vmem:[#allocation11_spill] sm:$0xff] %v13023_v38  ;;  %v13040_v61 = vadd.f32 %v6025_v5, %v5887_v45  ;;  %v6112_v17 = vpop.f32.mrf.mxu0  ;;  %v13047_v38 = vsub.f32 %v12997_v11, %v15543_v49  ;;  %v7109_v45 = vmul.f32 %v12699_v41, %v12699_v41  ;;  %v5831_v5 = vadd.f32 %v12948_v53, %v12912_v15 }
 0x29a   :  { %v6027_v35 = vpop.f32.mrf.mxu1  ;;  %v5965_v49 = vadd.f32 %v12962_v46, %v5833_v27  ;;  %15547 = vst [vmem:[#allocation65_spill] sm:$0xff] %v13070_v42  ;;  %15548 = vst [vmem:[#allocation66_spill] sm:$0xff] %v13073_v36  ;;  %v13082_v27 = vsub.f32 %v7038_v47, %v13049_v29  ;;  %v13086_v42 = vand.u32 4294901760, %v7108_v28  ;;  %v5721_v47 = vadd.f32 %v12934_v43, %v12910_v14 }
 0x29b   :  { %15541 = vst [vmem:[#allocation33_spill] sm:$0xff] %v13040_v61  ;;  %v13064_v11 = vadd.f32 %v6027_v35, %v5889_v54  ;;  %v6117_v61 = vpop.f32.mrf.mxu0  ;;  %v5963_v44 = vadd.f32 %v12958_v20, %v5831_v5  ;;  %v13079_v54 = vsub.f32 %v7107_v21, %v13042_v59  ;;  %v13091_v5 = vand.u32 4294901760, %v7109_v45 }
 0x29c   :  { %v6226_v55 = vpop.f32.mrf.mxu1  ;;  %v6106_v53 = vadd.f32 %v6105_v16, %v5965_v49  ;;  %15549 = vst [vmem:[#allocation67_spill] sm:$0xff] %v13082_v27  ;;  %15550 = vst [vmem:[#allocation68_spill] sm:$0xff] %v13086_v42  ;;  %v15553_v21 = vand.u32 4294901760, %v13018_v30  ;;  %v5974_v13 = vadd.f32 %v12970_v57, %v5841_v31  ;;  %v5849_v12 = vadd.f32 %v12960_v7, %v5721_v47 }
 0x29d   :  { %v6119_v15 = vpop.f32.mrf.mxu0  ;;  %v6104_v18 = vadd.f32 %v6103_v6, %v5963_v44  ;;  %15552 = vst [vmem:[#allocation70_spill] sm:$0xff] %v13091_v5  ;;  %v15554_v6 = vand.u32 4294901760, %v13036_v60  ;;  %v5972_v43 = vadd.f32 %v12966_v63, %v5839_v10  ;;  %v13117_v31 = vsub.f32 %v7108_v28, %v13086_v42 }
 0x29e   :  { %v6228_v35 = vpop.f32.mrf.mxu1  ;;  %v13096_v49 = vsub.f32 %v13018_v30, %v15553_v21  ;;  %v6113_v0 = vadd.f32 %v6112_v17, %v5974_v13  ;;  %v13127_v14 = vsub.f32 %v7109_v45, %v13091_v5  ;;  %v5983_v7 = vadd.f32 %v12974_v25, %v5849_v12 }
 0x29f   :  { %v13089_v20 = vadd.f32 %v6228_v35, %v6106_v53  ;;  %v6124_v16 = vpop.f32.mrf.mxu0  ;;  %v13106_v44 = vsub.f32 %v13036_v60, %v15554_v6  ;;  %v15555_v53 = vld [vmem:[#allocation39_spill] sm:$0xff]  ;;  %v13110_v41 = vadd.f32 %v6226_v55, %v6104_v18  ;;  %v5728_v6 = vadd.f32 %v12943_v1, %v12923_v33 }
 0x2a0   :  { %v6233_v46 = vpop.f32.mrf.mxu1  ;;  %v7110_v35 = vmul.f32 %v15555_v53, %v15555_v53  ;;  %v5847_v55 = vadd.f32 %v12956_v40, %v12932_v22  ;;  %v6111_v63 = vadd.f32 %v6110_v24, %v5972_v43  ;;  %v5726_v33 = vadd.f32 %v12940_v3, %v12917_v48 }
 0x2a1   :  { %15551 = vst [vmem:[#allocation69_spill] sm:$0xff] %v13089_v20  ;;  %15556 = vst [vmem:[#allocation39_spill] sm:$0xff] %v13110_v41  ;;  %v7111_v21 = vsub.f32 1.0, %v13089_v20  ;;  %v6126_v30 = vpop.f32.mrf.mxu0  ;;  %v5857_v22 = vadd.f32 %v12968_v62, %v5728_v6  ;;  %v6120_v45 = vadd.f32 %v6119_v15, %v5983_v7  ;;  %v15214_v3 = vand.u32 4294901760, %v13127_v14 }
 0x2a2   :  { %v6235_v57 = vpop.f32.mrf.mxu1  ;;  %v5981_v1 = vadd.f32 %v12972_v4, %v5847_v55  ;;  %v13137_v10 = vand.u32 4294901760, %v7110_v35  ;;  %v13139_v13 = vadd.f32 %v6233_v46, %v6111_v63  ;;  %v15213_v4 = vand.u32 4294901760, %v13117_v31 }
 0x2a3   :  { %v13124_v18 = vmul.f32 %v7111_v21, %v13110_v41  ;;  %v6131_v53 = vpop.f32.mrf.mxu0  ;;  %v13130_v17 = vadd.f32 %v6235_v57, %v6113_v0  ;;  %v5992_v12 = vadd.f32 %v12982_v56, %v5857_v22  ;;  %v15562_v63 = vand.u32 4294901760, %v13079_v54  ;;  %v15602_v41 = vld [vmem:[#allocation23_spill] sm:$0xff] }
 0x2a4   :  { %v6132_v28 = vadd.f32 %v6131_v53, %v12986_v52  ;;  %v6240_v47 = vpop.f32.mrf.mxu1  ;;  %15558 = vst [vmem:[#allocation72_spill] sm:$0xff] %v13137_v10  ;;  %15559 = vst [vmem:[#allocation73_spill] sm:$0xff] %v13139_v13  ;;  %v5855_v52 = vadd.f32 %v12964_v23, %v5726_v33  ;;  %v6118_v62 = vadd.f32 %v6117_v61, %v5981_v1 }
 0x2a5   :  { %15557 = vst [vmem:[#allocation71_spill] sm:$0xff] %v13130_v17  ;;  %v6133_v40 = vpop.f32.mrf.mxu0  ;;  %v7112_v25 = vsub.f32 1.0, %v13130_v17  ;;  %v6127_v57 = vadd.f32 %v6126_v30, %v5992_v12  ;;  %v13154_v56 = vsub.f32 %v7110_v35, %v13137_v10  ;;  %v13171_v35 = vsub.f32 %v13117_v31, %v15213_v4  ;;  %v15571_v4 = vld [vmem:[#allocation47_spill] sm:$0xff] }
 0x2a6   :  { %v6134_v24 = vadd.f32 %v6133_v40, %v12992_v9  ;;  %v6242_v21 = vpop.f32.mrf.mxu1  ;;  %v5990_v9 = vadd.f32 %v12976_v32, %v5855_v52  ;;  %v13156_v55 = vadd.f32 %v6240_v47, %v6118_v62  ;;  %v4927_v47 = vadd.f32 %v12785_v2, %v12762_v34  ;;  %v15566_v2 = vld [vmem:[#allocation44_spill] sm:$0xff] }
 0x2a7   :  { %v6138_v48 = vpop.f32.mrf.mxu0  ;;  %v7116_v43 = vmul.f32 %v7112_v25, %v13139_v13  ;;  %v13148_v15 = vadd.f32 %v6242_v21, %v6120_v45  ;;  %v4934_v1 = vadd.f32 %v12793_v50, %v12771_v51  ;;  %v15565_v21 = vld [vmem:[#allocation60_spill] sm:$0xff]  ;;  %v15215_v34 = vand.u32 4294901760, %v13154_v56  ;;  %v15567_v51 = vld [vmem:[#allocation45_spill] sm:$0xff] }
 0x2a8   :  { %v6139_v46 = vadd.f32 %v6138_v48, %v12999_v26  ;;  %v6247_v0 = vpop.f32.mrf.mxu1  ;;  %15561 = vst [vmem:[#allocation75_spill] sm:$0xff] %v13156_v55  ;;  %v13163_v26 = vsub.f32 %v13079_v54, %v15562_v63  ;;  %v6125_v32 = vadd.f32 %v6124_v16, %v5990_v9  ;;  %v5057_v48 = vadd.f32 %v15566_v2, %v4927_v47  ;;  %v15573_v2 = vld [vmem:[#allocation33_spill] sm:$0xff] }
 0x2a9   :  { %15560 = vst [vmem:[#allocation74_spill] sm:$0xff] %v13148_v15  ;;  %v6140_v6 = vpop.f32.mrf.mxu0  ;;  %v7113_v61 = vsub.f32 1.0, %v13148_v15  ;;  %v5065_v50 = vadd.f32 %v15567_v51, %v4934_v1 }
 0x2aa   :  { %v6249_v53 = vpop.f32.mrf.mxu1  ;;  %v6141_v30 = vadd.f32 %v6140_v6, %v13006_v39  ;;  %v13181_v39 = vsub.f32 %v13127_v14, %v15214_v3  ;;  %v13183_v16 = vadd.f32 %v6247_v0, %v6125_v32 }
 0x2ab   :  { %v13166_v33 = vadd.f32 %v6249_v53, %v6127_v57  ;;  %v6145_v22 = vpop.f32.mrf.mxu0  ;;  %v7117_v40 = vmul.f32 %v7113_v61, %v13156_v55  ;;  %v15569_v61 = vld [vmem:[#allocation11_spill] sm:$0xff]  ;;  %v5202_v3 = vadd.f32 %v15571_v4, %v5065_v50  ;;  %v15577_v50 = vld [vmem:[#allocation49_spill] sm:$0xff] }
 0x2ac   :  { %v6254_v45 = vpop.f32.mrf.mxu1  ;;  %15564 = vst [vmem:[#allocation77_spill] sm:$0xff] %v13183_v16  ;;  %v6146_v52 = vadd.f32 %v6145_v22, %v15565_v21  ;;  %v15570_v22 = vld [vmem:[#allocation46_spill] sm:$0xff] }
 0x2ad   :  { %15563 = vst [vmem:[#allocation76_spill] sm:$0xff] %v13166_v33  ;;  %v7114_v25 = vsub.f32 1.0, %v13166_v33  ;;  %v6147_v12 = vpop.f32.mrf.mxu0  ;;  %v13190_v62 = vadd.f32 %v6254_v45, %v6132_v28  ;;  %v7121_v6 = vmul.f32 %v7117_v40, %v7117_v40  ;;  %v5193_v21 = vadd.f32 %v15570_v22, %v5057_v48 }
 0x2ae   :  { %v6256_v9 = vpop.f32.mrf.mxu1  ;;  %v6148_v53 = vadd.f32 %v6147_v12, %v15569_v61  ;;  %v13207_v12 = vsub.f32 %v13154_v56, %v15215_v34  ;;  %v15575_v61 = vld [vmem:[#allocation12_spill] sm:$0xff]  ;;  %v15578_v34 = vld [vmem:[#allocation14_spill] sm:$0xff]  ;;  %v7119_v28 = vmul.f32 %v13124_v18, %v13124_v18  ;;  %v15587_v18 = vld [vmem:[#allocation17_spill] sm:$0xff] }
 0x2af   :  { %15568 = vst [vmem:[#allocation60_spill] sm:$0xff] %v13190_v62  ;;  %v7118_v0 = vmul.f32 %v7114_v25, %v13183_v16  ;;  %v6152_v63 = vpop.f32.mrf.mxu0  ;;  %v13198_v47 = vadd.f32 %v6256_v9, %v6134_v24  ;;  %v13211_v48 = vmul.f32 %v15575_v61, %v15575_v61  ;;  %v15576_v24 = vld [vmem:[#allocation48_spill] sm:$0xff]  ;;  %v5333_v9 = vadd.f32 %v15577_v50, %v5202_v3  ;;  %v15579_v61 = vld [vmem:[#allocation51_spill] sm:$0xff] }
 0x2b0   :  { %v6261_v1 = vpop.f32.mrf.mxu1  ;;  %v6153_v51 = vadd.f32 %v6152_v63, %v15573_v2  ;;  %v5326_v4 = vadd.f32 %v15576_v24, %v5193_v21  ;;  %v7120_v63 = vmul.f32 %v7116_v43, %v7116_v43  ;;  %v13223_v57 = vmul.f32 %v15578_v34, %v15578_v34  ;;  %v15582_v50 = vld [vmem:[#allocation19_spill] sm:$0xff] }
 0x2b1   :  { %15572 = vst [vmem:[#allocation44_spill] sm:$0xff] %v13198_v47  ;;  %v7122_v45 = vmul.f32 %v7118_v0, %v7118_v0  ;;  %v13202_v40 = vadd.f32 %v6261_v1, %v6139_v46  ;;  %v6154_v25 = vpop.f32.mrf.mxu0  ;;  %v7123_v0 = vsub.f32 1.0, %v13198_v47  ;;  %v13216_v46 = vand.u32 4294901760, %v7121_v6 }
 0x2b2   :  { %v6263_v22 = vpop.f32.mrf.mxu1  ;;  %v6155_v2 = vadd.f32 %v6154_v25, %v13064_v11  ;;  %v5456_v32 = vadd.f32 %v15579_v61, %v5333_v9  ;;  %v7062_v43 = vmul.f32 %v15582_v50, %v15582_v50  ;;  %v13242_v34 = vand.u32 4294901760, %v13211_v48  ;;  %v15585_v9 = vld [vmem:[#allocation50_spill] sm:$0xff]  ;;  %v15586_v61 = vld [vmem:[#allocation59_spill] sm:$0xff] }
 0x2b3   :  { %15574 = vst [vmem:[#allocation45_spill] sm:$0xff] %v13202_v40  ;;  %v13218_v1 = vand.u32 4294901760, %v7122_v45  ;;  %v13227_v21 = vmul.f32 %v7123_v0, %v13190_v62  ;;  %v13229_v3 = vadd.f32 %v6263_v22, %v6141_v30  ;;  %v5449_v30 = vadd.f32 %v15585_v9, %v5326_v4  ;;  %v15591_v62 = vld [vmem:[#allocation58_spill] sm:$0xff]  ;;  %v13266_v20 = vpop.f32.mrf.mxu0 }
 0x2b4   :  { %v6268_v24 = vpop.f32.mrf.mxu1  ;;  %15584 = vst [vmem:[#allocation33_spill] sm:$0xff] %v13242_v34  ;;  %v13250_v23 = vand.u32 4294901760, %v7120_v63  ;;  %v13259_v4 = vand.u32 4294901760, %v13223_v57  ;;  %v7088_v9 = vsub.f32 1.0, %v5456_v32  ;;  %15592 = vst [vmem:[#allocation14_spill] sm:$0xff] %v13266_v20  ;;  %v13272_v17 = vand.u32 4294901760, %v7119_v28 }
 0x2b5   :  { %15580 = vst [vmem:[#allocation11_spill] sm:$0xff] %v13227_v21  ;;  %15581 = vst [vmem:[#allocation46_spill] sm:$0xff] %v13229_v3  ;;  %v13236_v11 = vsub.f32 %v7122_v45, %v13218_v1  ;;  %v13238_v25 = vadd.f32 %v6268_v24, %v6146_v52  ;;  %10184 = vmatprep.subr.mxu0 %v13218_v1  ;;  %v7124_v0 = vsub.f32 1.0, %v13229_v3  ;;  %v15595_v32 = vld [vmem:[#allocation18_spill] sm:$0xff]  ;;  %v7087_v33 = vsub.f32 1.0, %v5449_v30 }
 0x2b6   :  { %v6270_v22 = vpop.f32.mrf.mxu1  ;;  %10185 = vmatpush3.msra.mxu0 %v15586_v61  ;;  %v7061_v45 = vmul.f32 %v15587_v18, %v15587_v18  ;;  %v13253_v52 = vsub.f32 %v7121_v6, %v13216_v46  ;;  %15589 = vst [vmem:[#allocation48_spill] sm:$0xff] %v13259_v4  ;;  %v15593_v6 = vld [vmem:[#allocation15_spill] sm:$0xff]  ;;  %v7092_v13 = vmul.f32 %v7088_v9, %v15602_v41 }
 0x2b7   :  { %15583 = vst [vmem:[#allocation47_spill] sm:$0xff] %v13238_v25  ;;  %v13255_v24 = vadd.f32 %v6270_v22, %v6148_v53  ;;  %10186 = vmatprep.subr.mxu0 %v13216_v46  ;;  %v13262_v7 = vmul.f32 %v7124_v0, %v13202_v40  ;;  %v7060_v53 = vmul.f32 %v15593_v6, %v15593_v6  ;;  %v13270_v22 = vand.u32 4294901760, %v7062_v43  ;;  %v15596_v40 = vld [vmem:[#allocation13_spill] sm:$0xff]  ;;  %v15598_v6 = vld [vmem:[#allocation55_spill] sm:$0xff] }
 0x2b8   :  { %v6275_v50 = vpop.f32.mrf.mxu1  ;;  %10187 = vmatpush3.msra.mxu0 %v15591_v62  ;;  %v13278_v0 = vmul.f32 %v15595_v32, %v15595_v32  ;;  %v7059_v18 = vmul.f32 %v15596_v40, %v15596_v40  ;;  %v13285_v21 = vand.u32 4294901760, %v7061_v45  ;;  %v15603_v40 = vld [vmem:[#allocation27_spill] sm:$0xff]  ;;  %v13298_v30 = vsub.f32 %v7120_v63, %v13250_v23 }
 0x2b9   :  { %15588 = vst [vmem:[#allocation12_spill] sm:$0xff] %v13255_v24  ;;  %15590 = vst [vmem:[#allocation49_spill] sm:$0xff] %v13262_v7  ;;  %v7125_v15 = vsub.f32 1.0, %v13255_v24  ;;  %10188 = vmatprep.subr.mxu0 %v13250_v23  ;;  %v13282_v47 = vadd.f32 %v6275_v50, %v6153_v51  ;;  %v7098_v51 = vmul.f32 %v15603_v40, %v15603_v40  ;;  %v15604_v50 = vld [vmem:[#allocation54_spill] sm:$0xff]  ;;  %v15605_v55 = vand.u32 4294901760, %v13236_v11  ;;  %v15609_v40 = vld [vmem:[#allocation16_spill] sm:$0xff] }
 0x2ba   :  { %15594 = vst [vmem:[#allocation51_spill] sm:$0xff] %v13270_v22  ;;  %v6277_v3 = vpop.f32.mrf.mxu1  ;;  %10189 = vmatpush3.msra.mxu0 %v15598_v6  ;;  %15599 = vst [vmem:[#allocation50_spill] sm:$0xff] %v13285_v21  ;;  %v13311_v41 = vsub.f32 %v7062_v43, %v13270_v22  ;;  %v13314_v9 = vsub.f32 %v7119_v28, %v13272_v17  ;;  %v7049_v32 = vmul.f32 %v15609_v40, %v15609_v40 }
 0x2bb   :  { %15597 = vst [vmem:[#allocation19_spill] sm:$0xff] %v13282_v47  ;;  %v13288_v7 = vmul.f32 %v7125_v15, %v13238_v25  ;;  %v13290_v24 = vadd.f32 %v6277_v3, %v6155_v2  ;;  %10190 = vmatprep.subr.mxu0 %v13272_v17  ;;  %v7461_v15 = vsub.f32 %v13236_v11, %v15605_v55  ;;  %v13304_v2 = vpop.f32.mrf.mxu0  ;;  %v13308_v25 = vand.u32 4294901760, %v7060_v53 }
 0x2bc   :  { %10191 = vmatpush3.msra.mxu0 %v15604_v50  ;;  %15606 = vst [vmem:[#allocation58_spill] sm:$0xff] %v13304_v2  ;;  %v13306_v3 = vpop.f32.mrf.mxu1  ;;  %v13320_v55 = vand.u32 4294901760, %v7059_v18  ;;  %v15612_v2 = vld [vmem:[#allocation25_spill] sm:$0xff]  ;;  %v13327_v43 = vsub.f32 %v7061_v45, %v13285_v21  ;;  %v15614_v40 = vand.u32 4294901760, %v13253_v52  ;;  %v13342_v45 = vand.u32 4294901760, %v7098_v51 }
 0x2bd   :  { %15600 = vst [vmem:[#allocation59_spill] sm:$0xff] %v13288_v7  ;;  %15601 = vst [vmem:[#allocation17_spill] sm:$0xff] %v13290_v24  ;;  %v7126_v63 = vsub.f32 1.0, %v13290_v24  ;;  %10192 = vmatprep.subr.mxu0 %v13137_v10  ;;  %v15611_v7 = vld [vmem:[#allocation21_spill] sm:$0xff]  ;;  %v7462_v24 = vand.u32 4294901760, %v7461_v15  ;;  %v15620_v15 = vand.u32 4294901760, %v13106_v44 }
 0x2be   :  { %15607 = vst [vmem:[#allocation15_spill] sm:$0xff] %v13306_v3  ;;  %15608 = vst [vmem:[#allocation18_spill] sm:$0xff] %v13308_v25  ;;  %v7091_v16 = vmul.f32 %v7087_v33, %v15611_v7  ;;  %v7097_v3 = vmul.f32 %v15612_v2, %v15612_v2  ;;  %10193 = vmatpush3.msra.mxu0 %v13270_v22  ;;  %v7468_v20 = vsub.f32 %v13253_v52, %v15614_v40  ;;  %v44_v7 = vld [vmem:[%s15162_s4] sm:$0xff] }
 0x2bf   :  { %15610 = vst [vmem:[#allocation13_spill] sm:$0xff] %v13320_v55  ;;  %v13330_v28 = vmul.f32 %v7126_v63, %v13282_v47  ;;  %10194 = vmatprep.subr.mxu0 %v13091_v5  ;;  %v13340_v33 = vand.u32 4294901760, %v13278_v0  ;;  %v7096_v2 = vmul.f32 %v7092_v13, %v7092_v13  ;;  %15616 = vst [vmem:[#allocation27_spill] sm:$0xff] %v13342_v45  ;;  %v13346_v63 = vpop.f32.mrf.mxu0  ;;  %v13348_v47 = vpop.f32.mrf.mxu1  ;;  %10222 = vmatprep.subr.mxu1 %v7462_v24 }
 0x2c0   :  { %10195 = vmatpush3.msra.mxu0 %v13285_v21  ;;  %15617 = vst [vmem:[#allocation54_spill] sm:$0xff] %v13346_v63  ;;  %15618 = vst [vmem:[#allocation16_spill] sm:$0xff] %v13348_v47  ;;  %v13351_v40 = vsub.f32 %v7060_v53, %v13308_v25  ;;  %v15244_v5 = vand.u32 4294901760, %v13314_v9  ;;  %v7095_v22 = vmul.f32 %v7091_v16, %v7091_v16  ;;  %v13356_v10 = vand.u32 4294901760, %v7097_v3 }
 0x2c1   :  { %15613 = vst [vmem:[#allocation55_spill] sm:$0xff] %v13330_v28  ;;  %15615 = vst [vmem:[#allocation23_spill] sm:$0xff] %v13340_v33  ;;  %v7469_v28 = vand.u32 4294901760, %v7468_v20  ;;  %10196 = vmatprep.subr.mxu0 %v13086_v42  ;;  %10223 = vmatpush3.msra.mxu1 %v15620_v15  ;;  %v15621_v63 = vand.u32 4294901760, %v13298_v30  ;;  %v13364_v24 = vand.u32 4294901760, %v44_v7  ;;  %v13366_v20 = vand.u32 4294901760, %v7049_v32  ;;  %v13388_v42 = vpop.f32.mrf.mxu1 }
 0x2c2   :  { %15619 = vst [vmem:[#allocation21_spill] sm:$0xff] %v13356_v10  ;;  %10197 = vmatpush3.msra.mxu0 %v13308_v25  ;;  %v13369_v53 = vsub.f32 %v7059_v18, %v13320_v55  ;;  %v7482_v44 = vsub.f32 %v13314_v9, %v15244_v5  ;;  %v15624_v15 = vld [vmem:[#allocation26_spill] sm:$0xff]  ;;  %v13378_v13 = vand.u32 4294901760, %v7096_v2  ;;  %v13381_v25 = vsub.f32 %v7098_v51, %v13342_v45  ;;  %v15630_v5 = vld [vmem:[#allocation24_spill] sm:$0xff] }
 0x2c3   :  { %v7475_v47 = vsub.f32 %v13298_v30, %v15621_v63  ;;  %15622 = vst [vmem:[#allocation25_spill] sm:$0xff] %v13364_v24  ;;  %15623 = vst [vmem:[#allocation78_spill] sm:$0xff] %v13366_v20  ;;  %10224 = vmatprep.subr.mxu1 %v7469_v28  ;;  %10198 = vmatprep.subr.mxu0 %v13042_v59  ;;  %v7086_v63 = vmul.f32 %v15624_v15, %v15624_v15  ;;  %v15627_v18 = vand.u32 4294901760, %v13096_v49  ;;  %v13386_v59 = vpop.f32.mrf.mxu0 }
 0x2c4   :  { %15625 = vst [vmem:[#allocation26_spill] sm:$0xff] %v13378_v13  ;;  %15626 = vst [vmem:[#allocation79_spill] sm:$0xff] %v13381_v25  ;;  %10199 = vmatpush3.msra.mxu0 %v13320_v55  ;;  %v7085_v16 = vmul.f32 %v15630_v5, %v15630_v5  ;;  %v13394_v15 = vsub.f32 %v13278_v0, %v13340_v33  ;;  %v15632_v51 = vand.u32 4294901760, %v13311_v41  ;;  %v15635_v0 = vld [vmem:[#allocation20_spill] sm:$0xff] }
 0x2c5   :  { %10225 = vmatpush3.msra.mxu1 %v15627_v18  ;;  %v7476_v28 = vand.u32 4294901760, %v7475_v47  ;;  %15628 = vst [vmem:[#allocation80_spill] sm:$0xff] %v13386_v59  ;;  %15629 = vst [vmem:[#allocation81_spill] sm:$0xff] %v13388_v42  ;;  %10200 = vmatprep.subr.mxu0 %v13342_v45  ;;  %v13401_v18 = vand.u32 4294901760, %v7095_v22  ;;  %v13404_v59 = vsub.f32 %v7097_v3, %v13356_v10  ;;  %v7483_v42 = vand.u32 4294901760, %v7482_v44 }
 0x2c6   :  { %15631 = vst [vmem:[#allocation24_spill] sm:$0xff] %v13394_v15  ;;  %v7377_v49 = vsub.f32 %v13311_v41, %v15632_v51  ;;  %10201 = vmatpush3.msra.mxu0 %v13340_v33  ;;  %v13408_v5 = vsub.f32 %v44_v7, %v13364_v24  ;;  %v13412_v45 = vmul.f32 %v15635_v0, %v15635_v0  ;;  %v15637_v47 = vand.u32 4294901760, %v13057_v37  ;;  %v15639_v7 = vld [vmem:[#allocation22_spill] sm:$0xff]  ;;  %v13432_v37 = vpop.f32.mrf.mxu0 }
 0x2c7   :  { %15633 = vst [vmem:[#allocation82_spill] sm:$0xff] %v13401_v18  ;;  %15634 = vst [vmem:[#allocation83_spill] sm:$0xff] %v13404_v59  ;;  %10226 = vmatprep.subr.mxu1 %v7476_v28  ;;  %v13415_v51 = vsub.f32 %v7049_v32, %v13366_v20  ;;  %10202 = vmatprep.subr.mxu0 %v13356_v10  ;;  %v15638_v3 = vand.u32 4294901760, %v13327_v43  ;;  %v7084_v33 = vmul.f32 %v15639_v7, %v15639_v7  ;;  %v13434_v32 = vpop.f32.mrf.mxu1 }
 0x2c8   :  { %10227 = vmatpush3.msra.mxu1 %v15637_v47  ;;  %v13426_v55 = vand.u32 4294901760, %v7086_v63  ;;  %v13429_v0 = vsub.f32 %v7096_v2, %v13378_v13  ;;  %10203 = vmatpush3.msra.mxu0 %v13366_v20  ;;  %15642 = vst [vmem:[#allocation85_spill] sm:$0xff] %v13432_v37  ;;  %15643 = vst [vmem:[#allocation86_spill] sm:$0xff] %v13434_v32  ;;  %v15645_v7 = vand.u32 4294901760, %v13047_v38  ;;  %v7378_v28 = vand.u32 4294901760, %v7377_v49 }
 0x2c9   :  { %15636 = vst [vmem:[#allocation20_spill] sm:$0xff] %v13415_v51  ;;  %v7384_v44 = vsub.f32 %v13327_v43, %v15638_v3  ;;  %10228 = vmatprep.subr.mxu1 %v7483_v42  ;;  %v13439_v3 = vsub.f32 %v13223_v57, %v13259_v4  ;;  %10204 = vmatprep.subr.mxu0 %v13378_v13  ;;  %v15646_v42 = vand.u32 4294901760, %v13351_v40  ;;  %v13448_v20 = vand.u32 4294901760, %v7085_v16  ;;  %v13480_v32 = vpop.f32.mrf.mxu1 }
 0x2ca   :  { %15640 = vst [vmem:[#allocation22_spill] sm:$0xff] %v13426_v55  ;;  %15641 = vst [vmem:[#allocation84_spill] sm:$0xff] %v13429_v0  ;;  %10229 = vmatpush3.msra.mxu1 %v15645_v7  ;;  %v13451_v47 = vsub.f32 %v7095_v22, %v13401_v18  ;;  %v15649_v57 = vand.u32 4294901760, %v13207_v12  ;;  %10205 = vmatpush3.msra.mxu0 %v13259_v4  ;;  %v13460_v7 = vsub.f32 %v13211_v48, %v13242_v34 }
 0x2cb   :  { %15644 = vst [vmem:[#allocation87_spill] sm:$0xff] %v13439_v3  ;;  %v7391_v2 = vsub.f32 %v13351_v40, %v15646_v42  ;;  %15647 = vst [vmem:[#allocation88_spill] sm:$0xff] %v13448_v20  ;;  %v7385_v42 = vand.u32 4294901760, %v7384_v44  ;;  %10206 = vmatprep.subr.mxu0 %v13401_v18  ;;  %v15651_v22 = vand.u32 4294901760, %v13369_v53  ;;  %v13470_v38 = vsub.f32 %v7086_v63, %v13426_v55 }
 0x2cc   :  { %15648 = vst [vmem:[#allocation89_spill] sm:$0xff] %v13451_v47  ;;  %10230 = vmatprep.subr.mxu1 %v15649_v57  ;;  %15650 = vst [vmem:[#allocation90_spill] sm:$0xff] %v13460_v7  ;;  %v13467_v57 = vand.u32 4294901760, %v7084_v33  ;;  %v15654_v49 = vand.u32 4294901760, %v13181_v39  ;;  %10207 = vmatpush3.msra.mxu0 %v13242_v34  ;;  %v15655_v48 = vand.u32 4294901760, %v13381_v25  ;;  %v13484_v12 = vand.u32 4294901760, %v13412_v45 }
 0x2cd   :  { %10231 = vmatpush3.msra.mxu1 %v7378_v28  ;;  %v7398_v37 = vsub.f32 %v13369_v53, %v15651_v22  ;;  %15653 = vst [vmem:[#allocation92_spill] sm:$0xff] %v13470_v38  ;;  %v13478_v28 = vpop.f32.mrf.mxu0  ;;  %15657 = vst [vmem:[#allocation94_spill] sm:$0xff] %v13480_v32  ;;  %v7392_v63 = vand.u32 4294901760, %v7391_v2  ;;  %10208 = vmatprep.subr.mxu0 %v13426_v55  ;;  %v15659_v39 = vand.u32 4294901760, %v13394_v15  ;;  %v15662_v22 = vand.u32 4294901760, %v13404_v59 }
 0x2ce   :  { %15652 = vst [vmem:[#allocation91_spill] sm:$0xff] %v13467_v57  ;;  %10232 = vmatprep.subr.mxu1 %v15654_v49  ;;  %v7517_v44 = vsub.f32 %v13381_v25, %v15655_v48  ;;  %15656 = vst [vmem:[#allocation93_spill] sm:$0xff] %v13478_v28  ;;  %v13492_v48 = vsub.f32 %v7085_v16, %v13448_v20  ;;  %v15661_v28 = vand.u32 4294901760, %v13171_v35  ;;  %10209 = vmatpush3.msra.mxu0 %v13049_v29 }
 0x2cf   :  { %15658 = vst [vmem:[#allocation95_spill] sm:$0xff] %v13484_v12  ;;  %10233 = vmatpush3.msra.mxu1 %v7385_v42  ;;  %v7405_v49 = vsub.f32 %v13394_v15, %v15659_v39  ;;  %v7524_v2 = vsub.f32 %v13404_v59, %v15662_v22  ;;  %v15663_v32 = vand.u32 4294901760, %v13408_v5  ;;  %v13506_v34 = vsub.f32 %v13033_v58, %v13073_v36  ;;  %v13518_v55 = vpop.f32.mrf.mxu0  ;;  %v13520_v58 = vpop.f32.mrf.mxu1 }
 0x2d0   :  { %15660 = vst [vmem:[#allocation96_spill] sm:$0xff] %v13492_v48  ;;  %10234 = vmatprep.subr.mxu1 %v15661_v28  ;;  %v7399_v16 = vand.u32 4294901760, %v7398_v37  ;;  %10210 = vmatprep.subr.mxu0 %v13448_v20  ;;  %v15665_v35 = vand.u32 4294901760, %v13415_v51  ;;  %v13514_v42 = vsub.f32 %v7084_v33, %v13467_v57  ;;  %v15667_v29 = vand.u32 4294901760, %v13163_v26  ;;  %15668 = vst [vmem:[#allocation99_spill] sm:$0xff] %v13518_v55 }
 0x2d1   :  { %v7323_v39 = vsub.f32 %v13408_v5, %v15663_v32  ;;  %15664 = vst [vmem:[#allocation97_spill] sm:$0xff] %v13506_v34  ;;  %10235 = vmatpush3.msra.mxu1 %v7392_v63  ;;  %v7518_v32 = vand.u32 4294901760, %v7517_v44  ;;  %15669 = vst [vmem:[#allocation100_spill] sm:$0xff] %v13520_v58  ;;  %10211 = vmatpush3.msra.mxu0 %v13073_v36  ;;  %v15670_v37 = vand.u32 4294901760, %v13429_v0  ;;  %v7406_v26 = vand.u32 4294901760, %v7405_v49  ;;  %v15674_v49 = vld [vmem:[#allocation32_spill] sm:$0xff] }
 0x2d2   :  { %v7412_v28 = vsub.f32 %v13415_v51, %v15665_v35  ;;  %15666 = vst [vmem:[#allocation98_spill] sm:$0xff] %v13514_v42  ;;  %10236 = vmatprep.subr.mxu1 %v15667_v29  ;;  %v13529_v33 = vsub.f32 %v13412_v45, %v13484_v12  ;;  %10212 = vmatprep.subr.mxu0 %v13467_v57  ;;  %v15672_v29 = vand.u32 4294901760, %v13439_v3  ;;  %v7525_v58 = vand.u32 4294901760, %v7524_v2 }
 0x2d3   :  { %v7531_v63 = vsub.f32 %v13429_v0, %v15670_v37  ;;  %10237 = vmatpush3.msra.mxu1 %v7399_v16  ;;  %10213 = vmatpush3.msra.mxu0 %v13029_v19  ;;  %v15673_v37 = vand.u32 4294901760, %v13451_v47  ;;  %v7324_v45 = vand.u32 4294901760, %v7323_v39  ;;  %v13543_v55 = vsub.f32 %v15674_v49, %v13067_v8  ;;  %v13552_v39 = vpop.f32.mrf.mxu1 }
 0x2d4   :  { %15671 = vst [vmem:[#allocation101_spill] sm:$0xff] %v13529_v33  ;;  %v7419_v44 = vsub.f32 %v13439_v3, %v15672_v29  ;;  %10238 = vmatprep.subr.mxu1 %v7518_v32  ;;  %v7413_v57 = vand.u32 4294901760, %v7412_v28  ;;  %10214 = vmatprep.subr.mxu0 %v13484_v12  ;;  %v15676_v32 = vand.u32 4294901760, %v13460_v7  ;;  %15678 = vst [vmem:[#allocation103_spill] sm:$0xff] %v13552_v39  ;;  %v15679_v49 = vand.u32 4294901760, %v13470_v38  ;;  %v15688_v12 = vld [vmem:[#allocation57_spill] sm:$0xff] }
 0x2d5   :  { %v7538_v35 = vsub.f32 %v13451_v47, %v15673_v37  ;;  %15675 = vst [vmem:[#allocation32_spill] sm:$0xff] %v13543_v55  ;;  %10239 = vmatpush3.msra.mxu1 %v7406_v26  ;;  %v7532_v22 = vand.u32 4294901760, %v7531_v63  ;;  %v13550_v37 = vpop.f32.mrf.mxu0  ;;  %10215 = vmatpush3.msra.mxu0 %v13067_v8  ;;  %v15681_v63 = vld [vmem:[#allocation65_spill] sm:$0xff]  ;;  %v15682_v39 = vand.u32 4294901760, %v13492_v48 }
 0x2d6   :  { %v7426_v2 = vsub.f32 %v13460_v7, %v15676_v32  ;;  %10240 = vmatprep.subr.mxu1 %v7525_v58  ;;  %15677 = vst [vmem:[#allocation102_spill] sm:$0xff] %v13550_v37  ;;  %v7545_v28 = vsub.f32 %v13470_v38, %v15679_v49  ;;  %v7420_v16 = vand.u32 4294901760, %v7419_v44  ;;  %10260 = vmatprep.subr.mxu0 %v13236_v11  ;;  %v15680_v32 = vand.u32 4294901760, %v13082_v27  ;;  %v15686_v49 = vld [vmem:[#allocation61_spill] sm:$0xff] }
 0x2d7   :  { %10241 = vmatpush3.msra.mxu1 %v7413_v57  ;;  %v15265_v29 = vand.u32 4294901760, %v15681_v63  ;;  %v7539_v37 = vand.u32 4294901760, %v7538_v35  ;;  %7325 = vmatmul.mubr.f32.vlgmr.msra.gmra.mxu0 %v7324_v45  ;;  %v7552_v8 = vsub.f32 %v13492_v48, %v15682_v39  ;;  %v15683_v44 = vand.u32 4294901760, %v13506_v34  ;;  %v13575_v35 = vpop.f32.mrf.mxu0 }
 0x2d8   :  { %v7433_v58 = vsub.f32 %v13082_v27, %v15680_v32  ;;  %10242 = vmatprep.subr.mxu1 %v7532_v22  ;;  %v7427_v57 = vand.u32 4294901760, %v7426_v2  ;;  %10261 = vmatpush3.msra.mxu0 %v13036_v60  ;;  %v13573_v22 = vpop.f32.mrf.mxu1  ;;  %v7546_v45 = vand.u32 4294901760, %v7545_v28  ;;  %v15685_v39 = vand.u32 4294901760, %v13514_v42 }
 0x2d9   :  { %10243 = vmatpush3.msra.mxu1 %v7420_v16  ;;  %v7440_v26 = vsub.f32 %v13506_v34, %v15683_v44  ;;  %15684 = vst [vmem:[#allocation104_spill] sm:$0xff] %v13573_v22  ;;  %10262 = vmatprep.subr.mxu0 %v13253_v52  ;;  %v7447_v44 = vsub.f32 %v15681_v63, %v15265_v29  ;;  %v15687_v28 = vand.u32 4294901760, %v13529_v33 }
 0x2da   :  { %10244 = vmatprep.subr.mxu1 %v7539_v37  ;;  %v7559_v16 = vsub.f32 %v13514_v42, %v15685_v39  ;;  %v7434_v2 = vand.u32 4294901760, %v7433_v58  ;;  %10263 = vmatpush3.msra.mxu0 %v15686_v49  ;;  %v7553_v37 = vand.u32 4294901760, %v7552_v8  ;;  %v15689_v58 = vand.u32 4294901760, %v13543_v55  ;;  %v51_v39 = vld [vmem:[%s15162_s4 + $0x38] sm:$0xff]  ;;  %v13598_v8 = vpop.f32.mrf.mxu1 }
 0x2db   :  { %10245 = vmatpush3.msra.mxu1 %v7427_v57  ;;  %10264 = vmatprep.subr.mxu0 %v13298_v30  ;;  %v7566_v32 = vsub.f32 %v13529_v33, %v15687_v28  ;;  %v7441_v22 = vand.u32 4294901760, %v7440_v26  ;;  %15690 = vst [vmem:[#allocation61_spill] sm:$0xff] %v13598_v8  ;;  %v7448_v26 = vand.u32 4294901760, %v7447_v44  ;;  %v50_v28 = vld [vmem:[%s15162_s4 + $0x30] sm:$0xff] }
 0x2dc   :  { %10246 = vmatprep.subr.mxu1 %v7546_v45  ;;  %10265 = vmatpush3.msra.mxu0 %v15688_v12  ;;  %v7454_v57 = vsub.f32 %v13543_v55, %v15689_v58  ;;  %v13596_v45 = vpop.f32.mrf.mxu0  ;;  %v7560_v29 = vand.u32 4294901760, %v7559_v16  ;;  %v13606_v12 = vand.u32 4294901760, %v51_v39  ;;  %v13614_v44 = vand.u32 4294901760, %v50_v28 }
 0x2dd   :  { %10247 = vmatpush3.msra.mxu1 %v7434_v2  ;;  %10266 = vmatprep.subr.mxu0 %v13314_v9  ;;  %v15691_v2 = vld [vmem:[#allocation56_spill] sm:$0xff]  ;;  %v7567_v58 = vand.u32 4294901760, %v7566_v32 }
 0x2de   :  { %10248 = vmatprep.subr.mxu1 %v7553_v37  ;;  %10267 = vmatpush3.msra.mxu0 %v15691_v2  ;;  %15692 = vst [vmem:[#allocation56_spill] sm:$0xff] %v13606_v12  ;;  %v7455_v8 = vand.u32 4294901760, %v7454_v57  ;;  %v13609_v16 = vpop.f32.mrf.mxu0  ;;  %15693 = vst [vmem:[#allocation105_spill] sm:$0xff] %v13614_v44  ;;  %v13631_v57 = vsub.f32 %v50_v28, %v13614_v44  ;;  %v15699_v28 = vld [vmem:[#allocation70_spill] sm:$0xff] }
 0x2df   :  { %10249 = vmatpush3.msra.mxu1 %v7441_v22  ;;  %10268 = vmatprep.subr.mxu0 %v13154_v56  ;;  %v13611_v22 = vpop.f32.mrf.mxu1 }
 0x2e0   :  { %10250 = vmatprep.subr.mxu1 %v7560_v29  ;;  %10269 = vmatpush3.msra.mxu0 %v13311_v41  ;;  %v13620_v29 = vsub.f32 %v51_v39, %v13606_v12  ;;  %v13624_v32 = vpop.f32.mrf.mxu0 }
 0x2e1   :  { %10251 = vmatpush3.msra.mxu1 %v7448_v26  ;;  %10270 = vmatprep.subr.mxu0 %v13127_v14  ;;  %v13626_v37 = vpop.f32.mrf.mxu1 }
 0x2e2   :  { %10252 = vmatprep.subr.mxu1 %v7567_v58  ;;  %10271 = vmatpush3.msra.mxu0 %v13327_v43  ;;  %v15272_v39 = vand.u32 4294901760, %v13620_v29  ;;  %v15695_v58 = vld [vmem:[#allocation72_spill] sm:$0xff] }
 0x2e3   :  { %10253 = vmatpush3.msra.mxu1 %v7455_v8  ;;  %10272 = vmatprep.subr.mxu0 %v13117_v31  ;;  %v13640_v8 = vpop.f32.mrf.mxu0  ;;  %v13642_v26 = vpop.f32.mrf.mxu1 }
 0x2e4   :  { %7572 = vmatmul.mubr.f32.vlgmr.msra.gmra.mxu1 %v13364_v24  ;;  %10298 = vmatprep.subr.mxu1 %v13218_v1  ;;  %15694 = vst [vmem:[#allocation106_spill] sm:$0xff] %v13640_v8  ;;  %v7332_v24 = vsub.f32 %v13620_v29, %v15272_v39  ;;  %v15696_v8 = vld [vmem:[#allocation51_spill] sm:$0xff]  ;;  %v15701_v39 = vld [vmem:[#allocation68_spill] sm:$0xff] }
 0x2e5   :  { %10299 = vmatpush3.msra.mxu1 %v15586_v61  ;;  %10273 = vmatpush3.msra.mxu0 %v13351_v40 }
 0x2e6   :  { %10300 = vmatprep.subr.mxu1 %v13216_v46  ;;  %10274 = vmatprep.subr.mxu0 %v13079_v54 }
 0x2e7   :  { %10301 = vmatpush3.msra.mxu1 %v15591_v62  ;;  %10275 = vmatpush3.msra.mxu0 %v13369_v53 }
 0x2e8   :  { %10302 = vmatprep.subr.mxu1 %v13250_v23  ;;  %10276 = vmatprep.subr.mxu0 %v13381_v25  ;;  %v13656_v25 = vpop.f32.mrf.mxu0 }
 0x2e9   :  { %10303 = vmatpush3.msra.mxu1 %v15598_v6  ;;  %10277 = vmatpush3.msra.mxu0 %v13394_v15  ;;  %15697 = vst [vmem:[#allocation72_spill] sm:$0xff] %v13656_v25  ;;  %v13658_v15 = vpop.f32.mrf.mxu1  ;;  %v15702_v25 = vld [vmem:[#allocation18_spill] sm:$0xff] }
 0x2ea   :  { %10304 = vmatprep.subr.mxu1 %v13272_v17  ;;  %10278 = vmatprep.subr.mxu0 %v13404_v59  ;;  %15698 = vst [vmem:[#allocation51_spill] sm:$0xff] %v13658_v15  ;;  %v15700_v59 = vand.u32 4294901760, %v13631_v57  ;;  %v13671_v15 = vpop.f32.mrf.mxu0 }
 0x2eb   :  { %10305 = vmatpush3.msra.mxu1 %v15604_v50  ;;  %10279 = vmatpush3.msra.mxu0 %v13415_v51 }
 0x2ec   :  { %10306 = vmatprep.subr.mxu1 %v15695_v58  ;;  %10280 = vmatprep.subr.mxu0 %v13429_v0  ;;  %v7338_v51 = vsub.f32 %v13631_v57, %v15700_v59  ;;  %v7333_v0 = vand.u32 4294901760, %v7332_v24  ;;  %v15707_v24 = vld [vmem:[#allocation23_spill] sm:$0xff] }
 0x2ed   :  { %10307 = vmatpush3.msra.mxu1 %v15696_v8  ;;  %10281 = vmatpush3.msra.mxu0 %v13439_v3  ;;  %v13673_v3 = vpop.f32.mrf.mxu1 }
 0x2ee   :  { %10308 = vmatprep.subr.mxu1 %v15699_v28  ;;  %10282 = vmatprep.subr.mxu0 %v13451_v47  ;;  %15703 = vst [vmem:[#allocation68_spill] sm:$0xff] %v13673_v3  ;;  %v15704_v28 = vld [vmem:[#allocation62_spill] sm:$0xff]  ;;  %v7339_v59 = vand.u32 4294901760, %v7338_v51  ;;  %v15706_v47 = vld [vmem:[#allocation27_spill] sm:$0xff] }
 0x2ef   :  { %10309 = vmatpush3.msra.mxu1 %v13285_v21  ;;  %10283 = vmatpush3.msra.mxu0 %v13460_v7  ;;  %v15705_v21 = vld [vmem:[#allocation13_spill] sm:$0xff]  ;;  %v13684_v7 = vpop.f32.mrf.mxu1  ;;  %v15709_v3 = vld [vmem:[#allocation78_spill] sm:$0xff] }
 0x2f0   :  { %10310 = vmatprep.subr.mxu1 %v15701_v39  ;;  %10284 = vmatprep.subr.mxu0 %v13470_v38  ;;  %v13682_v38 = vpop.f32.mrf.mxu0  ;;  %15708 = vst [vmem:[#allocation18_spill] sm:$0xff] %v13684_v7  ;;  %v15722_v7 = vld [vmem:[#allocation30_spill] sm:$0xff] }
 0x2f1   :  { %10311 = vmatpush3.msra.mxu1 %v15702_v25  ;;  %10285 = vmatpush3.msra.mxu0 %v13082_v27  ;;  %v13693_v51 = vpop.f32.mrf.mxu1 }
 0x2f2   :  { %10312 = vmatprep.subr.mxu1 %v15704_v28  ;;  %10286 = vmatprep.subr.mxu0 %v13492_v48  ;;  %15710 = vst [vmem:[#allocation62_spill] sm:$0xff] %v13693_v51 }
 0x2f3   :  { %10313 = vmatpush3.msra.mxu1 %v15705_v21  ;;  %7334 = vmatprep.mubr.f32.mxu0 %v7333_v0  ;;  %v13695_v0 = vpop.f32.mrf.mxu0 }
 0x2f4   :  { %10314 = vmatprep.subr.mxu1 %v15706_v47  ;;  %10287 = vmatpush3.msra.mxu0 %v13506_v34 }
 0x2f5   :  { %10315 = vmatpush3.msra.mxu1 %v15707_v24  ;;  %7340 = vmatmul.mubr.f32.gmra.mxu0 %v7339_v59  ;;  %v15711_v59 = vld [vmem:[#allocation54_spill] sm:$0xff]  ;;  %v15738_v24 = vld [vmem:[#allocation57_spill] sm:$0xff] }
 0x2f6   :  { %10316 = vmatprep.subr.mxu1 %v13356_v10  ;;  %10288 = vmatprep.subr.mxu0 %v13514_v42  ;;  %v15713_v42 = vld [vmem:[#allocation53_spill] sm:$0xff]  ;;  %v15718_v10 = vand.u32 4294901760, %v13236_v11  ;;  %v15739_v27 = vand.u32 4294901760, %v15738_v24 }
 0x2f7   :  { %10317 = vmatpush3.msra.mxu1 %v15709_v3  ;;  %10289 = vmatpush3.msra.mxu0 %v15681_v63  ;;  %v15712_v3 = vld [vmem:[#allocation81_spill] sm:$0xff]  ;;  %v15717_v63 = vld [vmem:[#allocation86_spill] sm:$0xff] }
 0x2f8   :  { %10318 = vmatprep.subr.mxu1 %v13378_v13  ;;  %10290 = vmatprep.subr.mxu0 %v13529_v33  ;;  %v6517_v34 = vadd.f32 %v15712_v3, %v15711_v59  ;;  %v15714_v13 = vld [vmem:[#allocation33_spill] sm:$0xff]  ;;  %v15716_v33 = vld [vmem:[#allocation80_spill] sm:$0xff]  ;;  %v15719_v3 = vld [vmem:[#allocation63_spill] sm:$0xff]  ;;  %v15720_v59 = vand.u32 4294901760, %v13036_v60 }
 0x2f9   :  { %10319 = vmatpush3.msra.mxu1 %v13259_v4  ;;  %10291 = vmatpush3.msra.mxu0 %v13543_v55  ;;  %v15715_v4 = vld [vmem:[#allocation22_spill] sm:$0xff]  ;;  %v6511_v51 = vadd.f32 %v15717_v63, %v15716_v33  ;;  %v13710_v55 = vpop.f32.mrf.mxu0  ;;  %v7138_v33 = vmul.f32 %v15722_v7, %v15722_v7  ;;  %v15724_v63 = vld [vmem:[#allocation15_spill] sm:$0xff]  ;;  %v15728_v7 = vld [vmem:[#allocation8_spill] sm:$0xff] }
 0x2fa   :  { %10320 = vmatprep.subr.mxu1 %v13401_v18  ;;  %7714 = vmatprep.mubr.f32.mxu0 %v15713_v42  ;;  %v13712_v18 = vpop.f32.mrf.mxu1  ;;  %v6636_v11 = vadd.f32 %v13609_v16, %v6517_v34  ;;  %v15726_v60 = vld [vmem:[#allocation31_spill] sm:$0xff]  ;;  %v15727_v34 = vand.u32 4294901760, %v15686_v49  ;;  %v7175_v16 = vand.u32 2147483647, %v15728_v7  ;;  %v15735_v49 = vld [vmem:[#allocation36_spill] sm:$0xff] }
 0x2fb   :  { %10321 = vmatpush3.msra.mxu1 %v15714_v13  ;;  %7717 = vmatmul.mubr.f32.vlgmr.msra.gmra.mxu0 %v13408_v5  ;;  %v15721_v13 = vld [vmem:[#allocation28_spill] sm:$0xff] }
 0x2fc   :  { %10322 = vmatprep.subr.mxu1 %v15715_v4  ;;  %10336 = vmatprep.subr.mxu0 %v15718_v10  ;;  %v7136_v4 = vmul.f32 %v15721_v13, %v15721_v13  ;;  %v15723_v10 = vld [vmem:[#allocation14_spill] sm:$0xff]  ;;  %v7137_v13 = vmul.f32 %v15726_v60, %v15726_v60  ;;  %v13739_v48 = vpop.f32.mrf.mxu1  ;;  %v15732_v60 = vld [vmem:[#allocation91_spill] sm:$0xff]  ;;  %v6762_v7 = vadd.f32 %v13626_v37, %v6636_v11  ;;  %v15741_v37 = vand.u32 4294901760, %v13314_v9  ;;  %v15743_v11 = vld [vmem:[#allocation29_spill] sm:$0xff] }
 0x2fd   :  { %7577 = vmatprep.mubr.f32.mxu1 %v13606_v12  ;;  %10323 = vmatpush3.msra.mxu1 %v15719_v3  ;;  %v6505_v12 = vadd.f32 %v15724_v63, %v15723_v10  ;;  %v15725_v3 = vand.u32 4294901760, %v13253_v52  ;;  %v15730_v10 = vld [vmem:[#allocation58_spill] sm:$0xff]  ;;  %v15731_v63 = vld [vmem:[#allocation16_spill] sm:$0xff] }
 0x2fe   :  { %10337 = vmatpush3.msra.mxu0 %v15720_v59  ;;  %7579 = vmatmul.mubr.f32.gmra.mxu1 %v13614_v44  ;;  %v6629_v59 = vadd.f32 %v13624_v32, %v6511_v51  ;;  %v15729_v44 = vld [vmem:[#allocation34_spill] sm:$0xff]  ;;  %v6499_v52 = vadd.f32 %v15731_v63, %v15730_v10  ;;  %v13743_v32 = vand.u32 4294901760, %v7136_v4  ;;  %v13745_v51 = vand.u32 4294901760, %v7138_v33  ;;  %v15737_v10 = vld [vmem:[#allocation9_spill] sm:$0xff]  ;;  %v10837_v24 = vpop.f32.mrf.mxu1 }
 0x2ff   :  { %10324 = vmatprep.subr.mxu1 %v13448_v20  ;;  %10338 = vmatprep.subr.mxu0 %v15725_v3  ;;  %v7180_v20 = vand.u32 2147483647, %v15729_v44  ;;  %v10823_v3 = vpop.f32.mrf.mxu0  ;;  %v15736_v44 = vand.u32 4294901760, %v13298_v30  ;;  %v7179_v63 = vand.u32 2147483647, %v15737_v10  ;;  %v13757_v47 = vand.u32 4294901760, %v7137_v13 }
 0x300   :  { %7723 = vmatprep.mubr.f32.mxu0 %v13620_v29  ;;  %10325 = vmatpush3.msra.mxu1 %v13073_v36  ;;  %15733 = vst [vmem:[#allocation13_spill] sm:$0xff] %v13743_v32  ;;  %15734 = vst [vmem:[#allocation54_spill] sm:$0xff] %v13745_v51  ;;  %v6622_v36 = vadd.f32 %v13575_v35, %v6505_v12  ;;  %v15742_v30 = vld [vmem:[#allocation64_spill] sm:$0xff]  ;;  %v13765_v10 = vand.u32 4294901760, %v7175_v16  ;;  %v13775_v9 = vsub.f32 %v7136_v4, %v13743_v32 }
 0x301   :  { %10339 = vmatpush3.msra.mxu0 %v15727_v34  ;;  %10326 = vmatprep.subr.mxu1 %v15732_v60  ;;  %v7181_v34 = vand.u32 2147483647, %v15735_v49  ;;  %v15740_v60 = vld [vmem:[#allocation95_spill] sm:$0xff]  ;;  %v6754_v49 = vadd.f32 %v13642_v26, %v6629_v59  ;;  %v13767_v12 = vand.u32 4294901760, %v7180_v20  ;;  %v6879_v35 = vpop.f32.mrf.mxu0  ;;  %v15747_v26 = vand.u32 4294901760, %v15691_v2 }
 0x302   :  { %7726 = vmatmul.mubr.f32.gmra.mxu0 %v13631_v57  ;;  %10340 = vmatprep.subr.mxu0 %v15736_v44  ;;  %v7135_v44 = vmul.f32 %v15743_v11, %v15743_v11  ;;  %15744 = vst [vmem:[#allocation81_spill] sm:$0xff] %v13765_v10  ;;  %15748 = vst [vmem:[#allocation80_spill] sm:$0xff] %v13775_v9  ;;  %v13778_v59 = vsub.f32 %v7138_v33, %v13745_v51  ;;  %v15756_v4 = vand.u32 4294901760, %v13311_v41 }
 0x303   :  { %10327 = vmatpush3.msra.mxu1 %v13029_v19  ;;  %10341 = vmatpush3.msra.mxu0 %v15739_v27  ;;  %15745 = vst [vmem:[#allocation53_spill] sm:$0xff] %v13767_v12  ;;  %v6615_v27 = vadd.f32 %v13596_v45, %v6499_v52  ;;  %v6886_v11 = vadd.f32 %v10823_v3, %v6762_v7  ;;  %v15752_v45 = vand.u32 4294901760, %v13154_v56  ;;  %v15754_v52 = vld [vmem:[#allocation38_spill] sm:$0xff]  ;;  %v15759_v56 = vand.u32 4294901760, %v13127_v14 }
 0x304   :  { %10328 = vmatprep.subr.mxu1 %v15740_v60  ;;  %10342 = vmatprep.subr.mxu0 %v15741_v37  ;;  %v15746_v60 = vand.u32 4294901760, %v15713_v42  ;;  %15749 = vst [vmem:[#allocation86_spill] sm:$0xff] %v13778_v59  ;;  %v13780_v37 = vand.u32 4294901760, %v7181_v34  ;;  %v13786_v42 = vand.u32 4294901760, %v7179_v63  ;;  %v7182_v2 = vand.u32 2147483647, %v15754_v52 }
 0x305   :  { %10329 = vmatpush3.msra.mxu1 %v15742_v30  ;;  %10343 = vmatpush3.msra.mxu0 %v15747_v26  ;;  %v15751_v30 = vand.u32 4294901760, %v13408_v5  ;;  %v13794_v33 = vsub.f32 %v7137_v13, %v13757_v47  ;;  %v15758_v3 = vld [vmem:[#allocation10_spill] sm:$0xff]  ;;  %v6880_v7 = vadd.f32 %v6879_v35, %v6754_v49  ;;  %v6738_v41 = vadd.f32 %v13611_v22, %v6615_v27  ;;  %v6993_v13 = vpop.f32.mrf.mxu1 }
 0x306   :  { %7830 = vmatprep.mubr.f32.mxu1 %v15746_v60  ;;  %15750 = vst [vmem:[#allocation28_spill] sm:$0xff] %v13780_v37  ;;  %10344 = vmatprep.subr.mxu0 %v15752_v45  ;;  %15753 = vst [vmem:[#allocation30_spill] sm:$0xff] %v13786_v42  ;;  %v15755_v60 = vld [vmem:[#allocation61_spill] sm:$0xff]  ;;  %v7176_v5 = vand.u32 2147483647, %v15758_v3  ;;  %v15763_v49 = vand.u32 4294901760, %v13620_v29  ;;  %v13815_v35 = vsub.f32 %v7181_v34, %v13780_v37 }
 0x307   :  { %7834 = vmatmul.mubr.f32.vlgmr.msra.gmra.mxu1 %v15751_v30  ;;  %v6746_v26 = vadd.f32 %v15755_v60, %v6622_v36  ;;  %10374 = vmatprep.subr.mxu1 %v13218_v1  ;;  %15757 = vst [vmem:[#allocation14_spill] sm:$0xff] %v13794_v33  ;;  %v13800_v30 = vand.u32 4294901760, %v7135_v44  ;;  %v13803_v36 = vsub.f32 %v7175_v16, %v13765_v10  ;;  %v15299_v14 = vand.u32 4294901760, %v13778_v59 }
 0x308   :  { %10345 = vmatpush3.msra.mxu0 %v15756_v4  ;;  %10375 = vmatpush3.msra.mxu1 %v15586_v61  ;;  %v13806_v1 = vsub.f32 %v7180_v20, %v13767_v12  ;;  %v15297_v61 = vand.u32 4294901760, %v13775_v9  ;;  %15764 = vst [vmem:[#allocation34_spill] sm:$0xff] %v13815_v35  ;;  %v13817_v16 = vadd.f32 %v10837_v24, %v6886_v11  ;;  %v15766_v20 = vand.u32 4294901760, %v13327_v43 }
 0x309   :  { %10346 = vmatprep.subr.mxu0 %v15759_v56  ;;  %15760 = vst [vmem:[#allocation15_spill] sm:$0xff] %v13800_v30  ;;  %15761 = vst [vmem:[#allocation31_spill] sm:$0xff] %v13803_v36  ;;  %10376 = vmatprep.subr.mxu1 %v13216_v46  ;;  %v13823_v22 = vsub.f32 %v7179_v63, %v13786_v42  ;;  %v15768_v46 = vld [vmem:[#allocation35_spill] sm:$0xff]  ;;  %v13826_v27 = vand.u32 4294901760, %v7182_v2  ;;  %v6874_v45 = vadd.f32 %v13695_v0, %v6746_v26 }
 0x30a   :  { %15762 = vst [vmem:[#allocation8_spill] sm:$0xff] %v13806_v1  ;;  %7841 = vmatprep.mubr.f32.mxu1 %v15763_v49  ;;  %15765 = vst [vmem:[#allocation58_spill] sm:$0xff] %v13817_v16  ;;  %10347 = vmatpush3.msra.mxu0 %v15766_v20  ;;  %v7177_v29 = vand.u32 2147483647, %v15768_v46  ;;  %v15769_v52 = vand.u32 4294901760, %v13631_v57  ;;  %v15770_v34 = vand.u32 4294901760, %v13117_v31  ;;  %v13837_v63 = vadd.f32 %v6993_v13, %v6880_v7 }
 0x30b   :  { %10377 = vmatpush3.msra.mxu1 %v15591_v62  ;;  %15767 = vst [vmem:[#allocation16_spill] sm:$0xff] %v13823_v22  ;;  %v15298_v43 = vand.u32 4294901760, %v13794_v33  ;;  %v13834_v24 = vand.u32 4294901760, %v7176_v5  ;;  %v15772_v62 = vld [vmem:[#allocation37_spill] sm:$0xff]  ;;  %v15774_v60 = vand.u32 4294901760, %v13351_v40  ;;  %v13843_v0 = vsub.f32 %v7135_v44, %v13800_v30  ;;  %v15781_v56 = vld [vmem:[#allocation79_spill] sm:$0xff] }
 0x30c   :  { %7845 = vmatmul.mubr.f32.gmra.mxu1 %v15769_v52  ;;  %10348 = vmatprep.subr.mxu0 %v15770_v34  ;;  %v7178_v11 = vand.u32 2147483647, %v15772_v62  ;;  %15773 = vst [vmem:[#allocation9_spill] sm:$0xff] %v13837_v63  ;;  %v6868_v57 = vadd.f32 %v13710_v55, %v6738_v41  ;;  %v15776_v31 = vand.u32 4294901760, %v13079_v54  ;;  %v15301_v26 = vand.u32 4294901760, %v13806_v1  ;;  %v15790_v62 = vld [vmem:[#allocation99_spill] sm:$0xff] }
 0x30d   :  { %15771 = vst [vmem:[#allocation36_spill] sm:$0xff] %v13834_v24  ;;  %10378 = vmatprep.subr.mxu1 %v13250_v23  ;;  %10349 = vmatpush3.msra.mxu0 %v15774_v60  ;;  %15775 = vst [vmem:[#allocation57_spill] sm:$0xff] %v13843_v0  ;;  %v15296_v4 = vand.u32 4294901760, %v13803_v36  ;;  %v13854_v23 = vsub.f32 %v13775_v9, %v15297_v61  ;;  %v13859_v40 = vsub.f32 %v13778_v59, %v15299_v14  ;;  %v15802_v61 = vld [vmem:[#allocation40_spill] sm:$0xff]  ;;  %v15803_v14 = vld [vmem:[#allocation77_spill] sm:$0xff] }
 0x30e   :  { %10379 = vmatpush3.msra.mxu1 %v15598_v6  ;;  %10350 = vmatprep.subr.mxu0 %v15776_v31  ;;  %v7154_v55 = vsub.f32 1.0, %v13817_v16  ;;  %v15778_v54 = vand.u32 4294901760, %v13369_v53  ;;  %v15302_v6 = vand.u32 4294901760, %v13815_v35  ;;  %v13866_v44 = vand.u32 4294901760, %v7177_v29  ;;  %v15792_v31 = vld [vmem:[#allocation70_spill] sm:$0xff]  ;;  %v15826_v59 = vld [vmem:[#allocation21_spill] sm:$0xff] }
 0x30f   :  { %15777 = vst [vmem:[#allocation29_spill] sm:$0xff] %v13854_v23  ;;  %10380 = vmatprep.subr.mxu1 %v13272_v17  ;;  %v13869_v3 = vsub.f32 %v7182_v2, %v13826_v27  ;;  %v13872_v7 = vadd.f32 %v13712_v18, %v6874_v45  ;;  %v15782_v41 = vand.u32 4294901760, %v15781_v56  ;;  %v15300_v17 = vand.u32 4294901760, %v13823_v22  ;;  %v15784_v2 = vld [vmem:[#allocation24_spill] sm:$0xff]  ;;  %v15787_v45 = vld [vmem:[#allocation83_spill] sm:$0xff] }
 0x310   :  { %10351 = vmatpush3.msra.mxu0 %v15778_v54  ;;  %10381 = vmatpush3.msra.mxu1 %v15604_v50  ;;  %v13879_v53 = vsub.f32 %v7176_v5, %v13834_v24  ;;  %v13881_v13 = vand.u32 4294901760, %v7178_v11  ;;  %v7153_v49 = vsub.f32 1.0, %v13837_v63  ;;  %v15785_v20 = vand.u32 4294901760, %v15784_v2  ;;  %v13896_v5 = vpop.f32.mrf.mxu0 }
 0x311   :  { %15779 = vst [vmem:[#allocation38_spill] sm:$0xff] %v13869_v3  ;;  %15780 = vst [vmem:[#allocation61_spill] sm:$0xff] %v13872_v7  ;;  %10352 = vmatprep.subr.mxu0 %v15782_v41  ;;  %10382 = vmatprep.subr.mxu1 %v15695_v58  ;;  %v13890_v50 = vsub.f32 %v13794_v33, %v15298_v43  ;;  %v13894_v46 = vadd.f32 %v13739_v48, %v6868_v57  ;;  %v15788_v52 = vand.u32 4294901760, %v15787_v45  ;;  %v15791_v48 = vld [vmem:[#allocation103_spill] sm:$0xff]  ;;  %v15795_v45 = vld [vmem:[#allocation50_spill] sm:$0xff] }
 0x312   :  { %15783 = vst [vmem:[#allocation10_spill] sm:$0xff] %v13881_v13  ;;  %10353 = vmatpush3.msra.mxu0 %v15785_v20  ;;  %10383 = vmatpush3.msra.mxu1 %v15696_v8  ;;  %v13904_v58 = vsub.f32 %v13806_v1, %v15301_v26  ;;  %v13909_v34 = vsub.f32 %v13803_v36, %v15296_v4  ;;  %v15793_v8 = vld [vmem:[#allocation20_spill] sm:$0xff]  ;;  %v7152_v20 = vsub.f32 1.0, %v13872_v7  ;;  %v7140_v43 = vsub.f32 1.0, %v15802_v61  ;;  %v15831_v1 = vld [vmem:[#allocation78_spill] sm:$0xff] }
 0x313   :  { %15786 = vst [vmem:[#allocation35_spill] sm:$0xff] %v13894_v46  ;;  %10354 = vmatprep.subr.mxu0 %v15788_v52  ;;  %v6541_v60 = vadd.f32 %v15791_v48, %v15790_v62  ;;  %v7158_v57 = vmul.f32 %v7154_v55, %v13817_v16  ;;  %10384 = vmatprep.subr.mxu1 %v15792_v31  ;;  %v15794_v54 = vand.u32 4294901760, %v15793_v8  ;;  %v15796_v55 = vld [vmem:[#allocation84_spill] sm:$0xff]  ;;  %v15798_v8 = vld [vmem:[#allocation102_spill] sm:$0xff]  ;;  %v7151_v26 = vsub.f32 1.0, %v13894_v46  ;;  %v15809_v62 = vld [vmem:[#allocation75_spill] sm:$0xff] }
 0x314   :  { %15789 = vst [vmem:[#allocation37_spill] sm:$0xff] %v13909_v34  ;;  %v13920_v56 = vsub.f32 %v13815_v35, %v15302_v6  ;;  %v13924_v2 = vsub.f32 %v7177_v29, %v13866_v44  ;;  %10385 = vmatpush3.msra.mxu1 %v15795_v45  ;;  %v15797_v52 = vand.u32 4294901760, %v15796_v55  ;;  %v13934_v48 = vsub.f32 %v13823_v22, %v15300_v17  ;;  %v15799_v29 = vld [vmem:[#allocation104_spill] sm:$0xff]  ;;  %v15800_v45 = vld [vmem:[#allocation87_spill] sm:$0xff]  ;;  %v13951_v6 = vpop.f32.mrf.mxu1  ;;  %v15811_v16 = vld [vmem:[#allocation94_spill] sm:$0xff] }
 0x315   :  { %10355 = vmatpush3.msra.mxu0 %v15794_v54  ;;  %v13937_v31 = vsub.f32 %v7178_v11, %v13881_v13  ;;  %v6535_v54 = vadd.f32 %v15799_v29, %v15798_v8  ;;  %v7157_v4 = vmul.f32 %v7153_v49, %v13837_v63  ;;  %10386 = vmatprep.subr.mxu1 %v15701_v39  ;;  %v15801_v55 = vand.u32 4294901760, %v15800_v45  ;;  %v13949_v11 = vpop.f32.mrf.mxu0  ;;  %v15804_v49 = vld [vmem:[#allocation89_spill] sm:$0xff]  ;;  %v15806_v29 = vld [vmem:[#allocation42_spill] sm:$0xff]  ;;  %v15812_v39 = vld [vmem:[#allocation92_spill] sm:$0xff] }
 0x316   :  { %10356 = vmatprep.subr.mxu0 %v15797_v52  ;;  %v7186_v17 = vand.u32 2147483647, %v15803_v14  ;;  %10387 = vmatpush3.msra.mxu1 %v15702_v25  ;;  %v15805_v8 = vand.u32 4294901760, %v15804_v49  ;;  %v7142_v45 = vsub.f32 1.0, %v15806_v29  ;;  %v7162_v41 = vmul.f32 %v7158_v57, %v7158_v57  ;;  %v15807_v14 = vld [vmem:[#allocation90_spill] sm:$0xff]  ;;  %v15810_v25 = vld [vmem:[#allocation85_spill] sm:$0xff]  ;;  %v13987_v33 = vpop.f32.mrf.mxu1 }
 0x317   :  { %10357 = vmatpush3.msra.mxu0 %v15801_v55  ;;  %v6664_v55 = vadd.f32 %v13671_v15, %v6541_v60  ;;  %10388 = vmatprep.subr.mxu1 %v15704_v28  ;;  %v15808_v18 = vand.u32 4294901760, %v15807_v14  ;;  %v7185_v63 = vand.u32 2147483647, %v15809_v62  ;;  %v6529_v49 = vadd.f32 %v15811_v16, %v15810_v25  ;;  %v15816_v14 = vld [vmem:[#allocation27_spill] sm:$0xff]  ;;  %v15820_v52 = vld [vmem:[#allocation100_spill] sm:$0xff]  ;;  %v10829_v9 = vpop.f32.mrf.mxu0 }
 0x318   :  { %10358 = vmatprep.subr.mxu0 %v15805_v8  ;;  %v7156_v8 = vmul.f32 %v7152_v20, %v13872_v7  ;;  %10389 = vmatpush3.msra.mxu1 %v15705_v21  ;;  %v15813_v36 = vand.u32 4294901760, %v15812_v39  ;;  %v15814_v15 = vand.u32 4294901760, %v13869_v3  ;;  %v6657_v57 = vadd.f32 %v13682_v38, %v6535_v54  ;;  %v15817_v16 = vld [vmem:[#allocation67_spill] sm:$0xff]  ;;  %v15819_v39 = vld [vmem:[#allocation93_spill] sm:$0xff] }
 0x319   :  { %10359 = vmatpush3.msra.mxu0 %v15808_v18  ;;  %v15815_v18 = vld [vmem:[#allocation43_spill] sm:$0xff]  ;;  %v7161_v62 = vmul.f32 %v7157_v4, %v7157_v4  ;;  %10390 = vmatprep.subr.mxu1 %v15816_v14  ;;  %v15818_v25 = vand.u32 4294901760, %v15817_v16  ;;  %v7144_v20 = vmul.f32 %v7140_v43, %v15802_v61  ;;  %v7155_v7 = vmul.f32 %v7151_v26, %v13894_v46  ;;  %v15822_v4 = vld [vmem:[#allocation96_spill] sm:$0xff]  ;;  %v15824_v16 = vld [vmem:[#allocation73_spill] sm:$0xff] }
 0x31a   :  { %10360 = vmatprep.subr.mxu0 %v15813_v36  ;;  %v13973_v28 = vsub.f32 %v13869_v3, %v15814_v15  ;;  %v7141_v60 = vsub.f32 1.0, %v15815_v18  ;;  %v13982_v36 = vand.u32 4294901760, %v7186_v17  ;;  %v6523_v15 = vadd.f32 %v15820_v52, %v15819_v39  ;;  %v15821_v38 = vld [vmem:[#allocation23_spill] sm:$0xff]  ;;  %v15825_v43 = vld [vmem:[#allocation18_spill] sm:$0xff]  ;;  %v15827_v52 = vld [vmem:[#allocation97_spill] sm:$0xff] }
 0x31b   :  { %10361 = vmatpush3.msra.mxu0 %v15818_v25  ;;  %10391 = vmatpush3.msra.mxu1 %v15821_v38  ;;  %v15823_v54 = vand.u32 4294901760, %v15822_v4  ;;  %v7146_v14 = vmul.f32 %v7142_v45, %v15806_v29  ;;  %v7184_v25 = vand.u32 2147483647, %v15824_v16  ;;  %v6794_v21 = vadd.f32 %v15825_v43, %v6664_v55  ;;  %v15829_v39 = vld [vmem:[#allocation41_spill] sm:$0xff]  ;;  %v15830_v38 = vld [vmem:[#allocation106_spill] sm:$0xff]  ;;  %v15834_v43 = vld [vmem:[#allocation39_spill] sm:$0xff] }
 0x31c   :  { %v13995_v61 = vand.u32 4294901760, %v7162_v41  ;;  %10392 = vmatprep.subr.mxu1 %v15826_v59  ;;  %v15828_v26 = vand.u32 4294901760, %v15827_v52  ;;  %v7139_v46 = vsub.f32 1.0, %v15829_v39  ;;  %v14001_v22 = vand.u32 4294901760, %v7185_v63  ;;  %v15832_v45 = vld [vmem:[#allocation98_spill] sm:$0xff]  ;;  %v15837_v3 = vld [vmem:[#allocation65_spill] sm:$0xff] }
 0x31d   :  { %10362 = vmatprep.subr.mxu0 %v15823_v54  ;;  %v6650_v4 = vadd.f32 %v15830_v38, %v6529_v49  ;;  %v7160_v54 = vmul.f32 %v7156_v8, %v7156_v8  ;;  %10393 = vmatpush3.msra.mxu1 %v15831_v1  ;;  %v15833_v16 = vand.u32 4294901760, %v15832_v45  ;;  %v7145_v55 = vmul.f32 %v7141_v60, %v15815_v18  ;;  %v15835_v59 = vld [vmem:[#allocation62_spill] sm:$0xff]  ;;  %v15839_v1 = vld [vmem:[#allocation72_spill] sm:$0xff]  ;;  %v6903_v45 = vpop.f32.mrf.mxu0 }
 0x31e   :  { %10363 = vmatpush3.msra.mxu0 %v15828_v26  ;;  %v7183_v29 = vand.u32 2147483647, %v15834_v43  ;;  %v6786_v35 = vadd.f32 %v15835_v59, %v6657_v57  ;;  %v14010_v52 = vand.u32 4294901760, %v7161_v62  ;;  %v15836_v26 = vld [vmem:[#allocation26_spill] sm:$0xff]  ;;  %v15838_v23 = vand.u32 4294901760, %v15837_v3  ;;  %v15840_v60 = vld [vmem:[#allocation48_spill] sm:$0xff] }
 0x31f   :  { %10364 = vmatprep.subr.mxu0 %v15833_v16  ;;  %10394 = vmatprep.subr.mxu1 %v15836_v26  ;;  %v14016_v49 = vsub.f32 %v7186_v17, %v13982_v36  ;;  %v6643_v8 = vadd.f32 %v15839_v1, %v6523_v15  ;;  %v7159_v38 = vmul.f32 %v7155_v7, %v7155_v7  ;;  %v10843_v16 = vpop.f32.mrf.mxu1  ;;  %v15841_v43 = vld [vmem:[#allocation101_spill] sm:$0xff]  ;;  %v14023_v26 = vand.u32 4294901760, %v7184_v25  ;;  %v15844_v17 = vld [vmem:[#allocation82_spill] sm:$0xff]  ;;  %v15845_v15 = vld [vmem:[#allocation32_spill] sm:$0xff] }
 0x320   :  { %10365 = vmatpush3.msra.mxu0 %v15838_v23  ;;  %10395 = vmatpush3.msra.mxu1 %v15840_v60  ;;  %v15842_v18 = vand.u32 4294901760, %v15841_v43  ;;  %v7150_v59 = vmul.f32 %v7146_v14, %v7146_v14  ;;  %v14026_v23 = vsub.f32 %v7162_v41, %v13995_v61  ;;  %v6910_v3 = vadd.f32 %v10829_v9, %v6794_v21  ;;  %v15847_v43 = vld [vmem:[#allocation51_spill] sm:$0xff]  ;;  %v15849_v14 = vld [vmem:[#allocation52_spill] sm:$0xff]  ;;  %v15850_v57 = vld [vmem:[#allocation33_spill] sm:$0xff] }
 0x321   :  { %15843 = vst [vmem:[#allocation79_spill] sm:$0xff] %v14023_v26  ;;  %10396 = vmatprep.subr.mxu1 %v15844_v17  ;;  %v15846_v7 = vand.u32 4294901760, %v15845_v15  ;;  %v7148_v1 = vmul.f32 %v7144_v20, %v7144_v20  ;;  %v14032_v60 = vsub.f32 %v7185_v63, %v14001_v22  ;;  %v14035_v34 = vand.u32 4294901760, %v7160_v54  ;;  %8011 = vmatprep.mubr.f32.mxu0 %v15849_v14  ;;  %v15852_v20 = vld [vmem:[#allocation25_spill] sm:$0xff]  ;;  %v15853_v63 = vld [vmem:[#allocation22_spill] sm:$0xff]  ;;  %v7017_v0 = vpop.f32.mrf.mxu1 }
 0x322   :  { %10366 = vmatprep.subr.mxu0 %v15842_v18  ;;  %v6778_v18 = vadd.f32 %v15847_v43, %v6650_v4  ;;  %10397 = vmatpush3.msra.mxu1 %v15850_v57  ;;  %v7143_v41 = vmul.f32 %v7139_v46, %v15829_v39  ;;  %v14040_v9 = vand.u32 4294901760, %v7183_v29  ;;  %v14043_v21 = vsub.f32 %v7161_v62, %v14010_v52  ;;  %v15854_v4 = vld [vmem:[#allocation68_spill] sm:$0xff]  ;;  %v15855_v57 = vld [vmem:[#allocation63_spill] sm:$0xff]  ;;  %v15862_v46 = vld [vmem:[#allocation105_spill] sm:$0xff] }
 0x323   :  { %10367 = vmatpush3.msra.mxu0 %v15846_v7  ;;  %15848 = vst [vmem:[#allocation24_spill] sm:$0xff] %v14035_v34  ;;  %v6904_v17 = vadd.f32 %v6903_v45, %v6786_v35  ;;  %10398 = vmatprep.subr.mxu1 %v15853_v63  ;;  %v7149_v15 = vmul.f32 %v7145_v55, %v7145_v55  ;;  %v14048_v43 = vand.u32 4294901760, %v7159_v38  ;;  %v14053_v39 = vand.u32 4294901760, %v7150_v59  ;;  %v15857_v55 = vld [vmem:[#allocation88_spill] sm:$0xff] }
 0x324   :  { %15851 = vst [vmem:[#allocation83_spill] sm:$0xff] %v14040_v9  ;;  %8013 = vmatmul.mubr.f32.vlgmr.msra.gmra.mxu0 %v15852_v20  ;;  %v6770_v7 = vadd.f32 %v15854_v4, %v6643_v8  ;;  %10412 = vmatprep.subr.mxu0 %v13982_v36  ;;  %v14056_v35 = vsub.f32 %v7184_v25, %v14023_v26  ;;  %v14063_v45 = vand.u32 4294901760, %v7148_v1  ;;  %v15861_v8 = vld [vmem:[#allocation66_spill] sm:$0xff]  ;;  %v15863_v25 = vld [vmem:[#allocation91_spill] sm:$0xff] }
 0x325   :  { %10399 = vmatpush3.msra.mxu1 %v15855_v57  ;;  %v14058_v62 = vadd.f32 %v10843_v16, %v6910_v3  ;;  %10413 = vmatpush3.msra.mxu0 %v13995_v61  ;;  %v14066_v63 = vsub.f32 %v7160_v54, %v14035_v34  ;;  %v6898_v4 = vadd.f32 %v13896_v5, %v6778_v18  ;;  %v15859_v57 = vld [vmem:[#allocation56_spill] sm:$0xff]  ;;  %v15869_v54 = vand.u32 4294901760, %v14032_v60 }
 0x326   :  { %10400 = vmatprep.subr.mxu1 %v15857_v55  ;;  %15858 = vst [vmem:[#allocation103_spill] sm:$0xff] %v14063_v45  ;;  %10414 = vmatprep.subr.mxu0 %v14001_v22  ;;  %v7147_v16 = vmul.f32 %v7143_v41, %v7143_v41  ;;  %v14073_v3 = vsub.f32 %v7183_v29, %v14040_v9  ;;  %v15864_v29 = vand.u32 4294901760, %v14016_v49  ;;  %v14089_v41 = vand.u32 4294901760, %v7149_v15 }
 0x327   :  { %15856 = vst [vmem:[#allocation99_spill] sm:$0xff] %v14058_v62  ;;  %8018 = vmatprep.mubr.f32.mxu0 %v15859_v57  ;;  %v14075_v55 = vadd.f32 %v7017_v0, %v6904_v17  ;;  %10401 = vmatpush3.msra.mxu1 %v15861_v8  ;;  %v14081_v5 = vsub.f32 %v7159_v38, %v14048_v43  ;;  %v7166_v8 = vsub.f32 1.0, %v14058_v62 }
 0x328   :  { %10415 = vmatpush3.msra.mxu0 %v14010_v52  ;;  %v6892_v18 = vadd.f32 %v13949_v11, %v6770_v7  ;;  %10402 = vmatprep.subr.mxu1 %v15863_v25  ;;  %v8379_v0 = vsub.f32 %v14016_v49, %v15864_v29  ;;  %15865 = vst [vmem:[#allocation20_spill] sm:$0xff] %v14089_v41  ;;  %v15866_v11 = vand.u32 4294901760, %v14026_v23  ;;  %v15870_v7 = vld [vmem:[#allocation64_spill] sm:$0xff] }
 0x329   :  { %15860 = vst [vmem:[#allocation70_spill] sm:$0xff] %v14075_v55  ;;  %8020 = vmatmul.mubr.f32.gmra.mxu0 %v15862_v46  ;;  %v14092_v17 = vsub.f32 %v7150_v59, %v14053_v39  ;;  %10416 = vmatprep.subr.mxu0 %v14023_v26  ;;  %v14102_v25 = vsub.f32 %v7148_v1, %v14063_v45  ;;  %v15868_v59 = vld [vmem:[#allocation95_spill] sm:$0xff]  ;;  %v15871_v1 = vand.u32 4294901760, %v14043_v21  ;;  %v15875_v26 = vand.u32 4294901760, %v14066_v63 }
 0x32a   :  { %10403 = vmatpush3.msra.mxu1 %v13029_v19  ;;  %v8267_v38 = vsub.f32 %v14026_v23, %v15866_v11  ;;  %v14105_v29 = vadd.f32 %v13951_v6, %v6898_v4  ;;  %10417 = vmatpush3.msra.mxu0 %v14035_v34  ;;  %v8386_v19 = vsub.f32 %v14032_v60, %v15869_v54  ;;  %v7165_v11 = vsub.f32 1.0, %v14075_v55 }
 0x32b   :  { %10404 = vmatprep.subr.mxu1 %v15868_v59  ;;  %10418 = vmatprep.subr.mxu0 %v14040_v9  ;;  %v8274_v6 = vsub.f32 %v14043_v21, %v15871_v1  ;;  %v15336_v4 = vand.u32 4294901760, %v14073_v3  ;;  %v14120_v34 = vand.u32 4294901760, %v7147_v16  ;;  %v14123_v59 = vadd.f32 %v13987_v33, %v6892_v18 }
 0x32c   :  { %15867 = vst [vmem:[#allocation50_spill] sm:$0xff] %v14105_v29  ;;  %10405 = vmatpush3.msra.mxu1 %v15870_v7  ;;  %8122 = vmatprep.mubr.f32.mxu1 %v15849_v14  ;;  %v8380_v54 = vand.u32 4294901760, %v8379_v0  ;;  %v14129_v7 = vsub.f32 %v7149_v15, %v14089_v41  ;;  %v7170_v9 = vmul.f32 %v7166_v8, %v14058_v62  ;;  %v8268_v1 = vand.u32 4294901760, %v8267_v38  ;;  %v15878_v62 = vld [vmem:[#allocation55_spill] sm:$0xff] }
 0x32d   :  { %15872 = vst [vmem:[#allocation84_spill] sm:$0xff] %v14120_v34  ;;  %15873 = vst [vmem:[#allocation102_spill] sm:$0xff] %v14123_v59  ;;  %10419 = vmatpush3.msra.mxu0 %v14048_v43  ;;  %8124 = vmatmul.mubr.f32.vlgmr.msra.gmra.mxu1 %v15852_v20  ;;  %v15874_v33 = vand.u32 4294901760, %v14056_v35  ;;  %v7164_v0 = vsub.f32 1.0, %v14105_v29  ;;  %v8387_v15 = vand.u32 4294901760, %v8386_v19  ;;  %v8281_v8 = vsub.f32 %v14066_v63, %v15875_v26  ;;  %v47_v19 = vld [vmem:[%s15162_s4 + $0x18] sm:$0xff] }
 0x32e   :  { %10420 = vmatprep.subr.mxu0 %v13826_v27  ;;  %10450 = vmatprep.subr.mxu1 %v8380_v54  ;;  %v7169_v38 = vmul.f32 %v7165_v11, %v14075_v55  ;;  %v8400_v14 = vsub.f32 %v14073_v3, %v15336_v4  ;;  %v8408_v54 = vand.u32 4294901760, %v13973_v28  ;;  %v7163_v26 = vsub.f32 1.0, %v14123_v59  ;;  %v46_v28 = vld [vmem:[%s15162_s4 + $0x10] sm:$0xff] }
 0x32f   :  { %v8393_v18 = vsub.f32 %v14056_v35, %v15874_v33  ;;  %10421 = vmatpush3.msra.mxu0 %v14053_v39  ;;  %10451 = vmatpush3.msra.mxu1 %v8268_v1  ;;  %v8275_v33 = vand.u32 4294901760, %v8274_v6  ;;  %v15876_v11 = vand.u32 4294901760, %v14081_v5  ;;  %v14160_v20 = vsub.f32 %v7147_v16, %v14120_v34 }
 0x330   :  { %10422 = vmatprep.subr.mxu0 %v13780_v37  ;;  %10452 = vmatprep.subr.mxu1 %v8387_v15  ;;  %v7174_v4 = vmul.f32 %v7170_v9, %v7170_v9  ;;  %v7134_v6 = vmul.f32 %v15878_v62, %v15878_v62  ;;  %v7168_v16 = vmul.f32 %v7164_v0, %v14105_v29  ;;  %v8282_v9 = vand.u32 4294901760, %v8281_v8 }
 0x331   :  { %8129 = vmatprep.mubr.f32.mxu1 %v15859_v57  ;;  %v8288_v1 = vsub.f32 %v14081_v5, %v15876_v11  ;;  %10423 = vmatpush3.msra.mxu0 %v14089_v41  ;;  %v8394_v15 = vand.u32 4294901760, %v8393_v18  ;;  %v15877_v57 = vand.u32 4294901760, %v14092_v17  ;;  %v14175_v37 = vand.u32 4294901760, %v47_v19  ;;  %v15891_v41 = vld [vmem:[#allocation11_spill] sm:$0xff] }
 0x332   :  { %10453 = vmatpush3.msra.mxu1 %v8275_v33  ;;  %10424 = vmatprep.subr.mxu0 %v13767_v12  ;;  %v7173_v33 = vmul.f32 %v7169_v38, %v7169_v38  ;;  %v8401_v18 = vand.u32 4294901760, %v8400_v14  ;;  %v14183_v62 = vand.u32 4294901760, %v46_v28  ;;  %v7167_v0 = vmul.f32 %v7163_v26, %v14123_v59 }
 0x333   :  { %v8295_v55 = vsub.f32 %v14092_v17, %v15877_v57  ;;  %8131 = vmatmul.mubr.f32.gmra.mxu1 %v15862_v46  ;;  %15879 = vst [vmem:[#allocation104_spill] sm:$0xff] %v14175_v37  ;;  %10454 = vmatprep.subr.mxu1 %v8394_v15  ;;  %v15880_v57 = vand.u32 4294901760, %v13937_v31  ;;  %v53_v46 = vld [vmem:[%s15162_s4 + $0x48] sm:$0xff]  ;;  %v8289_v8 = vand.u32 4294901760, %v8288_v1  ;;  %v15882_v38 = vand.u32 4294901760, %v14129_v7  ;;  %v52_v1 = vld [vmem:[%s15162_s4 + $0x40] sm:$0xff] }
 0x334   :  { %10425 = vmatpush3.msra.mxu0 %v14063_v45  ;;  %15881 = vst [vmem:[#allocation87_spill] sm:$0xff] %v14183_v62  ;;  %10455 = vmatpush3.msra.mxu1 %v8282_v9  ;;  %v14196_v45 = vand.u32 4294901760, %v7174_v4  ;;  %v15885_v26 = vand.u32 4294901760, %v14102_v25  ;;  %v7172_v15 = vmul.f32 %v7168_v16, %v7168_v16  ;;  %v14220_v16 = vsub.f32 %v46_v28, %v14183_v62 }
 0x335   :  { %v14181_v11 = vsub.f32 %v13937_v31, %v15880_v57  ;;  %10426 = vmatprep.subr.mxu0 %v13786_v42  ;;  %v8302_v14 = vsub.f32 %v14129_v7, %v15882_v38  ;;  %v15883_v57 = vld [vmem:[#allocation59_spill] sm:$0xff]  ;;  %10456 = vmatprep.subr.mxu1 %v8401_v18  ;;  %v8296_v12 = vand.u32 4294901760, %v8295_v55  ;;  %v14205_v38 = vand.u32 4294901760, %v7134_v6  ;;  %v15887_v55 = vld [vmem:[#allocation49_spill] sm:$0xff] }
 0x336   :  { %v7133_v29 = vmul.f32 %v15883_v57, %v15883_v57  ;;  %15884 = vst [vmem:[#allocation77_spill] sm:$0xff] %v14196_v45  ;;  %10427 = vmatpush3.msra.mxu0 %v14120_v34  ;;  %v8309_v9 = vsub.f32 %v14102_v25, %v15885_v26  ;;  %10457 = vmatpush3.msra.mxu1 %v8289_v8  ;;  %v14211_v18 = vand.u32 4294901760, %v53_v46  ;;  %v14215_v34 = vand.u32 4294901760, %v7173_v33 }
 0x337   :  { %10428 = vmatprep.subr.mxu0 %v13881_v13  ;;  %v14209_v57 = vsub.f32 %v47_v19, %v14175_v37  ;;  %v7132_v59 = vmul.f32 %v15887_v55, %v15887_v55  ;;  %10458 = vmatprep.subr.mxu1 %v8408_v54  ;;  %v7171_v8 = vmul.f32 %v7167_v0, %v7167_v0  ;;  %v8303_v19 = vand.u32 4294901760, %v8302_v14 }
 0x338   :  { %15886 = vst [vmem:[#allocation89_spill] sm:$0xff] %v14211_v18  ;;  %15888 = vst [vmem:[#allocation90_spill] sm:$0xff] %v14215_v34  ;;  %10429 = vmatpush3.msra.mxu0 %v13745_v51  ;;  %10459 = vmatpush3.msra.mxu1 %v8296_v12  ;;  %v15889_v13 = vand.u32 4294901760, %v14160_v20  ;;  %v14226_v55 = vand.u32 4294901760, %v52_v1  ;;  %v7131_v54 = vmul.f32 %v15891_v41, %v15891_v41  ;;  %v14230_v51 = vand.u32 4294901760, %v7133_v29 }
 0x339   :  { %10430 = vmatprep.subr.mxu0 %v13866_v44  ;;  %v14233_v26 = vsub.f32 %v7174_v4, %v14196_v45  ;;  %v15893_v28 = vand.u32 4294901760, %v13920_v56  ;;  %v8310_v12 = vand.u32 4294901760, %v8309_v9  ;;  %v14239_v0 = vsub.f32 %v7134_v6, %v14205_v38  ;;  %8488 = vmatprep.mubr.f32.mxu1 %v14175_v37 }
 0x33a   :  { %v8316_v42 = vsub.f32 %v14160_v20, %v15889_v13  ;;  %15890 = vst [vmem:[#allocation75_spill] sm:$0xff] %v14226_v55  ;;  %15892 = vst [vmem:[#allocation85_spill] sm:$0xff] %v14230_v51  ;;  %10431 = vmatpush3.msra.mxu0 %v13757_v47  ;;  %v14241_v13 = vand.u32 4294901760, %v7172_v15  ;;  %v14246_v14 = vsub.f32 %v53_v46, %v14211_v18  ;;  %v14248_v4 = vand.u32 4294901760, %v7132_v59 }
 0x33b   :  { %10460 = vmatprep.subr.mxu1 %v15893_v28  ;;  %10432 = vmatprep.subr.mxu0 %v13834_v24  ;;  %v14251_v56 = vsub.f32 %v7173_v33, %v14215_v34  ;;  %v15896_v9 = vand.u32 4294901760, %v13904_v58  ;;  %v15897_v6 = vand.u32 4294901760, %v13924_v2  ;;  %v14260_v41 = vand.u32 4294901760, %v7171_v8 }
 0x33c   :  { %15894 = vst [vmem:[#allocation94_spill] sm:$0xff] %v14241_v13  ;;  %10461 = vmatpush3.msra.mxu1 %v8303_v19  ;;  %15895 = vst [vmem:[#allocation92_spill] sm:$0xff] %v14248_v4  ;;  %10433 = vmatpush3.msra.mxu0 %v13743_v32  ;;  %v8317_v46 = vand.u32 4294901760, %v8316_v42  ;;  %v8436_v33 = vand.u32 4294901760, %v14181_v11  ;;  %v14265_v24 = vsub.f32 %v52_v1, %v14226_v55  ;;  %v14267_v58 = vand.u32 4294901760, %v7131_v54 }
 0x33d   :  { %10462 = vmatprep.subr.mxu1 %v15896_v9  ;;  %v8442_v19 = vsub.f32 %v13924_v2, %v15897_v6  ;;  %10434 = vmatprep.subr.mxu0 %v13765_v10  ;;  %v14270_v9 = vsub.f32 %v7133_v29, %v14230_v51  ;;  %v15898_v6 = vand.u32 4294901760, %v13934_v48  ;;  %v14280_v11 = vsub.f32 %v7172_v15, %v14241_v13  ;;  %v15940_v37 = vld [vmem:[#allocation77_spill] sm:$0xff] }
 0x33e   :  { %10463 = vmatpush3.msra.mxu1 %v8310_v12  ;;  %10435 = vmatpush3.msra.mxu0 %v13800_v30  ;;  %v15899_v12 = vand.u32 4294901760, %v13879_v53  ;;  %v15900_v29 = vand.u32 4294901760, %v14209_v57  ;;  %v14289_v30 = vsub.f32 %v7132_v59, %v14248_v4  ;;  %v15901_v15 = vand.u32 4294901760, %v14220_v16 }
 0x33f   :  { %10464 = vmatprep.subr.mxu1 %v15898_v6  ;;  %10436 = vmatprep.subr.mxu0 %v14196_v45  ;;  %v14297_v45 = vsub.f32 %v7171_v8, %v14260_v41  ;;  %v8331_v59 = vand.u32 4294901760, %v13890_v50 }
 0x340   :  { %v8449_v28 = vsub.f32 %v13879_v53, %v15899_v12  ;;  %10465 = vmatpush3.msra.mxu1 %v8317_v46  ;;  %v8235_v1 = vsub.f32 %v14209_v57, %v15900_v29  ;;  %10437 = vmatpush3.msra.mxu0 %v14205_v38  ;;  %v8443_v12 = vand.u32 4294901760, %v8442_v19  ;;  %v8241_v46 = vsub.f32 %v14220_v16, %v15901_v15 }
 0x341   :  { %10466 = vmatprep.subr.mxu1 %v8436_v33  ;;  %15902 = vst [vmem:[#allocation27_spill] sm:$0xff] %v14297_v45  ;;  %v15903_v29 = vand.u32 4294901760, %v13859_v40  ;;  %10438 = vmatprep.subr.mxu0 %v14215_v34  ;;  %v15904_v33 = vld [vmem:[#allocation57_spill] sm:$0xff]  ;;  %v14308_v15 = vsub.f32 %v7131_v54, %v14267_v58  ;;  %v15907_v40 = vand.u32 4294901760, %v14233_v26  ;;  %v15909_v54 = vand.u32 4294901760, %v14246_v14 }
 0x342   :  { %v15905_v6 = vand.u32 4294901760, %v15904_v33  ;;  %10439 = vmatpush3.msra.mxu0 %v14230_v51  ;;  %v8450_v8 = vand.u32 4294901760, %v8449_v28  ;;  %v8236_v50 = vand.u32 4294901760, %v8235_v1  ;;  %v8242_v42 = vand.u32 4294901760, %v8241_v46  ;;  %v15912_v34 = vld [vmem:[#allocation29_spill] sm:$0xff] }
 0x343   :  { %10467 = vmatpush3.msra.mxu1 %v15903_v29  ;;  %15906 = vst [vmem:[#allocation67_spill] sm:$0xff] %v14308_v15  ;;  %v8463_v29 = vsub.f32 %v14233_v26, %v15907_v40  ;;  %10440 = vmatprep.subr.mxu0 %v14241_v13  ;;  %v15910_v40 = vld [vmem:[#allocation37_spill] sm:$0xff]  ;;  %v15914_v28 = vand.u32 4294901760, %v14265_v24  ;;  %v15916_v13 = vand.u32 4294901760, %v14280_v11 }
 0x344   :  { %v8344_v19 = vsub.f32 %v15904_v33, %v15905_v6  ;;  %10468 = vmatprep.subr.mxu1 %v8443_v12  ;;  %v15908_v6 = vand.u32 4294901760, %v14239_v0  ;;  %v8250_v12 = vsub.f32 %v14246_v14, %v15909_v54  ;;  %10441 = vmatpush3.msra.mxu0 %v14248_v4  ;;  %v8457_v51 = vand.u32 4294901760, %v15910_v40 }
 0x345   :  { %10469 = vmatpush3.msra.mxu1 %v8331_v59  ;;  %v15911_v59 = vand.u32 4294901760, %v14251_v56  ;;  %10442 = vmatprep.subr.mxu0 %v14260_v41  ;;  %v8464_v46 = vand.u32 4294901760, %v8463_v29  ;;  %v15915_v40 = vand.u32 4294901760, %v14270_v9  ;;  %v15917_v4 = vand.u32 4294901760, %v14289_v30 }
 0x346   :  { %v8351_v48 = vsub.f32 %v14239_v0, %v15908_v6  ;;  %10470 = vmatprep.subr.mxu1 %v8450_v8  ;;  %v15913_v6 = vand.u32 4294901760, %v15912_v34  ;;  %v8345_v54 = vand.u32 4294901760, %v8344_v19  ;;  %v8256_v8 = vsub.f32 %v14265_v24, %v15914_v28  ;;  %10443 = vmatpush3.msra.mxu0 %v14267_v58 }
 0x347   :  { %v8470_v1 = vsub.f32 %v14251_v56, %v15911_v59  ;;  %v8358_v59 = vsub.f32 %v14270_v9, %v15915_v40  ;;  %v15371_v34 = vand.u32 4294901760, %v14308_v15  ;;  %8237 = vmatprep.mubr.f32.mxu0 %v8236_v50  ;;  %v8251_v19 = vand.u32 4294901760, %v8250_v12  ;;  %10488 = vmatprep.subr.mxu0 %v14016_v49 }
 0x348   :  { %10471 = vmatpush3.msra.mxu1 %v15913_v6  ;;  %v8352_v6 = vand.u32 4294901760, %v8351_v48  ;;  %v8477_v28 = vsub.f32 %v14280_v11, %v15916_v13  ;;  %8243 = vmatmul.mubr.f32.vlgmr.msra.gmra.mxu0 %v8242_v42  ;;  %v8365_v29 = vsub.f32 %v14289_v30, %v15917_v4  ;;  %v8257_v40 = vand.u32 4294901760, %v8256_v8  ;;  %v15919_v8 = vld [vmem:[#allocation38_spill] sm:$0xff] }
 0x349   :  { %10472 = vmatprep.subr.mxu1 %v8457_v51  ;;  %v8471_v51 = vand.u32 4294901760, %v8470_v1  ;;  %v15918_v50 = vand.u32 4294901760, %v14297_v45  ;;  %10489 = vmatpush3.msra.mxu0 %v14026_v23  ;;  %v8359_v12 = vand.u32 4294901760, %v8358_v59  ;;  %v8372_v13 = vsub.f32 %v14308_v15, %v15371_v34  ;;  %v15921_v59 = vld [vmem:[#allocation8_spill] sm:$0xff]  ;;  %v15936_v34 = vld [vmem:[#allocation10_spill] sm:$0xff] }
 0x34a   :  { %10473 = vmatpush3.msra.mxu1 %v8345_v54  ;;  %10490 = vmatprep.subr.mxu0 %v14032_v60  ;;  %v8478_v4 = vand.u32 4294901760, %v8477_v28  ;;  %v8366_v42 = vand.u32 4294901760, %v8365_v29  ;;  %v15924_v28 = vld [vmem:[#allocation16_spill] sm:$0xff]  ;;  %v15926_v29 = vld [vmem:[#allocation86_spill] sm:$0xff] }
 0x34b   :  { %10474 = vmatprep.subr.mxu1 %v8464_v46  ;;  %v8484_v48 = vsub.f32 %v14297_v45, %v15918_v50  ;;  %8252 = vmatprep.mubr.f32.mxu0 %v8251_v19  ;;  %v8373_v54 = vand.u32 4294901760, %v8372_v13  ;;  %v15920_v46 = vld [vmem:[#allocation34_spill] sm:$0xff]  ;;  %v15923_v19 = vld [vmem:[#allocation24_spill] sm:$0xff] }
 0x34c   :  { %10475 = vmatpush3.msra.mxu1 %v8352_v6  ;;  %10491 = vmatpush3.msra.mxu0 %v14043_v21  ;;  %v15922_v6 = vld [vmem:[#allocation79_spill] sm:$0xff]  ;;  %v15928_v50 = vld [vmem:[#allocation14_spill] sm:$0xff]  ;;  %v15931_v13 = vld [vmem:[#allocation80_spill] sm:$0xff] }
 0x34d   :  { %10476 = vmatprep.subr.mxu1 %v8471_v51  ;;  %8258 = vmatmul.mubr.f32.gmra.mxu0 %v8257_v40  ;;  %v8485_v1 = vand.u32 4294901760, %v8484_v48  ;;  %v15925_v51 = vld [vmem:[#allocation83_spill] sm:$0xff]  ;;  %v15927_v40 = vld [vmem:[#allocation28_spill] sm:$0xff] }
 0x34e   :  { %10477 = vmatpush3.msra.mxu1 %v8359_v12  ;;  %10492 = vmatprep.subr.mxu0 %v14056_v35  ;;  %v15929_v48 = vld [vmem:[#allocation20_spill] sm:$0xff]  ;;  %v15930_v12 = vld [vmem:[#allocation53_spill] sm:$0xff] }
 0x34f   :  { %10478 = vmatprep.subr.mxu1 %v8478_v4  ;;  %10493 = vmatpush3.msra.mxu0 %v14066_v63  ;;  %v15932_v4 = vld [vmem:[#allocation103_spill] sm:$0xff] }
 0x350   :  { %10479 = vmatpush3.msra.mxu1 %v8366_v42  ;;  %10494 = vmatprep.subr.mxu0 %v14073_v3  ;;  %v15933_v42 = vld [vmem:[#allocation31_spill] sm:$0xff] }
 0x351   :  { %10480 = vmatprep.subr.mxu1 %v8485_v1  ;;  %10495 = vmatpush3.msra.mxu0 %v14081_v5  ;;  %v15934_v1 = vld [vmem:[#allocation30_spill] sm:$0xff] }
 0x352   :  { %10481 = vmatpush3.msra.mxu1 %v8373_v54  ;;  %10496 = vmatprep.subr.mxu0 %v15919_v8  ;;  %v15935_v54 = vld [vmem:[#allocation84_spill] sm:$0xff] }
 0x353   :  { %8490 = vmatmul.mubr.f32.vlgmr.msra.gmra.mxu1 %v14183_v62  ;;  %10526 = vmatprep.subr.mxu1 %v13982_v36  ;;  %v15939_v62 = vld [vmem:[#allocation15_spill] sm:$0xff] }
 0x354   :  { %10497 = vmatpush3.msra.mxu0 %v14092_v17  ;;  %10527 = vmatpush3.msra.mxu1 %v13995_v61 }
 0x355   :  { %10498 = vmatprep.subr.mxu0 %v15920_v46  ;;  %10528 = vmatprep.subr.mxu1 %v14001_v22 }
 0x356   :  { %8495 = vmatprep.mubr.f32.mxu1 %v14211_v18  ;;  %10499 = vmatpush3.msra.mxu0 %v14129_v7  ;;  %v15938_v18 = vld [vmem:[#allocation36_spill] sm:$0xff] }
 0x357   :  { %10529 = vmatpush3.msra.mxu1 %v14010_v52  ;;  %10500 = vmatprep.subr.mxu0 %v15921_v59 }
 0x358   :  { %8497 = vmatmul.mubr.f32.gmra.mxu1 %v14226_v55  ;;  %10530 = vmatprep.subr.mxu1 %v15922_v6  ;;  %v15937_v55 = vld [vmem:[#allocation54_spill] sm:$0xff] }
 0x359   :  { %10501 = vmatpush3.msra.mxu0 %v14102_v25  ;;  %10531 = vmatpush3.msra.mxu1 %v15923_v19 }
 0x35a   :  { %10502 = vmatprep.subr.mxu0 %v15924_v28  ;;  %10532 = vmatprep.subr.mxu1 %v15925_v51 }
 0x35b   :  { %10503 = vmatpush3.msra.mxu0 %v14160_v20  ;;  %10533 = vmatpush3.msra.mxu1 %v14048_v43 }
 0x35c   :  { %10504 = vmatprep.subr.mxu0 %v13937_v31  ;;  %10534 = vmatprep.subr.mxu1 %v13826_v27 }
 0x35d   :  { %10505 = vmatpush3.msra.mxu0 %v15926_v29  ;;  %10535 = vmatpush3.msra.mxu1 %v14053_v39 }
 0x35e   :  { %10506 = vmatprep.subr.mxu0 %v13924_v2  ;;  %10536 = vmatprep.subr.mxu1 %v15927_v40 }
 0x35f   :  { %10507 = vmatpush3.msra.mxu0 %v15928_v50  ;;  %10537 = vmatpush3.msra.mxu1 %v15929_v48 }
 0x360   :  { %10508 = vmatprep.subr.mxu0 %v13879_v53  ;;  %10538 = vmatprep.subr.mxu1 %v15930_v12 }
 0x361   :  { %10509 = vmatpush3.msra.mxu0 %v15931_v13  ;;  %10539 = vmatpush3.msra.mxu1 %v15932_v4 }
 0x362   :  { %10510 = vmatprep.subr.mxu0 %v15933_v42  ;;  %10540 = vmatprep.subr.mxu1 %v15934_v1 }
 0x363   :  { %10511 = vmatpush3.msra.mxu0 %v15904_v33  ;;  %10541 = vmatpush3.msra.mxu1 %v15935_v54 }
 0x364   :  { %10512 = vmatprep.subr.mxu0 %v14233_v26  ;;  %10542 = vmatprep.subr.mxu1 %v15936_v34 }
 0x365   :  { %10513 = vmatpush3.msra.mxu0 %v14239_v0  ;;  %10543 = vmatpush3.msra.mxu1 %v15937_v55 }
 0x366   :  { %10514 = vmatprep.subr.mxu0 %v14251_v56  ;;  %10544 = vmatprep.subr.mxu1 %v13866_v44 }
 0x367   :  { %10515 = vmatpush3.msra.mxu0 %v14270_v9  ;;  %10545 = vmatpush3.msra.mxu1 %v13757_v47 }
 0x368   :  { %10516 = vmatprep.subr.mxu0 %v14280_v11  ;;  %10546 = vmatprep.subr.mxu1 %v15938_v18  ;;  %v15941_v18 = vand.u32 4294901760, %v14016_v49  ;;  %v15947_v49 = vld [vmem:[#allocation94_spill] sm:$0xff] }
 0x369   :  { %10517 = vmatpush3.msra.mxu0 %v14289_v30  ;;  %10547 = vmatpush3.msra.mxu1 %v13743_v32  ;;  %v15942_v32 = vand.u32 4294901760, %v14026_v23  ;;  %v15950_v23 = vand.u32 4294901760, %v14066_v63  ;;  %v15956_v63 = vand.u32 4294901760, %v14092_v17  ;;  %v15961_v17 = vand.u32 4294901760, %v15921_v59 }
 0x36a   :  { %10518 = vmatprep.subr.mxu0 %v14297_v45  ;;  %10548 = vmatprep.subr.mxu1 %v13765_v10  ;;  %v15943_v45 = vld [vmem:[#allocation90_spill] sm:$0xff]  ;;  %v15946_v10 = vand.u32 4294901760, %v14043_v21  ;;  %v15953_v21 = vand.u32 4294901760, %v14081_v5  ;;  %v15958_v5 = vand.u32 4294901760, %v14246_v14  ;;  %v15977_v59 = vand.u32 4294901760, %v14251_v56 }
 0x36b   :  { %10519 = vmatpush3.msra.mxu0 %v14308_v15  ;;  %8632 = vmatprep.mubr.f32.mxu0 %v14209_v57  ;;  %v15944_v15 = vand.u32 4294901760, %v14032_v60  ;;  %v15951_v60 = vand.u32 4294901760, %v14073_v3  ;;  %v15957_v3 = vand.u32 4294901760, %v15920_v46  ;;  %v15976_v46 = vand.u32 4294901760, %v14239_v0  ;;  %v15981_v0 = vld [vmem:[#allocation36_spill] sm:$0xff] }
 0x36c   :  { %10549 = vmatpush3.msra.mxu1 %v15939_v62  ;;  %8635 = vmatmul.mubr.f32.vlgmr.msra.gmra.mxu0 %v14220_v16  ;;  %v15945_v62 = vld [vmem:[#allocation85_spill] sm:$0xff] }
 0x36d   :  { %10550 = vmatprep.subr.mxu1 %v15940_v37  ;;  %10564 = vmatprep.subr.mxu0 %v15941_v18  ;;  %v15948_v18 = vand.u32 4294901760, %v14056_v35  ;;  %v15954_v35 = vand.u32 4294901760, %v14220_v16  ;;  %v15973_v16 = vand.u32 4294901760, %v15904_v33 }
 0x36e   :  { %10551 = vmatpush3.msra.mxu1 %v14205_v38  ;;  %10565 = vmatpush3.msra.mxu0 %v15942_v32  ;;  %v15949_v32 = vld [vmem:[#allocation92_spill] sm:$0xff] }
 0x36f   :  { %10552 = vmatprep.subr.mxu1 %v15943_v45  ;;  %10566 = vmatprep.subr.mxu0 %v15944_v15  ;;  %v15955_v15 = vand.u32 4294901760, %v15919_v8 }
 0x370   :  { %8641 = vmatprep.mubr.f32.mxu0 %v14246_v14  ;;  %10553 = vmatpush3.msra.mxu1 %v15945_v62  ;;  %v15975_v14 = vld [vmem:[#allocation43_spill] sm:$0xff] }
 0x371   :  { %10567 = vmatpush3.msra.mxu0 %v15946_v10  ;;  %10554 = vmatprep.subr.mxu1 %v15947_v49  ;;  %v15952_v10 = vand.u32 4294901760, %v14209_v57  ;;  %v15959_v57 = vand.u32 4294901760, %v14129_v7  ;;  %v15967_v7 = vand.u32 4294901760, %v13924_v2  ;;  %v15971_v2 = vand.u32 4294901760, %v15933_v42  ;;  %v15993_v42 = vld [vmem:[#allocation87_spill] sm:$0xff] }
 0x372   :  { %8644 = vmatmul.mubr.f32.gmra.mxu0 %v14265_v24  ;;  %10568 = vmatprep.subr.mxu0 %v15948_v18  ;;  %v7201_v8 = vand.u32 2147483647, %v15975_v14  ;;  %v16003_v14 = vld [vmem:[#allocation69_spill] sm:$0xff] }
 0x373   :  { %10555 = vmatpush3.msra.mxu1 %v15949_v32  ;;  %10569 = vmatpush3.msra.mxu0 %v15950_v23  ;;  %v15995_v23 = vmov 0.0  }
 0x374   :  { %10556 = vmatprep.subr.mxu1 %v14260_v41  ;;  %10570 = vmatprep.subr.mxu0 %v15951_v60  ;;  %v14519_v56 = vand.u32 4294901760, %v7201_v8 }
 0x375   :  { %10557 = vmatpush3.msra.mxu1 %v14267_v58  ;;  %8748 = vmatprep.mubr.f32.mxu1 %v15952_v10 }
 0x376   :  { %10571 = vmatpush3.msra.mxu0 %v15953_v21  ;;  %8752 = vmatmul.mubr.f32.vlgmr.msra.gmra.mxu1 %v15954_v35  ;;  %v15996_v21 = vld [vmem:[#allocation46_spill] sm:$0xff] }
 0x377   :  { %10572 = vmatprep.subr.mxu0 %v15955_v15  ;;  %10602 = vmatprep.subr.mxu1 %v13982_v36  ;;  %v15960_v36 = vand.u32 4294901760, %v14265_v24  ;;  %v15965_v24 = vand.u32 4294901760, %v13937_v31  ;;  %v15969_v31 = vand.u32 4294901760, %v13879_v53  ;;  %v15974_v53 = vand.u32 4294901760, %v14233_v26 }
 0x378   :  { %10573 = vmatpush3.msra.mxu0 %v15956_v63  ;;  %10603 = vmatpush3.msra.mxu1 %v13995_v61  ;;  %v15962_v61 = vand.u32 4294901760, %v14102_v25  ;;  %v15966_v25 = vand.u32 4294901760, %v15926_v29  ;;  %v15979_v26 = vand.u32 4294901760, %v14270_v9  ;;  %v15984_v29 = vld [vmem:[#allocation13_spill] sm:$0xff]  ;;  %v7196_v35 = vand.u32 2147483647, %v15996_v21 }
 0x379   :  { %10574 = vmatprep.subr.mxu0 %v15957_v3  ;;  %10604 = vmatprep.subr.mxu1 %v14001_v22  ;;  %v15963_v22 = vand.u32 4294901760, %v15924_v28  ;;  %v15983_v28 = vld [vmem:[#allocation41_spill] sm:$0xff]  ;;  %v15998_v3 = vld [vmem:[#allocation44_spill] sm:$0xff] }
 0x37a   :  { %8759 = vmatprep.mubr.f32.mxu1 %v15958_v5  ;;  %10575 = vmatpush3.msra.mxu0 %v15959_v57  ;;  %v15997_v63 = vld [vmem:[#allocation89_spill] sm:$0xff]  ;;  %v7195_v5 = vand.u32 2147483647, %v15998_v3 }
 0x37b   :  { %10605 = vmatpush3.msra.mxu1 %v14010_v52  ;;  %10576 = vmatprep.subr.mxu0 %v15961_v17  ;;  %v15964_v52 = vand.u32 4294901760, %v14160_v20  ;;  %v15968_v20 = vand.u32 4294901760, %v15928_v50  ;;  %v15988_v50 = vld [vmem:[#allocation67_spill] sm:$0xff] }
 0x37c   :  { %8763 = vmatmul.mubr.f32.gmra.mxu1 %v15960_v36  ;;  %10606 = vmatprep.subr.mxu1 %v15922_v6  ;;  %v15978_v6 = vld [vmem:[#allocation40_spill] sm:$0xff] }
 0x37d   :  { %10577 = vmatpush3.msra.mxu0 %v15962_v61  ;;  %10607 = vmatpush3.msra.mxu1 %v15923_v19  ;;  %v7200_v33 = vand.u32 2147483647, %v15978_v6  ;;  %v16000_v61 = vld [vmem:[#allocation76_spill] sm:$0xff] }
 0x37e   :  { %10578 = vmatprep.subr.mxu0 %v15963_v22  ;;  %10608 = vmatprep.subr.mxu1 %v15925_v51  ;;  %v7199_v51 = vand.u32 2147483647, %v15983_v28  ;;  %v7194_v22 = vand.u32 2147483647, %v16000_v61 }
 0x37f   :  { %10579 = vmatpush3.msra.mxu0 %v15964_v52  ;;  %10609 = vmatpush3.msra.mxu1 %v14048_v43  ;;  %v14525_v9 = vand.u32 4294901760, %v7200_v33  ;;  %v14575_v52 = vand.u32 4294901760, %v7196_v35 }
 0x380   :  { %10580 = vmatprep.subr.mxu0 %v15965_v24  ;;  %10610 = vmatprep.subr.mxu1 %v13826_v27  ;;  %v15970_v27 = vand.u32 4294901760, %v15931_v13  ;;  %v15991_v13 = vld [vmem:[#allocation104_spill] sm:$0xff]  ;;  %v14544_v60 = vand.u32 4294901760, %v7199_v51 }
 0x381   :  { %10581 = vmatpush3.msra.mxu0 %v15966_v25  ;;  %10611 = vmatpush3.msra.mxu1 %v14053_v39  ;;  %v15972_v39 = vld [vmem:[#allocation42_spill] sm:$0xff]  ;;  %v14547_v10 = vsub.f32 %v7200_v33, %v14525_v9 }
 0x382   :  { %10582 = vmatprep.subr.mxu0 %v15967_v7  ;;  %10612 = vmatprep.subr.mxu1 %v15927_v40  ;;  %v7202_v43 = vand.u32 2147483647, %v15972_v39  ;;  %v14566_v36 = vsub.f32 %v7199_v51, %v14544_v60  ;;  %v14588_v7 = vand.u32 4294901760, %v7195_v5  ;;  %v14602_v39 = vand.u32 4294901760, %v7194_v22 }
 0x383   :  { %10583 = vmatpush3.msra.mxu0 %v15968_v20  ;;  %10613 = vmatpush3.msra.mxu1 %v15929_v48  ;;  %v15989_v48 = vand.u32 4294901760, %v15988_v50  ;;  %v15396_v17 = vand.u32 4294901760, %v14547_v10 }
 0x384   :  { %10584 = vmatprep.subr.mxu0 %v15969_v31  ;;  %10614 = vmatprep.subr.mxu1 %v15930_v12  ;;  %v14508_v19 = vand.u32 4294901760, %v7202_v43  ;;  %v14615_v6 = vsub.f32 %v7195_v5, %v14588_v7 }
 0x385   :  { %10585 = vmatpush3.msra.mxu0 %v15970_v27  ;;  %10615 = vmatpush3.msra.mxu1 %v15932_v4  ;;  %v15992_v4 = vld [vmem:[#allocation15_spill] sm:$0xff]  ;;  %v9191_v31 = vsub.f32 %v14547_v10, %v15396_v17 }
 0x386   :  { %10586 = vmatprep.subr.mxu0 %v15971_v2  ;;  %10616 = vmatprep.subr.mxu1 %v15934_v1  ;;  %v14539_v1 = vsub.f32 %v7201_v8, %v14519_v56  ;;  %v16002_v27 = vld [vmem:[#allocation71_spill] sm:$0xff]  ;;  %v7191_v8 = vand.u32 2147483647, %v16003_v14 }
 0x387   :  { %10587 = vmatpush3.msra.mxu0 %v15973_v16  ;;  %10617 = vmatpush3.msra.mxu1 %v15935_v54  ;;  %v15994_v54 = vld [vmem:[#allocation12_spill] sm:$0xff]  ;;  %v7192_v2 = vand.u32 2147483647, %v16002_v27  ;;  %v9192_v28 = vand.u32 4294901760, %v9191_v31  ;;  %v16010_v27 = vld [vmem:[#allocation99_spill] sm:$0xff] }
 0x388   :  { %10588 = vmatprep.subr.mxu0 %v15974_v53  ;;  %10618 = vmatprep.subr.mxu1 %v15936_v34  ;;  %v15980_v34 = vand.u32 4294901760, %v14280_v11  ;;  %v15987_v11 = vld [vmem:[#allocation81_spill] sm:$0xff]  ;;  %v7197_v18 = vand.u32 2147483647, %v15994_v54  ;;  %v14638_v50 = vand.u32 4294901760, %v7191_v8 }
 0x389   :  { %10589 = vmatpush3.msra.mxu0 %v15976_v46  ;;  %10619 = vmatpush3.msra.mxu1 %v15937_v55  ;;  %v15982_v55 = vand.u32 4294901760, %v14289_v30  ;;  %v15990_v30 = vld [vmem:[#allocation17_spill] sm:$0xff] }
 0x38a   :  { %10590 = vmatprep.subr.mxu0 %v15977_v59  ;;  %10620 = vmatprep.subr.mxu1 %v13866_v44  ;;  %v15985_v44 = vld [vmem:[#allocation27_spill] sm:$0xff]  ;;  %v7198_v12 = vand.u32 2147483647, %v15990_v30  ;;  %v14561_v57 = vand.u32 4294901760, %v7197_v18  ;;  %v16006_v54 = vld [vmem:[#allocation45_spill] sm:$0xff] }
 0x38b   :  { %10591 = vmatpush3.msra.mxu0 %v15979_v26  ;;  %10621 = vmatpush3.msra.mxu1 %v13757_v47  ;;  %v15986_v40 = vand.u32 4294901760, %v15985_v44  ;;  %v14528_v47 = vsub.f32 %v7202_v43, %v14508_v19  ;;  %v14605_v43 = vsub.f32 %v7196_v35, %v14575_v52  ;;  %v14630_v44 = vsub.f32 %v7194_v22, %v14602_v39 }
 0x38c   :  { %10592 = vmatprep.subr.mxu0 %v15980_v34  ;;  %10622 = vmatprep.subr.mxu1 %v15981_v0  ;;  %v14553_v15 = vand.u32 4294901760, %v7198_v12  ;;  %v14591_v20 = vsub.f32 %v7197_v18, %v14561_v57  ;;  %v16004_v0 = vld [vmem:[#allocation19_spill] sm:$0xff]  ;;  %v7188_v18 = vand.u32 2147483647, %v16006_v54 }
 0x38d   :  { %10593 = vmatpush3.msra.mxu0 %v15982_v55  ;;  %10623 = vmatpush3.msra.mxu1 %v15984_v29  ;;  %v7190_v55 = vand.u32 2147483647, %v16004_v0  ;;  %v14627_v29 = vand.u32 4294901760, %v7192_v2 }
 0x38e   :  { %10594 = vmatprep.subr.mxu0 %v15986_v40  ;;  %10624 = vmatprep.subr.mxu1 %v15987_v11  ;;  %v14578_v24 = vsub.f32 %v7198_v12, %v14553_v15  ;;  %v15391_v33 = vand.u32 4294901760, %v14591_v20  ;;  %v15390_v40 = vand.u32 4294901760, %v14605_v43 }
 0x38f   :  { %10595 = vmatpush3.msra.mxu0 %v15989_v48  ;;  %8929 = vmatprep.mubr.f32.mxu0 %v15991_v13  ;;  %v16005_v48 = vld [vmem:[#allocation47_spill] sm:$0xff]  ;;  %v14652_v21 = vand.u32 4294901760, %v7190_v55  ;;  %v14657_v35 = vsub.f32 %v7192_v2, %v14627_v29  ;;  %v7210_v2 = vand.u32 2147483647, %v16010_v27 }
 0x390   :  { %10625 = vmatpush3.msra.mxu1 %v15992_v4  ;;  %8931 = vmatmul.mubr.f32.vlgmr.msra.gmra.mxu0 %v15993_v42  ;;  %v15392_v16 = vand.u32 4294901760, %v14578_v24  ;;  %v7189_v30 = vand.u32 2147483647, %v16005_v48  ;;  %v9219_v5 = vsub.f32 %v14605_v43, %v15390_v40 }
 0x391   :  { %10626 = vmatprep.subr.mxu1 %v15940_v37  ;;  %9054 = vmatprep.subr.mxu0 %v15995_v23  ;;  %v15398_v37 = vand.u32 4294901760, %v14528_v47  ;;  %v14680_v31 = vsub.f32 %v7190_v55, %v14652_v21  ;;  %v16012_v55 = vld [vmem:[#allocation70_spill] sm:$0xff] }
 0x392   :  { %10627 = vmatpush3.msra.mxu1 %v14205_v38  ;;  %9056 = vmatpush1.msra.mxu0 %v14508_v19  ;;  %v15397_v38 = vand.u32 4294901760, %v14539_v1  ;;  %v9205_v11 = vsub.f32 %v14578_v24, %v15392_v16  ;;  %v14668_v22 = vand.u32 4294901760, %v7189_v30  ;;  %v9220_v14 = vand.u32 4294901760, %v9219_v5 }
 0x393   :  { %10628 = vmatprep.subr.mxu1 %v15943_v45  ;;  %9057 = vmatprep.subr.mxu0 %v15995_v23  ;;  %v15999_v45 = vld [vmem:[#allocation75_spill] sm:$0xff]  ;;  %v15389_v54 = vand.u32 4294901760, %v14680_v31 }
 0x394   :  { %8936 = vmatprep.mubr.f32.mxu0 %v15997_v63  ;;  %10629 = vmatpush3.msra.mxu1 %v15945_v62  ;;  %v9177_v62 = vsub.f32 %v14528_v47, %v15398_v37  ;;  %v9206_v3 = vand.u32 4294901760, %v9205_v11  ;;  %16008 = vst [vmem:[#allocation93_spill] sm:$0xff] %v14668_v22  ;;  %v14694_v0 = vsub.f32 %v7189_v30, %v14668_v22  ;;  %v49_v30 = vld [vmem:[%s15162_s4 + $0x28] sm:$0xff] }
 0x395   :  { %9059 = vmatpush1.msra.mxu0 %v14519_v56  ;;  %10630 = vmatprep.subr.mxu1 %v15947_v49  ;;  %v9184_v49 = vsub.f32 %v14539_v1, %v15397_v38 }
 0x396   :  { %8938 = vmatmul.mubr.f32.gmra.mxu0 %v15999_v45  ;;  %9060 = vmatprep.subr.mxu0 %v15995_v23 }
 0x397   :  { %10631 = vmatpush3.msra.mxu1 %v15949_v32  ;;  %9062 = vmatpush1.msra.mxu0 %v14525_v9  ;;  %v16001_v32 = vld [vmem:[#allocation74_spill] sm:$0xff]  ;;  %v10216_v53 = vpop.f32.mrf.mxu0  ;;  %v9185_v46 = vand.u32 4294901760, %v9184_v49 }
 0x398   :  { %10632 = vmatprep.subr.mxu1 %v14260_v41  ;;  %9063 = vmatprep.subr.mxu0 %v15995_v23  ;;  %v7193_v25 = vand.u32 2147483647, %v16001_v32  ;;  %v15394_v41 = vand.u32 4294901760, %v14566_v36 }
 0x399   :  { %10633 = vmatpush3.msra.mxu1 %v14267_v58  ;;  %9040 = vmatprep.mubr.f32.mxu1 %v15991_v13  ;;  %v9178_v58 = vand.u32 4294901760, %v9177_v62  ;;  %v10217_v34 = vpop.f32.mrf.mxu0  ;;  %v15388_v13 = vand.u32 4294901760, %v14615_v6  ;;  %v16007_v62 = vld [vmem:[#allocation60_spill] sm:$0xff] }
 0x39a   :  { %9065 = vmatpush1.msra.mxu0 %v14544_v60  ;;  %9042 = vmatmul.mubr.f32.vlgmr.msra.gmra.mxu1 %v15993_v42  ;;  %v14612_v59 = vand.u32 4294901760, %v7193_v25  ;;  %v9198_v26 = vsub.f32 %v14566_v36, %v15394_v41  ;;  %v14625_v51 = vadd.f32 %v10217_v34, %v10216_v53  ;;  %v9212_v42 = vsub.f32 %v14591_v20, %v15391_v33  ;;  %v16021_v33 = vld [vmem:[#allocation9_spill] sm:$0xff]  ;;  %v16024_v41 = vld [vmem:[#allocation35_spill] sm:$0xff] }
 0x39b   :  { %9066 = vmatprep.subr.mxu0 %v15995_v23  ;;  %9173 = vmatprep.subr.mxu1 %v15995_v23  ;;  %v7187_v61 = vand.u32 2147483647, %v16007_v62  ;;  %v15384_v53 = vand.u32 4294901760, %v14657_v35  ;;  %v16014_v62 = vld [vmem:[#allocation50_spill] sm:$0xff]  ;;  %v7205_v16 = vand.u32 2147483647, %v16021_v33 }
 0x39c   :  { %9068 = vmatpush1.msra.mxu0 %v14553_v15  ;;  %9179 = vmatpush1.msra.mxu1 %v9178_v58  ;;  %v14644_v12 = vsub.f32 %v7193_v25, %v14612_v59  ;;  %v9199_v4 = vand.u32 4294901760, %v9198_v26  ;;  %v9213_v32 = vand.u32 4294901760, %v9212_v42  ;;  %v9226_v25 = vsub.f32 %v14615_v6, %v15388_v13 }
 0x39d   :  { %9069 = vmatprep.subr.mxu0 %v15995_v23  ;;  %9180 = vmatprep.subr.mxu1 %v15995_v23  ;;  %v14677_v58 = vand.u32 4294901760, %v7188_v18  ;;  %v14691_v34 = vand.u32 4294901760, %v7187_v61 }
 0x39e   :  { %9047 = vmatprep.mubr.f32.mxu1 %v15997_v63  ;;  %9071 = vmatpush1.msra.mxu0 %v14561_v57  ;;  %v15387_v63 = vand.u32 4294901760, %v14630_v44  ;;  %v15386_v49 = vand.u32 4294901760, %v14644_v12  ;;  %v9227_v11 = vand.u32 4294901760, %v9226_v25 }
 0x39f   :  { %9186 = vmatpush1.msra.mxu1 %v9185_v46  ;;  %9072 = vmatprep.subr.mxu0 %v15995_v23  ;;  %16009 = vst [vmem:[#allocation100_spill] sm:$0xff] %v14677_v58  ;;  %16011 = vst [vmem:[#allocation23_spill] sm:$0xff] %v14691_v34  ;;  %v14707_v42 = vsub.f32 %v7188_v18, %v14677_v58  ;;  %v9247_v18 = vsub.f32 %v14657_v35, %v15384_v53  ;;  %v48_v53 = vld [vmem:[%s15162_s4 + $0x20] sm:$0xff] }
 0x3a0   :  { %9049 = vmatmul.mubr.f32.gmra.mxu1 %v15999_v45  ;;  %9187 = vmatprep.subr.mxu1 %v15995_v23  ;;  %v14665_v45 = vsub.f32 %v7191_v8, %v14638_v50  ;;  %v9233_v8 = vsub.f32 %v14630_v44, %v15387_v63  ;;  %v9240_v48 = vsub.f32 %v14644_v12, %v15386_v49  ;;  %v14762_v13 = vand.u32 4294901760, %v48_v53 }
 0x3a1   :  { %9074 = vmatpush1.msra.mxu0 %v14575_v52  ;;  %9193 = vmatpush1.msra.mxu1 %v9192_v28  ;;  %v7209_v28 = vand.u32 2147483647, %v16012_v55  ;;  %v14720_v27 = vsub.f32 %v7187_v61, %v14691_v34  ;;  %v7213_v55 = vsel %vm7211_vm1, %v49_v30, 0  ;;  %v15395_v30 = vand.u32 4294901760, %v14707_v42 }
 0x3a2   :  { %9075 = vmatprep.subr.mxu0 %v15995_v23  ;;  %9194 = vmatprep.subr.mxu1 %v15995_v23  ;;  %v15385_v26 = vand.u32 4294901760, %v14665_v45  ;;  %v9234_v25 = vand.u32 4294901760, %v9233_v8  ;;  %v9241_v61 = vand.u32 4294901760, %v9240_v48  ;;  %v9261_v48 = vsub.f32 %v14680_v31, %v15389_v54 }
 0x3a3   :  { %9077 = vmatpush1.msra.mxu0 %v14588_v7  ;;  %9200 = vmatpush1.msra.mxu1 %v9199_v4  ;;  %v9248_v49 = vand.u32 4294901760, %v9247_v18  ;;  %v14755_v63 = vand.u32 4294901760, %v7213_v55  ;;  %v15403_v54 = vand.u32 4294901760, %v14720_v27  ;;  %v14797_v37 = vsub.f32 %v48_v53, %v14762_v13 }
 0x3a4   :  { %9078 = vmatprep.subr.mxu0 %v15995_v23  ;;  %9201 = vmatprep.subr.mxu1 %v15995_v23  ;;  %v10254_v46 = vpop.f32.mrf.mxu1 }
 0x3a5   :  { %9080 = vmatpush1.msra.mxu0 %v14602_v39  ;;  %9207 = vmatpush1.msra.mxu1 %v9206_v3  ;;  %v14710_v3 = vand.u32 4294901760, %v7210_v2  ;;  %v14789_v33 = vsub.f32 %v7213_v55, %v14755_v63 }
 0x3a6   :  { %9081 = vmatprep.subr.mxu0 %v15995_v23  ;;  %9208 = vmatprep.subr.mxu1 %v15995_v23  ;;  %v10255_v4 = vpop.f32.mrf.mxu1 }
 0x3a7   :  { %9083 = vmatpush1.msra.mxu0 %v14612_v59  ;;  %9214 = vmatpush1.msra.mxu1 %v9213_v32  ;;  %16013 = vst [vmem:[#allocation96_spill] sm:$0xff] %v14710_v3  ;;  %v10256_v5 = vadd.f32 %v10255_v4, %v10254_v46  ;;  %v7208_v32 = vand.u32 2147483647, %v16014_v62  ;;  %v14730_v4 = vand.u32 4294901760, %v7209_v28  ;;  %v9254_v62 = vsub.f32 %v14665_v45, %v15385_v26 }
 0x3a8   :  { %9084 = vmatprep.subr.mxu0 %v15995_v23  ;;  %9215 = vmatprep.subr.mxu1 %v15995_v23 }
 0x3a9   :  { %9086 = vmatpush1.msra.mxu0 %v14627_v29  ;;  %9221 = vmatpush1.msra.mxu1 %v9220_v14  ;;  %v15393_v14 = vand.u32 4294901760, %v14694_v0  ;;  %v14726_v46 = vadd.f32 %v10256_v5, %v14625_v51  ;;  %16016 = vst [vmem:[#allocation73_spill] sm:$0xff] %v14730_v4  ;;  %v55_v51 = vld [vmem:[%s15162_s4 + $0x58] sm:$0xff]  ;;  %v14744_v5 = vsub.f32 %v7210_v2, %v14710_v3  ;;  %v14752_v26 = vand.u32 4294901760, %v7208_v32 }
 0x3aa   :  { %9087 = vmatprep.subr.mxu0 %v15995_v23  ;;  %9222 = vmatprep.subr.mxu1 %v15995_v23  ;;  %v14769_v18 = vsub.f32 %v7209_v28, %v14730_v4  ;;  %v9255_v40 = vand.u32 4294901760, %v9254_v62 }
 0x3ab   :  { %9089 = vmatpush1.msra.mxu0 %v14638_v50  ;;  %9228 = vmatpush1.msra.mxu1 %v9227_v11  ;;  %v16015_v11 = vld [vmem:[#allocation102_spill] sm:$0xff]  ;;  %16018 = vst [vmem:[#allocation18_spill] sm:$0xff] %v14752_v26  ;;  %v9268_v2 = vsub.f32 %v14694_v0, %v15393_v14  ;;  %v9262_v14 = vand.u32 4294901760, %v9261_v48  ;;  %v14785_v62 = vsub.f32 %v7208_v32, %v14752_v26 }
 0x3ac   :  { %9090 = vmatprep.subr.mxu0 %v15995_v23  ;;  %9229 = vmatprep.subr.mxu1 %v15995_v23  ;;  %v7207_v8 = vand.u32 2147483647, %v16015_v11  ;;  %16020 = vst [vmem:[#allocation97_spill] sm:$0xff] %v14769_v18 }
 0x3ad   :  { %9092 = vmatpush1.msra.mxu0 %v14652_v21  ;;  %9235 = vmatpush1.msra.mxu1 %v9234_v25  ;;  %v16017_v25 = vld [vmem:[#allocation58_spill] sm:$0xff]  ;;  %v9269_v38 = vand.u32 4294901760, %v9268_v2  ;;  %v14810_v2 = vand.u32 4294901760, %v7205_v16 }
 0x3ae   :  { %9093 = vmatprep.subr.mxu0 %v15995_v23  ;;  %9236 = vmatprep.subr.mxu1 %v15995_v23  ;;  %v7206_v11 = vand.u32 2147483647, %v16017_v25  ;;  %v7216_v25 = vsel %vm7211_vm1, %v55_v51, 0  ;;  %v9275_v51 = vsub.f32 %v14707_v42, %v15395_v30  ;;  %v16023_v30 = vld [vmem:[#allocation61_spill] sm:$0xff] }
 0x3af   :  { %9095 = vmatpush1.msra.mxu0 %v14668_v22  ;;  %9242 = vmatpush1.msra.mxu1 %v9241_v61  ;;  %v14766_v61 = vand.u32 4294901760, %v7207_v8  ;;  %v14791_v48 = vand.u32 4294901760, %v7216_v25  ;;  %v7204_v17 = vand.u32 2147483647, %v16023_v30  ;;  %16025 = vst [vmem:[#allocation78_spill] sm:$0xff] %v14810_v2 }
 0x3b0   :  { %9096 = vmatprep.subr.mxu0 %v15995_v23  ;;  %9243 = vmatprep.subr.mxu1 %v15995_v23  ;;  %v14782_v28 = vand.u32 4294901760, %v7206_v11  ;;  %v9276_v53 = vand.u32 4294901760, %v9275_v51 }
 0x3b1   :  { %9098 = vmatpush1.msra.mxu0 %v14677_v58  ;;  %16019 = vst [vmem:[#allocation21_spill] sm:$0xff] %v14766_v61  ;;  %9249 = vmatpush1.msra.mxu1 %v9248_v49  ;;  %v54_v49 = vld [vmem:[%s15162_s4 + $0x50] sm:$0xff]  ;;  %v14800_v32 = vsub.f32 %v7207_v8, %v14766_v61  ;;  %v14824_v55 = vsub.f32 %v7216_v25, %v14791_v48  ;;  %v14826_v58 = vand.u32 4294901760, %v7204_v17 }
 0x3b2   :  { %9099 = vmatprep.subr.mxu0 %v15995_v23  ;;  %9250 = vmatprep.subr.mxu1 %v15995_v23  ;;  %16022 = vst [vmem:[#allocation106_spill] sm:$0xff] %v14782_v28  ;;  %v14807_v30 = vand.u32 4294901760, %v54_v49 }
 0x3b3   :  { %9101 = vmatpush1.msra.mxu0 %v14691_v34  ;;  %9256 = vmatpush1.msra.mxu1 %v9255_v40  ;;  %v9282_v40 = vsub.f32 %v14720_v27, %v15403_v54  ;;  %v14818_v34 = vsub.f32 %v7206_v11, %v14782_v28  ;;  %16027 = vst [vmem:[#allocation98_spill] sm:$0xff] %v14824_v55  ;;  %16028 = vst [vmem:[#allocation39_spill] sm:$0xff] %v14826_v58  ;;  %v16029_v11 = vand.u32 4294901760, %v14769_v18 }
 0x3b4   :  { %9118 = vmatprep.subr.mxu0 %v15995_v23  ;;  %9257 = vmatprep.subr.mxu1 %v15995_v23  ;;  %v14837_v25 = vsub.f32 %v54_v49, %v14807_v30  ;;  %v16033_v49 = vand.u32 4294901760, %v14789_v33  ;;  %v16035_v51 = vand.u32 4294901760, %v14800_v32 }
 0x3b5   :  { %9120 = vmatpush2.msra.mxu0 %v14710_v3  ;;  %9263 = vmatpush1.msra.mxu1 %v9262_v14  ;;  %v7203_v3 = vand.u32 2147483647, %v16024_v41  ;;  %v16026_v14 = vand.u32 4294901760, %v14744_v5  ;;  %v10219_v54 = vpop.f32.mrf.mxu0 }
 0x3b6   :  { %9121 = vmatprep.subr.mxu0 %v15995_v23  ;;  %9264 = vmatprep.subr.mxu1 %v15995_v23  ;;  %16030 = vst [vmem:[#allocation62_spill] sm:$0xff] %v14837_v25  ;;  %v9145_v41 = vsub.f32 %v14789_v33, %v16033_v49 }
 0x3b7   :  { %9123 = vmatpush2.msra.mxu0 %v14730_v4  ;;  %v9305_v8 = vsub.f32 %v14744_v5, %v16026_v14  ;;  %9270 = vmatpush1.msra.mxu1 %v9269_v38  ;;  %v9283_v38 = vand.u32 4294901760, %v9282_v40  ;;  %v9312_v14 = vsub.f32 %v14769_v18, %v16029_v11  ;;  %v14839_v4 = vand.u32 4294901760, %v7203_v3  ;;  %v10220_v22 = vpop.f32.mrf.mxu0 }
 0x3b8   :  { %9124 = vmatprep.subr.mxu0 %v15995_v23  ;;  %9271 = vmatprep.subr.mxu1 %v15995_v23  ;;  %v14856_v18 = vsub.f32 %v7204_v17, %v14826_v58 }
 0x3b9   :  { %9126 = vmatpush2.msra.mxu0 %v14752_v26  ;;  %9277 = vmatpush1.msra.mxu1 %v9276_v53  ;;  %16031 = vst [vmem:[#allocation26_spill] sm:$0xff] %v14839_v4  ;;  %v14842_v26 = vsub.f32 %v7205_v16, %v14810_v2  ;;  %v9306_v40 = vand.u32 4294901760, %v9305_v8  ;;  %v16032_v53 = vand.u32 4294901760, %v14785_v62  ;;  %v16034_v8 = vand.u32 4294901760, %v14797_v37 }
 0x3ba   :  { %9127 = vmatprep.subr.mxu0 %v15995_v23  ;;  %9278 = vmatprep.subr.mxu1 %v15995_v23  ;;  %v9313_v49 = vand.u32 4294901760, %v9312_v14  ;;  %v9326_v16 = vsub.f32 %v14800_v32, %v16035_v51  ;;  %v16036_v14 = vand.u32 4294901760, %v14818_v34 }
 0x3bb   :  { %9129 = vmatpush2.msra.mxu0 %v14766_v61  ;;  %9284 = vmatpush1.msra.mxu1 %v9283_v38  ;;  %v9319_v11 = vsub.f32 %v14785_v62, %v16032_v53  ;;  %v9151_v38 = vsub.f32 %v14797_v37, %v16034_v8  ;;  %v10221_v53 = vadd.f32 %v10220_v22, %v10219_v54  ;;  %v9146_v54 = vand.u32 4294901760, %v9145_v41  ;;  %v10292_v17 = vpop.f32.mrf.mxu0 }
 0x3bc   :  { %9130 = vmatprep.subr.mxu0 %v15995_v23  ;;  %9301 = vmatprep.subr.mxu1 %v15995_v23  ;;  %v14869_v61 = vsub.f32 %v7203_v3, %v14839_v4  ;;  %v9333_v51 = vsub.f32 %v14818_v34, %v16036_v14  ;;  %v9327_v41 = vand.u32 4294901760, %v9326_v16 }
 0x3bd   :  { %9132 = vmatpush2.msra.mxu0 %v14782_v28  ;;  %9307 = vmatpush2.msra.mxu1 %v9306_v40  ;;  %v9320_v22 = vand.u32 4294901760, %v9319_v11  ;;  %v16037_v40 = vand.u32 4294901760, %v14824_v55  ;;  %v16038_v11 = vand.u32 4294901760, %v14837_v25  ;;  %v10293_v8 = vpop.f32.mrf.mxu0 }
 0x3be   :  { %9133 = vmatprep.subr.mxu0 %v15995_v23  ;;  %9308 = vmatprep.subr.mxu1 %v15995_v23  ;;  %v9334_v16 = vand.u32 4294901760, %v9333_v51 }
 0x3bf   :  { %9135 = vmatpush2.msra.mxu0 %v14810_v2  ;;  %9314 = vmatpush2.msra.mxu1 %v9313_v49  ;;  %v9160_v3 = vsub.f32 %v14824_v55, %v16037_v40  ;;  %v9152_v2 = vand.u32 4294901760, %v9151_v38  ;;  %v9166_v14 = vsub.f32 %v14837_v25, %v16038_v11  ;;  %v16039_v40 = vand.u32 4294901760, %v14842_v26  ;;  %v10257_v49 = vpop.f32.mrf.mxu1 }
 0x3c0   :  { %9136 = vmatprep.subr.mxu0 %v15995_v23  ;;  %9315 = vmatprep.subr.mxu1 %v15995_v23  ;;  %v16040_v11 = vand.u32 4294901760, %v14856_v18 }
 0x3c1   :  { %9138 = vmatpush2.msra.mxu0 %v14826_v58  ;;  %9321 = vmatpush2.msra.mxu1 %v9320_v22  ;;  %v9340_v58 = vsub.f32 %v14842_v26, %v16039_v40  ;;  %v10294_v22 = vadd.f32 %v10293_v8, %v10292_v17  ;;  %v9161_v55 = vand.u32 4294901760, %v9160_v3  ;;  %v10258_v28 = vpop.f32.mrf.mxu1  ;;  %v9167_v40 = vand.u32 4294901760, %v9166_v14 }
 0x3c2   :  { %9139 = vmatprep.subr.mxu0 %v15995_v23  ;;  %9322 = vmatprep.subr.mxu1 %v15995_v23  ;;  %v9347_v25 = vsub.f32 %v14856_v18, %v16040_v11  ;;  %v10259_v38 = vadd.f32 %v10258_v28, %v10257_v49  ;;  %v10295_v17 = vpop.f32.mrf.mxu0  ;;  %v16041_v8 = vand.u32 4294901760, %v14869_v61 }
 0x3c3   :  { %9141 = vmatpush2.msra.mxu0 %v14839_v4  ;;  %9147 = vmatprep.mubr.f32.mxu0 %v9146_v54  ;;  %v7719_v4 = vadd.f32 %v10294_v22, %v14726_v46 }
 0x3c4   :  { %9328 = vmatpush2.msra.mxu1 %v9327_v41  ;;  %9153 = vmatmul.mubr.f32.vlgmr.msra.gmra.mxu0 %v9152_v2  ;;  %v9341_v2 = vand.u32 4294901760, %v9340_v58  ;;  %v9354_v54 = vsub.f32 %v14869_v61, %v16041_v8  ;;  %v7581_v46 = vadd.f32 %v10259_v38, %v10221_v53  ;;  %v10296_v51 = vpop.f32.mrf.mxu0  ;;  %v9348_v3 = vand.u32 4294901760, %v9347_v25  ;;  %v16042_v8 = vld [vmem:[#allocation97_spill] sm:$0xff] }
 0x3c5   :  { %9329 = vmatprep.subr.mxu1 %v15995_v23  ;;  %9372 = vmatprep.subr.mxu0 %v15995_v23  ;;  %v10297_v28 = vadd.f32 %v10296_v51, %v10295_v17 }
 0x3c6   :  { %9335 = vmatpush2.msra.mxu1 %v9334_v16  ;;  %9375 = vmatpush1.msra.mxu0 %v14528_v47  ;;  %v9355_v58 = vand.u32 4294901760, %v9354_v54  ;;  %v16043_v54 = vld [vmem:[#allocation93_spill] sm:$0xff] }
 0x3c7   :  { %9336 = vmatprep.subr.mxu1 %v15995_v23  ;;  %9376 = vmatprep.subr.mxu0 %v15995_v23  ;;  %v7728_v49 = vadd.f32 %v10297_v28, %v7581_v46  ;;  %v10330_v41 = vpop.f32.mrf.mxu1 }
 0x3c8   :  { %9162 = vmatprep.mubr.f32.mxu0 %v9161_v55  ;;  %9342 = vmatpush2.msra.mxu1 %v9341_v2 }
 0x3c9   :  { %9379 = vmatpush1.msra.mxu0 %v14539_v1  ;;  %9343 = vmatprep.subr.mxu1 %v15995_v23  ;;  %v10331_v55 = vpop.f32.mrf.mxu1 }
 0x3ca   :  { %9168 = vmatmul.mubr.f32.gmra.mxu0 %v9167_v40  ;;  %9380 = vmatprep.subr.mxu0 %v15995_v23  ;;  %v10332_v25 = vadd.f32 %v10331_v55, %v10330_v41  ;;  %v16046_v55 = vld [vmem:[#allocation96_spill] sm:$0xff] }
 0x3cb   :  { %9349 = vmatpush2.msra.mxu1 %v9348_v3  ;;  %9383 = vmatpush1.msra.mxu0 %v14547_v10  ;;  %v16044_v3 = vld [vmem:[#allocation100_spill] sm:$0xff] }
 0x3cc   :  { %9350 = vmatprep.subr.mxu1 %v15995_v23  ;;  %9384 = vmatprep.subr.mxu0 %v15995_v23  ;;  %v7836_v53 = vadd.f32 %v10332_v25, %v7719_v4  ;;  %v10333_v14 = vpop.f32.mrf.mxu1 }
 0x3cd   :  { %9356 = vmatpush2.msra.mxu1 %v9355_v58  ;;  %9358 = vmatprep.mubr.f32.mxu1 %v14755_v63 }
 0x3ce   :  { %9387 = vmatpush1.msra.mxu0 %v14566_v36  ;;  %9360 = vmatmul.mubr.f32.vlgmr.msra.gmra.mxu1 %v14762_v13  ;;  %v10334_v38 = vpop.f32.mrf.mxu1 }
 0x3cf   :  { %9388 = vmatprep.subr.mxu0 %v15995_v23  ;;  %9503 = vmatprep.subr.mxu1 %v15995_v23  ;;  %v10335_v22 = vadd.f32 %v10334_v38, %v10333_v14 }
 0x3d0   :  { %9391 = vmatpush1.msra.mxu0 %v14578_v24  ;;  %9505 = vmatpush1.msra.mxu1 %v14508_v19 }
 0x3d1   :  { %9392 = vmatprep.subr.mxu0 %v15995_v23  ;;  %9506 = vmatprep.subr.mxu1 %v15995_v23  ;;  %v7847_v4 = vadd.f32 %v10335_v22, %v7728_v49  ;;  %v16045_v49 = vld [vmem:[#allocation23_spill] sm:$0xff]  ;;  %v16048_v22 = vld [vmem:[#allocation18_spill] sm:$0xff] }
 0x3d2   :  { %9365 = vmatprep.mubr.f32.mxu1 %v14791_v48  ;;  %9395 = vmatpush1.msra.mxu0 %v14591_v20 }
 0x3d3   :  { %9508 = vmatpush1.msra.mxu1 %v14519_v56  ;;  %9396 = vmatprep.subr.mxu0 %v15995_v23 }
 0x3d4   :  { %9367 = vmatmul.mubr.f32.gmra.mxu1 %v14807_v30  ;;  %9509 = vmatprep.subr.mxu1 %v15995_v23 }
 0x3d5   :  { %9399 = vmatpush1.msra.mxu0 %v14605_v43  ;;  %9511 = vmatpush1.msra.mxu1 %v14525_v9 }
 0x3d6   :  { %9400 = vmatprep.subr.mxu0 %v15995_v23  ;;  %9512 = vmatprep.subr.mxu1 %v15995_v23 }
 0x3d7   :  { %9403 = vmatpush1.msra.mxu0 %v14615_v6  ;;  %9514 = vmatpush1.msra.mxu1 %v14544_v60 }
 0x3d8   :  { %9404 = vmatprep.subr.mxu0 %v15995_v23  ;;  %9515 = vmatprep.subr.mxu1 %v15995_v23 }
 0x3d9   :  { %9407 = vmatpush1.msra.mxu0 %v14630_v44  ;;  %9517 = vmatpush1.msra.mxu1 %v14553_v15 }
 0x3da   :  { %9408 = vmatprep.subr.mxu0 %v15995_v23  ;;  %9518 = vmatprep.subr.mxu1 %v15995_v23 }
 0x3db   :  { %9411 = vmatpush1.msra.mxu0 %v14644_v12  ;;  %9520 = vmatpush1.msra.mxu1 %v14561_v57 }
 0x3dc   :  { %9412 = vmatprep.subr.mxu0 %v15995_v23  ;;  %9521 = vmatprep.subr.mxu1 %v15995_v23 }
 0x3dd   :  { %9415 = vmatpush1.msra.mxu0 %v14657_v35  ;;  %9523 = vmatpush1.msra.mxu1 %v14575_v52 }
 0x3de   :  { %9416 = vmatprep.subr.mxu0 %v15995_v23  ;;  %9524 = vmatprep.subr.mxu1 %v15995_v23 }
 0x3df   :  { %9419 = vmatpush1.msra.mxu0 %v14665_v45  ;;  %9526 = vmatpush1.msra.mxu1 %v14588_v7 }
 0x3e0   :  { %9420 = vmatprep.subr.mxu0 %v15995_v23  ;;  %9527 = vmatprep.subr.mxu1 %v15995_v23 }
 0x3e1   :  { %9423 = vmatpush1.msra.mxu0 %v14680_v31  ;;  %9529 = vmatpush1.msra.mxu1 %v14602_v39 }
 0x3e2   :  { %9424 = vmatprep.subr.mxu0 %v15995_v23  ;;  %9530 = vmatprep.subr.mxu1 %v15995_v23 }
 0x3e3   :  { %9427 = vmatpush1.msra.mxu0 %v14694_v0  ;;  %9532 = vmatpush1.msra.mxu1 %v14612_v59 }
 0x3e4   :  { %9428 = vmatprep.subr.mxu0 %v15995_v23  ;;  %9533 = vmatprep.subr.mxu1 %v15995_v23  ;;  %v10368_v16 = vpop.f32.mrf.mxu0 }
 0x3e5   :  { %9431 = vmatpush1.msra.mxu0 %v14707_v42  ;;  %9535 = vmatpush1.msra.mxu1 %v14627_v29 }
 0x3e6   :  { %9432 = vmatprep.subr.mxu0 %v15995_v23  ;;  %9536 = vmatprep.subr.mxu1 %v15995_v23  ;;  %v10369_v11 = vpop.f32.mrf.mxu0 }
 0x3e7   :  { %9435 = vmatpush1.msra.mxu0 %v14720_v27  ;;  %9538 = vmatpush1.msra.mxu1 %v14638_v50  ;;  %v10370_v40 = vadd.f32 %v10369_v11, %v10368_v16  ;;  %v16049_v11 = vld [vmem:[#allocation21_spill] sm:$0xff] }
 0x3e8   :  { %9452 = vmatprep.subr.mxu0 %v15995_v23  ;;  %9539 = vmatprep.subr.mxu1 %v15995_v23 }
 0x3e9   :  { %9455 = vmatpush2.msra.mxu0 %v14744_v5  ;;  %9541 = vmatpush1.msra.mxu1 %v14652_v21  ;;  %v8015_v17 = vadd.f32 %v10370_v40, %v7836_v53  ;;  %v10371_v2 = vpop.f32.mrf.mxu0  ;;  %v16047_v53 = vld [vmem:[#allocation73_spill] sm:$0xff] }
 0x3ea   :  { %9456 = vmatprep.subr.mxu0 %v15995_v23  ;;  %9542 = vmatprep.subr.mxu1 %v15995_v23 }
 0x3eb   :  { %9459 = vmatpush2.msra.mxu0 %v16042_v8  ;;  %9544 = vmatpush1.msra.mxu1 %v16043_v54  ;;  %v10372_v46 = vpop.f32.mrf.mxu0 }
 0x3ec   :  { %9460 = vmatprep.subr.mxu0 %v15995_v23  ;;  %9545 = vmatprep.subr.mxu1 %v15995_v23  ;;  %v10373_v51 = vadd.f32 %v10372_v46, %v10371_v2  ;;  %v16051_v2 = vand.u32 4294901760, %v14528_v47  ;;  %v16052_v46 = vld [vmem:[#allocation98_spill] sm:$0xff]  ;;  %v16057_v47 = vand.u32 4294901760, %v14547_v10  ;;  %v16062_v10 = vand.u32 4294901760, %v14578_v24 }
 0x3ed   :  { %9463 = vmatpush2.msra.mxu0 %v14785_v62  ;;  %9547 = vmatpush1.msra.mxu1 %v16044_v3  ;;  %v10406_v58 = vpop.f32.mrf.mxu1 }
 0x3ee   :  { %9464 = vmatprep.subr.mxu0 %v15995_v23  ;;  %9548 = vmatprep.subr.mxu1 %v15995_v23  ;;  %v8022_v28 = vadd.f32 %v10373_v51, %v7847_v4  ;;  %v16053_v51 = vld [vmem:[#allocation78_spill] sm:$0xff] }
 0x3ef   :  { %9467 = vmatpush2.msra.mxu0 %v14800_v32  ;;  %9550 = vmatpush1.msra.mxu1 %v16045_v49  ;;  %v10407_v41 = vpop.f32.mrf.mxu1 }
 0x3f0   :  { %9468 = vmatprep.subr.mxu0 %v15995_v23  ;;  %9567 = vmatprep.subr.mxu1 %v15995_v23  ;;  %v10408_v25 = vadd.f32 %v10407_v41, %v10406_v58  ;;  %v16054_v58 = vand.u32 4294901760, %v14539_v1  ;;  %v16055_v41 = vld [vmem:[#allocation62_spill] sm:$0xff]  ;;  %v16059_v1 = vand.u32 4294901760, %v14789_v33 }
 0x3f1   :  { %9471 = vmatpush2.msra.mxu0 %v14818_v34  ;;  %9569 = vmatpush2.msra.mxu1 %v16046_v55 }
 0x3f2   :  { %9472 = vmatprep.subr.mxu0 %v15995_v23  ;;  %9570 = vmatprep.subr.mxu1 %v15995_v23  ;;  %v8126_v14 = vadd.f32 %v10408_v25, %v8015_v17  ;;  %v16050_v17 = vld [vmem:[#allocation106_spill] sm:$0xff] }
 0x3f3   :  { %9475 = vmatpush2.msra.mxu0 %v14842_v26  ;;  %9572 = vmatpush2.msra.mxu1 %v16047_v53  ;;  %v10409_v38 = vpop.f32.mrf.mxu1  ;;  %v16058_v25 = vld [vmem:[#allocation26_spill] sm:$0xff] }
 0x3f4   :  { %9476 = vmatprep.subr.mxu0 %v15995_v23  ;;  %9573 = vmatprep.subr.mxu1 %v15995_v23 }
 0x3f5   :  { %9479 = vmatpush2.msra.mxu0 %v14856_v18  ;;  %9575 = vmatpush2.msra.mxu1 %v16048_v22  ;;  %v10410_v4 = vpop.f32.mrf.mxu1 }
 0x3f6   :  { %9480 = vmatprep.subr.mxu0 %v15995_v23  ;;  %9576 = vmatprep.subr.mxu1 %v15995_v23  ;;  %v10411_v16 = vadd.f32 %v10410_v4, %v10409_v38  ;;  %v16060_v38 = vand.u32 4294901760, %v14566_v36  ;;  %v16061_v4 = vand.u32 4294901760, %v14797_v37  ;;  %v16064_v36 = vand.u32 4294901760, %v14591_v20 }
 0x3f7   :  { %9483 = vmatpush2.msra.mxu0 %v14869_v61  ;;  %9486 = vmatprep.mubr.f32.mxu0 %v14789_v33  ;;  %v16063_v33 = vand.u32 4294901760, %v16052_v46  ;;  %v16067_v20 = vand.u32 4294901760, %v14615_v6  ;;  %v16069_v6 = vand.u32 4294901760, %v14644_v12  ;;  %v16071_v12 = vand.u32 4294901760, %v14665_v45 }
 0x3f8   :  { %9578 = vmatpush2.msra.mxu1 %v16049_v11  ;;  %9489 = vmatmul.mubr.f32.vlgmr.msra.gmra.mxu0 %v14797_v37  ;;  %v8133_v40 = vadd.f32 %v10411_v16, %v8022_v28  ;;  %v16056_v28 = vld [vmem:[#allocation39_spill] sm:$0xff]  ;;  %v16065_v37 = vand.u32 4294901760, %v16055_v41  ;;  %v16073_v45 = vand.u32 4294901760, %v14694_v0  ;;  %v16075_v0 = vand.u32 4294901760, %v14720_v27 }
 0x3f9   :  { %9579 = vmatprep.subr.mxu1 %v15995_v23  ;;  %9614 = vmatprep.subr.mxu0 %v15995_v23  ;;  %v16080_v27 = vand.u32 4294901760, %v14818_v34  ;;  %v16083_v34 = vand.u32 4294901760, %v14869_v61 }
 0x3fa   :  { %9581 = vmatpush2.msra.mxu1 %v16050_v17  ;;  %9618 = vmatpush1.msra.mxu0 %v16051_v2 }
 0x3fb   :  { %9582 = vmatprep.subr.mxu1 %v15995_v23  ;;  %9619 = vmatprep.subr.mxu0 %v15995_v23 }
 0x3fc   :  { %9495 = vmatprep.mubr.f32.mxu0 %v16052_v46  ;;  %9584 = vmatpush2.msra.mxu1 %v16053_v51 }
 0x3fd   :  { %9623 = vmatpush1.msra.mxu0 %v16054_v58  ;;  %9585 = vmatprep.subr.mxu1 %v15995_v23 }
 0x3fe   :  { %9498 = vmatmul.mubr.f32.gmra.mxu0 %v16055_v41  ;;  %9624 = vmatprep.subr.mxu0 %v15995_v23 }
 0x3ff   :  { %9587 = vmatpush2.msra.mxu1 %v16056_v28  ;;  %9628 = vmatpush1.msra.mxu0 %v16057_v47 }
 0x400   :  { %9588 = vmatprep.subr.mxu1 %v15995_v23  ;;  %9629 = vmatprep.subr.mxu0 %v15995_v23 }
 0x401   :  { %9590 = vmatpush2.msra.mxu1 %v16058_v25  ;;  %9594 = vmatprep.mubr.f32.mxu1 %v16059_v1 }
 0x402   :  { %9633 = vmatpush1.msra.mxu0 %v16060_v38  ;;  %9598 = vmatmul.mubr.f32.vlgmr.msra.gmra.mxu1 %v16061_v4 }
 0x403   :  { %9634 = vmatprep.subr.mxu0 %v15995_v23  ;;  %9765 = vmatprep.subr.mxu1 %v15995_v23 }
 0x404   :  { %9638 = vmatpush1.msra.mxu0 %v16062_v10  ;;  %9767 = vmatpush1.msra.mxu1 %v14508_v19  ;;  %v16066_v19 = vand.u32 4294901760, %v14605_v43  ;;  %v16068_v43 = vand.u32 4294901760, %v14630_v44  ;;  %v16070_v44 = vand.u32 4294901760, %v14657_v35  ;;  %v16072_v35 = vand.u32 4294901760, %v14680_v31 }
 0x405   :  { %9639 = vmatprep.subr.mxu0 %v15995_v23  ;;  %9768 = vmatprep.subr.mxu1 %v15995_v23  ;;  %v16074_v31 = vand.u32 4294901760, %v14707_v42  ;;  %v16076_v42 = vand.u32 4294901760, %v14744_v5  ;;  %v16081_v5 = vand.u32 4294901760, %v14842_v26 }
 0x406   :  { %9605 = vmatprep.mubr.f32.mxu1 %v16063_v33  ;;  %9643 = vmatpush1.msra.mxu0 %v16064_v36 }
 0x407   :  { %9770 = vmatpush1.msra.mxu1 %v14519_v56  ;;  %9644 = vmatprep.subr.mxu0 %v15995_v23 }
 0x408   :  { %9609 = vmatmul.mubr.f32.gmra.mxu1 %v16065_v37  ;;  %9771 = vmatprep.subr.mxu1 %v15995_v23  ;;  %v10444_v24 = vpop.f32.mrf.mxu0 }
 0x409   :  { %9648 = vmatpush1.msra.mxu0 %v16066_v19  ;;  %9773 = vmatpush1.msra.mxu1 %v14525_v9 }
 0x40a   :  { %9649 = vmatprep.subr.mxu0 %v15995_v23  ;;  %9774 = vmatprep.subr.mxu1 %v15995_v23  ;;  %v10445_v56 = vpop.f32.mrf.mxu0 }
 0x40b   :  { %9653 = vmatpush1.msra.mxu0 %v16067_v20  ;;  %9776 = vmatpush1.msra.mxu1 %v14544_v60  ;;  %v10446_v16 = vadd.f32 %v10445_v56, %v10444_v24 }
 0x40c   :  { %9654 = vmatprep.subr.mxu0 %v15995_v23  ;;  %9777 = vmatprep.subr.mxu1 %v15995_v23 }
 0x40d   :  { %9658 = vmatpush1.msra.mxu0 %v16068_v43  ;;  %9779 = vmatpush1.msra.mxu1 %v14553_v15  ;;  %v8245_v9 = vadd.f32 %v10446_v16, %v8126_v14  ;;  %v10447_v2 = vpop.f32.mrf.mxu0 }
 0x40e   :  { %9659 = vmatprep.subr.mxu0 %v15995_v23  ;;  %9780 = vmatprep.subr.mxu1 %v15995_v23 }
 0x40f   :  { %9663 = vmatpush1.msra.mxu0 %v16069_v6  ;;  %9782 = vmatpush1.msra.mxu1 %v14561_v57  ;;  %v10448_v60 = vpop.f32.mrf.mxu0 }
 0x410   :  { %9664 = vmatprep.subr.mxu0 %v15995_v23  ;;  %9783 = vmatprep.subr.mxu1 %v15995_v23  ;;  %v10449_v15 = vadd.f32 %v10448_v60, %v10447_v2 }
 0x411   :  { %9668 = vmatpush1.msra.mxu0 %v16070_v44  ;;  %9785 = vmatpush1.msra.mxu1 %v14575_v52 }
 0x412   :  { %9669 = vmatprep.subr.mxu0 %v15995_v23  ;;  %9786 = vmatprep.subr.mxu1 %v15995_v23  ;;  %v8260_v14 = vadd.f32 %v10449_v15, %v8133_v40 }
 0x413   :  { %9673 = vmatpush1.msra.mxu0 %v16071_v12  ;;  %v10482_v57 = vpop.f32.mrf.mxu1  ;;  %9788 = vmatpush1.msra.mxu1 %v14588_v7 }
 0x414   :  { %9674 = vmatprep.subr.mxu0 %v15995_v23  ;;  %9789 = vmatprep.subr.mxu1 %v15995_v23 }
 0x415   :  { %9678 = vmatpush1.msra.mxu0 %v16072_v35  ;;  %v10483_v46 = vpop.f32.mrf.mxu1  ;;  %9791 = vmatpush1.msra.mxu1 %v14602_v39 }
 0x416   :  { %9679 = vmatprep.subr.mxu0 %v15995_v23  ;;  %v10484_v52 = vadd.f32 %v10483_v46, %v10482_v57  ;;  %9792 = vmatprep.subr.mxu1 %v15995_v23 }
 0x417   :  { %9683 = vmatpush1.msra.mxu0 %v16073_v45  ;;  %9794 = vmatpush1.msra.mxu1 %v14612_v59 }
 0x418   :  { %9684 = vmatprep.subr.mxu0 %v15995_v23  ;;  %v8492_v7 = vadd.f32 %v10484_v52, %v8245_v9  ;;  %v10485_v40 = vpop.f32.mrf.mxu1  ;;  %9795 = vmatprep.subr.mxu1 %v15995_v23 }
 0x419   :  { %9688 = vmatpush1.msra.mxu0 %v16074_v31  ;;  %9797 = vmatpush1.msra.mxu1 %v14627_v29  ;;  %v16077_v29 = vand.u32 4294901760, %v16042_v8 }
 0x41a   :  { %9689 = vmatprep.subr.mxu0 %v15995_v23  ;;  %v10486_v39 = vpop.f32.mrf.mxu1  ;;  %9798 = vmatprep.subr.mxu1 %v15995_v23 }
 0x41b   :  { %9693 = vmatpush1.msra.mxu0 %v16075_v0  ;;  %v10487_v59 = vadd.f32 %v10486_v39, %v10485_v40  ;;  %9800 = vmatpush1.msra.mxu1 %v14638_v50  ;;  %v16078_v50 = vand.u32 4294901760, %v14785_v62  ;;  %v16082_v62 = vand.u32 4294901760, %v14856_v18 }
 0x41c   :  { %9710 = vmatprep.subr.mxu0 %v15995_v23  ;;  %9801 = vmatprep.subr.mxu1 %v15995_v23 }
 0x41d   :  { %9714 = vmatpush2.msra.mxu0 %v16076_v42  ;;  %v8499_v58 = vadd.f32 %v10487_v59, %v8260_v14  ;;  %9803 = vmatpush1.msra.mxu1 %v14652_v21  ;;  %v16079_v21 = vand.u32 4294901760, %v14800_v32 }
 0x41e   :  { %9715 = vmatprep.subr.mxu0 %v15995_v23  ;;  %9804 = vmatprep.subr.mxu1 %v15995_v23 }
 0x41f   :  { %9719 = vmatpush2.msra.mxu0 %v16077_v29  ;;  %9806 = vmatpush1.msra.mxu1 %v16043_v54 }
 0x420   :  { %9720 = vmatprep.subr.mxu0 %v15995_v23  ;;  %9807 = vmatprep.subr.mxu1 %v15995_v23 }
 0x421   :  { %9724 = vmatpush2.msra.mxu0 %v16078_v50  ;;  %9809 = vmatpush1.msra.mxu1 %v16044_v3 }
 0x422   :  { %9725 = vmatprep.subr.mxu0 %v15995_v23  ;;  %9810 = vmatprep.subr.mxu1 %v15995_v23 }
 0x423   :  { %9729 = vmatpush2.msra.mxu0 %v16079_v21  ;;  %9812 = vmatpush1.msra.mxu1 %v16045_v49 }
 0x424   :  { %9730 = vmatprep.subr.mxu0 %v15995_v23  ;;  %9829 = vmatprep.subr.mxu1 %v15995_v23 }
 0x425   :  { %9734 = vmatpush2.msra.mxu0 %v16080_v27  ;;  %9831 = vmatpush2.msra.mxu1 %v16046_v55 }
 0x426   :  { %9735 = vmatprep.subr.mxu0 %v15995_v23  ;;  %9832 = vmatprep.subr.mxu1 %v15995_v23 }
 0x427   :  { %9739 = vmatpush2.msra.mxu0 %v16081_v5  ;;  %9834 = vmatpush2.msra.mxu1 %v16047_v53  ;;  %v9874_v5 = vstv %s15163_s5  ;;  %s10874_s5 = smov [#allocation3]  }
 0x428   :  { %9740 = vmatprep.subr.mxu0 %v15995_v23  ;;  %9835 = vmatprep.subr.mxu1 %v15995_v23  ;;  %s9920_s1 = sshll.u32 %s10874_s5, 4  ;;  %s9921_s1 = int_to_ptr.vmem [resolvable:$true] %s9920_s1 }
 0x429   :  { %9744 = vmatpush2.msra.mxu0 %v16082_v62  ;;  %9837 = vmatpush2.msra.mxu1 %v16048_v22  ;;  %s10850_s7 = scalar_lea.vmem %s9921_s1, 256  ;;  %p10855_p1 = scmp.lt.s32.totalorder %s9921_s1, %s9921_s1 }
 0x42a   :  { %9745 = vmatprep.subr.mxu0 %v15995_v23  ;;  %9838 = vmatprep.subr.mxu1 %v15995_v23  ;;  %p10851_p0 = scmp.ne.s32.totalorder %s9921_s1, %s10850_s7  ;;  %p10856_p2 = scmp.lt.s32.totalorder %s10850_s7, %s10850_s7 }
 0x42b   :  { %9749 = vmatpush2.msra.mxu0 %v16083_v34  ;;  %9751 = vmatprep.mubr.f32.mxu0 %v14755_v63 }
 0x42c   :  { %9840 = vmatpush2.msra.mxu1 %v16049_v11  ;;  %9753 = vmatmul.mubr.f32.vlgmr.msra.gmra.mxu0 %v14762_v13  ;;  %v10520_v26 = vpop.f32.mrf.mxu0  ;;  %p10857_p3 = por %p10856_p2, %p10855_p1 }
 0x42d   :  { %9841 = vmatprep.subr.mxu1 %v15995_v23  ;;  %9758 = vmatprep.mubr.f32.mxu0 %v14791_v48 }
 0x42e   :  { %9843 = vmatpush2.msra.mxu1 %v16050_v17  ;;  %9854 = vmatprep.mubr.f32.mxu1 %v14755_v63  ;;  %v10521_v18 = vpop.f32.mrf.mxu0  ;;  %p10858_p4 = pnand %p10857_p3, %p10851_p0 }
 0x42f   :  { %9844 = vmatprep.subr.mxu1 %v15995_v23  ;;  %v10522_v61 = vadd.f32 %v10521_v18, %v10520_v26  ;;  %v16084_v26 = vld [vmem:[#allocation6_spill] sm:$0xff] }
 0x430   :  { %9846 = vmatpush2.msra.mxu1 %v16053_v51  ;;  %9760 = vmatmul.mubr.f32.gmra.mxu0 %v14807_v30  ;;  %vm9868_vm2 = vcmp.eq.s32.totalorder %v16084_v26, 2  ;;  %vm9870_vm3 = vcmp.eq.s32.totalorder %v16084_v26, 3  ;;  %vm9881_vm4 = vcmp.eq.s32.totalorder %v16084_v26, 6  ;;  %vm9883_vm5 = vcmp.eq.s32.totalorder %v16084_v26, 7 }
 0x431   :  { %9847 = vmatprep.subr.mxu1 %v15995_v23  ;;  %v8637_v32 = vadd.f32 %v10522_v61, %v8492_v7  ;;  %vm9872_vm6 = vmor %vm9868_vm2, %vm9870_vm3 }
 0x432   :  { %9849 = vmatpush2.msra.mxu1 %v16056_v28  ;;  %v10523_v8 = vpop.f32.mrf.mxu0  ;;  %vm9885_vm7 = vmor %vm9881_vm4, %vm9883_vm5 }
 0x433   :  { %9850 = vmatprep.subr.mxu1 %v15995_v23 }
 0x434   :  { %9852 = vmatpush2.msra.mxu1 %v16058_v25  ;;  %v10524_v54 = vpop.f32.mrf.mxu0 }
 0x435   :  { %9856 = vmatmul.mubr.f32.vlgmr.msra.gmra.mxu1 %v14762_v13  ;;  %v10525_v63 = vadd.f32 %v10524_v54, %v10523_v8 }
 0x436   :  { %9861 = vmatprep.mubr.f32.mxu1 %v14791_v48  ;;  %v10558_v49 = vpop.f32.mrf.mxu1 }
 0x437   :  { %v8646_v3 = vadd.f32 %v10525_v63, %v8499_v58 }
 0x438   :  { %v10559_v55 = vpop.f32.mrf.mxu1 }
 0x439   :  { %9863 = vmatmul.mubr.f32.gmra.mxu1 %v14807_v30  ;;  %v10560_v53 = vadd.f32 %v10559_v55, %v10558_v49  ;;  %v16085_v55 = vld [vmem:[#allocation7_spill] sm:$0xff] }
 0x43a   :  { %vm9902_vm8 = vcmp.ge.s32.totalorder %v16085_v55, 11  ;;  %vm9904_vm9 = vcmp.le.s32.totalorder %v16085_v55, 13  ;;  %vm9894_vm10 = vcmp.eq.s32.totalorder %v16085_v55, 8 }
 0x43b   :  { %v8754_v22 = vadd.f32 %v10560_v53, %v8637_v32  ;;  %vm9906_vm11 = vmand %vm9902_vm8, %vm9904_vm9 }
 0x43c   :  { %v10561_v11 = vpop.f32.mrf.mxu1 }
 0x43e   :  { %v10562_v17 = vpop.f32.mrf.mxu1 }
 0x43f   :  { %v10563_v51 = vadd.f32 %v10562_v17, %v10561_v11 }
 0x441   :  { %v8765_v41 = vadd.f32 %v10563_v51, %v8646_v3 }
 0x450   :  { %v10596_v23 = vpop.f32.mrf.mxu0 }
 0x452   :  { %v10597_v28 = vpop.f32.mrf.mxu0 }
 0x453   :  { %v10598_v47 = vadd.f32 %v10597_v28, %v10596_v23 }
 0x455   :  { %v8933_v25 = vadd.f32 %v10598_v47, %v8754_v22 }
 0x456   :  { %v10599_v1 = vpop.f32.mrf.mxu0 }
 0x458   :  { %v10600_v13 = vpop.f32.mrf.mxu0 }
 0x459   :  { %v10601_v38 = vadd.f32 %v10600_v13, %v10599_v1 }
 0x45a   :  { %v10634_v48 = vpop.f32.mrf.mxu1 }
 0x45b   :  { %v8940_v4 = vadd.f32 %v10601_v38, %v8765_v41 }
 0x45c   :  { %v10635_v10 = vpop.f32.mrf.mxu1 }
 0x45d   :  { %v10636_v33 = vadd.f32 %v10635_v10, %v10634_v48 }
 0x45f   :  { %v9044_v30 = vadd.f32 %v10636_v33, %v8933_v25 }
 0x460   :  { %v10637_v36 = vpop.f32.mrf.mxu1 }
 0x462   :  { %v10638_v37 = vpop.f32.mrf.mxu1 }
 0x463   :  { %v10639_v19 = vadd.f32 %v10638_v37, %v10637_v36 }
 0x465   :  { %v9051_v24 = vadd.f32 %v10639_v19, %v8940_v4 }
 0x484   :  { %v9154_v20 = vpop.f32.mrf.mxu0 }
 0x485   :  { %v9155_v56 = vadd.f32 %v9154_v20, %v9044_v30 }
 0x486   :  { %v9156_v16 = vpop.f32.mrf.mxu0 }
 0x48a   :  { %v9169_v43 = vpop.f32.mrf.mxu0 }
 0x48b   :  { %v9170_v9 = vadd.f32 %v9169_v43, %v9051_v24 }
 0x48c   :  { %v9171_v2 = vpop.f32.mrf.mxu0 }
 0x48e   :  { %v9361_v6 = vpop.f32.mrf.mxu1 }
 0x48f   :  { %v9362_v60 = vadd.f32 %v9361_v6, %v9155_v56 }
 0x490   :  { %v9363_v44 = vpop.f32.mrf.mxu1 }
 0x494   :  { %v9368_v15 = vpop.f32.mrf.mxu1 }
 0x495   :  { %v9369_v12 = vadd.f32 %v9368_v15, %v9170_v9 }
 0x496   :  { %v9370_v14 = vpop.f32.mrf.mxu1 }
 0x4b8   :  { %v9490_v57 = vpop.f32.mrf.mxu0 }
 0x4b9   :  { %v9491_v59 = vadd.f32 %v9490_v57, %v9362_v60 }
 0x4ba   :  { %v9492_v35 = vpop.f32.mrf.mxu0 }
 0x4be   :  { %v9499_v46 = vpop.f32.mrf.mxu0 }
 0x4bf   :  { %v9500_v50 = vadd.f32 %v9499_v46, %v9369_v12 }
 0x4c0   :  { %v9501_v52 = vpop.f32.mrf.mxu0 }
 0x4c2   :  { %v9599_v45 = vpop.f32.mrf.mxu1 }
 0x4c3   :  { %v9600_v58 = vadd.f32 %v9599_v45, %v9491_v59 }
 0x4c4   :  { %v9601_v7 = vpop.f32.mrf.mxu1 }
 0x4c8   :  { %v9610_v40 = vpop.f32.mrf.mxu1 }
 0x4c9   :  { %v9611_v62 = vadd.f32 %v9610_v40, %v9500_v50 }
 0x4ca   :  { %v9612_v31 = vpop.f32.mrf.mxu1 }
 0x4ec   :  { %v9754_v39 = vpop.f32.mrf.mxu0 }
 0x4ed   :  { %v9755_v21 = vadd.f32 %v9754_v39, %v9600_v58 }
 0x4ee   :  { %v9756_v0 = vpop.f32.mrf.mxu0 }
 0x4f0   :  { %v9761_v42 = vpop.f32.mrf.mxu0 }
 0x4f1   :  { %v9762_v61 = vadd.f32 %v9761_v42, %v9611_v62 }
 0x4f2   :  { %v9763_v29 = vpop.f32.mrf.mxu0 }
 0x4f5   :  { %v9857_v27 = vpop.f32.mrf.mxu1 }
 0x4f6   :  { %v9858_v34 = vadd.f32 %v9857_v27, %v9755_v21 }
 0x4f7   :  { %v9859_v18 = vpop.f32.mrf.mxu1 }
 0x4f8   :  { %v9875_v32 = vsub.f32 %v9874_v5, %v9858_v34  ;;  %v9887_v8 = vadd.f32 1.0, %v9858_v34 }
 0x4f9   :  { %v9864_v54 = vpop.f32.mrf.mxu1 }
 0x4fa   :  { %v9877_v63 = vmax.f32 %v9875_v32, 0.0  ;;  %v9889_v3 = vmax.f32 %v9887_v8, 0.0  ;;  %v9865_v49 = vadd.f32 %v9864_v54, %v9762_v61 }
 0x4fb   :  { %v9866_v53 = vpop.f32.mrf.mxu1 }
 0x4fc   :  { %v9879_v22 = vsel %vm9872_vm6, %v9877_v63, %v9858_v34  ;;  %v10057_v11 = vadd.f32 -1.0, %v9865_v49  ;;  %v9908_v17 = vsub.f32 1.0, %v9865_v49 }
 0x4fd   :  { %v9891_v51 = vsel %vm9885_vm7, %v9889_v3, %v9879_v22 }
 0x4fe   :  { %9913 = vst [vmem:[#allocation3] sm:$0xff] %v9891_v51  ;;  %v9898_v41 = vmul.f32 %v10057_v11, %v10057_v11  ;;  %v9910_v23 = vmax.f32 %v9908_v17, 0.0 }
 0x500   :  { %v9900_v28 = vsel %vm9894_vm10, %v9898_v41, %v9865_v49 }
 0x501   :  { %v9912_v47 = vsel %vm9906_vm11, %v9910_v23, %v9900_v28 }
 0x502   :  { %9914 = vst [vmem:[#allocation3 + $0x8] sm:$0xff] %v9912_v47 }
 0x503   :  { %10861 = shalt.err (!%p10858_p4)
}
 0x504   :  { %s10875_s8 = smov 128   ;;  %s10876_s0 = smov 8  }
 0x505   :  { %9926 = dma.vmem_to_hbm [thread:$0]  %s9921_s1, 256, %s15164_s6, [#allocation4], %s10875_s8, %s10875_s8, %s10876_s0  }
 0x506   :  { %10870 = dma.done.wait [#allocation4], 256  }
 0x507   :  { %10871 = vsyncadd [#allocation4], 4294967040 }
 0x508   :  { %9930 = vsyncpa [#allocation4], 1 }

</bundles_post_ra>
